<compile_context>
chip_gen: v5e
topology: v5e:2x2
jax: 0.10.0
libtpu: 0.0.40
codegen_flags: <defaults>
</compile_context>

<pallas_src>
import math
import functools

import jax
import jax.numpy as jnp
from jax.experimental import pallas as pl
from jax.experimental.pallas import tpu as pltpu

NEG = -1e9  # large negative instead of -inf (avoids NaN on fully-masked rows)


# --------------------- in-kernel helpers (values, not refs) ------------------

def _mm(a, w):
    """MXU matmul: bf16 operands, f32 accumulation."""
    return jnp.dot(a.astype(jnp.bfloat16), w.astype(jnp.bfloat16),
                   preferred_element_type=jnp.float32)


def _ln(y, g, b, eps=1e-5):
    """LayerNorm over the last dim, f32 statistics."""
    mu = jnp.mean(y, axis=-1, keepdims=True)
    yc = y - mu
    var = jnp.mean(yc * yc, axis=-1, keepdims=True)
    return yc * jax.lax.rsqrt(var + eps) * g + b


def _mha(q3, k3, v3, mask, wo, bo, nhead):
    """Multi-head attention with in-VMEM head split.

    q3: (B, Lq, D) f32; k3/v3: (B, Lk, D) f32; mask: (B, Lq, Lk) additive f32;
    wo: (D, D) bf16; bo: (1, D) f32.
    Returns the output-projected context (B*Lq, D) f32, using
      concat_h(o_h) @ Wo == sum_h o_h @ Wo[h*dh:(h+1)*dh, :]
    so no lane-dim concatenation is needed.
    """
    B, Lq, D = q3.shape
    dh = D // nhead
    scale = 1.0 / math.sqrt(dh)
    out = None
    for h in range(nhead):                       # static python loop, nhead=4
        sl = slice(h * dh, (h + 1) * dh)
        qh = (q3[:, :, sl] * scale).astype(jnp.bfloat16)
        kh = k3[:, :, sl].astype(jnp.bfloat16)
        vh = v3[:, :, sl].astype(jnp.bfloat16)
        s = jnp.einsum('bqd,bkd->bqk', qh, kh,
                       preferred_element_type=jnp.float32) + mask
        s_max = jnp.max(s, axis=-1, keepdims=True)
        p = jnp.exp(s - s_max)
        p = p * pl.reciprocal(jnp.sum(p, axis=-1, keepdims=True), approx=True)
        oh = jnp.einsum('bqk,bkd->bqd', p.astype(jnp.bfloat16), vh,
                        preferred_element_type=jnp.float32)       # (B, Lq, dh)
        proj = _mm(oh.reshape(B * Lq, dh), wo[sl, :])             # (B*Lq, D)
        out = proj if out is None else out + proj
    return out + bo


# ------------------------------ fused kernels --------------------------------

def _enc_layer_kernel(x_ref, mask_ref,
                      wqkv_ref, bqkv_ref, wo_ref, bo_ref,
                      ln1g_ref, ln1b_ref,
                      w1_ref, b1_ref, w2_ref, b2_ref,
                      ln2g_ref, ln2b_ref,
                      o_ref, *, nhead):
    B, L, D = x_ref.shape
    x2 = x_ref[...].reshape(B * L, D)

    # packed QKV projection (one MXU pass) + self-attention
    qkv = (_mm(x2, wqkv_ref[...]) + bqkv_ref[...]).reshape(B, L, 3 * D)
    sa = _mha(qkv[:, :, :D], qkv[:, :, D:2 * D], qkv[:, :, 2 * D:],
              mask_ref[...], wo_ref[...], bo_ref[...], nhead)
    h1 = _ln(x2 + sa, ln1g_ref[...], ln1b_ref[...])

    # feed-forward (ReLU)
    ff = jnp.maximum(_mm(h1, w1_ref[...]) + b1_ref[...], 0.0)
    ff = _mm(ff, w2_ref[...]) + b2_ref[...]
    h2 = _ln(h1 + ff, ln2g_ref[...], ln2b_ref[...])

    o_ref[...] = h2.reshape(B, L, D)


def _dec_layer_kernel(y_ref, mem_ref, tmask_ref, mmask_ref,
                      wqkv_ref, bqkv_ref, wos_ref, bos_ref,
                      ln1g_ref, ln1b_ref,
                      wqc_ref, bqc_ref, wkvc_ref, bkvc_ref, woc_ref, boc_ref,
                      ln2g_ref, ln2b_ref,
                      w1_ref, b1_ref, w2_ref, b2_ref,
                      ln3g_ref, ln3b_ref,
                      o_ref, *, nhead):
    B, Lt, D = y_ref.shape
    Ls = mem_ref.shape[1]
    y2 = y_ref[...].reshape(B * Lt, D)
    mem2 = mem_ref[...].reshape(B * Ls, D)

    # masked self-attention (packed QKV)
    qkv = (_mm(y2, wqkv_ref[...]) + bqkv_ref[...]).reshape(B, Lt, 3 * D)
    sa = _mha(qkv[:, :, :D], qkv[:, :, D:2 * D], qkv[:, :, 2 * D:],
              tmask_ref[...], wos_ref[...], bos_ref[...], nhead)
    h1 = _ln(y2 + sa, ln1g_ref[...], ln1b_ref[...])

    # cross-attention (Q from decoder, packed K/V from encoder memory)
    q3 = (_mm(h1, wqc_ref[...]) + bqc_ref[...]).reshape(B, Lt, D)
    kv = (_mm(mem2, wkvc_ref[...]) + bkvc_ref[...]).reshape(B, Ls, 2 * D)
    ca = _mha(q3, kv[:, :, :D], kv[:, :, D:],
              mmask_ref[...], woc_ref[...], boc_ref[...], nhead)
    h2 = _ln(h1 + ca, ln2g_ref[...], ln2b_ref[...])

    # feed-forward (ReLU)
    ff = jnp.maximum(_mm(h2, w1_ref[...]) + b1_ref[...], 0.0)
    ff = _mm(ff, w2_ref[...]) + b2_ref[...]
    h3 = _ln(h2 + ff, ln3g_ref[...], ln3b_ref[...])

    o_ref[...] = h3.reshape(B, Lt, D)


def _ln_kernel(x_ref, g_ref, b_ref, o_ref):
    # pure LayerNorm (final encoder norm) — no zero-residual DMA.
    o_ref[...] = _ln(x_ref[...], g_ref[...], b_ref[...])


def _ln_fc_kernel(x_ref, g_ref, b_ref, w_ref, bias_ref, o_ref):
    # final decoder LayerNorm fused with the vocab projection.
    h = _ln(x_ref[...], g_ref[...], b_ref[...])
    o_ref[...] = _mm(h, w_ref[...]) + bias_ref[...]


# ------------------------------- wrappers -------------------------------------

def _full_spec(shape):
    nd = len(shape)
    return pl.BlockSpec(shape, lambda i, _nd=nd: (0,) * _nd)


def _pcall(kernel, out_shape, *args):
    return pl.pallas_call(
        kernel,
        out_shape=jax.ShapeDtypeStruct(out_shape, jnp.float32),
        grid=(1,),
        in_specs=[_full_spec(a.shape) for a in args],
        out_specs=_full_spec(out_shape),
        compiler_params=pltpu.CompilerParams(
            dimension_semantics=("arbitrary",)),
    )(*args)


# ------------------------------- forward --------------------------------------

def couplets_transformer_forward(params, src, tgt, d_model, nhead,
                                 padding_value=0):
    B, Ls = src.shape
    Lt = tgt.shape[1]
    scale = math.sqrt(d_model)

    # token embedding * sqrt(d_model) + positional encoding (plain-JAX glue)
    src_e = (jnp.take(params['emb'], src, axis=0) * scale
             + params['pe'][:Ls]).astype(jnp.float32)
    tgt_e = (jnp.take(params['emb'], tgt, axis=0) * scale
             + params['pe'][:Lt]).astype(jnp.float32)

    # additive masks at (B, Lq, Lk) — shared by all heads inside the kernels
    src_add = jnp.where(src == padding_value, NEG, 0.0).astype(jnp.float32)
    tgt_add = jnp.where(tgt == padding_value, NEG, 0.0).astype(jnp.float32)
    enc_mask = jnp.broadcast_to(src_add[:, None, :], (B, Ls, Ls))
    causal = jnp.where(jnp.triu(jnp.ones((Lt, Lt), dtype=bool), k=1), NEG, 0.0)
    dec_mask = jnp.maximum(causal[None, :, :] + tgt_add[:, None, :], NEG)
    mem_mask = jnp.broadcast_to(src_add[:, None, :], (B, Lt, Ls))

    # ---------------- encoder: one fused pallas_call per layer ----------------
    x = src_e
    enc_kernel = functools.partial(_enc_layer_kernel, nhead=nhead)
    for lp in params['enc_layers']:
        x = _pcall(enc_kernel, (B, Ls, d_model),
                   x, enc_mask,
                   lp['wqkv'], lp['bqkv'], lp['wo'], lp['bo'],
                   lp['ln1_g'], lp['ln1_b'],
                   lp['w1'], lp['b1'], lp['w2'], lp['b2'],
                   lp['ln2_g'], lp['ln2_b'])
    memory = _pcall(_ln_kernel, (B * Ls, d_model),
                    x.reshape(B * Ls, d_model),
                    params['enc_norm_g'], params['enc_norm_b']
                    ).reshape(B, Ls, d_model)

    # ---------------- decoder: one fused pallas_call per layer ----------------
    y = tgt_e
    dec_kernel = functools.partial(_dec_layer_kernel, nhead=nhead)
    for lp in params['dec_layers']:
        y = _pcall(dec_kernel, (B, Lt, d_model),
                   y, memory, dec_mask, mem_mask,
                   lp['wqkv'], lp['bqkv'], lp['wo_s'], lp['bo_s'],
                   lp['ln1_g'], lp['ln1_b'],
                   lp['wq_c'], lp['bq_c'], lp['wkv_c'], lp['bkv_c'],
                   lp['wo_c'], lp['bo_c'],
                   lp['ln2_g'], lp['ln2_b'],
                   lp['w1'], lp['b1'], lp['w2'], lp['b2'],
                   lp['ln3_g'], lp['ln3_b'])

    # final decoder LayerNorm fused with the vocab projection
    vocab = params['fc_w'].shape[1]
    logits = _pcall(_ln_fc_kernel, (B * Lt, vocab),
                    y.reshape(B * Lt, d_model),
                    params['dec_norm_g'], params['dec_norm_b'],
                    params['fc_w'], params['fc_b'])
    return logits.reshape(B, Lt, vocab)


# --------------------------------- init ---------------------------------------

def _xavier(key, shape):
    fan_in, fan_out = shape
    a = math.sqrt(6.0 / (fan_in + fan_out))
    return jax.random.uniform(key, shape, jnp.float32, -a, a)


def _init_attn_packed(key, d):
    ks = jax.random.split(key, 4)
    wq, wk, wv = (_xavier(ks[i], (d, d)) for i in range(3))
    return dict(
        wqkv=jnp.concatenate([wq, wk, wv], axis=1).astype(jnp.bfloat16),
        bqkv=jnp.zeros((1, 3 * d), jnp.float32),
        wo=_xavier(ks[3], (d, d)).astype(jnp.bfloat16),
        bo=jnp.zeros((1, d), jnp.float32),
    )


def _init_enc_layer(key, d, ff):
    k1, k2, k3 = jax.random.split(key, 3)
    a = _init_attn_packed(k1, d)
    return dict(
        wqkv=a['wqkv'], bqkv=a['bqkv'], wo=a['wo'], bo=a['bo'],
        w1=_xavier(k2, (d, ff)).astype(jnp.bfloat16),
        b1=jnp.zeros((1, ff), jnp.float32),
        w2=_xavier(k3, (ff, d)).astype(jnp.bfloat16),
        b2=jnp.zeros((1, d), jnp.float32),
        ln1_g=jnp.ones((1, d), jnp.float32), ln1_b=jnp.zeros((1, d), jnp.float32),
        ln2_g=jnp.ones((1, d), jnp.float32), ln2_b=jnp.zeros((1, d), jnp.float32),
    )


def _init_dec_layer(key, d, ff):
    k1, k2, k3, k4, k5, k6, k7 = jax.random.split(key, 7)
    sa = _init_attn_packed(k1, d)
    wk_c, wv_c = _xavier(k3, (d, d)), _xavier(k4, (d, d))
    return dict(
        wqkv=sa['wqkv'], bqkv=sa['bqkv'], wo_s=sa['wo'], bo_s=sa['bo'],
        wq_c=_xavier(k2, (d, d)).astype(jnp.bfloat16),
        bq_c=jnp.zeros((1, d), jnp.float32),
        wkv_c=jnp.concatenate([wk_c, wv_c], axis=1).astype(jnp.bfloat16),
        bkv_c=jnp.zeros((1, 2 * d), jnp.float32),
        wo_c=_xavier(k5, (d, d)).astype(jnp.bfloat16),
        bo_c=jnp.zeros((1, d), jnp.float32),
        w1=_xavier(k6, (d, ff)).astype(jnp.bfloat16),
        b1=jnp.zeros((1, ff), jnp.float32),
        w2=_xavier(k7, (ff, d)).astype(jnp.bfloat16),
        b2=jnp.zeros((1, d), jnp.float32),
        ln1_g=jnp.ones((1, d), jnp.float32), ln1_b=jnp.zeros((1, d), jnp.float32),
        ln2_g=jnp.ones((1, d), jnp.float32), ln2_b=jnp.zeros((1, d), jnp.float32),
        ln3_g=jnp.ones((1, d), jnp.float32), ln3_b=jnp.zeros((1, d), jnp.float32),
    )


def make_pe(max_len, d_model):
    position = jnp.arange(max_len, dtype=jnp.float32)[:, None]
    div_term = jnp.exp(jnp.arange(0, d_model, 2, dtype=jnp.float32)
                       * (-math.log(10000.0) / d_model))
    pe = jnp.zeros((max_len, d_model), jnp.float32)
    pe = pe.at[:, 0::2].set(jnp.sin(position * div_term))
    pe = pe.at[:, 1::2].set(jnp.cos(position * div_term))
    return pe


def init_params(key, vocab_size, d_model, nhead, n_enc, n_dec, ff, max_len=64):
    keys = jax.random.split(key, 2 + n_enc + n_dec)
    return dict(
        emb=_xavier(keys[0], (vocab_size, d_model)),
        pe=make_pe(max_len, d_model),
        enc_layers=[_init_enc_layer(keys[2 + i], d_model, ff)
                    for i in range(n_enc)],
        dec_layers=[_init_dec_layer(keys[2 + n_enc + i], d_model, ff)
                    for i in range(n_dec)],
        enc_norm_g=jnp.ones((1, d_model), jnp.float32),
        enc_norm_b=jnp.zeros((1, d_model), jnp.float32),
        dec_norm_g=jnp.ones((1, d_model), jnp.float32),
        dec_norm_b=jnp.zeros((1, d_model), jnp.float32),
        fc_w=_xavier(keys[1], (d_model, vocab_size)).astype(jnp.bfloat16),
        fc_b=jnp.zeros((1, vocab_size), jnp.float32),
    )


# --------------------------------- main ----------------------------------------

if __name__ == "__main__":
    vocab_size = 32
    d_model = 32
    nhead = 4
    num_encoder_layers = 2
    num_decoder_layers = 2
    dim_feedforward = 64
    B, Ls, Lt = 2, 8, 8

    root = jax.random.PRNGKey(0)
    kp, ks, kt = jax.random.split(root, 3)

    params = init_params(kp, vocab_size, d_model, nhead,
                         num_encoder_layers, num_decoder_layers,
                         dim_feedforward)

    src = jax.random.randint(ks, (B, Ls), 1, vocab_size, dtype=jnp.int32)
    tgt = jax.random.randint(kt, (B, Lt), 1, vocab_size, dtype=jnp.int32)
    # trailing padding tokens (padding_value = 0)
    src = src.at[:, -2:].set(0)
    tgt = tgt.at[:, -2:].set(0)

    fwd = jax.jit(functools.partial(couplets_transformer_forward,
                                    d_model=d_model, nhead=nhead,
                                    padding_value=0))
    logits = fwd(params, src, tgt)
    jax.block_until_ready(logits)
    assert logits.shape == (B, Lt, vocab_size)
    assert bool(jnp.all(jnp.isfinite(logits)))
    print("KERNEL_OK")
</pallas_src>

<mosaic_0001>
module attributes {stable_mosaic.version = 11 : i64} {
  func.func @_enc_layer_kernel(%arg0: i32, %arg1: memref<2x8x32xf32, #tpu.memory_space<vmem>>, %arg2: memref<2x8x8xf32, #tpu.memory_space<vmem>>, %arg3: memref<32x96xbf16, #tpu.memory_space<vmem>>, %arg4: memref<1x96xf32, #tpu.memory_space<vmem>>, %arg5: memref<32x32xbf16, #tpu.memory_space<vmem>>, %arg6: memref<1x32xf32, #tpu.memory_space<vmem>>, %arg7: memref<1x32xf32, #tpu.memory_space<vmem>>, %arg8: memref<1x32xf32, #tpu.memory_space<vmem>>, %arg9: memref<32x64xbf16, #tpu.memory_space<vmem>>, %arg10: memref<1x64xf32, #tpu.memory_space<vmem>>, %arg11: memref<64x32xbf16, #tpu.memory_space<vmem>>, %arg12: memref<1x32xf32, #tpu.memory_space<vmem>>, %arg13: memref<1x32xf32, #tpu.memory_space<vmem>>, %arg14: memref<1x32xf32, #tpu.memory_space<vmem>>, %arg15: memref<2x8x32xf32, #tpu.memory_space<vmem>>) attributes {dimension_semantics = [#tpu.dimension_semantics<arbitrary>], iteration_bounds = array<i64: 1>, scalar_prefetch = 0 : i64, scratch_operands = 0 : i64, tpu.core_type = #tpu.core_type<tc>, window_params = [{pipeline_mode = #tpu.pipeline_mode<synchronous>, transform_indices = @transform_0, window_bounds = array<i64: 2, 8, 32>}, {pipeline_mode = #tpu.pipeline_mode<synchronous>, transform_indices = @transform_1, window_bounds = array<i64: 2, 8, 8>}, {pipeline_mode = #tpu.pipeline_mode<synchronous>, transform_indices = @transform_2, window_bounds = array<i64: 32, 96>}, {pipeline_mode = #tpu.pipeline_mode<synchronous>, transform_indices = @transform_3, window_bounds = array<i64: 1, 96>}, {pipeline_mode = #tpu.pipeline_mode<synchronous>, transform_indices = @transform_4, window_bounds = array<i64: 32, 32>}, {pipeline_mode = #tpu.pipeline_mode<synchronous>, transform_indices = @transform_5, window_bounds = array<i64: 1, 32>}, {pipeline_mode = #tpu.pipeline_mode<synchronous>, transform_indices = @transform_6, window_bounds = array<i64: 1, 32>}, {pipeline_mode = #tpu.pipeline_mode<synchronous>, transform_indices = @transform_7, window_bounds = array<i64: 1, 32>}, {pipeline_mode = #tpu.pipeline_mode<synchronous>, transform_indices = @transform_8, window_bounds = array<i64: 32, 64>}, {pipeline_mode = #tpu.pipeline_mode<synchronous>, transform_indices = @transform_9, window_bounds = array<i64: 1, 64>}, {pipeline_mode = #tpu.pipeline_mode<synchronous>, transform_indices = @transform_10, window_bounds = array<i64: 64, 32>}, {pipeline_mode = #tpu.pipeline_mode<synchronous>, transform_indices = @transform_11, window_bounds = array<i64: 1, 32>}, {pipeline_mode = #tpu.pipeline_mode<synchronous>, transform_indices = @transform_12, window_bounds = array<i64: 1, 32>}, {pipeline_mode = #tpu.pipeline_mode<synchronous>, transform_indices = @transform_13, window_bounds = array<i64: 1, 32>}, {pipeline_mode = #tpu.pipeline_mode<synchronous>, transform_indices = @transform_14, window_bounds = array<i64: 2, 8, 32>}]} {
    %c0 = arith.constant 0 : index
    %c0_0 = arith.constant 0 : index
    %c0_1 = arith.constant 0 : index
    %0 = vector.load %arg1[%c0, %c0_0, %c0_1] : memref<2x8x32xf32, #tpu.memory_space<vmem>>, vector<2x8x32xf32>
    %1 = vector.shape_cast %0 : vector<2x8x32xf32> to vector<16x32xf32>
    %c0_2 = arith.constant 0 : index
    %c0_3 = arith.constant 0 : index
    %2 = vector.load %arg3[%c0_2, %c0_3] : memref<32x96xbf16, #tpu.memory_space<vmem>>, vector<32x96xbf16>
    %3 = arith.truncf %1 : vector<16x32xf32> to vector<16x32xbf16>
    %cst = arith.constant dense<0.000000e+00> : vector<16x96xf32>
    %4 = tpu.matmul %3, %2, %cst {dimension_numbers = #tpu.dot_dimension_numbers<[1], [0], [0], [1], [0, 0, 1, 1], [], []>} : vector<16x32xbf16>, vector<32x96xbf16>, vector<16x96xf32> -> vector<16x96xf32>
    %c0_4 = arith.constant 0 : index
    %c0_5 = arith.constant 0 : index
    %5 = vector.load %arg4[%c0_4, %c0_5] : memref<1x96xf32, #tpu.memory_space<vmem>>, vector<1x96xf32>
    %6 = vector.broadcast %5 : vector<1x96xf32> to vector<16x96xf32>
    %7 = arith.addf %4, %6 : vector<16x96xf32>
    %8 = vector.shape_cast %7 : vector<16x96xf32> to vector<2x8x96xf32>
    %9 = vector.extract_strided_slice %8 {offsets = [0, 0, 0], sizes = [2, 8, 32], strides = [1, 1, 1]} : vector<2x8x96xf32> to vector<2x8x32xf32>
    %10 = vector.extract_strided_slice %8 {offsets = [0, 0, 32], sizes = [2, 8, 32], strides = [1, 1, 1]} : vector<2x8x96xf32> to vector<2x8x32xf32>
    %11 = vector.extract_strided_slice %8 {offsets = [0, 0, 64], sizes = [2, 8, 32], strides = [1, 1, 1]} : vector<2x8x96xf32> to vector<2x8x32xf32>
    %c0_6 = arith.constant 0 : index
    %c0_7 = arith.constant 0 : index
    %c0_8 = arith.constant 0 : index
    %12 = vector.load %arg2[%c0_6, %c0_7, %c0_8] : memref<2x8x8xf32, #tpu.memory_space<vmem>>, vector<2x8x8xf32>
    %c0_9 = arith.constant 0 : index
    %c0_10 = arith.constant 0 : index
    %13 = vector.load %arg5[%c0_9, %c0_10] : memref<32x32xbf16, #tpu.memory_space<vmem>>, vector<32x32xbf16>
    %c0_11 = arith.constant 0 : index
    %c0_12 = arith.constant 0 : index
    %14 = vector.load %arg6[%c0_11, %c0_12] : memref<1x32xf32, #tpu.memory_space<vmem>>, vector<1x32xf32>
    %15 = vector.extract_strided_slice %9 {offsets = [0, 0, 0], sizes = [2, 8, 8], strides = [1, 1, 1]} : vector<2x8x32xf32> to vector<2x8x8xf32>
    %cst_13 = arith.constant 0.353553385 : f32
    %16 = vector.broadcast %cst_13 : f32 to vector<2x8x8xf32>
    %17 = arith.mulf %15, %16 : vector<2x8x8xf32>
    %18 = arith.truncf %17 : vector<2x8x8xf32> to vector<2x8x8xbf16>
    %19 = vector.extract_strided_slice %10 {offsets = [0, 0, 0], sizes = [2, 8, 8], strides = [1, 1, 1]} : vector<2x8x32xf32> to vector<2x8x8xf32>
    %20 = arith.truncf %19 : vector<2x8x8xf32> to vector<2x8x8xbf16>
    %21 = vector.extract_strided_slice %11 {offsets = [0, 0, 0], sizes = [2, 8, 8], strides = [1, 1, 1]} : vector<2x8x32xf32> to vector<2x8x8xf32>
    %22 = arith.truncf %21 : vector<2x8x8xf32> to vector<2x8x8xbf16>
    "tpu.trace_start"() <{level = 10 : i32, message = "bqd,bkd->bqk"}> : () -> ()
    %cst_14 = arith.constant dense<0.000000e+00> : vector<2x8x8xf32>
    %23 = tpu.matmul %18, %20, %cst_14 {dimension_numbers = #tpu.dot_dimension_numbers<[2], [2], [1], [1], [0, 0, 0, 1, 1, 1], [0], [0]>} : vector<2x8x8xbf16>, vector<2x8x8xbf16>, vector<2x8x8xf32> -> vector<2x8x8xf32>
    "tpu.trace_stop"() : () -> ()
    %24 = arith.addf %23, %12 : vector<2x8x8xf32>
    %cst_15 = arith.constant dense<0xFF800000> : vector<2x8xf32>
    %25 = vector.multi_reduction <maximumf>, %24, %cst_15 [2] : vector<2x8x8xf32> to vector<2x8xf32>
    %26 = vector.shape_cast %25 : vector<2x8xf32> to vector<2x8x1xf32>
    %27 = vector.broadcast %26 : vector<2x8x1xf32> to vector<2x8x8xf32>
    %28 = arith.subf %24, %27 : vector<2x8x8xf32>
    %29 = math.exp %28 : vector<2x8x8xf32>
    %cst_16 = arith.constant dense<0.000000e+00> : vector<2x8xf32>
    %30 = vector.multi_reduction <add>, %29, %cst_16 [2] : vector<2x8x8xf32> to vector<2x8xf32>
    %31 = vector.shape_cast %30 : vector<2x8xf32> to vector<2x8x1xf32>
    %32 = tpu.reciprocal %31 {approx = true} : vector<2x8x1xf32> -> vector<2x8x1xf32>
    %33 = vector.broadcast %32 : vector<2x8x1xf32> to vector<2x8x8xf32>
    %34 = arith.mulf %29, %33 : vector<2x8x8xf32>
    %35 = arith.truncf %34 : vector<2x8x8xf32> to vector<2x8x8xbf16>
    "tpu.trace_start"() <{level = 10 : i32, message = "bqk,bkd->bqd"}> : () -> ()
    %cst_17 = arith.constant dense<0.000000e+00> : vector<2x8x8xf32>
    %36 = tpu.matmul %35, %22, %cst_17 {dimension_numbers = #tpu.dot_dimension_numbers<[2], [1], [1], [2], [0, 0, 0, 1, 1, 2], [0], [0]>} : vector<2x8x8xbf16>, vector<2x8x8xbf16>, vector<2x8x8xf32> -> vector<2x8x8xf32>
    "tpu.trace_stop"() : () -> ()
    %37 = vector.shape_cast %36 : vector<2x8x8xf32> to vector<16x8xf32>
    %38 = vector.extract_strided_slice %13 {offsets = [0, 0], sizes = [8, 32], strides = [1, 1]} : vector<32x32xbf16> to vector<8x32xbf16>
    %39 = arith.truncf %37 : vector<16x8xf32> to vector<16x8xbf16>
    %cst_18 = arith.constant dense<0.000000e+00> : vector<16x32xf32>
    %40 = tpu.matmul %39, %38, %cst_18 {dimension_numbers = #tpu.dot_dimension_numbers<[1], [0], [0], [1], [0, 0, 1, 1], [], []>} : vector<16x8xbf16>, vector<8x32xbf16>, vector<16x32xf32> -> vector<16x32xf32>
    %41 = vector.extract_strided_slice %9 {offsets = [0, 0, 8], sizes = [2, 8, 8], strides = [1, 1, 1]} : vector<2x8x32xf32> to vector<2x8x8xf32>
    %cst_19 = arith.constant 0.353553385 : f32
    %42 = vector.broadcast %cst_19 : f32 to vector<2x8x8xf32>
    %43 = arith.mulf %41, %42 : vector<2x8x8xf32>
    %44 = arith.truncf %43 : vector<2x8x8xf32> to vector<2x8x8xbf16>
    %45 = vector.extract_strided_slice %10 {offsets = [0, 0, 8], sizes = [2, 8, 8], strides = [1, 1, 1]} : vector<2x8x32xf32> to vector<2x8x8xf32>
    %46 = arith.truncf %45 : vector<2x8x8xf32> to vector<2x8x8xbf16>
    %47 = vector.extract_strided_slice %11 {offsets = [0, 0, 8], sizes = [2, 8, 8], strides = [1, 1, 1]} : vector<2x8x32xf32> to vector<2x8x8xf32>
    %48 = arith.truncf %47 : vector<2x8x8xf32> to vector<2x8x8xbf16>
    "tpu.trace_start"() <{level = 10 : i32, message = "bqd,bkd->bqk"}> : () -> ()
    %cst_20 = arith.constant dense<0.000000e+00> : vector<2x8x8xf32>
    %49 = tpu.matmul %44, %46, %cst_20 {dimension_numbers = #tpu.dot_dimension_numbers<[2], [2], [1], [1], [0, 0, 0, 1, 1, 1], [0], [0]>} : vector<2x8x8xbf16>, vector<2x8x8xbf16>, vector<2x8x8xf32> -> vector<2x8x8xf32>
    "tpu.trace_stop"() : () -> ()
    %50 = arith.addf %49, %12 : vector<2x8x8xf32>
    %cst_21 = arith.constant dense<0xFF800000> : vector<2x8xf32>
    %51 = vector.multi_reduction <maximumf>, %50, %cst_21 [2] : vector<2x8x8xf32> to vector<2x8xf32>
    %52 = vector.shape_cast %51 : vector<2x8xf32> to vector<2x8x1xf32>
    %53 = vector.broadcast %52 : vector<2x8x1xf32> to vector<2x8x8xf32>
    %54 = arith.subf %50, %53 : vector<2x8x8xf32>
    %55 = math.exp %54 : vector<2x8x8xf32>
    %cst_22 = arith.constant dense<0.000000e+00> : vector<2x8xf32>
    %56 = vector.multi_reduction <add>, %55, %cst_22 [2] : vector<2x8x8xf32> to vector<2x8xf32>
    %57 = vector.shape_cast %56 : vector<2x8xf32> to vector<2x8x1xf32>
    %58 = tpu.reciprocal %57 {approx = true} : vector<2x8x1xf32> -> vector<2x8x1xf32>
    %59 = vector.broadcast %58 : vector<2x8x1xf32> to vector<2x8x8xf32>
    %60 = arith.mulf %55, %59 : vector<2x8x8xf32>
    %61 = arith.truncf %60 : vector<2x8x8xf32> to vector<2x8x8xbf16>
    "tpu.trace_start"() <{level = 10 : i32, message = "bqk,bkd->bqd"}> : () -> ()
    %cst_23 = arith.constant dense<0.000000e+00> : vector<2x8x8xf32>
    %62 = tpu.matmul %61, %48, %cst_23 {dimension_numbers = #tpu.dot_dimension_numbers<[2], [1], [1], [2], [0, 0, 0, 1, 1, 2], [0], [0]>} : vector<2x8x8xbf16>, vector<2x8x8xbf16>, vector<2x8x8xf32> -> vector<2x8x8xf32>
    "tpu.trace_stop"() : () -> ()
    %63 = vector.shape_cast %62 : vector<2x8x8xf32> to vector<16x8xf32>
    %64 = vector.extract_strided_slice %13 {offsets = [8, 0], sizes = [8, 32], strides = [1, 1]} : vector<32x32xbf16> to vector<8x32xbf16>
    %65 = arith.truncf %63 : vector<16x8xf32> to vector<16x8xbf16>
    %cst_24 = arith.constant dense<0.000000e+00> : vector<16x32xf32>
    %66 = tpu.matmul %65, %64, %cst_24 {dimension_numbers = #tpu.dot_dimension_numbers<[1], [0], [0], [1], [0, 0, 1, 1], [], []>} : vector<16x8xbf16>, vector<8x32xbf16>, vector<16x32xf32> -> vector<16x32xf32>
    %67 = arith.addf %40, %66 : vector<16x32xf32>
    %68 = vector.extract_strided_slice %9 {offsets = [0, 0, 16], sizes = [2, 8, 8], strides = [1, 1, 1]} : vector<2x8x32xf32> to vector<2x8x8xf32>
    %cst_25 = arith.constant 0.353553385 : f32
    %69 = vector.broadcast %cst_25 : f32 to vector<2x8x8xf32>
    %70 = arith.mulf %68, %69 : vector<2x8x8xf32>
    %71 = arith.truncf %70 : vector<2x8x8xf32> to vector<2x8x8xbf16>
    %72 = vector.extract_strided_slice %10 {offsets = [0, 0, 16], sizes = [2, 8, 8], strides = [1, 1, 1]} : vector<2x8x32xf32> to vector<2x8x8xf32>
    %73 = arith.truncf %72 : vector<2x8x8xf32> to vector<2x8x8xbf16>
    %74 = vector.extract_strided_slice %11 {offsets = [0, 0, 16], sizes = [2, 8, 8], strides = [1, 1, 1]} : vector<2x8x32xf32> to vector<2x8x8xf32>
    %75 = arith.truncf %74 : vector<2x8x8xf32> to vector<2x8x8xbf16>
    "tpu.trace_start"() <{level = 10 : i32, message = "bqd,bkd->bqk"}> : () -> ()
    %cst_26 = arith.constant dense<0.000000e+00> : vector<2x8x8xf32>
    %76 = tpu.matmul %71, %73, %cst_26 {dimension_numbers = #tpu.dot_dimension_numbers<[2], [2], [1], [1], [0, 0, 0, 1, 1, 1], [0], [0]>} : vector<2x8x8xbf16>, vector<2x8x8xbf16>, vector<2x8x8xf32> -> vector<2x8x8xf32>
    "tpu.trace_stop"() : () -> ()
    %77 = arith.addf %76, %12 : vector<2x8x8xf32>
    %cst_27 = arith.constant dense<0xFF800000> : vector<2x8xf32>
    %78 = vector.multi_reduction <maximumf>, %77, %cst_27 [2] : vector<2x8x8xf32> to vector<2x8xf32>
    %79 = vector.shape_cast %78 : vector<2x8xf32> to vector<2x8x1xf32>
    %80 = vector.broadcast %79 : vector<2x8x1xf32> to vector<2x8x8xf32>
    %81 = arith.subf %77, %80 : vector<2x8x8xf32>
    %82 = math.exp %81 : vector<2x8x8xf32>
    %cst_28 = arith.constant dense<0.000000e+00> : vector<2x8xf32>
    %83 = vector.multi_reduction <add>, %82, %cst_28 [2] : vector<2x8x8xf32> to vector<2x8xf32>
    %84 = vector.shape_cast %83 : vector<2x8xf32> to vector<2x8x1xf32>
    %85 = tpu.reciprocal %84 {approx = true} : vector<2x8x1xf32> -> vector<2x8x1xf32>
    %86 = vector.broadcast %85 : vector<2x8x1xf32> to vector<2x8x8xf32>
    %87 = arith.mulf %82, %86 : vector<2x8x8xf32>
    %88 = arith.truncf %87 : vector<2x8x8xf32> to vector<2x8x8xbf16>
    "tpu.trace_start"() <{level = 10 : i32, message = "bqk,bkd->bqd"}> : () -> ()
    %cst_29 = arith.constant dense<0.000000e+00> : vector<2x8x8xf32>
    %89 = tpu.matmul %88, %75, %cst_29 {dimension_numbers = #tpu.dot_dimension_numbers<[2], [1], [1], [2], [0, 0, 0, 1, 1, 2], [0], [0]>} : vector<2x8x8xbf16>, vector<2x8x8xbf16>, vector<2x8x8xf32> -> vector<2x8x8xf32>
    "tpu.trace_stop"() : () -> ()
    %90 = vector.shape_cast %89 : vector<2x8x8xf32> to vector<16x8xf32>
    %91 = vector.extract_strided_slice %13 {offsets = [16, 0], sizes = [8, 32], strides = [1, 1]} : vector<32x32xbf16> to vector<8x32xbf16>
    %92 = arith.truncf %90 : vector<16x8xf32> to vector<16x8xbf16>
    %cst_30 = arith.constant dense<0.000000e+00> : vector<16x32xf32>
    %93 = tpu.matmul %92, %91, %cst_30 {dimension_numbers = #tpu.dot_dimension_numbers<[1], [0], [0], [1], [0, 0, 1, 1], [], []>} : vector<16x8xbf16>, vector<8x32xbf16>, vector<16x32xf32> -> vector<16x32xf32>
    %94 = arith.addf %67, %93 : vector<16x32xf32>
    %95 = vector.extract_strided_slice %9 {offsets = [0, 0, 24], sizes = [2, 8, 8], strides = [1, 1, 1]} : vector<2x8x32xf32> to vector<2x8x8xf32>
    %cst_31 = arith.constant 0.353553385 : f32
    %96 = vector.broadcast %cst_31 : f32 to vector<2x8x8xf32>
    %97 = arith.mulf %95, %96 : vector<2x8x8xf32>
    %98 = arith.truncf %97 : vector<2x8x8xf32> to vector<2x8x8xbf16>
    %99 = vector.extract_strided_slice %10 {offsets = [0, 0, 24], sizes = [2, 8, 8], strides = [1, 1, 1]} : vector<2x8x32xf32> to vector<2x8x8xf32>
    %100 = arith.truncf %99 : vector<2x8x8xf32> to vector<2x8x8xbf16>
    %101 = vector.extract_strided_slice %11 {offsets = [0, 0, 24], sizes = [2, 8, 8], strides = [1, 1, 1]} : vector<2x8x32xf32> to vector<2x8x8xf32>
    %102 = arith.truncf %101 : vector<2x8x8xf32> to vector<2x8x8xbf16>
    "tpu.trace_start"() <{level = 10 : i32, message = "bqd,bkd->bqk"}> : () -> ()
    %cst_32 = arith.constant dense<0.000000e+00> : vector<2x8x8xf32>
    %103 = tpu.matmul %98, %100, %cst_32 {dimension_numbers = #tpu.dot_dimension_numbers<[2], [2], [1], [1], [0, 0, 0, 1, 1, 1], [0], [0]>} : vector<2x8x8xbf16>, vector<2x8x8xbf16>, vector<2x8x8xf32> -> vector<2x8x8xf32>
    "tpu.trace_stop"() : () -> ()
    %104 = arith.addf %103, %12 : vector<2x8x8xf32>
    %cst_33 = arith.constant dense<0xFF800000> : vector<2x8xf32>
    %105 = vector.multi_reduction <maximumf>, %104, %cst_33 [2] : vector<2x8x8xf32> to vector<2x8xf32>
    %106 = vector.shape_cast %105 : vector<2x8xf32> to vector<2x8x1xf32>
    %107 = vector.broadcast %106 : vector<2x8x1xf32> to vector<2x8x8xf32>
    %108 = arith.subf %104, %107 : vector<2x8x8xf32>
    %109 = math.exp %108 : vector<2x8x8xf32>
    %cst_34 = arith.constant dense<0.000000e+00> : vector<2x8xf32>
    %110 = vector.multi_reduction <add>, %109, %cst_34 [2] : vector<2x8x8xf32> to vector<2x8xf32>
    %111 = vector.shape_cast %110 : vector<2x8xf32> to vector<2x8x1xf32>
    %112 = tpu.reciprocal %111 {approx = true} : vector<2x8x1xf32> -> vector<2x8x1xf32>
    %113 = vector.broadcast %112 : vector<2x8x1xf32> to vector<2x8x8xf32>
    %114 = arith.mulf %109, %113 : vector<2x8x8xf32>
    %115 = arith.truncf %114 : vector<2x8x8xf32> to vector<2x8x8xbf16>
    "tpu.trace_start"() <{level = 10 : i32, message = "bqk,bkd->bqd"}> : () -> ()
    %cst_35 = arith.constant dense<0.000000e+00> : vector<2x8x8xf32>
    %116 = tpu.matmul %115, %102, %cst_35 {dimension_numbers = #tpu.dot_dimension_numbers<[2], [1], [1], [2], [0, 0, 0, 1, 1, 2], [0], [0]>} : vector<2x8x8xbf16>, vector<2x8x8xbf16>, vector<2x8x8xf32> -> vector<2x8x8xf32>
    "tpu.trace_stop"() : () -> ()
    %117 = vector.shape_cast %116 : vector<2x8x8xf32> to vector<16x8xf32>
    %118 = vector.extract_strided_slice %13 {offsets = [24, 0], sizes = [8, 32], strides = [1, 1]} : vector<32x32xbf16> to vector<8x32xbf16>
    %119 = arith.truncf %117 : vector<16x8xf32> to vector<16x8xbf16>
    %cst_36 = arith.constant dense<0.000000e+00> : vector<16x32xf32>
    %120 = tpu.matmul %119, %118, %cst_36 {dimension_numbers = #tpu.dot_dimension_numbers<[1], [0], [0], [1], [0, 0, 1, 1], [], []>} : vector<16x8xbf16>, vector<8x32xbf16>, vector<16x32xf32> -> vector<16x32xf32>
    %121 = arith.addf %94, %120 : vector<16x32xf32>
    %122 = vector.broadcast %14 : vector<1x32xf32> to vector<16x32xf32>
    %123 = arith.addf %121, %122 : vector<16x32xf32>
    %124 = arith.addf %1, %123 : vector<16x32xf32>
    %c0_37 = arith.constant 0 : index
    %c0_38 = arith.constant 0 : index
    %125 = vector.load %arg7[%c0_37, %c0_38] : memref<1x32xf32, #tpu.memory_space<vmem>>, vector<1x32xf32>
    %c0_39 = arith.constant 0 : index
    %c0_40 = arith.constant 0 : index
    %126 = vector.load %arg8[%c0_39, %c0_40] : memref<1x32xf32, #tpu.memory_space<vmem>>, vector<1x32xf32>
    %cst_41 = arith.constant dense<0.000000e+00> : vector<16xf32>
    %127 = vector.multi_reduction <add>, %124, %cst_41 [1] : vector<16x32xf32> to vector<16xf32>
    %128 = vector.shape_cast %127 : vector<16xf32> to vector<16x1xf32>
    %cst_42 = arith.constant 3.200000e+01 : f32
    %129 = vector.broadcast %cst_42 : f32 to vector<16x1xf32>
    %130 = arith.divf %128, %129 : vector<16x1xf32>
    %131 = vector.broadcast %130 : vector<16x1xf32> to vector<16x32xf32>
    %132 = arith.subf %124, %131 : vector<16x32xf32>
    %133 = arith.mulf %132, %132 : vector<16x32xf32>
    %cst_43 = arith.constant dense<0.000000e+00> : vector<16xf32>
    %134 = vector.multi_reduction <add>, %133, %cst_43 [1] : vector<16x32xf32> to vector<16xf32>
    %135 = vector.shape_cast %134 : vector<16xf32> to vector<16x1xf32>
    %cst_44 = arith.constant 3.200000e+01 : f32
    %136 = vector.broadcast %cst_44 : f32 to vector<16x1xf32>
    %137 = arith.divf %135, %136 : vector<16x1xf32>
    %cst_45 = arith.constant 9.99999974E-6 : f32
    %138 = vector.broadcast %cst_45 : f32 to vector<16x1xf32>
    %139 = arith.addf %137, %138 : vector<16x1xf32>
    %140 = math.rsqrt %139 : vector<16x1xf32>
    %141 = vector.broadcast %140 : vector<16x1xf32> to vector<16x32xf32>
    %142 = arith.mulf %132, %141 : vector<16x32xf32>
    %143 = vector.broadcast %125 : vector<1x32xf32> to vector<16x32xf32>
    %144 = arith.mulf %142, %143 : vector<16x32xf32>
    %145 = vector.broadcast %126 : vector<1x32xf32> to vector<16x32xf32>
    %146 = arith.addf %144, %145 : vector<16x32xf32>
    %c0_46 = arith.constant 0 : index
    %c0_47 = arith.constant 0 : index
    %147 = vector.load %arg9[%c0_46, %c0_47] : memref<32x64xbf16, #tpu.memory_space<vmem>>, vector<32x64xbf16>
    %148 = arith.truncf %146 : vector<16x32xf32> to vector<16x32xbf16>
    %cst_48 = arith.constant dense<0.000000e+00> : vector<16x64xf32>
    %149 = tpu.matmul %148, %147, %cst_48 {dimension_numbers = #tpu.dot_dimension_numbers<[1], [0], [0], [1], [0, 0, 1, 1], [], []>} : vector<16x32xbf16>, vector<32x64xbf16>, vector<16x64xf32> -> vector<16x64xf32>
    %c0_49 = arith.constant 0 : index
    %c0_50 = arith.constant 0 : index
    %150 = vector.load %arg10[%c0_49, %c0_50] : memref<1x64xf32, #tpu.memory_space<vmem>>, vector<1x64xf32>
    %151 = vector.broadcast %150 : vector<1x64xf32> to vector<16x64xf32>
    %152 = arith.addf %149, %151 : vector<16x64xf32>
    %cst_51 = arith.constant 0.000000e+00 : f32
    %153 = vector.broadcast %cst_51 : f32 to vector<16x64xf32>
    %154 = arith.maximumf %152, %153 : vector<16x64xf32>
    %c0_52 = arith.constant 0 : index
    %c0_53 = arith.constant 0 : index
    %155 = vector.load %arg11[%c0_52, %c0_53] : memref<64x32xbf16, #tpu.memory_space<vmem>>, vector<64x32xbf16>
    %156 = arith.truncf %154 : vector<16x64xf32> to vector<16x64xbf16>
    %cst_54 = arith.constant dense<0.000000e+00> : vector<16x32xf32>
    %157 = tpu.matmul %156, %155, %cst_54 {dimension_numbers = #tpu.dot_dimension_numbers<[1], [0], [0], [1], [0, 0, 1, 1], [], []>} : vector<16x64xbf16>, vector<64x32xbf16>, vector<16x32xf32> -> vector<16x32xf32>
    %c0_55 = arith.constant 0 : index
    %c0_56 = arith.constant 0 : index
    %158 = vector.load %arg12[%c0_55, %c0_56] : memref<1x32xf32, #tpu.memory_space<vmem>>, vector<1x32xf32>
    %159 = vector.broadcast %158 : vector<1x32xf32> to vector<16x32xf32>
    %160 = arith.addf %157, %159 : vector<16x32xf32>
    %161 = arith.addf %146, %160 : vector<16x32xf32>
    %c0_57 = arith.constant 0 : index
    %c0_58 = arith.constant 0 : index
    %162 = vector.load %arg13[%c0_57, %c0_58] : memref<1x32xf32, #tpu.memory_space<vmem>>, vector<1x32xf32>
    %c0_59 = arith.constant 0 : index
    %c0_60 = arith.constant 0 : index
    %163 = vector.load %arg14[%c0_59, %c0_60] : memref<1x32xf32, #tpu.memory_space<vmem>>, vector<1x32xf32>
    %cst_61 = arith.constant dense<0.000000e+00> : vector<16xf32>
    %164 = vector.multi_reduction <add>, %161, %cst_61 [1] : vector<16x32xf32> to vector<16xf32>
    %165 = vector.shape_cast %164 : vector<16xf32> to vector<16x1xf32>
    %cst_62 = arith.constant 3.200000e+01 : f32
    %166 = vector.broadcast %cst_62 : f32 to vector<16x1xf32>
    %167 = arith.divf %165, %166 : vector<16x1xf32>
    %168 = vector.broadcast %167 : vector<16x1xf32> to vector<16x32xf32>
    %169 = arith.subf %161, %168 : vector<16x32xf32>
    %170 = arith.mulf %169, %169 : vector<16x32xf32>
    %cst_63 = arith.constant dense<0.000000e+00> : vector<16xf32>
    %171 = vector.multi_reduction <add>, %170, %cst_63 [1] : vector<16x32xf32> to vector<16xf32>
    %172 = vector.shape_cast %171 : vector<16xf32> to vector<16x1xf32>
    %cst_64 = arith.constant 3.200000e+01 : f32
    %173 = vector.broadcast %cst_64 : f32 to vector<16x1xf32>
    %174 = arith.divf %172, %173 : vector<16x1xf32>
    %cst_65 = arith.constant 9.99999974E-6 : f32
    %175 = vector.broadcast %cst_65 : f32 to vector<16x1xf32>
    %176 = arith.addf %174, %175 : vector<16x1xf32>
    %177 = math.rsqrt %176 : vector<16x1xf32>
    %178 = vector.broadcast %177 : vector<16x1xf32> to vector<16x32xf32>
    %179 = arith.mulf %169, %178 : vector<16x32xf32>
    %180 = vector.broadcast %162 : vector<1x32xf32> to vector<16x32xf32>
    %181 = arith.mulf %179, %180 : vector<16x32xf32>
    %182 = vector.broadcast %163 : vector<1x32xf32> to vector<16x32xf32>
    %183 = arith.addf %181, %182 : vector<16x32xf32>
    %184 = vector.shape_cast %183 : vector<16x32xf32> to vector<2x8x32xf32>
    %c0_66 = arith.constant 0 : index
    %c0_67 = arith.constant 0 : index
    %c0_68 = arith.constant 0 : index
    %185 = vector.load %arg15[%c0_66, %c0_67, %c0_68] : memref<2x8x32xf32, #tpu.memory_space<vmem>>, vector<2x8x32xf32>
    tpu.vector_store %arg15[%c0_66, %c0_67, %c0_68], %184 {strides = array<i32>} : memref<2x8x32xf32, #tpu.memory_space<vmem>>, vector<2x8x32xf32>,
    return
  }
  func.func @transform_0(%arg0: i32) -> (i32, i32, i32) {
    %c0_i32 = arith.constant 0 : i32
    %c0_i32_0 = arith.constant 0 : i32
    %c0_i32_1 = arith.constant 0 : i32
    %c0_i32_2 = arith.constant 0 : i32
    return %c0_i32, %c0_i32_0, %c0_i32_1 : i32, i32, i32
  }
  func.func @transform_1(%arg0: i32) -> (i32, i32, i32) {
    %c0_i32 = arith.constant 0 : i32
    %c0_i32_0 = arith.constant 0 : i32
    %c0_i32_1 = arith.constant 0 : i32
    %c0_i32_2 = arith.constant 0 : i32
    return %c0_i32, %c0_i32_0, %c0_i32_1 : i32, i32, i32
  }
  func.func @transform_2(%arg0: i32) -> (i32, i32) {
    %c0_i32 = arith.constant 0 : i32
    %c0_i32_0 = arith.constant 0 : i32
    %c0_i32_1 = arith.constant 0 : i32
    return %c0_i32, %c0_i32_0 : i32, i32
  }
  func.func @transform_3(%arg0: i32) -> (i32, i32) {
    %c0_i32 = arith.constant 0 : i32
    %c0_i32_0 = arith.constant 0 : i32
    %c0_i32_1 = arith.constant 0 : i32
    return %c0_i32, %c0_i32_0 : i32, i32
  }
  func.func @transform_4(%arg0: i32) -> (i32, i32) {
    %c0_i32 = arith.constant 0 : i32
    %c0_i32_0 = arith.constant 0 : i32
    %c0_i32_1 = arith.constant 0 : i32
    return %c0_i32, %c0_i32_0 : i32, i32
  }
  func.func @transform_5(%arg0: i32) -> (i32, i32) {
    %c0_i32 = arith.constant 0 : i32
    %c0_i32_0 = arith.constant 0 : i32
    %c0_i32_1 = arith.constant 0 : i32
    return %c0_i32, %c0_i32_0 : i32, i32
  }
  func.func @transform_6(%arg0: i32) -> (i32, i32) {
    %c0_i32 = arith.constant 0 : i32
    %c0_i32_0 = arith.constant 0 : i32
    %c0_i32_1 = arith.constant 0 : i32
    return %c0_i32, %c0_i32_0 : i32, i32
  }
  func.func @transform_7(%arg0: i32) -> (i32, i32) {
    %c0_i32 = arith.constant 0 : i32
    %c0_i32_0 = arith.constant 0 : i32
    %c0_i32_1 = arith.constant 0 : i32
    return %c0_i32, %c0_i32_0 : i32, i32
  }
  func.func @transform_8(%arg0: i32) -> (i32, i32) {
    %c0_i32 = arith.constant 0 : i32
    %c0_i32_0 = arith.constant 0 : i32
    %c0_i32_1 = arith.constant 0 : i32
    return %c0_i32, %c0_i32_0 : i32, i32
  }
  func.func @transform_9(%arg0: i32) -> (i32, i32) {
    %c0_i32 = arith.constant 0 : i32
    %c0_i32_0 = arith.constant 0 : i32
    %c0_i32_1 = arith.constant 0 : i32
    return %c0_i32, %c0_i32_0 : i32, i32
  }
  func.func @transform_10(%arg0: i32) -> (i32, i32) {
    %c0_i32 = arith.constant 0 : i32
    %c0_i32_0 = arith.constant 0 : i32
    %c0_i32_1 = arith.constant 0 : i32
    return %c0_i32, %c0_i32_0 : i32, i32
  }
  func.func @transform_11(%arg0: i32) -> (i32, i32) {
    %c0_i32 = arith.constant 0 : i32
    %c0_i32_0 = arith.constant 0 : i32
    %c0_i32_1 = arith.constant 0 : i32
    return %c0_i32, %c0_i32_0 : i32, i32
  }
  func.func @transform_12(%arg0: i32) -> (i32, i32) {
    %c0_i32 = arith.constant 0 : i32
    %c0_i32_0 = arith.constant 0 : i32
    %c0_i32_1 = arith.constant 0 : i32
    return %c0_i32, %c0_i32_0 : i32, i32
  }
  func.func @transform_13(%arg0: i32) -> (i32, i32) {
    %c0_i32 = arith.constant 0 : i32
    %c0_i32_0 = arith.constant 0 : i32
    %c0_i32_1 = arith.constant 0 : i32
    return %c0_i32, %c0_i32_0 : i32, i32
  }
  func.func @transform_14(%arg0: i32) -> (i32, i32, i32) {
    %c0_i32 = arith.constant 0 : i32
    %c0_i32_0 = arith.constant 0 : i32
    %c0_i32_1 = arith.constant 0 : i32
    %c0_i32_2 = arith.constant 0 : i32
    return %c0_i32, %c0_i32_0, %c0_i32_1 : i32, i32, i32
  }
}

module attributes {stable_mosaic.version = 11 : i64} {
  func.func @_ln_kernel(%arg0: i32, %arg1: memref<16x32xf32, #tpu.memory_space<vmem>>, %arg2: memref<1x32xf32, #tpu.memory_space<vmem>>, %arg3: memref<1x32xf32, #tpu.memory_space<vmem>>, %arg4: memref<16x32xf32, #tpu.memory_space<vmem>>) attributes {dimension_semantics = [#tpu.dimension_semantics<arbitrary>], iteration_bounds = array<i64: 1>, scalar_prefetch = 0 : i64, scratch_operands = 0 : i64, tpu.core_type = #tpu.core_type<tc>, window_params = [{pipeline_mode = #tpu.pipeline_mode<synchronous>, transform_indices = @transform_0, window_bounds = array<i64: 16, 32>}, {pipeline_mode = #tpu.pipeline_mode<synchronous>, transform_indices = @transform_1, window_bounds = array<i64: 1, 32>}, {pipeline_mode = #tpu.pipeline_mode<synchronous>, transform_indices = @transform_2, window_bounds = array<i64: 1, 32>}, {pipeline_mode = #tpu.pipeline_mode<synchronous>, transform_indices = @transform_3, window_bounds = array<i64: 16, 32>}]} {
    %c0 = arith.constant 0 : index
    %c0_0 = arith.constant 0 : index
    %0 = vector.load %arg1[%c0, %c0_0] : memref<16x32xf32, #tpu.memory_space<vmem>>, vector<16x32xf32>
    %c0_1 = arith.constant 0 : index
    %c0_2 = arith.constant 0 : index
    %1 = vector.load %arg2[%c0_1, %c0_2] : memref<1x32xf32, #tpu.memory_space<vmem>>, vector<1x32xf32>
    %c0_3 = arith.constant 0 : index
    %c0_4 = arith.constant 0 : index
    %2 = vector.load %arg3[%c0_3, %c0_4] : memref<1x32xf32, #tpu.memory_space<vmem>>, vector<1x32xf32>
    %cst = arith.constant dense<0.000000e+00> : vector<16xf32>
    %3 = vector.multi_reduction <add>, %0, %cst [1] : vector<16x32xf32> to vector<16xf32>
    %4 = vector.shape_cast %3 : vector<16xf32> to vector<16x1xf32>
    %cst_5 = arith.constant 3.200000e+01 : f32
    %5 = vector.broadcast %cst_5 : f32 to vector<16x1xf32>
    %6 = arith.divf %4, %5 : vector<16x1xf32>
    %7 = vector.broadcast %6 : vector<16x1xf32> to vector<16x32xf32>
    %8 = arith.subf %0, %7 : vector<16x32xf32>
    %9 = arith.mulf %8, %8 : vector<16x32xf32>
    %cst_6 = arith.constant dense<0.000000e+00> : vector<16xf32>
    %10 = vector.multi_reduction <add>, %9, %cst_6 [1] : vector<16x32xf32> to vector<16xf32>
    %11 = vector.shape_cast %10 : vector<16xf32> to vector<16x1xf32>
    %cst_7 = arith.constant 3.200000e+01 : f32
    %12 = vector.broadcast %cst_7 : f32 to vector<16x1xf32>
    %13 = arith.divf %11, %12 : vector<16x1xf32>
    %cst_8 = arith.constant 9.99999974E-6 : f32
    %14 = vector.broadcast %cst_8 : f32 to vector<16x1xf32>
    %15 = arith.addf %13, %14 : vector<16x1xf32>
    %16 = math.rsqrt %15 : vector<16x1xf32>
    %17 = vector.broadcast %16 : vector<16x1xf32> to vector<16x32xf32>
    %18 = arith.mulf %8, %17 : vector<16x32xf32>
    %19 = vector.broadcast %1 : vector<1x32xf32> to vector<16x32xf32>
    %20 = arith.mulf %18, %19 : vector<16x32xf32>
    %21 = vector.broadcast %2 : vector<1x32xf32> to vector<16x32xf32>
    %22 = arith.addf %20, %21 : vector<16x32xf32>
    %c0_9 = arith.constant 0 : index
    %c0_10 = arith.constant 0 : index
    %23 = vector.load %arg4[%c0_9, %c0_10] : memref<16x32xf32, #tpu.memory_space<vmem>>, vector<16x32xf32>
    tpu.vector_store %arg4[%c0_9, %c0_10], %22 {strides = array<i32>} : memref<16x32xf32, #tpu.memory_space<vmem>>, vector<16x32xf32>,
    return
  }
  func.func @transform_0(%arg0: i32) -> (i32, i32) {
    %c0_i32 = arith.constant 0 : i32
    %c0_i32_0 = arith.constant 0 : i32
    %c0_i32_1 = arith.constant 0 : i32
    return %c0_i32, %c0_i32_0 : i32, i32
  }
  func.func @transform_1(%arg0: i32) -> (i32, i32) {
    %c0_i32 = arith.constant 0 : i32
    %c0_i32_0 = arith.constant 0 : i32
    %c0_i32_1 = arith.constant 0 : i32
    return %c0_i32, %c0_i32_0 : i32, i32
  }
  func.func @transform_2(%arg0: i32) -> (i32, i32) {
    %c0_i32 = arith.constant 0 : i32
    %c0_i32_0 = arith.constant 0 : i32
    %c0_i32_1 = arith.constant 0 : i32
    return %c0_i32, %c0_i32_0 : i32, i32
  }
  func.func @transform_3(%arg0: i32) -> (i32, i32) {
    %c0_i32 = arith.constant 0 : i32
    %c0_i32_0 = arith.constant 0 : i32
    %c0_i32_1 = arith.constant 0 : i32
    return %c0_i32, %c0_i32_0 : i32, i32
  }
}

module attributes {stable_mosaic.version = 11 : i64} {
  func.func @_dec_layer_kernel(%arg0: i32, %arg1: memref<2x8x32xf32, #tpu.memory_space<vmem>>, %arg2: memref<2x8x32xf32, #tpu.memory_space<vmem>>, %arg3: memref<2x8x8xf32, #tpu.memory_space<vmem>>, %arg4: memref<2x8x8xf32, #tpu.memory_space<vmem>>, %arg5: memref<32x96xbf16, #tpu.memory_space<vmem>>, %arg6: memref<1x96xf32, #tpu.memory_space<vmem>>, %arg7: memref<32x32xbf16, #tpu.memory_space<vmem>>, %arg8: memref<1x32xf32, #tpu.memory_space<vmem>>, %arg9: memref<1x32xf32, #tpu.memory_space<vmem>>, %arg10: memref<1x32xf32, #tpu.memory_space<vmem>>, %arg11: memref<32x32xbf16, #tpu.memory_space<vmem>>, %arg12: memref<1x32xf32, #tpu.memory_space<vmem>>, %arg13: memref<32x64xbf16, #tpu.memory_space<vmem>>, %arg14: memref<1x64xf32, #tpu.memory_space<vmem>>, %arg15: memref<32x32xbf16, #tpu.memory_space<vmem>>, %arg16: memref<1x32xf32, #tpu.memory_space<vmem>>, %arg17: memref<1x32xf32, #tpu.memory_space<vmem>>, %arg18: memref<1x32xf32, #tpu.memory_space<vmem>>, %arg19: memref<32x64xbf16, #tpu.memory_space<vmem>>, %arg20: memref<1x64xf32, #tpu.memory_space<vmem>>, %arg21: memref<64x32xbf16, #tpu.memory_space<vmem>>, %arg22: memref<1x32xf32, #tpu.memory_space<vmem>>, %arg23: memref<1x32xf32, #tpu.memory_space<vmem>>, %arg24: memref<1x32xf32, #tpu.memory_space<vmem>>, %arg25: memref<2x8x32xf32, #tpu.memory_space<vmem>>) attributes {dimension_semantics = [#tpu.dimension_semantics<arbitrary>], iteration_bounds = array<i64: 1>, scalar_prefetch = 0 : i64, scratch_operands = 0 : i64, tpu.core_type = #tpu.core_type<tc>, window_params = [{pipeline_mode = #tpu.pipeline_mode<synchronous>, transform_indices = @transform_0, window_bounds = array<i64: 2, 8, 32>}, {pipeline_mode = #tpu.pipeline_mode<synchronous>, transform_indices = @transform_1, window_bounds = array<i64: 2, 8, 32>}, {pipeline_mode = #tpu.pipeline_mode<synchronous>, transform_indices = @transform_2, window_bounds = array<i64: 2, 8, 8>}, {pipeline_mode = #tpu.pipeline_mode<synchronous>, transform_indices = @transform_3, window_bounds = array<i64: 2, 8, 8>}, {pipeline_mode = #tpu.pipeline_mode<synchronous>, transform_indices = @transform_4, window_bounds = array<i64: 32, 96>}, {pipeline_mode = #tpu.pipeline_mode<synchronous>, transform_indices = @transform_5, window_bounds = array<i64: 1, 96>}, {pipeline_mode = #tpu.pipeline_mode<synchronous>, transform_indices = @transform_6, window_bounds = array<i64: 32, 32>}, {pipeline_mode = #tpu.pipeline_mode<synchronous>, transform_indices = @transform_7, window_bounds = array<i64: 1, 32>}, {pipeline_mode = #tpu.pipeline_mode<synchronous>, transform_indices = @transform_8, window_bounds = array<i64: 1, 32>}, {pipeline_mode = #tpu.pipeline_mode<synchronous>, transform_indices = @transform_9, window_bounds = array<i64: 1, 32>}, {pipeline_mode = #tpu.pipeline_mode<synchronous>, transform_indices = @transform_10, window_bounds = array<i64: 32, 32>}, {pipeline_mode = #tpu.pipeline_mode<synchronous>, transform_indices = @transform_11, window_bounds = array<i64: 1, 32>}, {pipeline_mode = #tpu.pipeline_mode<synchronous>, transform_indices = @transform_12, window_bounds = array<i64: 32, 64>}, {pipeline_mode = #tpu.pipeline_mode<synchronous>, transform_indices = @transform_13, window_bounds = array<i64: 1, 64>}, {pipeline_mode = #tpu.pipeline_mode<synchronous>, transform_indices = @transform_14, window_bounds = array<i64: 32, 32>}, {pipeline_mode = #tpu.pipeline_mode<synchronous>, transform_indices = @transform_15, window_bounds = array<i64: 1, 32>}, {pipeline_mode = #tpu.pipeline_mode<synchronous>, transform_indices = @transform_16, window_bounds = array<i64: 1, 32>}, {pipeline_mode = #tpu.pipeline_mode<synchronous>, transform_indices = @transform_17, window_bounds = array<i64: 1, 32>}, {pipeline_mode = #tpu.pipeline_mode<synchronous>, transform_indices = @transform_18, window_bounds = array<i64: 32, 64>}, {pipeline_mode = #tpu.pipeline_mode<synchronous>, transform_indices = @transform_19, window_bounds = array<i64: 1, 64>}, {pipeline_mode = #tpu.pipeline_mode<synchronous>, transform_indices = @transform_20, window_bounds = array<i64: 64, 32>}, {pipeline_mode = #tpu.pipeline_mode<synchronous>, transform_indices = @transform_21, window_bounds = array<i64: 1, 32>}, {pipeline_mode = #tpu.pipeline_mode<synchronous>, transform_indices = @transform_22, window_bounds = array<i64: 1, 32>}, {pipeline_mode = #tpu.pipeline_mode<synchronous>, transform_indices = @transform_23, window_bounds = array<i64: 1, 32>}, {pipeline_mode = #tpu.pipeline_mode<synchronous>, transform_indices = @transform_24, window_bounds = array<i64: 2, 8, 32>}]} {
    %c0 = arith.constant 0 : index
    %c0_0 = arith.constant 0 : index
    %c0_1 = arith.constant 0 : index
    %0 = vector.load %arg1[%c0, %c0_0, %c0_1] : memref<2x8x32xf32, #tpu.memory_space<vmem>>, vector<2x8x32xf32>
    %1 = vector.shape_cast %0 : vector<2x8x32xf32> to vector<16x32xf32>
    %c0_2 = arith.constant 0 : index
    %c0_3 = arith.constant 0 : index
    %c0_4 = arith.constant 0 : index
    %2 = vector.load %arg2[%c0_2, %c0_3, %c0_4] : memref<2x8x32xf32, #tpu.memory_space<vmem>>, vector<2x8x32xf32>
    %3 = vector.shape_cast %2 : vector<2x8x32xf32> to vector<16x32xf32>
    %c0_5 = arith.constant 0 : index
    %c0_6 = arith.constant 0 : index
    %4 = vector.load %arg5[%c0_5, %c0_6] : memref<32x96xbf16, #tpu.memory_space<vmem>>, vector<32x96xbf16>
    %5 = arith.truncf %1 : vector<16x32xf32> to vector<16x32xbf16>
    %cst = arith.constant dense<0.000000e+00> : vector<16x96xf32>
    %6 = tpu.matmul %5, %4, %cst {dimension_numbers = #tpu.dot_dimension_numbers<[1], [0], [0], [1], [0, 0, 1, 1], [], []>} : vector<16x32xbf16>, vector<32x96xbf16>, vector<16x96xf32> -> vector<16x96xf32>
    %c0_7 = arith.constant 0 : index
    %c0_8 = arith.constant 0 : index
    %7 = vector.load %arg6[%c0_7, %c0_8] : memref<1x96xf32, #tpu.memory_space<vmem>>, vector<1x96xf32>
    %8 = vector.broadcast %7 : vector<1x96xf32> to vector<16x96xf32>
    %9 = arith.addf %6, %8 : vector<16x96xf32>
    %10 = vector.shape_cast %9 : vector<16x96xf32> to vector<2x8x96xf32>
    %11 = vector.extract_strided_slice %10 {offsets = [0, 0, 0], sizes = [2, 8, 32], strides = [1, 1, 1]} : vector<2x8x96xf32> to vector<2x8x32xf32>
    %12 = vector.extract_strided_slice %10 {offsets = [0, 0, 32], sizes = [2, 8, 32], strides = [1, 1, 1]} : vector<2x8x96xf32> to vector<2x8x32xf32>
    %13 = vector.extract_strided_slice %10 {offsets = [0, 0, 64], sizes = [2, 8, 32], strides = [1, 1, 1]} : vector<2x8x96xf32> to vector<2x8x32xf32>
    %c0_9 = arith.constant 0 : index
    %c0_10 = arith.constant 0 : index
    %c0_11 = arith.constant 0 : index
    %14 = vector.load %arg3[%c0_9, %c0_10, %c0_11] : memref<2x8x8xf32, #tpu.memory_space<vmem>>, vector<2x8x8xf32>
    %c0_12 = arith.constant 0 : index
    %c0_13 = arith.constant 0 : index
    %15 = vector.load %arg7[%c0_12, %c0_13] : memref<32x32xbf16, #tpu.memory_space<vmem>>, vector<32x32xbf16>
    %c0_14 = arith.constant 0 : index
    %c0_15 = arith.constant 0 : index
    %16 = vector.load %arg8[%c0_14, %c0_15] : memref<1x32xf32, #tpu.memory_space<vmem>>, vector<1x32xf32>
    %17 = vector.extract_strided_slice %11 {offsets = [0, 0, 0], sizes = [2, 8, 8], strides = [1, 1, 1]} : vector<2x8x32xf32> to vector<2x8x8xf32>
    %cst_16 = arith.constant 0.353553385 : f32
    %18 = vector.broadcast %cst_16 : f32 to vector<2x8x8xf32>
    %19 = arith.mulf %17, %18 : vector<2x8x8xf32>
    %20 = arith.truncf %19 : vector<2x8x8xf32> to vector<2x8x8xbf16>
    %21 = vector.extract_strided_slice %12 {offsets = [0, 0, 0], sizes = [2, 8, 8], strides = [1, 1, 1]} : vector<2x8x32xf32> to vector<2x8x8xf32>
    %22 = arith.truncf %21 : vector<2x8x8xf32> to vector<2x8x8xbf16>
    %23 = vector.extract_strided_slice %13 {offsets = [0, 0, 0], sizes = [2, 8, 8], strides = [1, 1, 1]} : vector<2x8x32xf32> to vector<2x8x8xf32>
    %24 = arith.truncf %23 : vector<2x8x8xf32> to vector<2x8x8xbf16>
    "tpu.trace_start"() <{level = 10 : i32, message = "bqd,bkd->bqk"}> : () -> ()
    %cst_17 = arith.constant dense<0.000000e+00> : vector<2x8x8xf32>
    %25 = tpu.matmul %20, %22, %cst_17 {dimension_numbers = #tpu.dot_dimension_numbers<[2], [2], [1], [1], [0, 0, 0, 1, 1, 1], [0], [0]>} : vector<2x8x8xbf16>, vector<2x8x8xbf16>, vector<2x8x8xf32> -> vector<2x8x8xf32>
    "tpu.trace_stop"() : () -> ()
    %26 = arith.addf %25, %14 : vector<2x8x8xf32>
    %cst_18 = arith.constant dense<0xFF800000> : vector<2x8xf32>
    %27 = vector.multi_reduction <maximumf>, %26, %cst_18 [2] : vector<2x8x8xf32> to vector<2x8xf32>
    %28 = vector.shape_cast %27 : vector<2x8xf32> to vector<2x8x1xf32>
    %29 = vector.broadcast %28 : vector<2x8x1xf32> to vector<2x8x8xf32>
    %30 = arith.subf %26, %29 : vector<2x8x8xf32>
    %31 = math.exp %30 : vector<2x8x8xf32>
    %cst_19 = arith.constant dense<0.000000e+00> : vector<2x8xf32>
    %32 = vector.multi_reduction <add>, %31, %cst_19 [2] : vector<2x8x8xf32> to vector<2x8xf32>
    %33 = vector.shape_cast %32 : vector<2x8xf32> to vector<2x8x1xf32>
    %34 = tpu.reciprocal %33 {approx = true} : vector<2x8x1xf32> -> vector<2x8x1xf32>
    %35 = vector.broadcast %34 : vector<2x8x1xf32> to vector<2x8x8xf32>
    %36 = arith.mulf %31, %35 : vector<2x8x8xf32>
    %37 = arith.truncf %36 : vector<2x8x8xf32> to vector<2x8x8xbf16>
    "tpu.trace_start"() <{level = 10 : i32, message = "bqk,bkd->bqd"}> : () -> ()
    %cst_20 = arith.constant dense<0.000000e+00> : vector<2x8x8xf32>
    %38 = tpu.matmul %37, %24, %cst_20 {dimension_numbers = #tpu.dot_dimension_numbers<[2], [1], [1], [2], [0, 0, 0, 1, 1, 2], [0], [0]>} : vector<2x8x8xbf16>, vector<2x8x8xbf16>, vector<2x8x8xf32> -> vector<2x8x8xf32>
    "tpu.trace_stop"() : () -> ()
    %39 = vector.shape_cast %38 : vector<2x8x8xf32> to vector<16x8xf32>
    %40 = vector.extract_strided_slice %15 {offsets = [0, 0], sizes = [8, 32], strides = [1, 1]} : vector<32x32xbf16> to vector<8x32xbf16>
    %41 = arith.truncf %39 : vector<16x8xf32> to vector<16x8xbf16>
    %cst_21 = arith.constant dense<0.000000e+00> : vector<16x32xf32>
    %42 = tpu.matmul %41, %40, %cst_21 {dimension_numbers = #tpu.dot_dimension_numbers<[1], [0], [0], [1], [0, 0, 1, 1], [], []>} : vector<16x8xbf16>, vector<8x32xbf16>, vector<16x32xf32> -> vector<16x32xf32>
    %43 = vector.extract_strided_slice %11 {offsets = [0, 0, 8], sizes = [2, 8, 8], strides = [1, 1, 1]} : vector<2x8x32xf32> to vector<2x8x8xf32>
    %cst_22 = arith.constant 0.353553385 : f32
    %44 = vector.broadcast %cst_22 : f32 to vector<2x8x8xf32>
    %45 = arith.mulf %43, %44 : vector<2x8x8xf32>
    %46 = arith.truncf %45 : vector<2x8x8xf32> to vector<2x8x8xbf16>
    %47 = vector.extract_strided_slice %12 {offsets = [0, 0, 8], sizes = [2, 8, 8], strides = [1, 1, 1]} : vector<2x8x32xf32> to vector<2x8x8xf32>
    %48 = arith.truncf %47 : vector<2x8x8xf32> to vector<2x8x8xbf16>
    %49 = vector.extract_strided_slice %13 {offsets = [0, 0, 8], sizes = [2, 8, 8], strides = [1, 1, 1]} : vector<2x8x32xf32> to vector<2x8x8xf32>
    %50 = arith.truncf %49 : vector<2x8x8xf32> to vector<2x8x8xbf16>
    "tpu.trace_start"() <{level = 10 : i32, message = "bqd,bkd->bqk"}> : () -> ()
    %cst_23 = arith.constant dense<0.000000e+00> : vector<2x8x8xf32>
    %51 = tpu.matmul %46, %48, %cst_23 {dimension_numbers = #tpu.dot_dimension_numbers<[2], [2], [1], [1], [0, 0, 0, 1, 1, 1], [0], [0]>} : vector<2x8x8xbf16>, vector<2x8x8xbf16>, vector<2x8x8xf32> -> vector<2x8x8xf32>
    "tpu.trace_stop"() : () -> ()
    %52 = arith.addf %51, %14 : vector<2x8x8xf32>
    %cst_24 = arith.constant dense<0xFF800000> : vector<2x8xf32>
    %53 = vector.multi_reduction <maximumf>, %52, %cst_24 [2] : vector<2x8x8xf32> to vector<2x8xf32>
    %54 = vector.shape_cast %53 : vector<2x8xf32> to vector<2x8x1xf32>
    %55 = vector.broadcast %54 : vector<2x8x1xf32> to vector<2x8x8xf32>
    %56 = arith.subf %52, %55 : vector<2x8x8xf32>
    %57 = math.exp %56 : vector<2x8x8xf32>
    %cst_25 = arith.constant dense<0.000000e+00> : vector<2x8xf32>
    %58 = vector.multi_reduction <add>, %57, %cst_25 [2] : vector<2x8x8xf32> to vector<2x8xf32>
    %59 = vector.shape_cast %58 : vector<2x8xf32> to vector<2x8x1xf32>
    %60 = tpu.reciprocal %59 {approx = true} : vector<2x8x1xf32> -> vector<2x8x1xf32>
    %61 = vector.broadcast %60 : vector<2x8x1xf32> to vector<2x8x8xf32>
    %62 = arith.mulf %57, %61 : vector<2x8x8xf32>
    %63 = arith.truncf %62 : vector<2x8x8xf32> to vector<2x8x8xbf16>
    "tpu.trace_start"() <{level = 10 : i32, message = "bqk,bkd->bqd"}> : () -> ()
    %cst_26 = arith.constant dense<0.000000e+00> : vector<2x8x8xf32>
    %64 = tpu.matmul %63, %50, %cst_26 {dimension_numbers = #tpu.dot_dimension_numbers<[2], [1], [1], [2], [0, 0, 0, 1, 1, 2], [0], [0]>} : vector<2x8x8xbf16>, vector<2x8x8xbf16>, vector<2x8x8xf32> -> vector<2x8x8xf32>
    "tpu.trace_stop"() : () -> ()
    %65 = vector.shape_cast %64 : vector<2x8x8xf32> to vector<16x8xf32>
    %66 = vector.extract_strided_slice %15 {offsets = [8, 0], sizes = [8, 32], strides = [1, 1]} : vector<32x32xbf16> to vector<8x32xbf16>
    %67 = arith.truncf %65 : vector<16x8xf32> to vector<16x8xbf16>
    %cst_27 = arith.constant dense<0.000000e+00> : vector<16x32xf32>
    %68 = tpu.matmul %67, %66, %cst_27 {dimension_numbers = #tpu.dot_dimension_numbers<[1], [0], [0], [1], [0, 0, 1, 1], [], []>} : vector<16x8xbf16>, vector<8x32xbf16>, vector<16x32xf32> -> vector<16x32xf32>
    %69 = arith.addf %42, %68 : vector<16x32xf32>
    %70 = vector.extract_strided_slice %11 {offsets = [0, 0, 16], sizes = [2, 8, 8], strides = [1, 1, 1]} : vector<2x8x32xf32> to vector<2x8x8xf32>
    %cst_28 = arith.constant 0.353553385 : f32
    %71 = vector.broadcast %cst_28 : f32 to vector<2x8x8xf32>
    %72 = arith.mulf %70, %71 : vector<2x8x8xf32>
    %73 = arith.truncf %72 : vector<2x8x8xf32> to vector<2x8x8xbf16>
    %74 = vector.extract_strided_slice %12 {offsets = [0, 0, 16], sizes = [2, 8, 8], strides = [1, 1, 1]} : vector<2x8x32xf32> to vector<2x8x8xf32>
    %75 = arith.truncf %74 : vector<2x8x8xf32> to vector<2x8x8xbf16>
    %76 = vector.extract_strided_slice %13 {offsets = [0, 0, 16], sizes = [2, 8, 8], strides = [1, 1, 1]} : vector<2x8x32xf32> to vector<2x8x8xf32>
    %77 = arith.truncf %76 : vector<2x8x8xf32> to vector<2x8x8xbf16>
    "tpu.trace_start"() <{level = 10 : i32, message = "bqd,bkd->bqk"}> : () -> ()
    %cst_29 = arith.constant dense<0.000000e+00> : vector<2x8x8xf32>
    %78 = tpu.matmul %73, %75, %cst_29 {dimension_numbers = #tpu.dot_dimension_numbers<[2], [2], [1], [1], [0, 0, 0, 1, 1, 1], [0], [0]>} : vector<2x8x8xbf16>, vector<2x8x8xbf16>, vector<2x8x8xf32> -> vector<2x8x8xf32>
    "tpu.trace_stop"() : () -> ()
    %79 = arith.addf %78, %14 : vector<2x8x8xf32>
    %cst_30 = arith.constant dense<0xFF800000> : vector<2x8xf32>
    %80 = vector.multi_reduction <maximumf>, %79, %cst_30 [2] : vector<2x8x8xf32> to vector<2x8xf32>
    %81 = vector.shape_cast %80 : vector<2x8xf32> to vector<2x8x1xf32>
    %82 = vector.broadcast %81 : vector<2x8x1xf32> to vector<2x8x8xf32>
    %83 = arith.subf %79, %82 : vector<2x8x8xf32>
    %84 = math.exp %83 : vector<2x8x8xf32>
    %cst_31 = arith.constant dense<0.000000e+00> : vector<2x8xf32>
    %85 = vector.multi_reduction <add>, %84, %cst_31 [2] : vector<2x8x8xf32> to vector<2x8xf32>
    %86 = vector.shape_cast %85 : vector<2x8xf32> to vector<2x8x1xf32>
    %87 = tpu.reciprocal %86 {approx = true} : vector<2x8x1xf32> -> vector<2x8x1xf32>
    %88 = vector.broadcast %87 : vector<2x8x1xf32> to vector<2x8x8xf32>
    %89 = arith.mulf %84, %88 : vector<2x8x8xf32>
    %90 = arith.truncf %89 : vector<2x8x8xf32> to vector<2x8x8xbf16>
    "tpu.trace_start"() <{level = 10 : i32, message = "bqk,bkd->bqd"}> : () -> ()
    %cst_32 = arith.constant dense<0.000000e+00> : vector<2x8x8xf32>
    %91 = tpu.matmul %90, %77, %cst_32 {dimension_numbers = #tpu.dot_dimension_numbers<[2], [1], [1], [2], [0, 0, 0, 1, 1, 2], [0], [0]>} : vector<2x8x8xbf16>, vector<2x8x8xbf16>, vector<2x8x8xf32> -> vector<2x8x8xf32>
    "tpu.trace_stop"() : () -> ()
    %92 = vector.shape_cast %91 : vector<2x8x8xf32> to vector<16x8xf32>
    %93 = vector.extract_strided_slice %15 {offsets = [16, 0], sizes = [8, 32], strides = [1, 1]} : vector<32x32xbf16> to vector<8x32xbf16>
    %94 = arith.truncf %92 : vector<16x8xf32> to vector<16x8xbf16>
    %cst_33 = arith.constant dense<0.000000e+00> : vector<16x32xf32>
    %95 = tpu.matmul %94, %93, %cst_33 {dimension_numbers = #tpu.dot_dimension_numbers<[1], [0], [0], [1], [0, 0, 1, 1], [], []>} : vector<16x8xbf16>, vector<8x32xbf16>, vector<16x32xf32> -> vector<16x32xf32>
    %96 = arith.addf %69, %95 : vector<16x32xf32>
    %97 = vector.extract_strided_slice %11 {offsets = [0, 0, 24], sizes = [2, 8, 8], strides = [1, 1, 1]} : vector<2x8x32xf32> to vector<2x8x8xf32>
    %cst_34 = arith.constant 0.353553385 : f32
    %98 = vector.broadcast %cst_34 : f32 to vector<2x8x8xf32>
    %99 = arith.mulf %97, %98 : vector<2x8x8xf32>
    %100 = arith.truncf %99 : vector<2x8x8xf32> to vector<2x8x8xbf16>
    %101 = vector.extract_strided_slice %12 {offsets = [0, 0, 24], sizes = [2, 8, 8], strides = [1, 1, 1]} : vector<2x8x32xf32> to vector<2x8x8xf32>
    %102 = arith.truncf %101 : vector<2x8x8xf32> to vector<2x8x8xbf16>
    %103 = vector.extract_strided_slice %13 {offsets = [0, 0, 24], sizes = [2, 8, 8], strides = [1, 1, 1]} : vector<2x8x32xf32> to vector<2x8x8xf32>
    %104 = arith.truncf %103 : vector<2x8x8xf32> to vector<2x8x8xbf16>
    "tpu.trace_start"() <{level = 10 : i32, message = "bqd,bkd->bqk"}> : () -> ()
    %cst_35 = arith.constant dense<0.000000e+00> : vector<2x8x8xf32>
    %105 = tpu.matmul %100, %102, %cst_35 {dimension_numbers = #tpu.dot_dimension_numbers<[2], [2], [1], [1], [0, 0, 0, 1, 1, 1], [0], [0]>} : vector<2x8x8xbf16>, vector<2x8x8xbf16>, vector<2x8x8xf32> -> vector<2x8x8xf32>
    "tpu.trace_stop"() : () -> ()
    %106 = arith.addf %105, %14 : vector<2x8x8xf32>
    %cst_36 = arith.constant dense<0xFF800000> : vector<2x8xf32>
    %107 = vector.multi_reduction <maximumf>, %106, %cst_36 [2] : vector<2x8x8xf32> to vector<2x8xf32>
    %108 = vector.shape_cast %107 : vector<2x8xf32> to vector<2x8x1xf32>
    %109 = vector.broadcast %108 : vector<2x8x1xf32> to vector<2x8x8xf32>
    %110 = arith.subf %106, %109 : vector<2x8x8xf32>
    %111 = math.exp %110 : vector<2x8x8xf32>
    %cst_37 = arith.constant dense<0.000000e+00> : vector<2x8xf32>
    %112 = vector.multi_reduction <add>, %111, %cst_37 [2] : vector<2x8x8xf32> to vector<2x8xf32>
    %113 = vector.shape_cast %112 : vector<2x8xf32> to vector<2x8x1xf32>
    %114 = tpu.reciprocal %113 {approx = true} : vector<2x8x1xf32> -> vector<2x8x1xf32>
    %115 = vector.broadcast %114 : vector<2x8x1xf32> to vector<2x8x8xf32>
    %116 = arith.mulf %111, %115 : vector<2x8x8xf32>
    %117 = arith.truncf %116 : vector<2x8x8xf32> to vector<2x8x8xbf16>
    "tpu.trace_start"() <{level = 10 : i32, message = "bqk,bkd->bqd"}> : () -> ()
    %cst_38 = arith.constant dense<0.000000e+00> : vector<2x8x8xf32>
    %118 = tpu.matmul %117, %104, %cst_38 {dimension_numbers = #tpu.dot_dimension_numbers<[2], [1], [1], [2], [0, 0, 0, 1, 1, 2], [0], [0]>} : vector<2x8x8xbf16>, vector<2x8x8xbf16>, vector<2x8x8xf32> -> vector<2x8x8xf32>
    "tpu.trace_stop"() : () -> ()
    %119 = vector.shape_cast %118 : vector<2x8x8xf32> to vector<16x8xf32>
    %120 = vector.extract_strided_slice %15 {offsets = [24, 0], sizes = [8, 32], strides = [1, 1]} : vector<32x32xbf16> to vector<8x32xbf16>
    %121 = arith.truncf %119 : vector<16x8xf32> to vector<16x8xbf16>
    %cst_39 = arith.constant dense<0.000000e+00> : vector<16x32xf32>
    %122 = tpu.matmul %121, %120, %cst_39 {dimension_numbers = #tpu.dot_dimension_numbers<[1], [0], [0], [1], [0, 0, 1, 1], [], []>} : vector<16x8xbf16>, vector<8x32xbf16>, vector<16x32xf32> -> vector<16x32xf32>
    %123 = arith.addf %96, %122 : vector<16x32xf32>
    %124 = vector.broadcast %16 : vector<1x32xf32> to vector<16x32xf32>
    %125 = arith.addf %123, %124 : vector<16x32xf32>
    %126 = arith.addf %1, %125 : vector<16x32xf32>
    %c0_40 = arith.constant 0 : index
    %c0_41 = arith.constant 0 : index
    %127 = vector.load %arg9[%c0_40, %c0_41] : memref<1x32xf32, #tpu.memory_space<vmem>>, vector<1x32xf32>
    %c0_42 = arith.constant 0 : index
    %c0_43 = arith.constant 0 : index
    %128 = vector.load %arg10[%c0_42, %c0_43] : memref<1x32xf32, #tpu.memory_space<vmem>>, vector<1x32xf32>
    %cst_44 = arith.constant dense<0.000000e+00> : vector<16xf32>
    %129 = vector.multi_reduction <add>, %126, %cst_44 [1] : vector<16x32xf32> to vector<16xf32>
    %130 = vector.shape_cast %129 : vector<16xf32> to vector<16x1xf32>
    %cst_45 = arith.constant 3.200000e+01 : f32
    %131 = vector.broadcast %cst_45 : f32 to vector<16x1xf32>
    %132 = arith.divf %130, %131 : vector<16x1xf32>
    %133 = vector.broadcast %132 : vector<16x1xf32> to vector<16x32xf32>
    %134 = arith.subf %126, %133 : vector<16x32xf32>
    %135 = arith.mulf %134, %134 : vector<16x32xf32>
    %cst_46 = arith.constant dense<0.000000e+00> : vector<16xf32>
    %136 = vector.multi_reduction <add>, %135, %cst_46 [1] : vector<16x32xf32> to vector<16xf32>
    %137 = vector.shape_cast %136 : vector<16xf32> to vector<16x1xf32>
    %cst_47 = arith.constant 3.200000e+01 : f32
    %138 = vector.broadcast %cst_47 : f32 to vector<16x1xf32>
    %139 = arith.divf %137, %138 : vector<16x1xf32>
    %cst_48 = arith.constant 9.99999974E-6 : f32
    %140 = vector.broadcast %cst_48 : f32 to vector<16x1xf32>
    %141 = arith.addf %139, %140 : vector<16x1xf32>
    %142 = math.rsqrt %141 : vector<16x1xf32>
    %143 = vector.broadcast %142 : vector<16x1xf32> to vector<16x32xf32>
    %144 = arith.mulf %134, %143 : vector<16x32xf32>
    %145 = vector.broadcast %127 : vector<1x32xf32> to vector<16x32xf32>
    %146 = arith.mulf %144, %145 : vector<16x32xf32>
    %147 = vector.broadcast %128 : vector<1x32xf32> to vector<16x32xf32>
    %148 = arith.addf %146, %147 : vector<16x32xf32>
    %c0_49 = arith.constant 0 : index
    %c0_50 = arith.constant 0 : index
    %149 = vector.load %arg11[%c0_49, %c0_50] : memref<32x32xbf16, #tpu.memory_space<vmem>>, vector<32x32xbf16>
    %150 = arith.truncf %148 : vector<16x32xf32> to vector<16x32xbf16>
    %cst_51 = arith.constant dense<0.000000e+00> : vector<16x32xf32>
    %151 = tpu.matmul %150, %149, %cst_51 {dimension_numbers = #tpu.dot_dimension_numbers<[1], [0], [0], [1], [0, 0, 1, 1], [], []>} : vector<16x32xbf16>, vector<32x32xbf16>, vector<16x32xf32> -> vector<16x32xf32>
    %c0_52 = arith.constant 0 : index
    %c0_53 = arith.constant 0 : index
    %152 = vector.load %arg12[%c0_52, %c0_53] : memref<1x32xf32, #tpu.memory_space<vmem>>, vector<1x32xf32>
    %153 = vector.broadcast %152 : vector<1x32xf32> to vector<16x32xf32>
    %154 = arith.addf %151, %153 : vector<16x32xf32>
    %155 = vector.shape_cast %154 : vector<16x32xf32> to vector<2x8x32xf32>
    %c0_54 = arith.constant 0 : index
    %c0_55 = arith.constant 0 : index
    %156 = vector.load %arg13[%c0_54, %c0_55] : memref<32x64xbf16, #tpu.memory_space<vmem>>, vector<32x64xbf16>
    %157 = arith.truncf %3 : vector<16x32xf32> to vector<16x32xbf16>
    %cst_56 = arith.constant dense<0.000000e+00> : vector<16x64xf32>
    %158 = tpu.matmul %157, %156, %cst_56 {dimension_numbers = #tpu.dot_dimension_numbers<[1], [0], [0], [1], [0, 0, 1, 1], [], []>} : vector<16x32xbf16>, vector<32x64xbf16>, vector<16x64xf32> -> vector<16x64xf32>
    %c0_57 = arith.constant 0 : index
    %c0_58 = arith.constant 0 : index
    %159 = vector.load %arg14[%c0_57, %c0_58] : memref<1x64xf32, #tpu.memory_space<vmem>>, vector<1x64xf32>
    %160 = vector.broadcast %159 : vector<1x64xf32> to vector<16x64xf32>
    %161 = arith.addf %158, %160 : vector<16x64xf32>
    %162 = vector.shape_cast %161 : vector<16x64xf32> to vector<2x8x64xf32>
    %163 = vector.extract_strided_slice %162 {offsets = [0, 0, 0], sizes = [2, 8, 32], strides = [1, 1, 1]} : vector<2x8x64xf32> to vector<2x8x32xf32>
    %164 = vector.extract_strided_slice %162 {offsets = [0, 0, 32], sizes = [2, 8, 32], strides = [1, 1, 1]} : vector<2x8x64xf32> to vector<2x8x32xf32>
    %c0_59 = arith.constant 0 : index
    %c0_60 = arith.constant 0 : index
    %c0_61 = arith.constant 0 : index
    %165 = vector.load %arg4[%c0_59, %c0_60, %c0_61] : memref<2x8x8xf32, #tpu.memory_space<vmem>>, vector<2x8x8xf32>
    %c0_62 = arith.constant 0 : index
    %c0_63 = arith.constant 0 : index
    %166 = vector.load %arg15[%c0_62, %c0_63] : memref<32x32xbf16, #tpu.memory_space<vmem>>, vector<32x32xbf16>
    %c0_64 = arith.constant 0 : index
    %c0_65 = arith.constant 0 : index
    %167 = vector.load %arg16[%c0_64, %c0_65] : memref<1x32xf32, #tpu.memory_space<vmem>>, vector<1x32xf32>
    %168 = vector.extract_strided_slice %155 {offsets = [0, 0, 0], sizes = [2, 8, 8], strides = [1, 1, 1]} : vector<2x8x32xf32> to vector<2x8x8xf32>
    %cst_66 = arith.constant 0.353553385 : f32
    %169 = vector.broadcast %cst_66 : f32 to vector<2x8x8xf32>
    %170 = arith.mulf %168, %169 : vector<2x8x8xf32>
    %171 = arith.truncf %170 : vector<2x8x8xf32> to vector<2x8x8xbf16>
    %172 = vector.extract_strided_slice %163 {offsets = [0, 0, 0], sizes = [2, 8, 8], strides = [1, 1, 1]} : vector<2x8x32xf32> to vector<2x8x8xf32>
    %173 = arith.truncf %172 : vector<2x8x8xf32> to vector<2x8x8xbf16>
    %174 = vector.extract_strided_slice %164 {offsets = [0, 0, 0], sizes = [2, 8, 8], strides = [1, 1, 1]} : vector<2x8x32xf32> to vector<2x8x8xf32>
    %175 = arith.truncf %174 : vector<2x8x8xf32> to vector<2x8x8xbf16>
    "tpu.trace_start"() <{level = 10 : i32, message = "bqd,bkd->bqk"}> : () -> ()
    %cst_67 = arith.constant dense<0.000000e+00> : vector<2x8x8xf32>
    %176 = tpu.matmul %171, %173, %cst_67 {dimension_numbers = #tpu.dot_dimension_numbers<[2], [2], [1], [1], [0, 0, 0, 1, 1, 1], [0], [0]>} : vector<2x8x8xbf16>, vector<2x8x8xbf16>, vector<2x8x8xf32> -> vector<2x8x8xf32>
    "tpu.trace_stop"() : () -> ()
    %177 = arith.addf %176, %165 : vector<2x8x8xf32>
    %cst_68 = arith.constant dense<0xFF800000> : vector<2x8xf32>
    %178 = vector.multi_reduction <maximumf>, %177, %cst_68 [2] : vector<2x8x8xf32> to vector<2x8xf32>
    %179 = vector.shape_cast %178 : vector<2x8xf32> to vector<2x8x1xf32>
    %180 = vector.broadcast %179 : vector<2x8x1xf32> to vector<2x8x8xf32>
    %181 = arith.subf %177, %180 : vector<2x8x8xf32>
    %182 = math.exp %181 : vector<2x8x8xf32>
    %cst_69 = arith.constant dense<0.000000e+00> : vector<2x8xf32>
    %183 = vector.multi_reduction <add>, %182, %cst_69 [2] : vector<2x8x8xf32> to vector<2x8xf32>
    %184 = vector.shape_cast %183 : vector<2x8xf32> to vector<2x8x1xf32>
    %185 = tpu.reciprocal %184 {approx = true} : vector<2x8x1xf32> -> vector<2x8x1xf32>
    %186 = vector.broadcast %185 : vector<2x8x1xf32> to vector<2x8x8xf32>
    %187 = arith.mulf %182, %186 : vector<2x8x8xf32>
    %188 = arith.truncf %187 : vector<2x8x8xf32> to vector<2x8x8xbf16>
    "tpu.trace_start"() <{level = 10 : i32, message = "bqk,bkd->bqd"}> : () -> ()
    %cst_70 = arith.constant dense<0.000000e+00> : vector<2x8x8xf32>
    %189 = tpu.matmul %188, %175, %cst_70 {dimension_numbers = #tpu.dot_dimension_numbers<[2], [1], [1], [2], [0, 0, 0, 1, 1, 2], [0], [0]>} : vector<2x8x8xbf16>, vector<2x8x8xbf16>, vector<2x8x8xf32> -> vector<2x8x8xf32>
    "tpu.trace_stop"() : () -> ()
    %190 = vector.shape_cast %189 : vector<2x8x8xf32> to vector<16x8xf32>
    %191 = vector.extract_strided_slice %166 {offsets = [0, 0], sizes = [8, 32], strides = [1, 1]} : vector<32x32xbf16> to vector<8x32xbf16>
    %192 = arith.truncf %190 : vector<16x8xf32> to vector<16x8xbf16>
    %cst_71 = arith.constant dense<0.000000e+00> : vector<16x32xf32>
    %193 = tpu.matmul %192, %191, %cst_71 {dimension_numbers = #tpu.dot_dimension_numbers<[1], [0], [0], [1], [0, 0, 1, 1], [], []>} : vector<16x8xbf16>, vector<8x32xbf16>, vector<16x32xf32> -> vector<16x32xf32>
    %194 = vector.extract_strided_slice %155 {offsets = [0, 0, 8], sizes = [2, 8, 8], strides = [1, 1, 1]} : vector<2x8x32xf32> to vector<2x8x8xf32>
    %cst_72 = arith.constant 0.353553385 : f32
    %195 = vector.broadcast %cst_72 : f32 to vector<2x8x8xf32>
    %196 = arith.mulf %194, %195 : vector<2x8x8xf32>
    %197 = arith.truncf %196 : vector<2x8x8xf32> to vector<2x8x8xbf16>
    %198 = vector.extract_strided_slice %163 {offsets = [0, 0, 8], sizes = [2, 8, 8], strides = [1, 1, 1]} : vector<2x8x32xf32> to vector<2x8x8xf32>
    %199 = arith.truncf %198 : vector<2x8x8xf32> to vector<2x8x8xbf16>
    %200 = vector.extract_strided_slice %164 {offsets = [0, 0, 8], sizes = [2, 8, 8], strides = [1, 1, 1]} : vector<2x8x32xf32> to vector<2x8x8xf32>
    %201 = arith.truncf %200 : vector<2x8x8xf32> to vector<2x8x8xbf16>
    "tpu.trace_start"() <{level = 10 : i32, message = "bqd,bkd->bqk"}> : () -> ()
    %cst_73 = arith.constant dense<0.000000e+00> : vector<2x8x8xf32>
    %202 = tpu.matmul %197, %199, %cst_73 {dimension_numbers = #tpu.dot_dimension_numbers<[2], [2], [1], [1], [0, 0, 0, 1, 1, 1], [0], [0]>} : vector<2x8x8xbf16>, vector<2x8x8xbf16>, vector<2x8x8xf32> -> vector<2x8x8xf32>
    "tpu.trace_stop"() : () -> ()
    %203 = arith.addf %202, %165 : vector<2x8x8xf32>
    %cst_74 = arith.constant dense<0xFF800000> : vector<2x8xf32>
    %204 = vector.multi_reduction <maximumf>, %203, %cst_74 [2] : vector<2x8x8xf32> to vector<2x8xf32>
    %205 = vector.shape_cast %204 : vector<2x8xf32> to vector<2x8x1xf32>
    %206 = vector.broadcast %205 : vector<2x8x1xf32> to vector<2x8x8xf32>
    %207 = arith.subf %203, %206 : vector<2x8x8xf32>
    %208 = math.exp %207 : vector<2x8x8xf32>
    %cst_75 = arith.constant dense<0.000000e+00> : vector<2x8xf32>
    %209 = vector.multi_reduction <add>, %208, %cst_75 [2] : vector<2x8x8xf32> to vector<2x8xf32>
    %210 = vector.shape_cast %209 : vector<2x8xf32> to vector<2x8x1xf32>
    %211 = tpu.reciprocal %210 {approx = true} : vector<2x8x1xf32> -> vector<2x8x1xf32>
    %212 = vector.broadcast %211 : vector<2x8x1xf32> to vector<2x8x8xf32>
    %213 = arith.mulf %208, %212 : vector<2x8x8xf32>
    %214 = arith.truncf %213 : vector<2x8x8xf32> to vector<2x8x8xbf16>
    "tpu.trace_start"() <{level = 10 : i32, message = "bqk,bkd->bqd"}> : () -> ()
    %cst_76 = arith.constant dense<0.000000e+00> : vector<2x8x8xf32>
    %215 = tpu.matmul %214, %201, %cst_76 {dimension_numbers = #tpu.dot_dimension_numbers<[2], [1], [1], [2], [0, 0, 0, 1, 1, 2], [0], [0]>} : vector<2x8x8xbf16>, vector<2x8x8xbf16>, vector<2x8x8xf32> -> vector<2x8x8xf32>
    "tpu.trace_stop"() : () -> ()
    %216 = vector.shape_cast %215 : vector<2x8x8xf32> to vector<16x8xf32>
    %217 = vector.extract_strided_slice %166 {offsets = [8, 0], sizes = [8, 32], strides = [1, 1]} : vector<32x32xbf16> to vector<8x32xbf16>
    %218 = arith.truncf %216 : vector<16x8xf32> to vector<16x8xbf16>
    %cst_77 = arith.constant dense<0.000000e+00> : vector<16x32xf32>
    %219 = tpu.matmul %218, %217, %cst_77 {dimension_numbers = #tpu.dot_dimension_numbers<[1], [0], [0], [1], [0, 0, 1, 1], [], []>} : vector<16x8xbf16>, vector<8x32xbf16>, vector<16x32xf32> -> vector<16x32xf32>
    %220 = arith.addf %193, %219 : vector<16x32xf32>
    %221 = vector.extract_strided_slice %155 {offsets = [0, 0, 16], sizes = [2, 8, 8], strides = [1, 1, 1]} : vector<2x8x32xf32> to vector<2x8x8xf32>
    %cst_78 = arith.constant 0.353553385 : f32
    %222 = vector.broadcast %cst_78 : f32 to vector<2x8x8xf32>
    %223 = arith.mulf %221, %222 : vector<2x8x8xf32>
    %224 = arith.truncf %223 : vector<2x8x8xf32> to vector<2x8x8xbf16>
    %225 = vector.extract_strided_slice %163 {offsets = [0, 0, 16], sizes = [2, 8, 8], strides = [1, 1, 1]} : vector<2x8x32xf32> to vector<2x8x8xf32>
    %226 = arith.truncf %225 : vector<2x8x8xf32> to vector<2x8x8xbf16>
    %227 = vector.extract_strided_slice %164 {offsets = [0, 0, 16], sizes = [2, 8, 8], strides = [1, 1, 1]} : vector<2x8x32xf32> to vector<2x8x8xf32>
    %228 = arith.truncf %227 : vector<2x8x8xf32> to vector<2x8x8xbf16>
    "tpu.trace_start"() <{level = 10 : i32, message = "bqd,bkd->bqk"}> : () -> ()
    %cst_79 = arith.constant dense<0.000000e+00> : vector<2x8x8xf32>
    %229 = tpu.matmul %224, %226, %cst_79 {dimension_numbers = #tpu.dot_dimension_numbers<[2], [2], [1], [1], [0, 0, 0, 1, 1, 1], [0], [0]>} : vector<2x8x8xbf16>, vector<2x8x8xbf16>, vector<2x8x8xf32> -> vector<2x8x8xf32>
    "tpu.trace_stop"() : () -> ()
    %230 = arith.addf %229, %165 : vector<2x8x8xf32>
    %cst_80 = arith.constant dense<0xFF800000> : vector<2x8xf32>
    %231 = vector.multi_reduction <maximumf>, %230, %cst_80 [2] : vector<2x8x8xf32> to vector<2x8xf32>
    %232 = vector.shape_cast %231 : vector<2x8xf32> to vector<2x8x1xf32>
    %233 = vector.broadcast %232 : vector<2x8x1xf32> to vector<2x8x8xf32>
    %234 = arith.subf %230, %233 : vector<2x8x8xf32>
    %235 = math.exp %234 : vector<2x8x8xf32>
    %cst_81 = arith.constant dense<0.000000e+00> : vector<2x8xf32>
    %236 = vector.multi_reduction <add>, %235, %cst_81 [2] : vector<2x8x8xf32> to vector<2x8xf32>
    %237 = vector.shape_cast %236 : vector<2x8xf32> to vector<2x8x1xf32>
    %238 = tpu.reciprocal %237 {approx = true} : vector<2x8x1xf32> -> vector<2x8x1xf32>
    %239 = vector.broadcast %238 : vector<2x8x1xf32> to vector<2x8x8xf32>
    %240 = arith.mulf %235, %239 : vector<2x8x8xf32>
    %241 = arith.truncf %240 : vector<2x8x8xf32> to vector<2x8x8xbf16>
    "tpu.trace_start"() <{level = 10 : i32, message = "bqk,bkd->bqd"}> : () -> ()
    %cst_82 = arith.constant dense<0.000000e+00> : vector<2x8x8xf32>
    %242 = tpu.matmul %241, %228, %cst_82 {dimension_numbers = #tpu.dot_dimension_numbers<[2], [1], [1], [2], [0, 0, 0, 1, 1, 2], [0], [0]>} : vector<2x8x8xbf16>, vector<2x8x8xbf16>, vector<2x8x8xf32> -> vector<2x8x8xf32>
    "tpu.trace_stop"() : () -> ()
    %243 = vector.shape_cast %242 : vector<2x8x8xf32> to vector<16x8xf32>
    %244 = vector.extract_strided_slice %166 {offsets = [16, 0], sizes = [8, 32], strides = [1, 1]} : vector<32x32xbf16> to vector<8x32xbf16>
    %245 = arith.truncf %243 : vector<16x8xf32> to vector<16x8xbf16>
    %cst_83 = arith.constant dense<0.000000e+00> : vector<16x32xf32>
    %246 = tpu.matmul %245, %244, %cst_83 {dimension_numbers = #tpu.dot_dimension_numbers<[1], [0], [0], [1], [0, 0, 1, 1], [], []>} : vector<16x8xbf16>, vector<8x32xbf16>, vector<16x32xf32> -> vector<16x32xf32>
    %247 = arith.addf %220, %246 : vector<16x32xf32>
    %248 = vector.extract_strided_slice %155 {offsets = [0, 0, 24], sizes = [2, 8, 8], strides = [1, 1, 1]} : vector<2x8x32xf32> to vector<2x8x8xf32>
    %cst_84 = arith.constant 0.353553385 : f32
    %249 = vector.broadcast %cst_84 : f32 to vector<2x8x8xf32>
    %250 = arith.mulf %248, %249 : vector<2x8x8xf32>
    %251 = arith.truncf %250 : vector<2x8x8xf32> to vector<2x8x8xbf16>
    %252 = vector.extract_strided_slice %163 {offsets = [0, 0, 24], sizes = [2, 8, 8], strides = [1, 1, 1]} : vector<2x8x32xf32> to vector<2x8x8xf32>
    %253 = arith.truncf %252 : vector<2x8x8xf32> to vector<2x8x8xbf16>
    %254 = vector.extract_strided_slice %164 {offsets = [0, 0, 24], sizes = [2, 8, 8], strides = [1, 1, 1]} : vector<2x8x32xf32> to vector<2x8x8xf32>
    %255 = arith.truncf %254 : vector<2x8x8xf32> to vector<2x8x8xbf16>
    "tpu.trace_start"() <{level = 10 : i32, message = "bqd,bkd->bqk"}> : () -> ()
    %cst_85 = arith.constant dense<0.000000e+00> : vector<2x8x8xf32>
    %256 = tpu.matmul %251, %253, %cst_85 {dimension_numbers = #tpu.dot_dimension_numbers<[2], [2], [1], [1], [0, 0, 0, 1, 1, 1], [0], [0]>} : vector<2x8x8xbf16>, vector<2x8x8xbf16>, vector<2x8x8xf32> -> vector<2x8x8xf32>
    "tpu.trace_stop"() : () -> ()
    %257 = arith.addf %256, %165 : vector<2x8x8xf32>
    %cst_86 = arith.constant dense<0xFF800000> : vector<2x8xf32>
    %258 = vector.multi_reduction <maximumf>, %257, %cst_86 [2] : vector<2x8x8xf32> to vector<2x8xf32>
    %259 = vector.shape_cast %258 : vector<2x8xf32> to vector<2x8x1xf32>
    %260 = vector.broadcast %259 : vector<2x8x1xf32> to vector<2x8x8xf32>
    %261 = arith.subf %257, %260 : vector<2x8x8xf32>
    %262 = math.exp %261 : vector<2x8x8xf32>
    %cst_87 = arith.constant dense<0.000000e+00> : vector<2x8xf32>
    %263 = vector.multi_reduction <add>, %262, %cst_87 [2] : vector<2x8x8xf32> to vector<2x8xf32>
    %264 = vector.shape_cast %263 : vector<2x8xf32> to vector<2x8x1xf32>
    %265 = tpu.reciprocal %264 {approx = true} : vector<2x8x1xf32> -> vector<2x8x1xf32>
    %266 = vector.broadcast %265 : vector<2x8x1xf32> to vector<2x8x8xf32>
    %267 = arith.mulf %262, %266 : vector<2x8x8xf32>
    %268 = arith.truncf %267 : vector<2x8x8xf32> to vector<2x8x8xbf16>
    "tpu.trace_start"() <{level = 10 : i32, message = "bqk,bkd->bqd"}> : () -> ()
    %cst_88 = arith.constant dense<0.000000e+00> : vector<2x8x8xf32>
    %269 = tpu.matmul %268, %255, %cst_88 {dimension_numbers = #tpu.dot_dimension_numbers<[2], [1], [1], [2], [0, 0, 0, 1, 1, 2], [0], [0]>} : vector<2x8x8xbf16>, vector<2x8x8xbf16>, vector<2x8x8xf32> -> vector<2x8x8xf32>
    "tpu.trace_stop"() : () -> ()
    %270 = vector.shape_cast %269 : vector<2x8x8xf32> to vector<16x8xf32>
    %271 = vector.extract_strided_slice %166 {offsets = [24, 0], sizes = [8, 32], strides = [1, 1]} : vector<32x32xbf16> to vector<8x32xbf16>
    %272 = arith.truncf %270 : vector<16x8xf32> to vector<16x8xbf16>
    %cst_89 = arith.constant dense<0.000000e+00> : vector<16x32xf32>
    %273 = tpu.matmul %272, %271, %cst_89 {dimension_numbers = #tpu.dot_dimension_numbers<[1], [0], [0], [1], [0, 0, 1, 1], [], []>} : vector<16x8xbf16>, vector<8x32xbf16>, vector<16x32xf32> -> vector<16x32xf32>
    %274 = arith.addf %247, %273 : vector<16x32xf32>
    %275 = vector.broadcast %167 : vector<1x32xf32> to vector<16x32xf32>
    %276 = arith.addf %274, %275 : vector<16x32xf32>
    %277 = arith.addf %148, %276 : vector<16x32xf32>
    %c0_90 = arith.constant 0 : index
    %c0_91 = arith.constant 0 : index
    %278 = vector.load %arg17[%c0_90, %c0_91] : memref<1x32xf32, #tpu.memory_space<vmem>>, vector<1x32xf32>
    %c0_92 = arith.constant 0 : index
    %c0_93 = arith.constant 0 : index
    %279 = vector.load %arg18[%c0_92, %c0_93] : memref<1x32xf32, #tpu.memory_space<vmem>>, vector<1x32xf32>
    %cst_94 = arith.constant dense<0.000000e+00> : vector<16xf32>
    %280 = vector.multi_reduction <add>, %277, %cst_94 [1] : vector<16x32xf32> to vector<16xf32>
    %281 = vector.shape_cast %280 : vector<16xf32> to vector<16x1xf32>
    %cst_95 = arith.constant 3.200000e+01 : f32
    %282 = vector.broadcast %cst_95 : f32 to vector<16x1xf32>
    %283 = arith.divf %281, %282 : vector<16x1xf32>
    %284 = vector.broadcast %283 : vector<16x1xf32> to vector<16x32xf32>
    %285 = arith.subf %277, %284 : vector<16x32xf32>
    %286 = arith.mulf %285, %285 : vector<16x32xf32>
    %cst_96 = arith.constant dense<0.000000e+00> : vector<16xf32>
    %287 = vector.multi_reduction <add>, %286, %cst_96 [1] : vector<16x32xf32> to vector<16xf32>
    %288 = vector.shape_cast %287 : vector<16xf32> to vector<16x1xf32>
    %cst_97 = arith.constant 3.200000e+01 : f32
    %289 = vector.broadcast %cst_97 : f32 to vector<16x1xf32>
    %290 = arith.divf %288, %289 : vector<16x1xf32>
    %cst_98 = arith.constant 9.99999974E-6 : f32
    %291 = vector.broadcast %cst_98 : f32 to vector<16x1xf32>
    %292 = arith.addf %290, %291 : vector<16x1xf32>
    %293 = math.rsqrt %292 : vector<16x1xf32>
    %294 = vector.broadcast %293 : vector<16x1xf32> to vector<16x32xf32>
    %295 = arith.mulf %285, %294 : vector<16x32xf32>
    %296 = vector.broadcast %278 : vector<1x32xf32> to vector<16x32xf32>
    %297 = arith.mulf %295, %296 : vector<16x32xf32>
    %298 = vector.broadcast %279 : vector<1x32xf32> to vector<16x32xf32>
    %299 = arith.addf %297, %298 : vector<16x32xf32>
    %c0_99 = arith.constant 0 : index
    %c0_100 = arith.constant 0 : index
    %300 = vector.load %arg19[%c0_99, %c0_100] : memref<32x64xbf16, #tpu.memory_space<vmem>>, vector<32x64xbf16>
    %301 = arith.truncf %299 : vector<16x32xf32> to vector<16x32xbf16>
    %cst_101 = arith.constant dense<0.000000e+00> : vector<16x64xf32>
    %302 = tpu.matmul %301, %300, %cst_101 {dimension_numbers = #tpu.dot_dimension_numbers<[1], [0], [0], [1], [0, 0, 1, 1], [], []>} : vector<16x32xbf16>, vector<32x64xbf16>, vector<16x64xf32> -> vector<16x64xf32>
    %c0_102 = arith.constant 0 : index
    %c0_103 = arith.constant 0 : index
    %303 = vector.load %arg20[%c0_102, %c0_103] : memref<1x64xf32, #tpu.memory_space<vmem>>, vector<1x64xf32>
    %304 = vector.broadcast %303 : vector<1x64xf32> to vector<16x64xf32>
    %305 = arith.addf %302, %304 : vector<16x64xf32>
    %cst_104 = arith.constant 0.000000e+00 : f32
    %306 = vector.broadcast %cst_104 : f32 to vector<16x64xf32>
    %307 = arith.maximumf %305, %306 : vector<16x64xf32>
    %c0_105 = arith.constant 0 : index
    %c0_106 = arith.constant 0 : index
    %308 = vector.load %arg21[%c0_105, %c0_106] : memref<64x32xbf16, #tpu.memory_space<vmem>>, vector<64x32xbf16>
    %309 = arith.truncf %307 : vector<16x64xf32> to vector<16x64xbf16>
    %cst_107 = arith.constant dense<0.000000e+00> : vector<16x32xf32>
    %310 = tpu.matmul %309, %308, %cst_107 {dimension_numbers = #tpu.dot_dimension_numbers<[1], [0], [0], [1], [0, 0, 1, 1], [], []>} : vector<16x64xbf16>, vector<64x32xbf16>, vector<16x32xf32> -> vector<16x32xf32>
    %c0_108 = arith.constant 0 : index
    %c0_109 = arith.constant 0 : index
    %311 = vector.load %arg22[%c0_108, %c0_109] : memref<1x32xf32, #tpu.memory_space<vmem>>, vector<1x32xf32>
    %312 = vector.broadcast %311 : vector<1x32xf32> to vector<16x32xf32>
    %313 = arith.addf %310, %312 : vector<16x32xf32>
    %314 = arith.addf %299, %313 : vector<16x32xf32>
    %c0_110 = arith.constant 0 : index
    %c0_111 = arith.constant 0 : index
    %315 = vector.load %arg23[%c0_110, %c0_111] : memref<1x32xf32, #tpu.memory_space<vmem>>, vector<1x32xf32>
    %c0_112 = arith.constant 0 : index
    %c0_113 = arith.constant 0 : index
    %316 = vector.load %arg24[%c0_112, %c0_113] : memref<1x32xf32, #tpu.memory_space<vmem>>, vector<1x32xf32>
    %cst_114 = arith.constant dense<0.000000e+00> : vector<16xf32>
    %317 = vector.multi_reduction <add>, %314, %cst_114 [1] : vector<16x32xf32> to vector<16xf32>
    %318 = vector.shape_cast %317 : vector<16xf32> to vector<16x1xf32>
    %cst_115 = arith.constant 3.200000e+01 : f32
    %319 = vector.broadcast %cst_115 : f32 to vector<16x1xf32>
    %320 = arith.divf %318, %319 : vector<16x1xf32>
    %321 = vector.broadcast %320 : vector<16x1xf32> to vector<16x32xf32>
    %322 = arith.subf %314, %321 : vector<16x32xf32>
    %323 = arith.mulf %322, %322 : vector<16x32xf32>
    %cst_116 = arith.constant dense<0.000000e+00> : vector<16xf32>
    %324 = vector.multi_reduction <add>, %323, %cst_116 [1] : vector<16x32xf32> to vector<16xf32>
    %325 = vector.shape_cast %324 : vector<16xf32> to vector<16x1xf32>
    %cst_117 = arith.constant 3.200000e+01 : f32
    %326 = vector.broadcast %cst_117 : f32 to vector<16x1xf32>
    %327 = arith.divf %325, %326 : vector<16x1xf32>
    %cst_118 = arith.constant 9.99999974E-6 : f32
    %328 = vector.broadcast %cst_118 : f32 to vector<16x1xf32>
    %329 = arith.addf %327, %328 : vector<16x1xf32>
    %330 = math.rsqrt %329 : vector<16x1xf32>
    %331 = vector.broadcast %330 : vector<16x1xf32> to vector<16x32xf32>
    %332 = arith.mulf %322, %331 : vector<16x32xf32>
    %333 = vector.broadcast %315 : vector<1x32xf32> to vector<16x32xf32>
    %334 = arith.mulf %332, %333 : vector<16x32xf32>
    %335 = vector.broadcast %316 : vector<1x32xf32> to vector<16x32xf32>
    %336 = arith.addf %334, %335 : vector<16x32xf32>
    %337 = vector.shape_cast %336 : vector<16x32xf32> to vector<2x8x32xf32>
    %c0_119 = arith.constant 0 : index
    %c0_120 = arith.constant 0 : index
    %c0_121 = arith.constant 0 : index
    %338 = vector.load %arg25[%c0_119, %c0_120, %c0_121] : memref<2x8x32xf32, #tpu.memory_space<vmem>>, vector<2x8x32xf32>
    tpu.vector_store %arg25[%c0_119, %c0_120, %c0_121], %337 {strides = array<i32>} : memref<2x8x32xf32, #tpu.memory_space<vmem>>, vector<2x8x32xf32>,
    return
  }
  func.func @transform_0(%arg0: i32) -> (i32, i32, i32) {
    %c0_i32 = arith.constant 0 : i32
    %c0_i32_0 = arith.constant 0 : i32
    %c0_i32_1 = arith.constant 0 : i32
    %c0_i32_2 = arith.constant 0 : i32
    return %c0_i32, %c0_i32_0, %c0_i32_1 : i32, i32, i32
  }
  func.func @transform_1(%arg0: i32) -> (i32, i32, i32) {
    %c0_i32 = arith.constant 0 : i32
    %c0_i32_0 = arith.constant 0 : i32
    %c0_i32_1 = arith.constant 0 : i32
    %c0_i32_2 = arith.constant 0 : i32
    return %c0_i32, %c0_i32_0, %c0_i32_1 : i32, i32, i32
  }
  func.func @transform_2(%arg0: i32) -> (i32, i32, i32) {
    %c0_i32 = arith.constant 0 : i32
    %c0_i32_0 = arith.constant 0 : i32
    %c0_i32_1 = arith.constant 0 : i32
    %c0_i32_2 = arith.constant 0 : i32
    return %c0_i32, %c0_i32_0, %c0_i32_1 : i32, i32, i32
  }
  func.func @transform_3(%arg0: i32) -> (i32, i32, i32) {
    %c0_i32 = arith.constant 0 : i32
    %c0_i32_0 = arith.constant 0 : i32
    %c0_i32_1 = arith.constant 0 : i32
    %c0_i32_2 = arith.constant 0 : i32
    return %c0_i32, %c0_i32_0, %c0_i32_1 : i32, i32, i32
  }
  func.func @transform_4(%arg0: i32) -> (i32, i32) {
    %c0_i32 = arith.constant 0 : i32
    %c0_i32_0 = arith.constant 0 : i32
    %c0_i32_1 = arith.constant 0 : i32
    return %c0_i32, %c0_i32_0 : i32, i32
  }
  func.func @transform_5(%arg0: i32) -> (i32, i32) {
    %c0_i32 = arith.constant 0 : i32
    %c0_i32_0 = arith.constant 0 : i32
    %c0_i32_1 = arith.constant 0 : i32
    return %c0_i32, %c0_i32_0 : i32, i32
  }
  func.func @transform_6(%arg0: i32) -> (i32, i32) {
    %c0_i32 = arith.constant 0 : i32
    %c0_i32_0 = arith.constant 0 : i32
    %c0_i32_1 = arith.constant 0 : i32
    return %c0_i32, %c0_i32_0 : i32, i32
  }
  func.func @transform_7(%arg0: i32) -> (i32, i32) {
    %c0_i32 = arith.constant 0 : i32
    %c0_i32_0 = arith.constant 0 : i32
    %c0_i32_1 = arith.constant 0 : i32
    return %c0_i32, %c0_i32_0 : i32, i32
  }
  func.func @transform_8(%arg0: i32) -> (i32, i32) {
    %c0_i32 = arith.constant 0 : i32
    %c0_i32_0 = arith.constant 0 : i32
    %c0_i32_1 = arith.constant 0 : i32
    return %c0_i32, %c0_i32_0 : i32, i32
  }
  func.func @transform_9(%arg0: i32) -> (i32, i32) {
    %c0_i32 = arith.constant 0 : i32
    %c0_i32_0 = arith.constant 0 : i32
    %c0_i32_1 = arith.constant 0 : i32
    return %c0_i32, %c0_i32_0 : i32, i32
  }
  func.func @transform_10(%arg0: i32) -> (i32, i32) {
    %c0_i32 = arith.constant 0 : i32
    %c0_i32_0 = arith.constant 0 : i32
    %c0_i32_1 = arith.constant 0 : i32
    return %c0_i32, %c0_i32_0 : i32, i32
  }
  func.func @transform_11(%arg0: i32) -> (i32, i32) {
    %c0_i32 = arith.constant 0 : i32
    %c0_i32_0 = arith.constant 0 : i32
    %c0_i32_1 = arith.constant 0 : i32
    return %c0_i32, %c0_i32_0 : i32, i32
  }
  func.func @transform_12(%arg0: i32) -> (i32, i32) {
    %c0_i32 = arith.constant 0 : i32
    %c0_i32_0 = arith.constant 0 : i32
    %c0_i32_1 = arith.constant 0 : i32
    return %c0_i32, %c0_i32_0 : i32, i32
  }
  func.func @transform_13(%arg0: i32) -> (i32, i32) {
    %c0_i32 = arith.constant 0 : i32
    %c0_i32_0 = arith.constant 0 : i32
    %c0_i32_1 = arith.constant 0 : i32
    return %c0_i32, %c0_i32_0 : i32, i32
  }
  func.func @transform_14(%arg0: i32) -> (i32, i32) {
    %c0_i32 = arith.constant 0 : i32
    %c0_i32_0 = arith.constant 0 : i32
    %c0_i32_1 = arith.constant 0 : i32
    return %c0_i32, %c0_i32_0 : i32, i32
  }
  func.func @transform_15(%arg0: i32) -> (i32, i32) {
    %c0_i32 = arith.constant 0 : i32
    %c0_i32_0 = arith.constant 0 : i32
    %c0_i32_1 = arith.constant 0 : i32
    return %c0_i32, %c0_i32_0 : i32, i32
  }
  func.func @transform_16(%arg0: i32) -> (i32, i32) {
    %c0_i32 = arith.constant 0 : i32
    %c0_i32_0 = arith.constant 0 : i32
    %c0_i32_1 = arith.constant 0 : i32
    return %c0_i32, %c0_i32_0 : i32, i32
  }
  func.func @transform_17(%arg0: i32) -> (i32, i32) {
    %c0_i32 = arith.constant 0 : i32
    %c0_i32_0 = arith.constant 0 : i32
    %c0_i32_1 = arith.constant 0 : i32
    return %c0_i32, %c0_i32_0 : i32, i32
  }
  func.func @transform_18(%arg0: i32) -> (i32, i32) {
    %c0_i32 = arith.constant 0 : i32
    %c0_i32_0 = arith.constant 0 : i32
    %c0_i32_1 = arith.constant 0 : i32
    return %c0_i32, %c0_i32_0 : i32, i32
  }
  func.func @transform_19(%arg0: i32) -> (i32, i32) {
    %c0_i32 = arith.constant 0 : i32
    %c0_i32_0 = arith.constant 0 : i32
    %c0_i32_1 = arith.constant 0 : i32
    return %c0_i32, %c0_i32_0 : i32, i32
  }
  func.func @transform_20(%arg0: i32) -> (i32, i32) {
    %c0_i32 = arith.constant 0 : i32
    %c0_i32_0 = arith.constant 0 : i32
    %c0_i32_1 = arith.constant 0 : i32
    return %c0_i32, %c0_i32_0 : i32, i32
  }
  func.func @transform_21(%arg0: i32) -> (i32, i32) {
    %c0_i32 = arith.constant 0 : i32
    %c0_i32_0 = arith.constant 0 : i32
    %c0_i32_1 = arith.constant 0 : i32
    return %c0_i32, %c0_i32_0 : i32, i32
  }
  func.func @transform_22(%arg0: i32) -> (i32, i32) {
    %c0_i32 = arith.constant 0 : i32
    %c0_i32_0 = arith.constant 0 : i32
    %c0_i32_1 = arith.constant 0 : i32
    return %c0_i32, %c0_i32_0 : i32, i32
  }
  func.func @transform_23(%arg0: i32) -> (i32, i32) {
    %c0_i32 = arith.constant 0 : i32
    %c0_i32_0 = arith.constant 0 : i32
    %c0_i32_1 = arith.constant 0 : i32
    return %c0_i32, %c0_i32_0 : i32, i32
  }
  func.func @transform_24(%arg0: i32) -> (i32, i32, i32) {
    %c0_i32 = arith.constant 0 : i32
    %c0_i32_0 = arith.constant 0 : i32
    %c0_i32_1 = arith.constant 0 : i32
    %c0_i32_2 = arith.constant 0 : i32
    return %c0_i32, %c0_i32_0, %c0_i32_1 : i32, i32, i32
  }
}

module attributes {stable_mosaic.version = 11 : i64} {
  func.func @_dec_layer_kernel(%arg0: i32, %arg1: memref<2x8x32xf32, #tpu.memory_space<vmem>>, %arg2: memref<2x8x32xf32, #tpu.memory_space<vmem>>, %arg3: memref<2x8x8xf32, #tpu.memory_space<vmem>>, %arg4: memref<2x8x8xf32, #tpu.memory_space<vmem>>, %arg5: memref<32x96xbf16, #tpu.memory_space<vmem>>, %arg6: memref<1x96xf32, #tpu.memory_space<vmem>>, %arg7: memref<32x32xbf16, #tpu.memory_space<vmem>>, %arg8: memref<1x32xf32, #tpu.memory_space<vmem>>, %arg9: memref<1x32xf32, #tpu.memory_space<vmem>>, %arg10: memref<1x32xf32, #tpu.memory_space<vmem>>, %arg11: memref<32x32xbf16, #tpu.memory_space<vmem>>, %arg12: memref<1x32xf32, #tpu.memory_space<vmem>>, %arg13: memref<32x64xbf16, #tpu.memory_space<vmem>>, %arg14: memref<1x64xf32, #tpu.memory_space<vmem>>, %arg15: memref<32x32xbf16, #tpu.memory_space<vmem>>, %arg16: memref<1x32xf32, #tpu.memory_space<vmem>>, %arg17: memref<1x32xf32, #tpu.memory_space<vmem>>, %arg18: memref<1x32xf32, #tpu.memory_space<vmem>>, %arg19: memref<32x64xbf16, #tpu.memory_space<vmem>>, %arg20: memref<1x64xf32, #tpu.memory_space<vmem>>, %arg21: memref<64x32xbf16, #tpu.memory_space<vmem>>, %arg22: memref<1x32xf32, #tpu.memory_space<vmem>>, %arg23: memref<1x32xf32, #tpu.memory_space<vmem>>, %arg24: memref<1x32xf32, #tpu.memory_space<vmem>>, %arg25: memref<2x8x32xf32, #tpu.memory_space<vmem>>) attributes {dimension_semantics = [#tpu.dimension_semantics<arbitrary>], iteration_bounds = array<i64: 1>, scalar_prefetch = 0 : i64, scratch_operands = 0 : i64, tpu.core_type = #tpu.core_type<tc>, window_params = [{pipeline_mode = #tpu.pipeline_mode<synchronous>, transform_indices = @transform_0, window_bounds = array<i64: 2, 8, 32>}, {pipeline_mode = #tpu.pipeline_mode<synchronous>, transform_indices = @transform_1, window_bounds = array<i64: 2, 8, 32>}, {pipeline_mode = #tpu.pipeline_mode<synchronous>, transform_indices = @transform_2, window_bounds = array<i64: 2, 8, 8>}, {pipeline_mode = #tpu.pipeline_mode<synchronous>, transform_indices = @transform_3, window_bounds = array<i64: 2, 8, 8>}, {pipeline_mode = #tpu.pipeline_mode<synchronous>, transform_indices = @transform_4, window_bounds = array<i64: 32, 96>}, {pipeline_mode = #tpu.pipeline_mode<synchronous>, transform_indices = @transform_5, window_bounds = array<i64: 1, 96>}, {pipeline_mode = #tpu.pipeline_mode<synchronous>, transform_indices = @transform_6, window_bounds = array<i64: 32, 32>}, {pipeline_mode = #tpu.pipeline_mode<synchronous>, transform_indices = @transform_7, window_bounds = array<i64: 1, 32>}, {pipeline_mode = #tpu.pipeline_mode<synchronous>, transform_indices = @transform_8, window_bounds = array<i64: 1, 32>}, {pipeline_mode = #tpu.pipeline_mode<synchronous>, transform_indices = @transform_9, window_bounds = array<i64: 1, 32>}, {pipeline_mode = #tpu.pipeline_mode<synchronous>, transform_indices = @transform_10, window_bounds = array<i64: 32, 32>}, {pipeline_mode = #tpu.pipeline_mode<synchronous>, transform_indices = @transform_11, window_bounds = array<i64: 1, 32>}, {pipeline_mode = #tpu.pipeline_mode<synchronous>, transform_indices = @transform_12, window_bounds = array<i64: 32, 64>}, {pipeline_mode = #tpu.pipeline_mode<synchronous>, transform_indices = @transform_13, window_bounds = array<i64: 1, 64>}, {pipeline_mode = #tpu.pipeline_mode<synchronous>, transform_indices = @transform_14, window_bounds = array<i64: 32, 32>}, {pipeline_mode = #tpu.pipeline_mode<synchronous>, transform_indices = @transform_15, window_bounds = array<i64: 1, 32>}, {pipeline_mode = #tpu.pipeline_mode<synchronous>, transform_indices = @transform_16, window_bounds = array<i64: 1, 32>}, {pipeline_mode = #tpu.pipeline_mode<synchronous>, transform_indices = @transform_17, window_bounds = array<i64: 1, 32>}, {pipeline_mode = #tpu.pipeline_mode<synchronous>, transform_indices = @transform_18, window_bounds = array<i64: 32, 64>}, {pipeline_mode = #tpu.pipeline_mode<synchronous>, transform_indices = @transform_19, window_bounds = array<i64: 1, 64>}, {pipeline_mode = #tpu.pipeline_mode<synchronous>, transform_indices = @transform_20, window_bounds = array<i64: 64, 32>}, {pipeline_mode = #tpu.pipeline_mode<synchronous>, transform_indices = @transform_21, window_bounds = array<i64: 1, 32>}, {pipeline_mode = #tpu.pipeline_mode<synchronous>, transform_indices = @transform_22, window_bounds = array<i64: 1, 32>}, {pipeline_mode = #tpu.pipeline_mode<synchronous>, transform_indices = @transform_23, window_bounds = array<i64: 1, 32>}, {pipeline_mode = #tpu.pipeline_mode<synchronous>, transform_indices = @transform_24, window_bounds = array<i64: 2, 8, 32>}]} {
    %c0 = arith.constant 0 : index
    %c0_0 = arith.constant 0 : index
    %c0_1 = arith.constant 0 : index
    %0 = vector.load %arg1[%c0, %c0_0, %c0_1] : memref<2x8x32xf32, #tpu.memory_space<vmem>>, vector<2x8x32xf32>
    %1 = vector.shape_cast %0 : vector<2x8x32xf32> to vector<16x32xf32>
    %c0_2 = arith.constant 0 : index
    %c0_3 = arith.constant 0 : index
    %c0_4 = arith.constant 0 : index
    %2 = vector.load %arg2[%c0_2, %c0_3, %c0_4] : memref<2x8x32xf32, #tpu.memory_space<vmem>>, vector<2x8x32xf32>
    %3 = vector.shape_cast %2 : vector<2x8x32xf32> to vector<16x32xf32>
    %c0_5 = arith.constant 0 : index
    %c0_6 = arith.constant 0 : index
    %4 = vector.load %arg5[%c0_5, %c0_6] : memref<32x96xbf16, #tpu.memory_space<vmem>>, vector<32x96xbf16>
    %5 = arith.truncf %1 : vector<16x32xf32> to vector<16x32xbf16>
    %cst = arith.constant dense<0.000000e+00> : vector<16x96xf32>
    %6 = tpu.matmul %5, %4, %cst {dimension_numbers = #tpu.dot_dimension_numbers<[1], [0], [0], [1], [0, 0, 1, 1], [], []>} : vector<16x32xbf16>, vector<32x96xbf16>, vector<16x96xf32> -> vector<16x96xf32>
    %c0_7 = arith.constant 0 : index
    %c0_8 = arith.constant 0 : index
    %7 = vector.load %arg6[%c0_7, %c0_8] : memref<1x96xf32, #tpu.memory_space<vmem>>, vector<1x96xf32>
    %8 = vector.broadcast %7 : vector<1x96xf32> to vector<16x96xf32>
    %9 = arith.addf %6, %8 : vector<16x96xf32>
    %10 = vector.shape_cast %9 : vector<16x96xf32> to vector<2x8x96xf32>
    %11 = vector.extract_strided_slice %10 {offsets = [0, 0, 0], sizes = [2, 8, 32], strides = [1, 1, 1]} : vector<2x8x96xf32> to vector<2x8x32xf32>
    %12 = vector.extract_strided_slice %10 {offsets = [0, 0, 32], sizes = [2, 8, 32], strides = [1, 1, 1]} : vector<2x8x96xf32> to vector<2x8x32xf32>
    %13 = vector.extract_strided_slice %10 {offsets = [0, 0, 64], sizes = [2, 8, 32], strides = [1, 1, 1]} : vector<2x8x96xf32> to vector<2x8x32xf32>
    %c0_9 = arith.constant 0 : index
    %c0_10 = arith.constant 0 : index
    %c0_11 = arith.constant 0 : index
    %14 = vector.load %arg3[%c0_9, %c0_10, %c0_11] : memref<2x8x8xf32, #tpu.memory_space<vmem>>, vector<2x8x8xf32>
    %c0_12 = arith.constant 0 : index
    %c0_13 = arith.constant 0 : index
    %15 = vector.load %arg7[%c0_12, %c0_13] : memref<32x32xbf16, #tpu.memory_space<vmem>>, vector<32x32xbf16>
    %c0_14 = arith.constant 0 : index
    %c0_15 = arith.constant 0 : index
    %16 = vector.load %arg8[%c0_14, %c0_15] : memref<1x32xf32, #tpu.memory_space<vmem>>, vector<1x32xf32>
    %17 = vector.extract_strided_slice %11 {offsets = [0, 0, 0], sizes = [2, 8, 8], strides = [1, 1, 1]} : vector<2x8x32xf32> to vector<2x8x8xf32>
    %cst_16 = arith.constant 0.353553385 : f32
    %18 = vector.broadcast %cst_16 : f32 to vector<2x8x8xf32>
    %19 = arith.mulf %17, %18 : vector<2x8x8xf32>
    %20 = arith.truncf %19 : vector<2x8x8xf32> to vector<2x8x8xbf16>
    %21 = vector.extract_strided_slice %12 {offsets = [0, 0, 0], sizes = [2, 8, 8], strides = [1, 1, 1]} : vector<2x8x32xf32> to vector<2x8x8xf32>
    %22 = arith.truncf %21 : vector<2x8x8xf32> to vector<2x8x8xbf16>
    %23 = vector.extract_strided_slice %13 {offsets = [0, 0, 0], sizes = [2, 8, 8], strides = [1, 1, 1]} : vector<2x8x32xf32> to vector<2x8x8xf32>
    %24 = arith.truncf %23 : vector<2x8x8xf32> to vector<2x8x8xbf16>
    "tpu.trace_start"() <{level = 10 : i32, message = "bqd,bkd->bqk"}> : () -> ()
    %cst_17 = arith.constant dense<0.000000e+00> : vector<2x8x8xf32>
    %25 = tpu.matmul %20, %22, %cst_17 {dimension_numbers = #tpu.dot_dimension_numbers<[2], [2], [1], [1], [0, 0, 0, 1, 1, 1], [0], [0]>} : vector<2x8x8xbf16>, vector<2x8x8xbf16>, vector<2x8x8xf32> -> vector<2x8x8xf32>
    "tpu.trace_stop"() : () -> ()
    %26 = arith.addf %25, %14 : vector<2x8x8xf32>
    %cst_18 = arith.constant dense<0xFF800000> : vector<2x8xf32>
    %27 = vector.multi_reduction <maximumf>, %26, %cst_18 [2] : vector<2x8x8xf32> to vector<2x8xf32>
    %28 = vector.shape_cast %27 : vector<2x8xf32> to vector<2x8x1xf32>
    %29 = vector.broadcast %28 : vector<2x8x1xf32> to vector<2x8x8xf32>
    %30 = arith.subf %26, %29 : vector<2x8x8xf32>
    %31 = math.exp %30 : vector<2x8x8xf32>
    %cst_19 = arith.constant dense<0.000000e+00> : vector<2x8xf32>
    %32 = vector.multi_reduction <add>, %31, %cst_19 [2] : vector<2x8x8xf32> to vector<2x8xf32>
    %33 = vector.shape_cast %32 : vector<2x8xf32> to vector<2x8x1xf32>
    %34 = tpu.reciprocal %33 {approx = true} : vector<2x8x1xf32> -> vector<2x8x1xf32>
    %35 = vector.broadcast %34 : vector<2x8x1xf32> to vector<2x8x8xf32>
    %36 = arith.mulf %31, %35 : vector<2x8x8xf32>
    %37 = arith.truncf %36 : vector<2x8x8xf32> to vector<2x8x8xbf16>
    "tpu.trace_start"() <{level = 10 : i32, message = "bqk,bkd->bqd"}> : () -> ()
    %cst_20 = arith.constant dense<0.000000e+00> : vector<2x8x8xf32>
    %38 = tpu.matmul %37, %24, %cst_20 {dimension_numbers = #tpu.dot_dimension_numbers<[2], [1], [1], [2], [0, 0, 0, 1, 1, 2], [0], [0]>} : vector<2x8x8xbf16>, vector<2x8x8xbf16>, vector<2x8x8xf32> -> vector<2x8x8xf32>
    "tpu.trace_stop"() : () -> ()
    %39 = vector.shape_cast %38 : vector<2x8x8xf32> to vector<16x8xf32>
    %40 = vector.extract_strided_slice %15 {offsets = [0, 0], sizes = [8, 32], strides = [1, 1]} : vector<32x32xbf16> to vector<8x32xbf16>
    %41 = arith.truncf %39 : vector<16x8xf32> to vector<16x8xbf16>
    %cst_21 = arith.constant dense<0.000000e+00> : vector<16x32xf32>
    %42 = tpu.matmul %41, %40, %cst_21 {dimension_numbers = #tpu.dot_dimension_numbers<[1], [0], [0], [1], [0, 0, 1, 1], [], []>} : vector<16x8xbf16>, vector<8x32xbf16>, vector<16x32xf32> -> vector<16x32xf32>
    %43 = vector.extract_strided_slice %11 {offsets = [0, 0, 8], sizes = [2, 8, 8], strides = [1, 1, 1]} : vector<2x8x32xf32> to vector<2x8x8xf32>
    %cst_22 = arith.constant 0.353553385 : f32
    %44 = vector.broadcast %cst_22 : f32 to vector<2x8x8xf32>
    %45 = arith.mulf %43, %44 : vector<2x8x8xf32>
    %46 = arith.truncf %45 : vector<2x8x8xf32> to vector<2x8x8xbf16>
    %47 = vector.extract_strided_slice %12 {offsets = [0, 0, 8], sizes = [2, 8, 8], strides = [1, 1, 1]} : vector<2x8x32xf32> to vector<2x8x8xf32>
    %48 = arith.truncf %47 : vector<2x8x8xf32> to vector<2x8x8xbf16>
    %49 = vector.extract_strided_slice %13 {offsets = [0, 0, 8], sizes = [2, 8, 8], strides = [1, 1, 1]} : vector<2x8x32xf32> to vector<2x8x8xf32>
    %50 = arith.truncf %49 : vector<2x8x8xf32> to vector<2x8x8xbf16>
    "tpu.trace_start"() <{level = 10 : i32, message = "bqd,bkd->bqk"}> : () -> ()
    %cst_23 = arith.constant dense<0.000000e+00> : vector<2x8x8xf32>
    %51 = tpu.matmul %46, %48, %cst_23 {dimension_numbers = #tpu.dot_dimension_numbers<[2], [2], [1], [1], [0, 0, 0, 1, 1, 1], [0], [0]>} : vector<2x8x8xbf16>, vector<2x8x8xbf16>, vector<2x8x8xf32> -> vector<2x8x8xf32>
    "tpu.trace_stop"() : () -> ()
    %52 = arith.addf %51, %14 : vector<2x8x8xf32>
    %cst_24 = arith.constant dense<0xFF800000> : vector<2x8xf32>
    %53 = vector.multi_reduction <maximumf>, %52, %cst_24 [2] : vector<2x8x8xf32> to vector<2x8xf32>
    %54 = vector.shape_cast %53 : vector<2x8xf32> to vector<2x8x1xf32>
    %55 = vector.broadcast %54 : vector<2x8x1xf32> to vector<2x8x8xf32>
    %56 = arith.subf %52, %55 : vector<2x8x8xf32>
    %57 = math.exp %56 : vector<2x8x8xf32>
    %cst_25 = arith.constant dense<0.000000e+00> : vector<2x8xf32>
    %58 = vector.multi_reduction <add>, %57, %cst_25 [2] : vector<2x8x8xf32> to vector<2x8xf32>
    %59 = vector.shape_cast %58 : vector<2x8xf32> to vector<2x8x1xf32>
    %60 = tpu.reciprocal %59 {approx = true} : vector<2x8x1xf32> -> vector<2x8x1xf32>
    %61 = vector.broadcast %60 : vector<2x8x1xf32> to vector<2x8x8xf32>
    %62 = arith.mulf %57, %61 : vector<2x8x8xf32>
    %63 = arith.truncf %62 : vector<2x8x8xf32> to vector<2x8x8xbf16>
    "tpu.trace_start"() <{level = 10 : i32, message = "bqk,bkd->bqd"}> : () -> ()
    %cst_26 = arith.constant dense<0.000000e+00> : vector<2x8x8xf32>
    %64 = tpu.matmul %63, %50, %cst_26 {dimension_numbers = #tpu.dot_dimension_numbers<[2], [1], [1], [2], [0, 0, 0, 1, 1, 2], [0], [0]>} : vector<2x8x8xbf16>, vector<2x8x8xbf16>, vector<2x8x8xf32> -> vector<2x8x8xf32>
    "tpu.trace_stop"() : () -> ()
    %65 = vector.shape_cast %64 : vector<2x8x8xf32> to vector<16x8xf32>
    %66 = vector.extract_strided_slice %15 {offsets = [8, 0], sizes = [8, 32], strides = [1, 1]} : vector<32x32xbf16> to vector<8x32xbf16>
    %67 = arith.truncf %65 : vector<16x8xf32> to vector<16x8xbf16>
    %cst_27 = arith.constant dense<0.000000e+00> : vector<16x32xf32>
    %68 = tpu.matmul %67, %66, %cst_27 {dimension_numbers = #tpu.dot_dimension_numbers<[1], [0], [0], [1], [0, 0, 1, 1], [], []>} : vector<16x8xbf16>, vector<8x32xbf16>, vector<16x32xf32> -> vector<16x32xf32>
    %69 = arith.addf %42, %68 : vector<16x32xf32>
    %70 = vector.extract_strided_slice %11 {offsets = [0, 0, 16], sizes = [2, 8, 8], strides = [1, 1, 1]} : vector<2x8x32xf32> to vector<2x8x8xf32>
    %cst_28 = arith.constant 0.353553385 : f32
    %71 = vector.broadcast %cst_28 : f32 to vector<2x8x8xf32>
    %72 = arith.mulf %70, %71 : vector<2x8x8xf32>
    %73 = arith.truncf %72 : vector<2x8x8xf32> to vector<2x8x8xbf16>
    %74 = vector.extract_strided_slice %12 {offsets = [0, 0, 16], sizes = [2, 8, 8], strides = [1, 1, 1]} : vector<2x8x32xf32> to vector<2x8x8xf32>
    %75 = arith.truncf %74 : vector<2x8x8xf32> to vector<2x8x8xbf16>
    %76 = vector.extract_strided_slice %13 {offsets = [0, 0, 16], sizes = [2, 8, 8], strides = [1, 1, 1]} : vector<2x8x32xf32> to vector<2x8x8xf32>
    %77 = arith.truncf %76 : vector<2x8x8xf32> to vector<2x8x8xbf16>
    "tpu.trace_start"() <{level = 10 : i32, message = "bqd,bkd->bqk"}> : () -> ()
    %cst_29 = arith.constant dense<0.000000e+00> : vector<2x8x8xf32>
    %78 = tpu.matmul %73, %75, %cst_29 {dimension_numbers = #tpu.dot_dimension_numbers<[2], [2], [1], [1], [0, 0, 0, 1, 1, 1], [0], [0]>} : vector<2x8x8xbf16>, vector<2x8x8xbf16>, vector<2x8x8xf32> -> vector<2x8x8xf32>
    "tpu.trace_stop"() : () -> ()
    %79 = arith.addf %78, %14 : vector<2x8x8xf32>
    %cst_30 = arith.constant dense<0xFF800000> : vector<2x8xf32>
    %80 = vector.multi_reduction <maximumf>, %79, %cst_30 [2] : vector<2x8x8xf32> to vector<2x8xf32>
    %81 = vector.shape_cast %80 : vector<2x8xf32> to vector<2x8x1xf32>
    %82 = vector.broadcast %81 : vector<2x8x1xf32> to vector<2x8x8xf32>
    %83 = arith.subf %79, %82 : vector<2x8x8xf32>
    %84 = math.exp %83 : vector<2x8x8xf32>
    %cst_31 = arith.constant dense<0.000000e+00> : vector<2x8xf32>
    %85 = vector.multi_reduction <add>, %84, %cst_31 [2] : vector<2x8x8xf32> to vector<2x8xf32>
    %86 = vector.shape_cast %85 : vector<2x8xf32> to vector<2x8x1xf32>
    %87 = tpu.reciprocal %86 {approx = true} : vector<2x8x1xf32> -> vector<2x8x1xf32>
    %88 = vector.broadcast %87 : vector<2x8x1xf32> to vector<2x8x8xf32>
    %89 = arith.mulf %84, %88 : vector<2x8x8xf32>
    %90 = arith.truncf %89 : vector<2x8x8xf32> to vector<2x8x8xbf16>
    "tpu.trace_start"() <{level = 10 : i32, message = "bqk,bkd->bqd"}> : () -> ()
    %cst_32 = arith.constant dense<0.000000e+00> : vector<2x8x8xf32>
    %91 = tpu.matmul %90, %77, %cst_32 {dimension_numbers = #tpu.dot_dimension_numbers<[2], [1], [1], [2], [0, 0, 0, 1, 1, 2], [0], [0]>} : vector<2x8x8xbf16>, vector<2x8x8xbf16>, vector<2x8x8xf32> -> vector<2x8x8xf32>
    "tpu.trace_stop"() : () -> ()
    %92 = vector.shape_cast %91 : vector<2x8x8xf32> to vector<16x8xf32>
    %93 = vector.extract_strided_slice %15 {offsets = [16, 0], sizes = [8, 32], strides = [1, 1]} : vector<32x32xbf16> to vector<8x32xbf16>
    %94 = arith.truncf %92 : vector<16x8xf32> to vector<16x8xbf16>
    %cst_33 = arith.constant dense<0.000000e+00> : vector<16x32xf32>
    %95 = tpu.matmul %94, %93, %cst_33 {dimension_numbers = #tpu.dot_dimension_numbers<[1], [0], [0], [1], [0, 0, 1, 1], [], []>} : vector<16x8xbf16>, vector<8x32xbf16>, vector<16x32xf32> -> vector<16x32xf32>
    %96 = arith.addf %69, %95 : vector<16x32xf32>
    %97 = vector.extract_strided_slice %11 {offsets = [0, 0, 24], sizes = [2, 8, 8], strides = [1, 1, 1]} : vector<2x8x32xf32> to vector<2x8x8xf32>
    %cst_34 = arith.constant 0.353553385 : f32
    %98 = vector.broadcast %cst_34 : f32 to vector<2x8x8xf32>
    %99 = arith.mulf %97, %98 : vector<2x8x8xf32>
    %100 = arith.truncf %99 : vector<2x8x8xf32> to vector<2x8x8xbf16>
    %101 = vector.extract_strided_slice %12 {offsets = [0, 0, 24], sizes = [2, 8, 8], strides = [1, 1, 1]} : vector<2x8x32xf32> to vector<2x8x8xf32>
    %102 = arith.truncf %101 : vector<2x8x8xf32> to vector<2x8x8xbf16>
    %103 = vector.extract_strided_slice %13 {offsets = [0, 0, 24], sizes = [2, 8, 8], strides = [1, 1, 1]} : vector<2x8x32xf32> to vector<2x8x8xf32>
    %104 = arith.truncf %103 : vector<2x8x8xf32> to vector<2x8x8xbf16>
    "tpu.trace_start"() <{level = 10 : i32, message = "bqd,bkd->bqk"}> : () -> ()
    %cst_35 = arith.constant dense<0.000000e+00> : vector<2x8x8xf32>
    %105 = tpu.matmul %100, %102, %cst_35 {dimension_numbers = #tpu.dot_dimension_numbers<[2], [2], [1], [1], [0, 0, 0, 1, 1, 1], [0], [0]>} : vector<2x8x8xbf16>, vector<2x8x8xbf16>, vector<2x8x8xf32> -> vector<2x8x8xf32>
    "tpu.trace_stop"() : () -> ()
    %106 = arith.addf %105, %14 : vector<2x8x8xf32>
    %cst_36 = arith.constant dense<0xFF800000> : vector<2x8xf32>
    %107 = vector.multi_reduction <maximumf>, %106, %cst_36 [2] : vector<2x8x8xf32> to vector<2x8xf32>
    %108 = vector.shape_cast %107 : vector<2x8xf32> to vector<2x8x1xf32>
    %109 = vector.broadcast %108 : vector<2x8x1xf32> to vector<2x8x8xf32>
    %110 = arith.subf %106, %109 : vector<2x8x8xf32>
    %111 = math.exp %110 : vector<2x8x8xf32>
    %cst_37 = arith.constant dense<0.000000e+00> : vector<2x8xf32>
    %112 = vector.multi_reduction <add>, %111, %cst_37 [2] : vector<2x8x8xf32> to vector<2x8xf32>
    %113 = vector.shape_cast %112 : vector<2x8xf32> to vector<2x8x1xf32>
    %114 = tpu.reciprocal %113 {approx = true} : vector<2x8x1xf32> -> vector<2x8x1xf32>
    %115 = vector.broadcast %114 : vector<2x8x1xf32> to vector<2x8x8xf32>
    %116 = arith.mulf %111, %115 : vector<2x8x8xf32>
    %117 = arith.truncf %116 : vector<2x8x8xf32> to vector<2x8x8xbf16>
    "tpu.trace_start"() <{level = 10 : i32, message = "bqk,bkd->bqd"}> : () -> ()
    %cst_38 = arith.constant dense<0.000000e+00> : vector<2x8x8xf32>
    %118 = tpu.matmul %117, %104, %cst_38 {dimension_numbers = #tpu.dot_dimension_numbers<[2], [1], [1], [2], [0, 0, 0, 1, 1, 2], [0], [0]>} : vector<2x8x8xbf16>, vector<2x8x8xbf16>, vector<2x8x8xf32> -> vector<2x8x8xf32>
    "tpu.trace_stop"() : () -> ()
    %119 = vector.shape_cast %118 : vector<2x8x8xf32> to vector<16x8xf32>
    %120 = vector.extract_strided_slice %15 {offsets = [24, 0], sizes = [8, 32], strides = [1, 1]} : vector<32x32xbf16> to vector<8x32xbf16>
    %121 = arith.truncf %119 : vector<16x8xf32> to vector<16x8xbf16>
    %cst_39 = arith.constant dense<0.000000e+00> : vector<16x32xf32>
    %122 = tpu.matmul %121, %120, %cst_39 {dimension_numbers = #tpu.dot_dimension_numbers<[1], [0], [0], [1], [0, 0, 1, 1], [], []>} : vector<16x8xbf16>, vector<8x32xbf16>, vector<16x32xf32> -> vector<16x32xf32>
    %123 = arith.addf %96, %122 : vector<16x32xf32>
    %124 = vector.broadcast %16 : vector<1x32xf32> to vector<16x32xf32>
    %125 = arith.addf %123, %124 : vector<16x32xf32>
    %126 = arith.addf %1, %125 : vector<16x32xf32>
    %c0_40 = arith.constant 0 : index
    %c0_41 = arith.constant 0 : index
    %127 = vector.load %arg9[%c0_40, %c0_41] : memref<1x32xf32, #tpu.memory_space<vmem>>, vector<1x32xf32>
    %c0_42 = arith.constant 0 : index
    %c0_43 = arith.constant 0 : index
    %128 = vector.load %arg10[%c0_42, %c0_43] : memref<1x32xf32, #tpu.memory_space<vmem>>, vector<1x32xf32>
    %cst_44 = arith.constant dense<0.000000e+00> : vector<16xf32>
    %129 = vector.multi_reduction <add>, %126, %cst_44 [1] : vector<16x32xf32> to vector<16xf32>
    %130 = vector.shape_cast %129 : vector<16xf32> to vector<16x1xf32>
    %cst_45 = arith.constant 3.200000e+01 : f32
    %131 = vector.broadcast %cst_45 : f32 to vector<16x1xf32>
    %132 = arith.divf %130, %131 : vector<16x1xf32>
    %133 = vector.broadcast %132 : vector<16x1xf32> to vector<16x32xf32>
    %134 = arith.subf %126, %133 : vector<16x32xf32>
    %135 = arith.mulf %134, %134 : vector<16x32xf32>
    %cst_46 = arith.constant dense<0.000000e+00> : vector<16xf32>
    %136 = vector.multi_reduction <add>, %135, %cst_46 [1] : vector<16x32xf32> to vector<16xf32>
    %137 = vector.shape_cast %136 : vector<16xf32> to vector<16x1xf32>
    %cst_47 = arith.constant 3.200000e+01 : f32
    %138 = vector.broadcast %cst_47 : f32 to vector<16x1xf32>
    %139 = arith.divf %137, %138 : vector<16x1xf32>
    %cst_48 = arith.constant 9.99999974E-6 : f32
    %140 = vector.broadcast %cst_48 : f32 to vector<16x1xf32>
    %141 = arith.addf %139, %140 : vector<16x1xf32>
    %142 = math.rsqrt %141 : vector<16x1xf32>
    %143 = vector.broadcast %142 : vector<16x1xf32> to vector<16x32xf32>
    %144 = arith.mulf %134, %143 : vector<16x32xf32>
    %145 = vector.broadcast %127 : vector<1x32xf32> to vector<16x32xf32>
    %146 = arith.mulf %144, %145 : vector<16x32xf32>
    %147 = vector.broadcast %128 : vector<1x32xf32> to vector<16x32xf32>
    %148 = arith.addf %146, %147 : vector<16x32xf32>
    %c0_49 = arith.constant 0 : index
    %c0_50 = arith.constant 0 : index
    %149 = vector.load %arg11[%c0_49, %c0_50] : memref<32x32xbf16, #tpu.memory_space<vmem>>, vector<32x32xbf16>
    %150 = arith.truncf %148 : vector<16x32xf32> to vector<16x32xbf16>
    %cst_51 = arith.constant dense<0.000000e+00> : vector<16x32xf32>
    %151 = tpu.matmul %150, %149, %cst_51 {dimension_numbers = #tpu.dot_dimension_numbers<[1], [0], [0], [1], [0, 0, 1, 1], [], []>} : vector<16x32xbf16>, vector<32x32xbf16>, vector<16x32xf32> -> vector<16x32xf32>
    %c0_52 = arith.constant 0 : index
    %c0_53 = arith.constant 0 : index
    %152 = vector.load %arg12[%c0_52, %c0_53] : memref<1x32xf32, #tpu.memory_space<vmem>>, vector<1x32xf32>
    %153 = vector.broadcast %152 : vector<1x32xf32> to vector<16x32xf32>
    %154 = arith.addf %151, %153 : vector<16x32xf32>
    %155 = vector.shape_cast %154 : vector<16x32xf32> to vector<2x8x32xf32>
    %c0_54 = arith.constant 0 : index
    %c0_55 = arith.constant 0 : index
    %156 = vector.load %arg13[%c0_54, %c0_55] : memref<32x64xbf16, #tpu.memory_space<vmem>>, vector<32x64xbf16>
    %157 = arith.truncf %3 : vector<16x32xf32> to vector<16x32xbf16>
    %cst_56 = arith.constant dense<0.000000e+00> : vector<16x64xf32>
    %158 = tpu.matmul %157, %156, %cst_56 {dimension_numbers = #tpu.dot_dimension_numbers<[1], [0], [0], [1], [0, 0, 1, 1], [], []>} : vector<16x32xbf16>, vector<32x64xbf16>, vector<16x64xf32> -> vector<16x64xf32>
    %c0_57 = arith.constant 0 : index
    %c0_58 = arith.constant 0 : index
    %159 = vector.load %arg14[%c0_57, %c0_58] : memref<1x64xf32, #tpu.memory_space<vmem>>, vector<1x64xf32>
    %160 = vector.broadcast %159 : vector<1x64xf32> to vector<16x64xf32>
    %161 = arith.addf %158, %160 : vector<16x64xf32>
    %162 = vector.shape_cast %161 : vector<16x64xf32> to vector<2x8x64xf32>
    %163 = vector.extract_strided_slice %162 {offsets = [0, 0, 0], sizes = [2, 8, 32], strides = [1, 1, 1]} : vector<2x8x64xf32> to vector<2x8x32xf32>
    %164 = vector.extract_strided_slice %162 {offsets = [0, 0, 32], sizes = [2, 8, 32], strides = [1, 1, 1]} : vector<2x8x64xf32> to vector<2x8x32xf32>
    %c0_59 = arith.constant 0 : index
    %c0_60 = arith.constant 0 : index
    %c0_61 = arith.constant 0 : index
    %165 = vector.load %arg4[%c0_59, %c0_60, %c0_61] : memref<2x8x8xf32, #tpu.memory_space<vmem>>, vector<2x8x8xf32>
    %c0_62 = arith.constant 0 : index
    %c0_63 = arith.constant 0 : index
    %166 = vector.load %arg15[%c0_62, %c0_63] : memref<32x32xbf16, #tpu.memory_space<vmem>>, vector<32x32xbf16>
    %c0_64 = arith.constant 0 : index
    %c0_65 = arith.constant 0 : index
    %167 = vector.load %arg16[%c0_64, %c0_65] : memref<1x32xf32, #tpu.memory_space<vmem>>, vector<1x32xf32>
    %168 = vector.extract_strided_slice %155 {offsets = [0, 0, 0], sizes = [2, 8, 8], strides = [1, 1, 1]} : vector<2x8x32xf32> to vector<2x8x8xf32>
    %cst_66 = arith.constant 0.353553385 : f32
    %169 = vector.broadcast %cst_66 : f32 to vector<2x8x8xf32>
    %170 = arith.mulf %168, %169 : vector<2x8x8xf32>
    %171 = arith.truncf %170 : vector<2x8x8xf32> to vector<2x8x8xbf16>
    %172 = vector.extract_strided_slice %163 {offsets = [0, 0, 0], sizes = [2, 8, 8], strides = [1, 1, 1]} : vector<2x8x32xf32> to vector<2x8x8xf32>
    %173 = arith.truncf %172 : vector<2x8x8xf32> to vector<2x8x8xbf16>
    %174 = vector.extract_strided_slice %164 {offsets = [0, 0, 0], sizes = [2, 8, 8], strides = [1, 1, 1]} : vector<2x8x32xf32> to vector<2x8x8xf32>
    %175 = arith.truncf %174 : vector<2x8x8xf32> to vector<2x8x8xbf16>
    "tpu.trace_start"() <{level = 10 : i32, message = "bqd,bkd->bqk"}> : () -> ()
    %cst_67 = arith.constant dense<0.000000e+00> : vector<2x8x8xf32>
    %176 = tpu.matmul %171, %173, %cst_67 {dimension_numbers = #tpu.dot_dimension_numbers<[2], [2], [1], [1], [0, 0, 0, 1, 1, 1], [0], [0]>} : vector<2x8x8xbf16>, vector<2x8x8xbf16>, vector<2x8x8xf32> -> vector<2x8x8xf32>
    "tpu.trace_stop"() : () -> ()
    %177 = arith.addf %176, %165 : vector<2x8x8xf32>
    %cst_68 = arith.constant dense<0xFF800000> : vector<2x8xf32>
    %178 = vector.multi_reduction <maximumf>, %177, %cst_68 [2] : vector<2x8x8xf32> to vector<2x8xf32>
    %179 = vector.shape_cast %178 : vector<2x8xf32> to vector<2x8x1xf32>
    %180 = vector.broadcast %179 : vector<2x8x1xf32> to vector<2x8x8xf32>
    %181 = arith.subf %177, %180 : vector<2x8x8xf32>
    %182 = math.exp %181 : vector<2x8x8xf32>
    %cst_69 = arith.constant dense<0.000000e+00> : vector<2x8xf32>
    %183 = vector.multi_reduction <add>, %182, %cst_69 [2] : vector<2x8x8xf32> to vector<2x8xf32>
    %184 = vector.shape_cast %183 : vector<2x8xf32> to vector<2x8x1xf32>
    %185 = tpu.reciprocal %184 {approx = true} : vector<2x8x1xf32> -> vector<2x8x1xf32>
    %186 = vector.broadcast %185 : vector<2x8x1xf32> to vector<2x8x8xf32>
    %187 = arith.mulf %182, %186 : vector<2x8x8xf32>
    %188 = arith.truncf %187 : vector<2x8x8xf32> to vector<2x8x8xbf16>
    "tpu.trace_start"() <{level = 10 : i32, message = "bqk,bkd->bqd"}> : () -> ()
    %cst_70 = arith.constant dense<0.000000e+00> : vector<2x8x8xf32>
    %189 = tpu.matmul %188, %175, %cst_70 {dimension_numbers = #tpu.dot_dimension_numbers<[2], [1], [1], [2], [0, 0, 0, 1, 1, 2], [0], [0]>} : vector<2x8x8xbf16>, vector<2x8x8xbf16>, vector<2x8x8xf32> -> vector<2x8x8xf32>
    "tpu.trace_stop"() : () -> ()
    %190 = vector.shape_cast %189 : vector<2x8x8xf32> to vector<16x8xf32>
    %191 = vector.extract_strided_slice %166 {offsets = [0, 0], sizes = [8, 32], strides = [1, 1]} : vector<32x32xbf16> to vector<8x32xbf16>
    %192 = arith.truncf %190 : vector<16x8xf32> to vector<16x8xbf16>
    %cst_71 = arith.constant dense<0.000000e+00> : vector<16x32xf32>
    %193 = tpu.matmul %192, %191, %cst_71 {dimension_numbers = #tpu.dot_dimension_numbers<[1], [0], [0], [1], [0, 0, 1, 1], [], []>} : vector<16x8xbf16>, vector<8x32xbf16>, vector<16x32xf32> -> vector<16x32xf32>
    %194 = vector.extract_strided_slice %155 {offsets = [0, 0, 8], sizes = [2, 8, 8], strides = [1, 1, 1]} : vector<2x8x32xf32> to vector<2x8x8xf32>
    %cst_72 = arith.constant 0.353553385 : f32
    %195 = vector.broadcast %cst_72 : f32 to vector<2x8x8xf32>
    %196 = arith.mulf %194, %195 : vector<2x8x8xf32>
    %197 = arith.truncf %196 : vector<2x8x8xf32> to vector<2x8x8xbf16>
    %198 = vector.extract_strided_slice %163 {offsets = [0, 0, 8], sizes = [2, 8, 8], strides = [1, 1, 1]} : vector<2x8x32xf32> to vector<2x8x8xf32>
    %199 = arith.truncf %198 : vector<2x8x8xf32> to vector<2x8x8xbf16>
    %200 = vector.extract_strided_slice %164 {offsets = [0, 0, 8], sizes = [2, 8, 8], strides = [1, 1, 1]} : vector<2x8x32xf32> to vector<2x8x8xf32>
    %201 = arith.truncf %200 : vector<2x8x8xf32> to vector<2x8x8xbf16>
    "tpu.trace_start"() <{level = 10 : i32, message = "bqd,bkd->bqk"}> : () -> ()
    %cst_73 = arith.constant dense<0.000000e+00> : vector<2x8x8xf32>
    %202 = tpu.matmul %197, %199, %cst_73 {dimension_numbers = #tpu.dot_dimension_numbers<[2], [2], [1], [1], [0, 0, 0, 1, 1, 1], [0], [0]>} : vector<2x8x8xbf16>, vector<2x8x8xbf16>, vector<2x8x8xf32> -> vector<2x8x8xf32>
    "tpu.trace_stop"() : () -> ()
    %203 = arith.addf %202, %165 : vector<2x8x8xf32>
    %cst_74 = arith.constant dense<0xFF800000> : vector<2x8xf32>
    %204 = vector.multi_reduction <maximumf>, %203, %cst_74 [2] : vector<2x8x8xf32> to vector<2x8xf32>
    %205 = vector.shape_cast %204 : vector<2x8xf32> to vector<2x8x1xf32>
    %206 = vector.broadcast %205 : vector<2x8x1xf32> to vector<2x8x8xf32>
    %207 = arith.subf %203, %206 : vector<2x8x8xf32>
    %208 = math.exp %207 : vector<2x8x8xf32>
    %cst_75 = arith.constant dense<0.000000e+00> : vector<2x8xf32>
    %209 = vector.multi_reduction <add>, %208, %cst_75 [2] : vector<2x8x8xf32> to vector<2x8xf32>
    %210 = vector.shape_cast %209 : vector<2x8xf32> to vector<2x8x1xf32>
    %211 = tpu.reciprocal %210 {approx = true} : vector<2x8x1xf32> -> vector<2x8x1xf32>
    %212 = vector.broadcast %211 : vector<2x8x1xf32> to vector<2x8x8xf32>
    %213 = arith.mulf %208, %212 : vector<2x8x8xf32>
    %214 = arith.truncf %213 : vector<2x8x8xf32> to vector<2x8x8xbf16>
    "tpu.trace_start"() <{level = 10 : i32, message = "bqk,bkd->bqd"}> : () -> ()
    %cst_76 = arith.constant dense<0.000000e+00> : vector<2x8x8xf32>
    %215 = tpu.matmul %214, %201, %cst_76 {dimension_numbers = #tpu.dot_dimension_numbers<[2], [1], [1], [2], [0, 0, 0, 1, 1, 2], [0], [0]>} : vector<2x8x8xbf16>, vector<2x8x8xbf16>, vector<2x8x8xf32> -> vector<2x8x8xf32>
    "tpu.trace_stop"() : () -> ()
    %216 = vector.shape_cast %215 : vector<2x8x8xf32> to vector<16x8xf32>
    %217 = vector.extract_strided_slice %166 {offsets = [8, 0], sizes = [8, 32], strides = [1, 1]} : vector<32x32xbf16> to vector<8x32xbf16>
    %218 = arith.truncf %216 : vector<16x8xf32> to vector<16x8xbf16>
    %cst_77 = arith.constant dense<0.000000e+00> : vector<16x32xf32>
    %219 = tpu.matmul %218, %217, %cst_77 {dimension_numbers = #tpu.dot_dimension_numbers<[1], [0], [0], [1], [0, 0, 1, 1], [], []>} : vector<16x8xbf16>, vector<8x32xbf16>, vector<16x32xf32> -> vector<16x32xf32>
    %220 = arith.addf %193, %219 : vector<16x32xf32>
    %221 = vector.extract_strided_slice %155 {offsets = [0, 0, 16], sizes = [2, 8, 8], strides = [1, 1, 1]} : vector<2x8x32xf32> to vector<2x8x8xf32>
    %cst_78 = arith.constant 0.353553385 : f32
    %222 = vector.broadcast %cst_78 : f32 to vector<2x8x8xf32>
    %223 = arith.mulf %221, %222 : vector<2x8x8xf32>
    %224 = arith.truncf %223 : vector<2x8x8xf32> to vector<2x8x8xbf16>
    %225 = vector.extract_strided_slice %163 {offsets = [0, 0, 16], sizes = [2, 8, 8], strides = [1, 1, 1]} : vector<2x8x32xf32> to vector<2x8x8xf32>
    %226 = arith.truncf %225 : vector<2x8x8xf32> to vector<2x8x8xbf16>
    %227 = vector.extract_strided_slice %164 {offsets = [0, 0, 16], sizes = [2, 8, 8], strides = [1, 1, 1]} : vector<2x8x32xf32> to vector<2x8x8xf32>
    %228 = arith.truncf %227 : vector<2x8x8xf32> to vector<2x8x8xbf16>
    "tpu.trace_start"() <{level = 10 : i32, message = "bqd,bkd->bqk"}> : () -> ()
    %cst_79 = arith.constant dense<0.000000e+00> : vector<2x8x8xf32>
    %229 = tpu.matmul %224, %226, %cst_79 {dimension_numbers = #tpu.dot_dimension_numbers<[2], [2], [1], [1], [0, 0, 0, 1, 1, 1], [0], [0]>} : vector<2x8x8xbf16>, vector<2x8x8xbf16>, vector<2x8x8xf32> -> vector<2x8x8xf32>
    "tpu.trace_stop"() : () -> ()
    %230 = arith.addf %229, %165 : vector<2x8x8xf32>
    %cst_80 = arith.constant dense<0xFF800000> : vector<2x8xf32>
    %231 = vector.multi_reduction <maximumf>, %230, %cst_80 [2] : vector<2x8x8xf32> to vector<2x8xf32>
    %232 = vector.shape_cast %231 : vector<2x8xf32> to vector<2x8x1xf32>
    %233 = vector.broadcast %232 : vector<2x8x1xf32> to vector<2x8x8xf32>
    %234 = arith.subf %230, %233 : vector<2x8x8xf32>
    %235 = math.exp %234 : vector<2x8x8xf32>
    %cst_81 = arith.constant dense<0.000000e+00> : vector<2x8xf32>
    %236 = vector.multi_reduction <add>, %235, %cst_81 [2] : vector<2x8x8xf32> to vector<2x8xf32>
    %237 = vector.shape_cast %236 : vector<2x8xf32> to vector<2x8x1xf32>
    %238 = tpu.reciprocal %237 {approx = true} : vector<2x8x1xf32> -> vector<2x8x1xf32>
    %239 = vector.broadcast %238 : vector<2x8x1xf32> to vector<2x8x8xf32>
    %240 = arith.mulf %235, %239 : vector<2x8x8xf32>
    %241 = arith.truncf %240 : vector<2x8x8xf32> to vector<2x8x8xbf16>
    "tpu.trace_start"() <{level = 10 : i32, message = "bqk,bkd->bqd"}> : () -> ()
    %cst_82 = arith.constant dense<0.000000e+00> : vector<2x8x8xf32>
    %242 = tpu.matmul %241, %228, %cst_82 {dimension_numbers = #tpu.dot_dimension_numbers<[2], [1], [1], [2], [0, 0, 0, 1, 1, 2], [0], [0]>} : vector<2x8x8xbf16>, vector<2x8x8xbf16>, vector<2x8x8xf32> -> vector<2x8x8xf32>
    "tpu.trace_stop"() : () -> ()
    %243 = vector.shape_cast %242 : vector<2x8x8xf32> to vector<16x8xf32>
    %244 = vector.extract_strided_slice %166 {offsets = [16, 0], sizes = [8, 32], strides = [1, 1]} : vector<32x32xbf16> to vector<8x32xbf16>
    %245 = arith.truncf %243 : vector<16x8xf32> to vector<16x8xbf16>
    %cst_83 = arith.constant dense<0.000000e+00> : vector<16x32xf32>
    %246 = tpu.matmul %245, %244, %cst_83 {dimension_numbers = #tpu.dot_dimension_numbers<[1], [0], [0], [1], [0, 0, 1, 1], [], []>} : vector<16x8xbf16>, vector<8x32xbf16>, vector<16x32xf32> -> vector<16x32xf32>
    %247 = arith.addf %220, %246 : vector<16x32xf32>
    %248 = vector.extract_strided_slice %155 {offsets = [0, 0, 24], sizes = [2, 8, 8], strides = [1, 1, 1]} : vector<2x8x32xf32> to vector<2x8x8xf32>
    %cst_84 = arith.constant 0.353553385 : f32
    %249 = vector.broadcast %cst_84 : f32 to vector<2x8x8xf32>
    %250 = arith.mulf %248, %249 : vector<2x8x8xf32>
    %251 = arith.truncf %250 : vector<2x8x8xf32> to vector<2x8x8xbf16>
    %252 = vector.extract_strided_slice %163 {offsets = [0, 0, 24], sizes = [2, 8, 8], strides = [1, 1, 1]} : vector<2x8x32xf32> to vector<2x8x8xf32>
    %253 = arith.truncf %252 : vector<2x8x8xf32> to vector<2x8x8xbf16>
    %254 = vector.extract_strided_slice %164 {offsets = [0, 0, 24], sizes = [2, 8, 8], strides = [1, 1, 1]} : vector<2x8x32xf32> to vector<2x8x8xf32>
    %255 = arith.truncf %254 : vector<2x8x8xf32> to vector<2x8x8xbf16>
    "tpu.trace_start"() <{level = 10 : i32, message = "bqd,bkd->bqk"}> : () -> ()
    %cst_85 = arith.constant dense<0.000000e+00> : vector<2x8x8xf32>
    %256 = tpu.matmul %251, %253, %cst_85 {dimension_numbers = #tpu.dot_dimension_numbers<[2], [2], [1], [1], [0, 0, 0, 1, 1, 1], [0], [0]>} : vector<2x8x8xbf16>, vector<2x8x8xbf16>, vector<2x8x8xf32> -> vector<2x8x8xf32>
    "tpu.trace_stop"() : () -> ()
    %257 = arith.addf %256, %165 : vector<2x8x8xf32>
    %cst_86 = arith.constant dense<0xFF800000> : vector<2x8xf32>
    %258 = vector.multi_reduction <maximumf>, %257, %cst_86 [2] : vector<2x8x8xf32> to vector<2x8xf32>
    %259 = vector.shape_cast %258 : vector<2x8xf32> to vector<2x8x1xf32>
    %260 = vector.broadcast %259 : vector<2x8x1xf32> to vector<2x8x8xf32>
    %261 = arith.subf %257, %260 : vector<2x8x8xf32>
    %262 = math.exp %261 : vector<2x8x8xf32>
    %cst_87 = arith.constant dense<0.000000e+00> : vector<2x8xf32>
    %263 = vector.multi_reduction <add>, %262, %cst_87 [2] : vector<2x8x8xf32> to vector<2x8xf32>
    %264 = vector.shape_cast %263 : vector<2x8xf32> to vector<2x8x1xf32>
    %265 = tpu.reciprocal %264 {approx = true} : vector<2x8x1xf32> -> vector<2x8x1xf32>
    %266 = vector.broadcast %265 : vector<2x8x1xf32> to vector<2x8x8xf32>
    %267 = arith.mulf %262, %266 : vector<2x8x8xf32>
    %268 = arith.truncf %267 : vector<2x8x8xf32> to vector<2x8x8xbf16>
    "tpu.trace_start"() <{level = 10 : i32, message = "bqk,bkd->bqd"}> : () -> ()
    %cst_88 = arith.constant dense<0.000000e+00> : vector<2x8x8xf32>
    %269 = tpu.matmul %268, %255, %cst_88 {dimension_numbers = #tpu.dot_dimension_numbers<[2], [1], [1], [2], [0, 0, 0, 1, 1, 2], [0], [0]>} : vector<2x8x8xbf16>, vector<2x8x8xbf16>, vector<2x8x8xf32> -> vector<2x8x8xf32>
    "tpu.trace_stop"() : () -> ()
    %270 = vector.shape_cast %269 : vector<2x8x8xf32> to vector<16x8xf32>
    %271 = vector.extract_strided_slice %166 {offsets = [24, 0], sizes = [8, 32], strides = [1, 1]} : vector<32x32xbf16> to vector<8x32xbf16>
    %272 = arith.truncf %270 : vector<16x8xf32> to vector<16x8xbf16>
    %cst_89 = arith.constant dense<0.000000e+00> : vector<16x32xf32>
    %273 = tpu.matmul %272, %271, %cst_89 {dimension_numbers = #tpu.dot_dimension_numbers<[1], [0], [0], [1], [0, 0, 1, 1], [], []>} : vector<16x8xbf16>, vector<8x32xbf16>, vector<16x32xf32> -> vector<16x32xf32>
    %274 = arith.addf %247, %273 : vector<16x32xf32>
    %275 = vector.broadcast %167 : vector<1x32xf32> to vector<16x32xf32>
    %276 = arith.addf %274, %275 : vector<16x32xf32>
    %277 = arith.addf %148, %276 : vector<16x32xf32>
    %c0_90 = arith.constant 0 : index
    %c0_91 = arith.constant 0 : index
    %278 = vector.load %arg17[%c0_90, %c0_91] : memref<1x32xf32, #tpu.memory_space<vmem>>, vector<1x32xf32>
    %c0_92 = arith.constant 0 : index
    %c0_93 = arith.constant 0 : index
    %279 = vector.load %arg18[%c0_92, %c0_93] : memref<1x32xf32, #tpu.memory_space<vmem>>, vector<1x32xf32>
    %cst_94 = arith.constant dense<0.000000e+00> : vector<16xf32>
    %280 = vector.multi_reduction <add>, %277, %cst_94 [1] : vector<16x32xf32> to vector<16xf32>
    %281 = vector.shape_cast %280 : vector<16xf32> to vector<16x1xf32>
    %cst_95 = arith.constant 3.200000e+01 : f32
    %282 = vector.broadcast %cst_95 : f32 to vector<16x1xf32>
    %283 = arith.divf %281, %282 : vector<16x1xf32>
    %284 = vector.broadcast %283 : vector<16x1xf32> to vector<16x32xf32>
    %285 = arith.subf %277, %284 : vector<16x32xf32>
    %286 = arith.mulf %285, %285 : vector<16x32xf32>
    %cst_96 = arith.constant dense<0.000000e+00> : vector<16xf32>
    %287 = vector.multi_reduction <add>, %286, %cst_96 [1] : vector<16x32xf32> to vector<16xf32>
    %288 = vector.shape_cast %287 : vector<16xf32> to vector<16x1xf32>
    %cst_97 = arith.constant 3.200000e+01 : f32
    %289 = vector.broadcast %cst_97 : f32 to vector<16x1xf32>
    %290 = arith.divf %288, %289 : vector<16x1xf32>
    %cst_98 = arith.constant 9.99999974E-6 : f32
    %291 = vector.broadcast %cst_98 : f32 to vector<16x1xf32>
    %292 = arith.addf %290, %291 : vector<16x1xf32>
    %293 = math.rsqrt %292 : vector<16x1xf32>
    %294 = vector.broadcast %293 : vector<16x1xf32> to vector<16x32xf32>
    %295 = arith.mulf %285, %294 : vector<16x32xf32>
    %296 = vector.broadcast %278 : vector<1x32xf32> to vector<16x32xf32>
    %297 = arith.mulf %295, %296 : vector<16x32xf32>
    %298 = vector.broadcast %279 : vector<1x32xf32> to vector<16x32xf32>
    %299 = arith.addf %297, %298 : vector<16x32xf32>
    %c0_99 = arith.constant 0 : index
    %c0_100 = arith.constant 0 : index
    %300 = vector.load %arg19[%c0_99, %c0_100] : memref<32x64xbf16, #tpu.memory_space<vmem>>, vector<32x64xbf16>
    %301 = arith.truncf %299 : vector<16x32xf32> to vector<16x32xbf16>
    %cst_101 = arith.constant dense<0.000000e+00> : vector<16x64xf32>
    %302 = tpu.matmul %301, %300, %cst_101 {dimension_numbers = #tpu.dot_dimension_numbers<[1], [0], [0], [1], [0, 0, 1, 1], [], []>} : vector<16x32xbf16>, vector<32x64xbf16>, vector<16x64xf32> -> vector<16x64xf32>
    %c0_102 = arith.constant 0 : index
    %c0_103 = arith.constant 0 : index
    %303 = vector.load %arg20[%c0_102, %c0_103] : memref<1x64xf32, #tpu.memory_space<vmem>>, vector<1x64xf32>
    %304 = vector.broadcast %303 : vector<1x64xf32> to vector<16x64xf32>
    %305 = arith.addf %302, %304 : vector<16x64xf32>
    %cst_104 = arith.constant 0.000000e+00 : f32
    %306 = vector.broadcast %cst_104 : f32 to vector<16x64xf32>
    %307 = arith.maximumf %305, %306 : vector<16x64xf32>
    %c0_105 = arith.constant 0 : index
    %c0_106 = arith.constant 0 : index
    %308 = vector.load %arg21[%c0_105, %c0_106] : memref<64x32xbf16, #tpu.memory_space<vmem>>, vector<64x32xbf16>
    %309 = arith.truncf %307 : vector<16x64xf32> to vector<16x64xbf16>
    %cst_107 = arith.constant dense<0.000000e+00> : vector<16x32xf32>
    %310 = tpu.matmul %309, %308, %cst_107 {dimension_numbers = #tpu.dot_dimension_numbers<[1], [0], [0], [1], [0, 0, 1, 1], [], []>} : vector<16x64xbf16>, vector<64x32xbf16>, vector<16x32xf32> -> vector<16x32xf32>
    %c0_108 = arith.constant 0 : index
    %c0_109 = arith.constant 0 : index
    %311 = vector.load %arg22[%c0_108, %c0_109] : memref<1x32xf32, #tpu.memory_space<vmem>>, vector<1x32xf32>
    %312 = vector.broadcast %311 : vector<1x32xf32> to vector<16x32xf32>
    %313 = arith.addf %310, %312 : vector<16x32xf32>
    %314 = arith.addf %299, %313 : vector<16x32xf32>
    %c0_110 = arith.constant 0 : index
    %c0_111 = arith.constant 0 : index
    %315 = vector.load %arg23[%c0_110, %c0_111] : memref<1x32xf32, #tpu.memory_space<vmem>>, vector<1x32xf32>
    %c0_112 = arith.constant 0 : index
    %c0_113 = arith.constant 0 : index
    %316 = vector.load %arg24[%c0_112, %c0_113] : memref<1x32xf32, #tpu.memory_space<vmem>>, vector<1x32xf32>
    %cst_114 = arith.constant dense<0.000000e+00> : vector<16xf32>
    %317 = vector.multi_reduction <add>, %314, %cst_114 [1] : vector<16x32xf32> to vector<16xf32>
    %318 = vector.shape_cast %317 : vector<16xf32> to vector<16x1xf32>
    %cst_115 = arith.constant 3.200000e+01 : f32
    %319 = vector.broadcast %cst_115 : f32 to vector<16x1xf32>
    %320 = arith.divf %318, %319 : vector<16x1xf32>
    %321 = vector.broadcast %320 : vector<16x1xf32> to vector<16x32xf32>
    %322 = arith.subf %314, %321 : vector<16x32xf32>
    %323 = arith.mulf %322, %322 : vector<16x32xf32>
    %cst_116 = arith.constant dense<0.000000e+00> : vector<16xf32>
    %324 = vector.multi_reduction <add>, %323, %cst_116 [1] : vector<16x32xf32> to vector<16xf32>
    %325 = vector.shape_cast %324 : vector<16xf32> to vector<16x1xf32>
    %cst_117 = arith.constant 3.200000e+01 : f32
    %326 = vector.broadcast %cst_117 : f32 to vector<16x1xf32>
    %327 = arith.divf %325, %326 : vector<16x1xf32>
    %cst_118 = arith.constant 9.99999974E-6 : f32
    %328 = vector.broadcast %cst_118 : f32 to vector<16x1xf32>
    %329 = arith.addf %327, %328 : vector<16x1xf32>
    %330 = math.rsqrt %329 : vector<16x1xf32>
    %331 = vector.broadcast %330 : vector<16x1xf32> to vector<16x32xf32>
    %332 = arith.mulf %322, %331 : vector<16x32xf32>
    %333 = vector.broadcast %315 : vector<1x32xf32> to vector<16x32xf32>
    %334 = arith.mulf %332, %333 : vector<16x32xf32>
    %335 = vector.broadcast %316 : vector<1x32xf32> to vector<16x32xf32>
    %336 = arith.addf %334, %335 : vector<16x32xf32>
    %337 = vector.shape_cast %336 : vector<16x32xf32> to vector<2x8x32xf32>
    %c0_119 = arith.constant 0 : index
    %c0_120 = arith.constant 0 : index
    %c0_121 = arith.constant 0 : index
    %338 = vector.load %arg25[%c0_119, %c0_120, %c0_121] : memref<2x8x32xf32, #tpu.memory_space<vmem>>, vector<2x8x32xf32>
    tpu.vector_store %arg25[%c0_119, %c0_120, %c0_121], %337 {strides = array<i32>} : memref<2x8x32xf32, #tpu.memory_space<vmem>>, vector<2x8x32xf32>,
    return
  }
  func.func @transform_0(%arg0: i32) -> (i32, i32, i32) {
    %c0_i32 = arith.constant 0 : i32
    %c0_i32_0 = arith.constant 0 : i32
    %c0_i32_1 = arith.constant 0 : i32
    %c0_i32_2 = arith.constant 0 : i32
    return %c0_i32, %c0_i32_0, %c0_i32_1 : i32, i32, i32
  }
  func.func @transform_1(%arg0: i32) -> (i32, i32, i32) {
    %c0_i32 = arith.constant 0 : i32
    %c0_i32_0 = arith.constant 0 : i32
    %c0_i32_1 = arith.constant 0 : i32
    %c0_i32_2 = arith.constant 0 : i32
    return %c0_i32, %c0_i32_0, %c0_i32_1 : i32, i32, i32
  }
  func.func @transform_2(%arg0: i32) -> (i32, i32, i32) {
    %c0_i32 = arith.constant 0 : i32
    %c0_i32_0 = arith.constant 0 : i32
    %c0_i32_1 = arith.constant 0 : i32
    %c0_i32_2 = arith.constant 0 : i32
    return %c0_i32, %c0_i32_0, %c0_i32_1 : i32, i32, i32
  }
  func.func @transform_3(%arg0: i32) -> (i32, i32, i32) {
    %c0_i32 = arith.constant 0 : i32
    %c0_i32_0 = arith.constant 0 : i32
    %c0_i32_1 = arith.constant 0 : i32
    %c0_i32_2 = arith.constant 0 : i32
    return %c0_i32, %c0_i32_0, %c0_i32_1 : i32, i32, i32
  }
  func.func @transform_4(%arg0: i32) -> (i32, i32) {
    %c0_i32 = arith.constant 0 : i32
    %c0_i32_0 = arith.constant 0 : i32
    %c0_i32_1 = arith.constant 0 : i32
    return %c0_i32, %c0_i32_0 : i32, i32
  }
  func.func @transform_5(%arg0: i32) -> (i32, i32) {
    %c0_i32 = arith.constant 0 : i32
    %c0_i32_0 = arith.constant 0 : i32
    %c0_i32_1 = arith.constant 0 : i32
    return %c0_i32, %c0_i32_0 : i32, i32
  }
  func.func @transform_6(%arg0: i32) -> (i32, i32) {
    %c0_i32 = arith.constant 0 : i32
    %c0_i32_0 = arith.constant 0 : i32
    %c0_i32_1 = arith.constant 0 : i32
    return %c0_i32, %c0_i32_0 : i32, i32
  }
  func.func @transform_7(%arg0: i32) -> (i32, i32) {
    %c0_i32 = arith.constant 0 : i32
    %c0_i32_0 = arith.constant 0 : i32
    %c0_i32_1 = arith.constant 0 : i32
    return %c0_i32, %c0_i32_0 : i32, i32
  }
  func.func @transform_8(%arg0: i32) -> (i32, i32) {
    %c0_i32 = arith.constant 0 : i32
    %c0_i32_0 = arith.constant 0 : i32
    %c0_i32_1 = arith.constant 0 : i32
    return %c0_i32, %c0_i32_0 : i32, i32
  }
  func.func @transform_9(%arg0: i32) -> (i32, i32) {
    %c0_i32 = arith.constant 0 : i32
    %c0_i32_0 = arith.constant 0 : i32
    %c0_i32_1 = arith.constant 0 : i32
    return %c0_i32, %c0_i32_0 : i32, i32
  }
  func.func @transform_10(%arg0: i32) -> (i32, i32) {
    %c0_i32 = arith.constant 0 : i32
    %c0_i32_0 = arith.constant 0 : i32
    %c0_i32_1 = arith.constant 0 : i32
    return %c0_i32, %c0_i32_0 : i32, i32
  }
  func.func @transform_11(%arg0: i32) -> (i32, i32) {
    %c0_i32 = arith.constant 0 : i32
    %c0_i32_0 = arith.constant 0 : i32
    %c0_i32_1 = arith.constant 0 : i32
    return %c0_i32, %c0_i32_0 : i32, i32
  }
  func.func @transform_12(%arg0: i32) -> (i32, i32) {
    %c0_i32 = arith.constant 0 : i32
    %c0_i32_0 = arith.constant 0 : i32
    %c0_i32_1 = arith.constant 0 : i32
    return %c0_i32, %c0_i32_0 : i32, i32
  }
  func.func @transform_13(%arg0: i32) -> (i32, i32) {
    %c0_i32 = arith.constant 0 : i32
    %c0_i32_0 = arith.constant 0 : i32
    %c0_i32_1 = arith.constant 0 : i32
    return %c0_i32, %c0_i32_0 : i32, i32
  }
  func.func @transform_14(%arg0: i32) -> (i32, i32) {
    %c0_i32 = arith.constant 0 : i32
    %c0_i32_0 = arith.constant 0 : i32
    %c0_i32_1 = arith.constant 0 : i32
    return %c0_i32, %c0_i32_0 : i32, i32
  }
  func.func @transform_15(%arg0: i32) -> (i32, i32) {
    %c0_i32 = arith.constant 0 : i32
    %c0_i32_0 = arith.constant 0 : i32
    %c0_i32_1 = arith.constant 0 : i32
    return %c0_i32, %c0_i32_0 : i32, i32
  }
  func.func @transform_16(%arg0: i32) -> (i32, i32) {
    %c0_i32 = arith.constant 0 : i32
    %c0_i32_0 = arith.constant 0 : i32
    %c0_i32_1 = arith.constant 0 : i32
    return %c0_i32, %c0_i32_0 : i32, i32
  }
  func.func @transform_17(%arg0: i32) -> (i32, i32) {
    %c0_i32 = arith.constant 0 : i32
    %c0_i32_0 = arith.constant 0 : i32
    %c0_i32_1 = arith.constant 0 : i32
    return %c0_i32, %c0_i32_0 : i32, i32
  }
  func.func @transform_18(%arg0: i32) -> (i32, i32) {
    %c0_i32 = arith.constant 0 : i32
    %c0_i32_0 = arith.constant 0 : i32
    %c0_i32_1 = arith.constant 0 : i32
    return %c0_i32, %c0_i32_0 : i32, i32
  }
  func.func @transform_19(%arg0: i32) -> (i32, i32) {
    %c0_i32 = arith.constant 0 : i32
    %c0_i32_0 = arith.constant 0 : i32
    %c0_i32_1 = arith.constant 0 : i32
    return %c0_i32, %c0_i32_0 : i32, i32
  }
  func.func @transform_20(%arg0: i32) -> (i32, i32) {
    %c0_i32 = arith.constant 0 : i32
    %c0_i32_0 = arith.constant 0 : i32
    %c0_i32_1 = arith.constant 0 : i32
    return %c0_i32, %c0_i32_0 : i32, i32
  }
  func.func @transform_21(%arg0: i32) -> (i32, i32) {
    %c0_i32 = arith.constant 0 : i32
    %c0_i32_0 = arith.constant 0 : i32
    %c0_i32_1 = arith.constant 0 : i32
    return %c0_i32, %c0_i32_0 : i32, i32
  }
  func.func @transform_22(%arg0: i32) -> (i32, i32) {
    %c0_i32 = arith.constant 0 : i32
    %c0_i32_0 = arith.constant 0 : i32
    %c0_i32_1 = arith.constant 0 : i32
    return %c0_i32, %c0_i32_0 : i32, i32
  }
  func.func @transform_23(%arg0: i32) -> (i32, i32) {
    %c0_i32 = arith.constant 0 : i32
    %c0_i32_0 = arith.constant 0 : i32
    %c0_i32_1 = arith.constant 0 : i32
    return %c0_i32, %c0_i32_0 : i32, i32
  }
  func.func @transform_24(%arg0: i32) -> (i32, i32, i32) {
    %c0_i32 = arith.constant 0 : i32
    %c0_i32_0 = arith.constant 0 : i32
    %c0_i32_1 = arith.constant 0 : i32
    %c0_i32_2 = arith.constant 0 : i32
    return %c0_i32, %c0_i32_0, %c0_i32_1 : i32, i32, i32
  }
}

module attributes {stable_mosaic.version = 11 : i64} {
  func.func @_ln_fc_kernel(%arg0: i32, %arg1: memref<16x32xf32, #tpu.memory_space<vmem>>, %arg2: memref<1x32xf32, #tpu.memory_space<vmem>>, %arg3: memref<1x32xf32, #tpu.memory_space<vmem>>, %arg4: memref<32x32xbf16, #tpu.memory_space<vmem>>, %arg5: memref<1x32xf32, #tpu.memory_space<vmem>>, %arg6: memref<16x32xf32, #tpu.memory_space<vmem>>) attributes {dimension_semantics = [#tpu.dimension_semantics<arbitrary>], iteration_bounds = array<i64: 1>, scalar_prefetch = 0 : i64, scratch_operands = 0 : i64, tpu.core_type = #tpu.core_type<tc>, window_params = [{pipeline_mode = #tpu.pipeline_mode<synchronous>, transform_indices = @transform_0, window_bounds = array<i64: 16, 32>}, {pipeline_mode = #tpu.pipeline_mode<synchronous>, transform_indices = @transform_1, window_bounds = array<i64: 1, 32>}, {pipeline_mode = #tpu.pipeline_mode<synchronous>, transform_indices = @transform_2, window_bounds = array<i64: 1, 32>}, {pipeline_mode = #tpu.pipeline_mode<synchronous>, transform_indices = @transform_3, window_bounds = array<i64: 32, 32>}, {pipeline_mode = #tpu.pipeline_mode<synchronous>, transform_indices = @transform_4, window_bounds = array<i64: 1, 32>}, {pipeline_mode = #tpu.pipeline_mode<synchronous>, transform_indices = @transform_5, window_bounds = array<i64: 16, 32>}]} {
    %c0 = arith.constant 0 : index
    %c0_0 = arith.constant 0 : index
    %0 = vector.load %arg1[%c0, %c0_0] : memref<16x32xf32, #tpu.memory_space<vmem>>, vector<16x32xf32>
    %c0_1 = arith.constant 0 : index
    %c0_2 = arith.constant 0 : index
    %1 = vector.load %arg2[%c0_1, %c0_2] : memref<1x32xf32, #tpu.memory_space<vmem>>, vector<1x32xf32>
    %c0_3 = arith.constant 0 : index
    %c0_4 = arith.constant 0 : index
    %2 = vector.load %arg3[%c0_3, %c0_4] : memref<1x32xf32, #tpu.memory_space<vmem>>, vector<1x32xf32>
    %cst = arith.constant dense<0.000000e+00> : vector<16xf32>
    %3 = vector.multi_reduction <add>, %0, %cst [1] : vector<16x32xf32> to vector<16xf32>
    %4 = vector.shape_cast %3 : vector<16xf32> to vector<16x1xf32>
    %cst_5 = arith.constant 3.200000e+01 : f32
    %5 = vector.broadcast %cst_5 : f32 to vector<16x1xf32>
    %6 = arith.divf %4, %5 : vector<16x1xf32>
    %7 = vector.broadcast %6 : vector<16x1xf32> to vector<16x32xf32>
    %8 = arith.subf %0, %7 : vector<16x32xf32>
    %9 = arith.mulf %8, %8 : vector<16x32xf32>
    %cst_6 = arith.constant dense<0.000000e+00> : vector<16xf32>
    %10 = vector.multi_reduction <add>, %9, %cst_6 [1] : vector<16x32xf32> to vector<16xf32>
    %11 = vector.shape_cast %10 : vector<16xf32> to vector<16x1xf32>
    %cst_7 = arith.constant 3.200000e+01 : f32
    %12 = vector.broadcast %cst_7 : f32 to vector<16x1xf32>
    %13 = arith.divf %11, %12 : vector<16x1xf32>
    %cst_8 = arith.constant 9.99999974E-6 : f32
    %14 = vector.broadcast %cst_8 : f32 to vector<16x1xf32>
    %15 = arith.addf %13, %14 : vector<16x1xf32>
    %16 = math.rsqrt %15 : vector<16x1xf32>
    %17 = vector.broadcast %16 : vector<16x1xf32> to vector<16x32xf32>
    %18 = arith.mulf %8, %17 : vector<16x32xf32>
    %19 = vector.broadcast %1 : vector<1x32xf32> to vector<16x32xf32>
    %20 = arith.mulf %18, %19 : vector<16x32xf32>
    %21 = vector.broadcast %2 : vector<1x32xf32> to vector<16x32xf32>
    %22 = arith.addf %20, %21 : vector<16x32xf32>
    %c0_9 = arith.constant 0 : index
    %c0_10 = arith.constant 0 : index
    %23 = vector.load %arg4[%c0_9, %c0_10] : memref<32x32xbf16, #tpu.memory_space<vmem>>, vector<32x32xbf16>
    %24 = arith.truncf %22 : vector<16x32xf32> to vector<16x32xbf16>
    %cst_11 = arith.constant dense<0.000000e+00> : vector<16x32xf32>
    %25 = tpu.matmul %24, %23, %cst_11 {dimension_numbers = #tpu.dot_dimension_numbers<[1], [0], [0], [1], [0, 0, 1, 1], [], []>} : vector<16x32xbf16>, vector<32x32xbf16>, vector<16x32xf32> -> vector<16x32xf32>
    %c0_12 = arith.constant 0 : index
    %c0_13 = arith.constant 0 : index
    %26 = vector.load %arg5[%c0_12, %c0_13] : memref<1x32xf32, #tpu.memory_space<vmem>>, vector<1x32xf32>
    %27 = vector.broadcast %26 : vector<1x32xf32> to vector<16x32xf32>
    %28 = arith.addf %25, %27 : vector<16x32xf32>
    %c0_14 = arith.constant 0 : index
    %c0_15 = arith.constant 0 : index
    %29 = vector.load %arg6[%c0_14, %c0_15] : memref<16x32xf32, #tpu.memory_space<vmem>>, vector<16x32xf32>
    tpu.vector_store %arg6[%c0_14, %c0_15], %28 {strides = array<i32>} : memref<16x32xf32, #tpu.memory_space<vmem>>, vector<16x32xf32>,
    return
  }
  func.func @transform_0(%arg0: i32) -> (i32, i32) {
    %c0_i32 = arith.constant 0 : i32
    %c0_i32_0 = arith.constant 0 : i32
    %c0_i32_1 = arith.constant 0 : i32
    return %c0_i32, %c0_i32_0 : i32, i32
  }
  func.func @transform_1(%arg0: i32) -> (i32, i32) {
    %c0_i32 = arith.constant 0 : i32
    %c0_i32_0 = arith.constant 0 : i32
    %c0_i32_1 = arith.constant 0 : i32
    return %c0_i32, %c0_i32_0 : i32, i32
  }
  func.func @transform_2(%arg0: i32) -> (i32, i32) {
    %c0_i32 = arith.constant 0 : i32
    %c0_i32_0 = arith.constant 0 : i32
    %c0_i32_1 = arith.constant 0 : i32
    return %c0_i32, %c0_i32_0 : i32, i32
  }
  func.func @transform_3(%arg0: i32) -> (i32, i32) {
    %c0_i32 = arith.constant 0 : i32
    %c0_i32_0 = arith.constant 0 : i32
    %c0_i32_1 = arith.constant 0 : i32
    return %c0_i32, %c0_i32_0 : i32, i32
  }
  func.func @transform_4(%arg0: i32) -> (i32, i32) {
    %c0_i32 = arith.constant 0 : i32
    %c0_i32_0 = arith.constant 0 : i32
    %c0_i32_1 = arith.constant 0 : i32
    return %c0_i32, %c0_i32_0 : i32, i32
  }
  func.func @transform_5(%arg0: i32) -> (i32, i32) {
    %c0_i32 = arith.constant 0 : i32
    %c0_i32_0 = arith.constant 0 : i32
    %c0_i32_1 = arith.constant 0 : i32
    return %c0_i32, %c0_i32_0 : i32, i32
  }
}

</mosaic_0001>

<bundles_post_ra>
// kernel: couplets_transformer_forward.8
= control target key start
LH: loop header
LB: loop body
LE: loop exit
PB: predicated region body
PF: predicated region fallthrough
CT: control target
= control target key end

     0   :  { %vm18_vm0 = vcmask 261120   ;;  %v95_v4 = vmov 32.0   ;;  %s140_s0 = inlined_call_operand.vmem [shape: f32[16,32], index: 0, kind: input, shape index: {}]   ;;  %s141_s1 = inlined_call_operand.vmem [shape: f32[1,32], index: 1, kind: input, shape index: {}]   ;;  %s142_s2 = inlined_call_operand.vmem [shape: f32[1,32], index: 2, kind: input, shape index: {}]   ;;  %s143_s3 = inlined_call_operand.vmem [shape: f32[16,32], index: 3, kind: output, shape index: {}]  }
   0x1   :  { %v14_v0 = vld [vmem:[%s140_s0] sm:$0xff]  ;;  %v15_v2 = vld [vmem:[%s140_s0 + $0x8] sm:$0xff]  ;;  %89 = vrcp.f32 %v95_v4 }
   0x2   :  { %v19_v1 = vsel %vm18_vm0, %v14_v0, 0.0  ;;  %v22_v3 = vsel %vm18_vm0, %v15_v2, 0.0  ;;  %v87_v35 = vld [vmem:[%s141_s1] ss:$0 sm:$0xff] }
   0x3   :  { %20 = vadd.xlane.f32.xlu0 %v19_v1  ;;  %v88_v38 = vld [vmem:[%s142_s2] ss:$0 sm:$0xff] }
   0x7   :  { %v90_v5 = vpop.eup %89 }
   0x8   :  { %v26_v6 = vmul.f32 32.0, %v90_v5  ;;  %vm30_vm1 = vweird.f32 %v90_v5 }
   0xa   :  { %v27_v7 = vsub.f32 1.0, %v26_v6 }
   0xb   :  { %23 = vadd.xlane.f32.xlu0 %v22_v3 }
   0xc   :  { %v28_v8 = vmul.f32 %v90_v5, %v27_v7 }
   0xe   :  { %v29_v9 = vadd.f32 %v90_v5, %v28_v8 }
  0x10   :  { %v31_v10 = vsel %vm30_vm1, %v90_v5, %v29_v9 }
  0x76   :  { %v21_v11 = vpop.xlane.xlu0 %20 }
  0x77   :  { %v32_v12 = vmul.f32 %v31_v10, %v21_v11 }
  0x79   :  { %v34_v13 = vsub.f32 %v14_v0, %v32_v12 }
  0x7b   :  { %v36_v14 = vmul.f32 %v34_v13, %v34_v13 }
  0x7d   :  { %v38_v15 = vsel %vm18_vm0, %v36_v14, 0.0 }
  0x7e   :  { %39 = vadd.xlane.f32.xlu1 %v38_v15  ;;  %v24_v16 = vpop.xlane.xlu0 %23 }
  0x7f   :  { %v33_v17 = vmul.f32 %v31_v10, %v24_v16 }
  0x81   :  { %v35_v18 = vsub.f32 %v15_v2, %v33_v17 }
  0x83   :  { %v37_v19 = vmul.f32 %v35_v18, %v35_v18 }
  0x85   :  { %v41_v20 = vsel %vm18_vm0, %v37_v19, 0.0 }
  0x86   :  { %42 = vadd.xlane.f32.xlu1 %v41_v20 }
  0xf1   :  { %v40_v21 = vpop.xlane.xlu1 %39 }
  0xf2   :  { %v44_v22 = vmul.f32 %v40_v21, %v31_v10 }
  0xf4   :  { %v46_v23 = vadd.f32 1e-05, %v44_v22 }
  0xf6   :  { %91 = vrsqrt.f32 %v46_v23  ;;  %vm54_vm3 = vweird.f32 %v46_v23 }
  0xf9   :  { %v43_v24 = vpop.xlane.xlu1 %42 }
  0xfa   :  { %v45_v25 = vmul.f32 %v43_v24, %v31_v10 }
  0xfc   :  { %v92_v26 = vpop.eup %91  ;;  %v47_v27 = vadd.f32 1e-05, %v45_v25 }
  0xfd   :  { %v49_v28 = vmul.f32 %v92_v26, %v46_v23  ;;  %vm55_vm2 = vweird.f32 %v92_v26 }
  0xfe   :  { %93 = vrsqrt.f32 %v47_v27  ;;  %vm56_vm4 = vmor %vm54_vm3, %vm55_vm2  ;;  %vm64_vm6 = vweird.f32 %v47_v27 }
  0xff   :  { %v50_v29 = vmul.f32 %v92_v26, %v49_v28 }
 0x101   :  { %v51_v30 = vmul.f32 0.5, %v50_v29 }
 0x103   :  { %v52_v31 = vsub.f32 1.5, %v51_v30 }
 0x104   :  { %v94_v32 = vpop.eup %93 }
 0x105   :  { %v53_v33 = vmul.f32 %v92_v26, %v52_v31  ;;  %v59_v34 = vmul.f32 %v94_v32, %v47_v27  ;;  %vm65_vm5 = vweird.f32 %v94_v32 }
 0x106   :  { %vm66_vm7 = vmor %vm64_vm6, %vm65_vm5 }
 0x107   :  { %v57_v36 = vsel %vm56_vm4, %v92_v26, %v53_v33  ;;  %v60_v37 = vmul.f32 %v94_v32, %v59_v34 }
 0x108   :  { %v68_v39 = vmul.f32 %v57_v36, %v34_v13 }
 0x109   :  { %v61_v40 = vmul.f32 0.5, %v60_v37 }
 0x10a   :  { %v73_v41 = vmul.f32 %v87_v35, %v68_v39 }
 0x10b   :  { %v62_v42 = vsub.f32 1.5, %v61_v40 }
 0x10c   :  { %v78_v43 = vadd.f32 %v88_v38, %v73_v41 }
 0x10d   :  { %v63_v44 = vmul.f32 %v94_v32, %v62_v42 }
 0x10e   :  { %80 = vst.msk [vmem:[%s143_s3] sm:$0xff] %vm18_vm0, %v78_v43 }
 0x10f   :  { %v67_v45 = vsel %vm66_vm7, %v94_v32, %v63_v44 }
 0x110   :  { %v69_v46 = vmul.f32 %v67_v45, %v35_v18 }
 0x112   :  { %v74_v47 = vmul.f32 %v87_v35, %v69_v46 }
 0x114   :  { %v79_v48 = vadd.f32 %v88_v38, %v74_v47 }
 0x116   :  { %81 = vst.msk [vmem:[%s143_s3 + $0x8] sm:$0xff] %vm18_vm0, %v79_v48 }

// kernel: couplets_transformer_forward.6
= control target key start
LH: loop header
LB: loop body
LE: loop exit
PB: predicated region body
PF: predicated region fallthrough
CT: control target
= control target key end

     0   :  { %vm71_vm0 = vcmask 261120   ;;  %s1005_s23 = smov 56   ;;  %vm107_vm1 = vcmask 64512   ;;  %vm180_vm2 = vcmask 1043456   ;;  %s1006_s28 = smov 80   ;;  %vm795_vm10 = vcmask 523264   ;;  %s1306_s2 = inlined_call_operand.vmem [shape: bf16[32,96], index: 2, kind: input, shape index: {}]   ;;  %s1307_s0 = inlined_call_operand.vmem [shape: f32[2,8,32], index: 0, kind: input, shape index: {}]   ;;  %s1308_s3 = inlined_call_operand.vmem [shape: f32[1,96], index: 3, kind: input, shape index: {}]   ;;  %s1309_s1 = inlined_call_operand.vmem [shape: f32[2,8,8], index: 1, kind: input, shape index: {}]   ;;  %s1310_s4 = inlined_call_operand.vmem [shape: bf16[32,32], index: 4, kind: input, shape index: {}]   ;;  %s1311_s5 = inlined_call_operand.vmem [shape: f32[1,32], index: 5, kind: input, shape index: {}]   ;;  %s1312_s6 = inlined_call_operand.vmem [shape: f32[1,32], index: 6, kind: input, shape index: {}]   ;;  %s1313_s7 = inlined_call_operand.vmem [shape: f32[1,32], index: 7, kind: input, shape index: {}]   ;;  %s1314_s9 = inlined_call_operand.vmem [shape: f32[1,64], index: 9, kind: input, shape index: {}]   ;;  %s1315_s8 = inlined_call_operand.vmem [shape: bf16[32,64], index: 8, kind: input, shape index: {}]   ;;  %s1316_s11 = inlined_call_operand.vmem [shape: f32[1,32], index: 11, kind: input, shape index: {}]   ;;  %s1317_s10 = inlined_call_operand.vmem [shape: bf16[64,32], index: 10, kind: input, shape index: {}]   ;;  %s1318_s12 = inlined_call_operand.vmem [shape: f32[1,32], index: 12, kind: input, shape index: {}]   ;;  %s1319_s13 = inlined_call_operand.vmem [shape: f32[1,32], index: 13, kind: input, shape index: {}]   ;;  %s1320_s14 = inlined_call_operand.vmem [shape: f32[2,8,32], index: 14, kind: output, shape index: {}]  }
   0x1   :  { %v933_v0 = vld [vmem:[%s1306_s2 + $0x8] sm:$0xff]  ;;  %v932_v1 = vld [vmem:[%s1306_s2] sm:$0xff]  ;;  %s1003_s2 = smov 88   ;;  %s1008_s29 = smov 112  }
   0x2   :  { %81 = vmatpush.bf16.msra.mxu0 %v933_v0  ;;  %v1098_v2 = vld [vmem:[%s1307_s0] sm:$0xff]  ;;  %v1103_v3 = vld [vmem:[%s1307_s0 + $0x8] sm:$0xff]  ;;  %s1002_s0 = smov 96   ;;  %s1009_s30 = smov 48  }
   0x3   :  { %v54_v4 = vpack.c.bf16 %v1103_v3, %v1098_v2  ;;  %v952_v5 = vld [vmem:[%s1308_s3] ss:$0 sm:$0xff]  ;;  %s1004_s3 = smov 120   ;;  %v1148_v45 = vld [vmem:[%s1309_s1 + $0x8] sm:$0xff]  ;;  %s1010_s15 = smov 72  }
   0x4   :  { %v1139_v36 = vld [vmem:[%s1309_s1] sm:$0xff]  ;;  %s1007_s1 = smov 64   ;;  %s1011_s20 = smov 104  }
   0x5   :  { %s1012_s21 = smov 40  }
   0x6   :  { %82 = vmatpush.bf16.msra.mxu0 %v932_v1 }
   0x9   :  { %885 = vmatmul.msk.bf16.vlgmr.msra.gmra.mxu0 %vm71_vm0, %v54_v4 }
  0x86   :  { %v84_v6 = vpop.f32.mrf.mxu0 }
  0x87   :  { %v85_v7 = vadd.f32 %v952_v5, %v84_v6 }
  0x89   :  { %v100_v8 = vpack.c.bf16 %v85_v7, %v85_v7  ;;  %v96_v9 = vmul.f32 0.35355338, %v85_v7 }
  0x8b   :  { %v103_v10 = vunpack.c.l.b16 %v100_v8  ;;  %v98_v12 = vpack.c.bf16 %v96_v9, %v96_v9 }
  0x8d   :  { %v1111_v11 = vpack.c.b16 %v103_v10, %v103_v10  ;;  %v220_v17 = vunpack.c.l.b16 %v98_v12 }
  0x8e   :  { %v86_v13 = vpop.f32.mrf.mxu0 }
  0x8f   :  { %v87_v14 = vadd.f32 %v952_v5, %v86_v13  ;;  %105 = vrot.lane.b32.xlu1 %v1111_v11, %s1002_s0  ;;  %224 = vrot.lane.b32.xlu0 %v1111_v11, %s1003_s2  ;;  %v1117_v21 = vpack.c.b16 %v220_v17, %v220_v17 }
  0x91   :  { %v97_v15 = vmul.f32 0.35355338, %v87_v14  ;;  %v101_v16 = vpack.c.bf16 %v87_v14, %v87_v14 }
  0x93   :  { %v128_v18 = vunpack.c.l.b16 %v101_v16  ;;  %v99_v19 = vpack.c.bf16 %v97_v15, %v97_v15 }
  0x95   :  { %v1115_v20 = vpack.c.b16 %v128_v18, %v128_v18  ;;  %v246_v22 = vunpack.c.l.b16 %v99_v19 }
  0x97   :  { %250 = vrot.lane.b32.xlu2 %v1115_v20, %s1003_s2  ;;  %130 = vrot.lane.b32.xlu1 %v1115_v20, %s1002_s0  ;;  %v1122_v23 = vpack.c.b16 %v246_v22, %v246_v22 }
  0x98   :  { %222 = vrot.lane.b32.xlu0 %v1117_v21, %s1004_s3 }
  0x9f   :  { %248 = vrot.lane.b32.xlu2 %v1122_v23, %s1004_s3 }
  0xa7   :  { %295 = vrot.lane.b32.xlu2 %v1111_v11, %s1005_s23 }
  0xf1   :  { %v251_v24 = vpop.permute.xlu2 %250 }
  0xf2   :  { %v256_v30 = vsel %vm107_vm1, %v251_v24, 0 }
  0xf9   :  { %v249_v25 = vpop.permute.xlu2 %248 }
 0x101   :  { %v106_v26 = vpop.permute.xlu1 %105  ;;  %v225_v27 = vpop.permute.xlu0 %224 }
 0x102   :  { %v112_v28 = vsel %vm107_vm1, %v106_v26, 0  ;;  %v230_v29 = vsel %vm107_vm1, %v225_v27, 0  ;;  %v296_v31 = vpop.permute.xlu2 %295 }
 0x103   :  { %121 = vmatpush.bf16.xpose.msra.mxu1 %v112_v28  ;;  %239 = vmatpush.bf16.xpose.msrb.mxu0 %v230_v29  ;;  %v301_v35 = vsel %vm180_vm2, %v296_v31, 0 }
 0x109   :  { %v131_v32 = vpop.permute.xlu1 %130 }
 0x10a   :  { %v223_v33 = vpop.permute.xlu0 %222  ;;  %886 = vmatmul.msk.bf16.vlgmr.msra.gmra.mxu1 %vm107_vm1, %v98_v12  ;;  %v136_v34 = vsel %vm107_vm1, %v131_v32, 0 }
 0x10b   :  { %265 = vmatpush.bf16.xpose.msrb.mxu1 %v256_v30  ;;  %890 = vmatmul.msk.bf16.vlgmr.msrb.gmra.mxu0 %vm107_vm1, %v223_v33 }
 0x10c   :  { %145 = vmatpush.bf16.xpose.msra.mxu2 %v136_v34 }
 0x113   :  { %887 = vmatmul.msk.bf16.vlgmr.msra.gmra.mxu2 %vm107_vm1, %v99_v19  ;;  %v92_v19 = vld [vmem:[%s1310_s4 + $0x4] sm:$0xf] }
 0x114   :  { %310 = vmatpush.bf16.msrb.mxu2 %v301_v35  ;;  %v342_v22 = vsel %vm180_vm2, %v92_v19, 0 }
 0x115   :  { %351 = vmatpush.bf16.msra.mxu0 %v342_v22 }
 0x11a   :  { %891 = vmatmul.msk.bf16.vlgmr.msrb.gmra.mxu1 %vm107_vm1, %v249_v25 }
 0x187   :  { %v123_v37 = vpop.f32.mrf.mxu1 }
 0x188   :  { %v124_v38 = vadd.f32 %v123_v37, %v1139_v36  ;;  %v241_v39 = vpop.f32.mrf.mxu0 }
 0x189   :  { %v242_v40 = vadd.f32 %v241_v39, %v1139_v36 }
 0x18a   :  { %v151_v41 = vsel %vm107_vm1, %v124_v38, -inf }
 0x18b   :  { %v271_v42 = vsel %vm107_vm1, %v242_v40, -inf  ;;  %152 = vmax.xlane.f32.xlu2 %v151_v41 }
 0x18c   :  { %272 = vmax.xlane.f32.xlu0 %v271_v42 }
 0x18f   :  { %v125_v43 = vpop.f32.mrf.mxu1 }
 0x190   :  { %v243_v44 = vpop.f32.mrf.mxu0 }
 0x196   :  { %v147_v46 = vpop.f32.mrf.mxu2 }
 0x197   :  { %v148_v47 = vadd.f32 %v147_v46, %v1148_v45  ;;  %v267_v48 = vpop.f32.mrf.mxu1 }
 0x198   :  { %v268_v50 = vadd.f32 %v267_v48, %v1148_v45 }
 0x199   :  { %v154_v49 = vsel %vm107_vm1, %v148_v47, -inf }
 0x19a   :  { %155 = vmax.xlane.f32.xlu2 %v154_v49  ;;  %v274_v53 = vsel %vm107_vm1, %v268_v50, -inf }
 0x19e   :  { %v149_v51 = vpop.f32.mrf.mxu2 }
 0x19f   :  { %v269_v52 = vpop.f32.mrf.mxu1 }
 0x1a0   :  { %380 = vrot.lane.b32.xlu0 %v1111_v11, %s1006_s28 }
 0x1a2   :  { %275 = vmax.xlane.f32.xlu2 %v274_v53 }
 0x1ba   :  { %175 = vrot.lane.b32.xlu2 %v1111_v11, %s1007_s1 }
 0x1c2   :  { %197 = vrot.lane.b32.xlu2 %v1115_v20, %s1007_s1 }
 0x1fe   :  { %v153_v54 = vpop.xlane.xlu2 %152 }
 0x1ff   :  { %v273_v55 = vpop.xlane.xlu0 %272  ;;  %v157_v56 = vsub.f32 %v124_v38, %v153_v54 }
 0x200   :  { %v277_v57 = vsub.f32 %v242_v40, %v273_v55 }
 0x201   :  { %v159_v58 = vmul.f32 1.442695, %v157_v56 }
 0x202   :  { %v279_v59 = vmul.f32 1.442695, %v277_v57 }
 0x203   :  { %960 = vpow2.f32 %v159_v58 }
 0x204   :  { %962 = vpow2.f32 %v279_v59 }
 0x209   :  { %v961_v60 = vpop.eup %960 }
 0x20a   :  { %v963_v61 = vpop.eup %962  ;;  %v163_v62 = vsel %vm107_vm1, %v961_v60, 0.0 }
 0x20b   :  { %v283_v63 = vsel %vm107_vm1, %v963_v61, 0.0  ;;  %164 = vadd.xlane.f32.xlu0 %v163_v62 }
 0x20c   :  { %284 = vadd.xlane.f32.xlu1 %v283_v63 }
 0x20d   :  { %v156_v0 = vpop.xlane.xlu2 %155 }
 0x20e   :  { %v158_v15 = vsub.f32 %v148_v47, %v156_v0 }
 0x210   :  { %v161_v16 = vmul.f32 1.442695, %v158_v15 }
 0x212   :  { %v381_v1 = vpop.permute.xlu0 %380 }
 0x213   :  { %v386_v4 = vsel %vm107_vm1, %v381_v1, 0 }
 0x214   :  { %395 = vmatpush.bf16.xpose.msra.mxu2 %v386_v4 }
 0x215   :  { %v276_v5 = vpop.xlane.xlu2 %275 }
 0x216   :  { %v278_v6 = vsub.f32 %v268_v50, %v276_v5 }
 0x218   :  { %v281_v7 = vmul.f32 1.442695, %v278_v6 }
 0x21a   :  { %964 = vpow2.f32 %v281_v7 }
 0x21b   :  { %966 = vpow2.f32 %v161_v16 }
 0x21d   :  { %v176_v8 = vpop.permute.xlu2 %175 }
 0x21e   :  { %v182_v9 = vsel %vm180_vm2, %v176_v8, 0 }
 0x21f   :  { %191 = vmatpush.bf16.msra.mxu3 %v182_v9  ;;  %316 = vrot.lane.b32.xlu0 %v1115_v20, %s1005_s23 }
 0x220   :  { %v965_v10 = vpop.eup %964 }
 0x221   :  { %v286_v12 = vsel %vm107_vm1, %v965_v10, 0.0  ;;  %v967_v17 = vpop.eup %966 }
 0x222   :  { %287 = vadd.xlane.f32.xlu2 %v286_v12  ;;  %v166_v18 = vsel %vm107_vm1, %v967_v17, 0.0 }
 0x225   :  { %v198_v13 = vpop.permute.xlu2 %197  ;;  %378 = vrot.lane.b32.xlu1 %v1117_v21, %s1008_s29 }
 0x226   :  { %v203_v14 = vsel %vm180_vm2, %v198_v13, 0 }
 0x227   :  { %212 = vmatpush.bf16.msrb.mxu3 %v203_v14  ;;  %401 = vrot.lane.b32.xlu0 %v1122_v23, %s1008_s29 }
 0x23a   :  { %448 = vrot.lane.b32.xlu2 %v1111_v11, %s1009_s30 }
 0x242   :  { %515 = vrot.lane.b32.xlu2 %v1111_v11, %s1010_s15 }
 0x24a   :  { %538 = vrot.lane.b32.xlu2 %v1115_v20, %s1010_s15 }
 0x24f   :  { %167 = vadd.xlane.f32.xlu1 %v166_v18 }
 0x268   :  { %403 = vrot.lane.b32.xlu1 %v1115_v20, %s1006_s28 }
 0x27e   :  { %v165_v24 = vpop.xlane.xlu0 %164 }
 0x27f   :  { %v285_v25 = vpop.xlane.xlu1 %284  ;;  %968 = vrcp.f32 %v165_v24 }
 0x280   :  { %970 = vrcp.f32 %v285_v25 }
 0x285   :  { %v969_v26 = vpop.eup %968 }
 0x286   :  { %v971_v27 = vpop.eup %970  ;;  %v171_v28 = vmul.f32 %v969_v26, %v961_v60  ;;  %v91_v60 = vld [vmem:[%s1310_s4] sm:$0xf] }
 0x287   :  { %v291_v29 = vmul.f32 %v971_v27, %v963_v61  ;;  %v362_v61 = vsel %vm180_vm2, %v91_v60, 0 }
 0x288   :  { %v173_v30 = vpack.c.bf16 %v171_v28, %v171_v28  ;;  %371 = vmatpush.bf16.msra.mxu1 %v362_v61 }
 0x289   :  { %v293_v31 = vpack.c.bf16 %v291_v29, %v291_v29 }
 0x28a   :  { %888 = vmatmul.msk.bf16.vlgmr.msra.gmra.mxu3 %vm107_vm1, %v173_v30 }
 0x28b   :  { %892 = vmatmul.msk.bf16.vlgmr.msrb.gmra.mxu2 %vm107_vm1, %v293_v31 }
 0x291   :  { %v317_v32 = vpop.permute.xlu0 %316 }
 0x292   :  { %v322_v33 = vsel %vm180_vm2, %v317_v32, 0 }
 0x293   :  { %331 = vmatpush.bf16.msra.mxu3 %v322_v33 }
 0x295   :  { %v288_v34 = vpop.xlane.xlu2 %287 }
 0x297   :  { %v379_v35 = vpop.permute.xlu1 %378 }
 0x299   :  { %v402_v51 = vpop.permute.xlu0 %401 }
 0x29b   :  { %896 = vmatmul.msk.bf16.vlgmr.msra.gmra.mxu2 %vm107_vm1, %v379_v35 }
 0x29d   :  { %v449_v37 = vpop.permute.xlu2 %448 }
 0x29e   :  { %v454_v38 = vsel %vm180_vm2, %v449_v37, 0 }
 0x29f   :  { %463 = vmatpush.bf16.msrb.mxu0 %v454_v38 }
 0x2a5   :  { %v516_v47 = vpop.permute.xlu2 %515 }
 0x2a6   :  { %v521_v50 = vsel %vm107_vm1, %v516_v47, 0 }
 0x2ad   :  { %v539_v1 = vpop.permute.xlu2 %538 }
 0x2ae   :  { %v544_v6 = vsel %vm107_vm1, %v539_v1, 0 }
 0x2c2   :  { %v168_v39 = vpop.xlane.xlu1 %167 }
 0x2c3   :  { %972 = vrcp.f32 %v168_v39  ;;  %v93_v39 = vld [vmem:[%s1310_s4 + $0x8] sm:$0xf] }
 0x2c4   :  { %974 = vrcp.f32 %v288_v34 }
 0x2c9   :  { %v973_v40 = vpop.eup %972 }
 0x2ca   :  { %v172_v41 = vmul.f32 %v973_v40, %v967_v17  ;;  %v975_v43 = vpop.eup %974  ;;  %v495_v40 = vsel %vm180_vm2, %v93_v39, 0  ;;  %v1013_v39 = vmov 32.0  }
 0x2cb   :  { %v292_v44 = vmul.f32 %v975_v43, %v965_v10  ;;  %504 = vmatpush.bf16.msrb.mxu2 %v495_v40 }
 0x2cc   :  { %v174_v42 = vpack.c.bf16 %v172_v41, %v172_v41 }
 0x2cd   :  { %v294_v49 = vpack.c.bf16 %v292_v44, %v292_v44 }
 0x2ce   :  { %889 = vmatmul.msk.bf16.vlgmr.msrb.gmra.mxu3 %vm107_vm1, %v174_v42 }
 0x2da   :  { %v404_v46 = vpop.permute.xlu1 %403 }
 0x2db   :  { %v409_v48 = vsel %vm107_vm1, %v404_v46, 0 }
 0x2dc   :  { %418 = vmatpush.bf16.xpose.msrb.mxu3 %v409_v48 }
 0x2de   :  { %893 = vmatmul.msk.bf16.vlgmr.msra.gmra.mxu3 %vm107_vm1, %v294_v49 }
 0x2e4   :  { %530 = vmatpush.bf16.xpose.msra.mxu3 %v521_v50 }
 0x2ee   :  { %897 = vmatmul.msk.bf16.vlgmr.msrb.gmra.mxu3 %vm107_vm1, %v402_v51 }
 0x30d   :  { %v193_v52 = vpop.f32.mrf.mxu3 }
 0x30e   :  { %v312_v53 = vpop.f32.mrf.mxu2 }
 0x315   :  { %v195_v54 = vpop.f32.mrf.mxu3 }
 0x316   :  { %v314_v55 = vpop.f32.mrf.mxu2 }
 0x31e   :  { %v397_v56 = vpop.f32.mrf.mxu2 }
 0x31f   :  { %v398_v57 = vadd.f32 %v397_v56, %v1139_v36 }
 0x321   :  { %v424_v58 = vsel %vm107_vm1, %v398_v57, -inf }
 0x322   :  { %425 = vmax.xlane.f32.xlu0 %v424_v58 }
 0x326   :  { %v399_v59 = vpop.f32.mrf.mxu2 }
 0x336   :  { %513 = vrot.lane.b32.xlu0 %v1117_v21, %s1011_s20 }
 0x351   :  { %v214_v62 = vpop.f32.mrf.mxu3 }
 0x352   :  { %v218_v63 = vpack.c.bf16 %v214_v62, %v193_v52 }
 0x354   :  { %895 = vmatmul.msk.bf16.vlgmr.msra.gmra.mxu1 %vm107_vm1, %v218_v63 }
 0x359   :  { %v216_v0 = vpop.f32.mrf.mxu3 }
 0x361   :  { %v333_v4 = vpop.f32.mrf.mxu3 }
 0x362   :  { %v337_v5 = vpack.c.bf16 %v333_v4, %v312_v53 }
 0x364   :  { %894 = vmatmul.msk.bf16.vlgmr.msra.gmra.mxu0 %vm107_vm1, %v337_v5 }
 0x365   :  { %553 = vmatpush.bf16.xpose.msra.mxu0 %v544_v6 }
 0x369   :  { %v335_v7 = vpop.f32.mrf.mxu3 }
 0x371   :  { %v420_v8 = vpop.f32.mrf.mxu3 }
 0x372   :  { %v421_v9 = vadd.f32 %v420_v8, %v1148_v45 }
 0x374   :  { %v427_v10 = vsel %vm107_vm1, %v421_v9, -inf }
 0x375   :  { %428 = vmax.xlane.f32.xlu2 %v427_v10 }
 0x379   :  { %v422_v21 = vpop.f32.mrf.mxu3 }
 0x395   :  { %v426_v12 = vpop.xlane.xlu0 %425 }
 0x396   :  { %v430_v13 = vsub.f32 %v398_v57, %v426_v12 }
 0x398   :  { %v432_v14 = vmul.f32 1.442695, %v430_v13 }
 0x39a   :  { %976 = vpow2.f32 %v432_v14 }
 0x3a0   :  { %v977_v15 = vpop.eup %976 }
 0x3a1   :  { %v436_v16 = vsel %vm107_vm1, %v977_v15, 0.0 }
 0x3a2   :  { %437 = vadd.xlane.f32.xlu1 %v436_v16 }
 0x3a8   :  { %v514_v17 = vpop.permute.xlu0 %513 }
 0x3a9   :  { %901 = vmatmul.msk.bf16.vlgmr.msra.gmra.mxu3 %vm107_vm1, %v514_v17 }
 0x3bb   :  { %536 = vrot.lane.b32.xlu1 %v1122_v23, %s1011_s20 }
 0x3c3   :  { %469 = vrot.lane.b32.xlu1 %v1115_v20, %s1009_s30 }
 0x3d1   :  { %v373_v18 = vpop.f32.mrf.mxu1 }
 0x3d9   :  { %v375_v59 = vpop.f32.mrf.mxu1 }
 0x3e1   :  { %v353_v19 = vpop.f32.mrf.mxu0 }
 0x3e2   :  { %v1206_v22 = vadd.f32 %v373_v18, %v353_v19 }
 0x3e8   :  { %v429_v24 = vpop.xlane.xlu2 %428 }
 0x3e9   :  { %v431_v25 = vsub.f32 %v421_v9, %v429_v24  ;;  %v355_v47 = vpop.f32.mrf.mxu0 }
 0x3eb   :  { %v434_v26 = vmul.f32 1.442695, %v431_v25 }
 0x3ed   :  { %978 = vpow2.f32 %v434_v26 }
 0x3f3   :  { %v979_v27 = vpop.eup %978 }
 0x3f4   :  { %v439_v28 = vsel %vm107_vm1, %v979_v27, 0.0 }
 0x3f5   :  { %440 = vadd.xlane.f32.xlu0 %v439_v28 }
 0x409   :  { %604 = vrot.lane.b32.xlu0 %v1115_v20, %s1012_s21 }
 0x415   :  { %v438_v23 = vpop.xlane.xlu1 %437 }
 0x416   :  { %980 = vrcp.f32 %v438_v23 }
 0x41c   :  { %v981_v29 = vpop.eup %980 }
 0x41d   :  { %v444_v30 = vmul.f32 %v981_v29, %v977_v15 }
 0x41f   :  { %v446_v31 = vpack.c.bf16 %v444_v30, %v444_v30  ;;  %v376_v30 = vadd.f32 %v375_v59, %v355_v47 }
 0x421   :  { %898 = vmatmul.msk.bf16.vlgmr.msrb.gmra.mxu0 %vm107_vm1, %v446_v31 }
 0x42c   :  { %v532_v32 = vpop.f32.mrf.mxu3 }
 0x42d   :  { %v533_v33 = vadd.f32 %v532_v32, %v1139_v36  ;;  %v537_v34 = vpop.permute.xlu1 %536 }
 0x42f   :  { %v559_v35 = vsel %vm107_vm1, %v533_v33, -inf }
 0x430   :  { %560 = vmax.xlane.f32.xlu2 %v559_v35 }
 0x431   :  { %902 = vmatmul.msk.bf16.vlgmr.msra.gmra.mxu0 %vm107_vm1, %v537_v34 }
 0x434   :  { %v534_v37 = vpop.f32.mrf.mxu3 }
 0x435   :  { %v470_v38 = vpop.permute.xlu1 %469 }
 0x436   :  { %v475_v20 = vsel %vm180_vm2, %v470_v38, 0 }
 0x437   :  { %484 = vmatpush.bf16.msrb.mxu1 %v475_v20 }
 0x468   :  { %v441_v41 = vpop.xlane.xlu0 %440 }
 0x469   :  { %982 = vrcp.f32 %v441_v41 }
 0x46f   :  { %v983_v36 = vpop.eup %982 }
 0x470   :  { %v445_v42 = vmul.f32 %v983_v36, %v979_v27  ;;  %v953_v27 = vld [vmem:[%s1311_s5] ss:$0 sm:$0xff] }
 0x472   :  { %v447_v43 = vpack.c.bf16 %v445_v42, %v445_v42 }
 0x474   :  { %899 = vmatmul.msk.bf16.vlgmr.msrb.gmra.mxu1 %vm107_vm1, %v447_v43 }
 0x47b   :  { %v605_v44 = vpop.permute.xlu0 %604 }
 0x47c   :  { %v610_v46 = vsel %vm180_vm2, %v605_v44, 0 }
 0x47d   :  { %619 = vmatpush.bf16.msra.mxu2 %v610_v46 }
 0x49e   :  { %v465_v48 = vpop.f32.mrf.mxu0 }
 0x4a3   :  { %v561_v49 = vpop.xlane.xlu2 %560 }
 0x4a4   :  { %v565_v50 = vsub.f32 %v533_v33, %v561_v49 }
 0x4a6   :  { %v567_v51 = vmul.f32 1.442695, %v565_v50  ;;  %v467_v52 = vpop.f32.mrf.mxu0 }
 0x4a8   :  { %984 = vpow2.f32 %v567_v51 }
 0x4ae   :  { %v985_v53 = vpop.eup %984  ;;  %v555_v54 = vpop.f32.mrf.mxu0 }
 0x4af   :  { %v556_v55 = vadd.f32 %v555_v54, %v1148_v45  ;;  %v571_v56 = vsel %vm107_vm1, %v985_v53, 0.0  ;;  %v935_v54 = vld [vmem:[%s1315_s8 + $0x8] sm:$0xff] }
 0x4b0   :  { %572 = vadd.xlane.f32.xlu2 %v571_v56  ;;  %748 = vmatpush.bf16.msrb.mxu0 %v935_v54 }
 0x4b1   :  { %v562_v57 = vsel %vm107_vm1, %v556_v55, -inf }
 0x4b2   :  { %563 = vmax.xlane.f32.xlu1 %v562_v57 }
 0x4b6   :  { %v557_v58 = vpop.f32.mrf.mxu0 }
 0x4b7   :  { %v934_v58 = vld [vmem:[%s1315_s8] sm:$0xff] }
 0x4b8   :  { %749 = vmatpush.bf16.msrb.mxu0 %v934_v58 }
 0x4f1   :  { %v486_v60 = vpop.f32.mrf.mxu1 }
 0x4f2   :  { %v490_v61 = vpack.c.bf16 %v486_v60, %v465_v48 }
 0x4f4   :  { %900 = vmatmul.msk.bf16.vlgmr.msrb.gmra.mxu2 %vm107_vm1, %v490_v61 }
 0x4f9   :  { %v488_v62 = vpop.f32.mrf.mxu1 }
 0x523   :  { %v573_v7 = vpop.xlane.xlu2 %572 }
 0x525   :  { %v564_v63 = vpop.xlane.xlu1 %563 }
 0x526   :  { %v566_v0 = vsub.f32 %v556_v55, %v564_v63 }
 0x528   :  { %v569_v1 = vmul.f32 1.442695, %v566_v0 }
 0x52a   :  { %986 = vpow2.f32 %v569_v1 }
 0x52b   :  { %988 = vrcp.f32 %v573_v7 }
 0x530   :  { %v987_v4 = vpop.eup %986 }
 0x531   :  { %v574_v45 = vsel %vm107_vm1, %v987_v4, 0.0  ;;  %v989_v9 = vpop.eup %988 }
 0x532   :  { %575 = vadd.xlane.f32.xlu2 %v574_v45  ;;  %v579_v21 = vmul.f32 %v989_v9, %v985_v53 }
 0x534   :  { %v581_v16 = vpack.c.bf16 %v579_v21, %v579_v21  ;;  %v954_v21 = vld [vmem:[%s1312_s6] ss:$0 sm:$0xff] }
 0x54a   :  { %583 = vrot.lane.b32.xlu2 %v1111_v11, %s1012_s21  ;;  %v94_v11 = vld [vmem:[%s1310_s4 + $0xc] sm:$0xf] }
 0x54b   :  { %v630_v17 = vsel %vm180_vm2, %v94_v11, 0 }
 0x54c   :  { %639 = vmatpush.bf16.msrb.mxu3 %v630_v17 }
 0x577   :  { %v506_v5 = vpop.f32.mrf.mxu2 }
 0x578   :  { %v511_v6 = vadd.f32 %v506_v5, %v1206_v22 }
 0x57f   :  { %v508_v18 = vpop.f32.mrf.mxu2 }
 0x580   :  { %v512_v32 = vadd.f32 %v508_v18, %v376_v30 }
 0x5a5   :  { %v576_v8 = vpop.xlane.xlu2 %575 }
 0x5a6   :  { %990 = vrcp.f32 %v576_v8 }
 0x5a7   :  { %992 = vrcp.f32 %v1013_v39 }
 0x5ac   :  { %v991_v10 = vpop.eup %990 }
 0x5ad   :  { %v580_v12 = vmul.f32 %v991_v10, %v987_v4  ;;  %v584_v13 = vpop.permute.xlu2 %583  ;;  %v993_v40 = vpop.eup %992 }
 0x5ae   :  { %v589_v14 = vsel %vm180_vm2, %v584_v13, 0  ;;  %v664_v41 = vmul.f32 32.0, %v993_v40  ;;  %vm668_vm3 = vweird.f32 %v993_v40 }
 0x5af   :  { %v582_v15 = vpack.c.bf16 %v580_v12, %v580_v12  ;;  %598 = vmatpush.bf16.msra.mxu1 %v589_v14 }
 0x5b0   :  { %v665_v36 = vsub.f32 1.0, %v664_v41 }
 0x5b1   :  { %904 = vmatmul.msk.bf16.vlgmr.msra.gmra.mxu2 %vm107_vm1, %v582_v15  ;;  %v955_v15 = vld [vmem:[%s1313_s7] ss:$0 sm:$0xff] }
 0x5b2   :  { %903 = vmatmul.msk.bf16.vlgmr.msra.gmra.mxu1 %vm107_vm1, %v581_v16  ;;  %v666_v42 = vmul.f32 %v993_v40, %v665_v36 }
 0x5b4   :  { %v667_v43 = vadd.f32 %v993_v40, %v666_v42 }
 0x62f   :  { %v600_v19 = vpop.f32.mrf.mxu1 }
 0x634   :  { %v621_v22 = vpop.f32.mrf.mxu2 }
 0x635   :  { %v625_v24 = vpack.c.bf16 %v621_v22, %v600_v19 }
 0x637   :  { %v602_v25 = vpop.f32.mrf.mxu1  ;;  %905 = vmatmul.msk.bf16.vlgmr.msrb.gmra.mxu3 %vm107_vm1, %v625_v24  ;;  %v939_v24 = vld [vmem:[%s1317_s10 + $0x18] sm:$0xff] }
 0x638   :  { %803 = vmatpush.bf16.msrb.mxu1 %v939_v24  ;;  %v938_v25 = vld [vmem:[%s1317_s10 + $0x10] sm:$0xff] }
 0x63c   :  { %v623_v26 = vpop.f32.mrf.mxu2  ;;  %804 = vmatpush.bf16.msrb.mxu1 %v938_v25 }
 0x63d   :  { %v937_v26 = vld [vmem:[%s1317_s10 + $0x8] sm:$0xff] }
 0x640   :  { %805 = vmatpush.bf16.msrb.mxu1 %v937_v26 }
 0x6ba   :  { %v641_v28 = vpop.f32.mrf.mxu3 }
 0x6bb   :  { %v646_v23 = vadd.f32 %v641_v28, %v511_v6 }
 0x6bd   :  { %v651_v29 = vadd.f32 %v953_v27, %v646_v23  ;;  %v956_v23 = vld [vmem:[%s1314_s9] ss:$0 sm:$0xff] }
 0x6bf   :  { %v653_v31 = vadd.f32 %v651_v29, %v1098_v2  ;;  %v1245_v2 = vsel %vm668_vm3, %v993_v40, %v667_v43 }
 0x6c1   :  { %v657_v33 = vsel %vm71_vm0, %v653_v31, 0.0 }
 0x6c2   :  { %658 = vadd.xlane.f32.xlu1 %v657_v33  ;;  %v643_v34 = vpop.f32.mrf.mxu3 }
 0x6c3   :  { %v647_v35 = vadd.f32 %v643_v34, %v512_v32 }
 0x6c5   :  { %v652_v37 = vadd.f32 %v953_v27, %v647_v35  ;;  %v936_v27 = vld [vmem:[%s1317_s10] sm:$0xff] }
 0x6c6   :  { %806 = vmatpush.bf16.msrb.mxu1 %v936_v27  ;;  %v957_v35 = vld [vmem:[%s1316_s11] ss:$0 sm:$0xff] }
 0x6c7   :  { %v654_v38 = vadd.f32 %v652_v37, %v1103_v3 }
 0x6c9   :  { %v660_v20 = vsel %vm71_vm0, %v654_v38, 0.0 }
 0x6ca   :  { %661 = vadd.xlane.f32.xlu0 %v660_v20 }
 0x735   :  { %v659_v44 = vpop.xlane.xlu1 %658 }
 0x736   :  { %v670_v46 = vmul.f32 %v1245_v2, %v659_v44 }
 0x738   :  { %v672_v47 = vsub.f32 %v653_v31, %v670_v46 }
 0x73a   :  { %v674_v48 = vmul.f32 %v672_v47, %v672_v47 }
 0x73c   :  { %v676_v3 = vsel %vm71_vm0, %v674_v48, 0.0 }
 0x73d   :  { %677 = vadd.xlane.f32.xlu1 %v676_v3  ;;  %v662_v49 = vpop.xlane.xlu0 %661 }
 0x73e   :  { %v671_v50 = vmul.f32 %v1245_v2, %v662_v49 }
 0x740   :  { %v673_v51 = vsub.f32 %v654_v38, %v671_v50 }
 0x742   :  { %v675_v52 = vmul.f32 %v673_v51, %v673_v51 }
 0x744   :  { %v679_v53 = vsel %vm71_vm0, %v675_v52, 0.0 }
 0x745   :  { %680 = vadd.xlane.f32.xlu1 %v679_v53 }
 0x7b0   :  { %v678_v55 = vpop.xlane.xlu1 %677 }
 0x7b1   :  { %v682_v56 = vmul.f32 %v678_v55, %v1245_v2 }
 0x7b3   :  { %v684_v57 = vadd.f32 1e-05, %v682_v56 }
 0x7b5   :  { %994 = vrsqrt.f32 %v684_v57  ;;  %vm692_vm5 = vweird.f32 %v684_v57 }
 0x7b8   :  { %v681_v59 = vpop.xlane.xlu1 %680 }
 0x7b9   :  { %v683_v60 = vmul.f32 %v681_v59, %v1245_v2 }
 0x7bb   :  { %v995_v61 = vpop.eup %994  ;;  %v685_v62 = vadd.f32 1e-05, %v683_v60 }
 0x7bc   :  { %v687_v63 = vmul.f32 %v995_v61, %v684_v57  ;;  %vm693_vm4 = vweird.f32 %v995_v61 }
 0x7bd   :  { %996 = vrsqrt.f32 %v685_v62  ;;  %vm694_vm6 = vmor %vm692_vm5, %vm693_vm4  ;;  %vm702_vm8 = vweird.f32 %v685_v62 }
 0x7be   :  { %v688_v0 = vmul.f32 %v995_v61, %v687_v63 }
 0x7c0   :  { %v689_v1 = vmul.f32 0.5, %v688_v0 }
 0x7c2   :  { %v690_v4 = vsub.f32 1.5, %v689_v1 }
 0x7c3   :  { %v997_v45 = vpop.eup %996 }
 0x7c4   :  { %v691_v5 = vmul.f32 %v995_v61, %v690_v4  ;;  %v697_v6 = vmul.f32 %v997_v45, %v685_v62  ;;  %vm703_vm7 = vweird.f32 %v997_v45 }
 0x7c5   :  { %vm704_vm9 = vmor %vm702_vm8, %vm703_vm7 }
 0x7c6   :  { %v698_v7 = vmul.f32 %v997_v45, %v697_v6  ;;  %v695_v8 = vsel %vm694_vm6, %v995_v61, %v691_v5 }
 0x7c7   :  { %v706_v12 = vmul.f32 %v695_v8, %v672_v47 }
 0x7c8   :  { %v699_v9 = vmul.f32 0.5, %v698_v7 }
 0x7c9   :  { %v711_v16 = vmul.f32 %v954_v21, %v706_v12 }
 0x7ca   :  { %v700_v10 = vsub.f32 1.5, %v699_v9 }
 0x7cb   :  { %v716_v18 = vadd.f32 %v955_v15, %v711_v16 }
 0x7cc   :  { %v701_v13 = vmul.f32 %v997_v45, %v700_v10 }
 0x7ce   :  { %v705_v14 = vsel %vm704_vm9, %v997_v45, %v701_v13  ;;  %v958_v45 = vld [vmem:[%s1318_s12] ss:$0 sm:$0xff] }
 0x7cf   :  { %v707_v11 = vmul.f32 %v705_v14, %v673_v51 }
 0x7d1   :  { %v712_v17 = vmul.f32 %v954_v21, %v707_v11 }
 0x7d3   :  { %v717_v19 = vadd.f32 %v955_v15, %v712_v17 }
 0x7d5   :  { %v722_v22 = vpack.c.bf16 %v717_v19, %v716_v18 }
 0x7d7   :  { %914 = vmatmul.msk.bf16.vlgmr.msrb.gmra.mxu0 %vm71_vm0, %v722_v22 }
 0x854   :  { %v751_v28 = vpop.f32.mrf.mxu0 }
 0x855   :  { %v752_v29 = vadd.f32 %v956_v23, %v751_v28 }
 0x857   :  { %v756_v32 = vmax.f32 %v752_v29, 0.0 }
 0x85c   :  { %v753_v30 = vpop.f32.mrf.mxu0 }
 0x85d   :  { %v754_v31 = vadd.f32 %v956_v23, %v753_v30 }
 0x85f   :  { %v757_v33 = vmax.f32 %v754_v31, 0.0 }
 0x861   :  { %v766_v34 = vpack.c.bf16 %v757_v33, %v756_v32 }
 0x863   :  { %931 = vmatmul.msk.bf16.vlgmr.msrb.gmra.mxu1 %vm795_vm10, %v766_v34 }
 0x8e0   :  { %v808_v37 = vpop.f32.mrf.mxu1 }
 0x8e1   :  { %v809_v38 = vadd.f32 %v957_v35, %v808_v37 }
 0x8e3   :  { %v813_v20 = vadd.f32 %v809_v38, %v716_v18 }
 0x8e5   :  { %v817_v39 = vsel %vm71_vm0, %v813_v20, 0.0 }
 0x8e6   :  { %818 = vadd.xlane.f32.xlu2 %v817_v39 }
 0x8e8   :  { %v810_v40 = vpop.f32.mrf.mxu1 }
 0x8e9   :  { %v811_v41 = vadd.f32 %v957_v35, %v810_v40 }
 0x8eb   :  { %v814_v36 = vadd.f32 %v811_v41, %v717_v19 }
 0x8ed   :  { %v820_v42 = vsel %vm71_vm0, %v814_v36, 0.0 }
 0x8ee   :  { %821 = vadd.xlane.f32.xlu1 %v820_v42 }
 0x959   :  { %v819_v43 = vpop.xlane.xlu2 %818 }
 0x95a   :  { %v823_v44 = vmul.f32 %v819_v43, %v1245_v2 }
 0x95c   :  { %v825_v46 = vsub.f32 %v813_v20, %v823_v44 }
 0x95e   :  { %v827_v47 = vmul.f32 %v825_v46, %v825_v46 }
 0x960   :  { %v829_v48 = vsel %vm71_vm0, %v827_v47, 0.0 }
 0x961   :  { %v822_v3 = vpop.xlane.xlu1 %821  ;;  %830 = vadd.xlane.f32.xlu1 %v829_v48 }
 0x962   :  { %v824_v49 = vmul.f32 %v822_v3, %v1245_v2 }
 0x964   :  { %v826_v50 = vsub.f32 %v814_v36, %v824_v49 }
 0x966   :  { %v828_v51 = vmul.f32 %v826_v50, %v826_v50 }
 0x968   :  { %v832_v52 = vsel %vm71_vm0, %v828_v51, 0.0 }
 0x969   :  { %833 = vadd.xlane.f32.xlu1 %v832_v52 }
 0x9d4   :  { %v831_v53 = vpop.xlane.xlu1 %830 }
 0x9d5   :  { %v835_v54 = vmul.f32 %v831_v53, %v1245_v2 }
 0x9d7   :  { %v837_v55 = vadd.f32 1e-05, %v835_v54 }
 0x9d9   :  { %998 = vrsqrt.f32 %v837_v55  ;;  %vm845_vm12 = vweird.f32 %v837_v55 }
 0x9dc   :  { %v834_v56 = vpop.xlane.xlu1 %833 }
 0x9dd   :  { %v836_v57 = vmul.f32 %v834_v56, %v1245_v2  ;;  %v959_v2 = vld [vmem:[%s1319_s13] ss:$0 sm:$0xff] }
 0x9df   :  { %v999_v58 = vpop.eup %998  ;;  %v838_v59 = vadd.f32 1e-05, %v836_v57 }
 0x9e0   :  { %v840_v60 = vmul.f32 %v999_v58, %v837_v55  ;;  %vm846_vm11 = vweird.f32 %v999_v58 }
 0x9e1   :  { %1000 = vrsqrt.f32 %v838_v59  ;;  %vm847_vm13 = vmor %vm845_vm12, %vm846_vm11  ;;  %vm855_vm15 = vweird.f32 %v838_v59 }
 0x9e2   :  { %v841_v61 = vmul.f32 %v999_v58, %v840_v60 }
 0x9e4   :  { %v842_v62 = vmul.f32 0.5, %v841_v61 }
 0x9e6   :  { %v843_v63 = vsub.f32 1.5, %v842_v62 }
 0x9e7   :  { %v1001_v0 = vpop.eup %1000 }
 0x9e8   :  { %v844_v1 = vmul.f32 %v999_v58, %v843_v63  ;;  %v850_v4 = vmul.f32 %v1001_v0, %v838_v59  ;;  %vm856_vm14 = vweird.f32 %v1001_v0 }
 0x9e9   :  { %vm857_vm1 = vmor %vm855_vm15, %vm856_vm14 }
 0x9ea   :  { %v848_v5 = vsel %vm847_vm13, %v999_v58, %v844_v1  ;;  %v851_v6 = vmul.f32 %v1001_v0, %v850_v4 }
 0x9eb   :  { %v859_v7 = vmul.f32 %v848_v5, %v825_v46 }
 0x9ec   :  { %v852_v8 = vmul.f32 0.5, %v851_v6 }
 0x9ed   :  { %v864_v9 = vmul.f32 %v958_v45, %v859_v7 }
 0x9ee   :  { %v853_v10 = vsub.f32 1.5, %v852_v8 }
 0x9ef   :  { %v869_v21 = vadd.f32 %v959_v2, %v864_v9 }
 0x9f0   :  { %v854_v12 = vmul.f32 %v1001_v0, %v853_v10 }
 0x9f1   :  { %871 = vst.msk [vmem:[%s1320_s14] sm:$0xff] %vm71_vm0, %v869_v21 }
 0x9f2   :  { %v858_v13 = vsel %vm857_vm1, %v1001_v0, %v854_v12 }
 0x9f3   :  { %v860_v14 = vmul.f32 %v858_v13, %v826_v50 }
 0x9f5   :  { %v865_v15 = vmul.f32 %v958_v45, %v860_v14 }
 0x9f7   :  { %v870_v16 = vadd.f32 %v959_v2, %v865_v15 }
 0x9f9   :  { %872 = vst.msk [vmem:[%s1320_s14 + $0x8] sm:$0xff] %vm71_vm0, %v870_v16 }

// kernel: couplets_transformer_forward.11
= control target key start
LH: loop header
LB: loop body
LE: loop exit
PB: predicated region body
PF: predicated region fallthrough
CT: control target
= control target key end

     0   :  { %10 = vsyncpa [#allocation3], 0  ;;  %s347_s0 = inlined_call_operand.vmem [shape: f32[16,32], index: 0, kind: input, shape index: {}]   ;;  %s348_s1 = inlined_call_operand.vmem [shape: f32[1,32], index: 1, kind: input, shape index: {}]   ;;  %s349_s2 = inlined_call_operand.hbm [shape: f32[1,32], index: 2, kind: input, shape index: {}]   ;;  %s350_s3 = inlined_call_operand.vmem [shape: bf16[32,32], index: 3, kind: input, shape index: {}]   ;;  %s351_s4 = inlined_call_operand.hbm [shape: f32[1,32], index: 4, kind: input, shape index: {}]   ;;  %s352_s5 = inlined_call_operand.hbm [shape: f32[16,32], index: 5, kind: output, shape index: {}]  }
   0x1   :  { %11 = vsyncpa [#allocation6], 0 }
   0x2   :  { %12 = vsyncpa [#allocation4], 0  ;;  %s22_s20 = sshll.u32 %s349_s2, 4  ;;  %s280_s21 = smov [#allocation2]   ;;  %s23_s20 = int_to_ptr.hbm [resolvable:$true] %s22_s20 }
   0x3   :  { %s24_s22 = sshll.u32 %s280_s21, 4  ;;  %s35_s25 = sshll.u32 %s351_s4, 4  ;;  %s25_s22 = int_to_ptr.vmem [resolvable:$true] %s24_s22  ;;  %s36_s25 = int_to_ptr.hbm [resolvable:$true] %s35_s25 }
   0x4   :  { %27 = dma.hbm_to_vmem [thread:$0]  %s23_s20, 16, %s25_s22, [#allocation3]  }
   0x5   :  { %s281_s26 = smov [#allocation5]  }
   0x6   :  { %s37_s27 = sshll.u32 %s281_s26, 4  ;;  %s38_s27 = int_to_ptr.vmem [resolvable:$true] %s37_s27 }
   0x7   :  { %40 = dma.hbm_to_vmem [thread:$0]  %s36_s25, 16, %s38_s27, [#allocation6]  }
   0x8   :  { %274 = dma.done.wait [#allocation3], 16  }
   0x9   :  { %275 = vsyncadd [#allocation3], 4294967280 }
   0xa   :  { %276 = dma.done.wait [#allocation6], 16  }
   0xb   :  { %277 = vsyncadd [#allocation6], 4294967280  ;;  %vm54_vm0 = vcmask 261120   ;;  %v50_v0 = vld [vmem:[%s347_s0] sm:$0xff]  ;;  %v51_v2 = vld [vmem:[%s347_s0 + $0x8] sm:$0xff]  ;;  %v282_v4 = vmov 32.0  }
   0xc   :  { %v55_v1 = vsel %vm54_vm0, %v50_v0, 0.0  ;;  %v58_v3 = vsel %vm54_vm0, %v51_v2, 0.0  ;;  %196 = vrcp.f32 %v282_v4  ;;  %v186_v21 = vld [vmem:[%s350_s3 + $0x8] sm:$0xff]  ;;  %v185_v23 = vld [vmem:[%s350_s3] sm:$0xff]  ;;  %s283_s9 = smov [#allocation7]   ;;  %s162_s12 = sshll.u32 %s352_s5, 4  ;;  %s163_s12 = int_to_ptr.hbm [resolvable:$true] %s162_s12 }
   0xd   :  { %56 = vadd.xlane.f32.xlu0 %v55_v1  ;;  %146 = vmatpush.bf16.msra.mxu0 %v186_v21  ;;  %v193_v42 = vld [vmem:[%s348_s1] ss:$0 sm:$0xff]  ;;  %v195_v52 = vld [vmem:[#allocation5] ss:$0 sm:$0xff]  ;;  %s160_s1 = sshll.u32 %s283_s9, 4  ;;  %s284_s13 = smov 128   ;;  %s161_s1 = int_to_ptr.vmem [resolvable:$true] %s160_s1 }
   0xe   :  { %v194_v47 = vld [vmem:[#allocation2] ss:$0 sm:$0xff]  ;;  %s285_s14 = smov 8  }
  0x11   :  { %147 = vmatpush.bf16.msra.mxu0 %v185_v23 }
  0x12   :  { %v197_v5 = vpop.eup %196 }
  0x13   :  { %v62_v6 = vmul.f32 32.0, %v197_v5  ;;  %vm66_vm1 = vweird.f32 %v197_v5 }
  0x15   :  { %59 = vadd.xlane.f32.xlu0 %v58_v3  ;;  %v63_v7 = vsub.f32 1.0, %v62_v6 }
  0x17   :  { %v64_v8 = vmul.f32 %v197_v5, %v63_v7 }
  0x19   :  { %v65_v9 = vadd.f32 %v197_v5, %v64_v8 }
  0x1b   :  { %v67_v10 = vsel %vm66_vm1, %v197_v5, %v65_v9 }
  0x80   :  { %v57_v11 = vpop.xlane.xlu0 %56 }
  0x81   :  { %v68_v12 = vmul.f32 %v67_v10, %v57_v11 }
  0x83   :  { %v70_v13 = vsub.f32 %v50_v0, %v68_v12 }
  0x85   :  { %v72_v14 = vmul.f32 %v70_v13, %v70_v13 }
  0x87   :  { %v74_v15 = vsel %vm54_vm0, %v72_v14, 0.0 }
  0x88   :  { %75 = vadd.xlane.f32.xlu1 %v74_v15  ;;  %v60_v16 = vpop.xlane.xlu0 %59 }
  0x89   :  { %v69_v17 = vmul.f32 %v67_v10, %v60_v16 }
  0x8b   :  { %v71_v18 = vsub.f32 %v51_v2, %v69_v17 }
  0x8d   :  { %v73_v19 = vmul.f32 %v71_v18, %v71_v18 }
  0x8f   :  { %v77_v20 = vsel %vm54_vm0, %v73_v19, 0.0 }
  0x90   :  { %78 = vadd.xlane.f32.xlu1 %v77_v20 }
  0xfb   :  { %v76_v22 = vpop.xlane.xlu1 %75 }
  0xfc   :  { %v80_v24 = vmul.f32 %v76_v22, %v67_v10 }
  0xfe   :  { %v82_v25 = vadd.f32 1e-05, %v80_v24 }
 0x100   :  { %198 = vrsqrt.f32 %v82_v25  ;;  %vm90_vm3 = vweird.f32 %v82_v25 }
 0x103   :  { %v79_v26 = vpop.xlane.xlu1 %78 }
 0x104   :  { %v81_v27 = vmul.f32 %v79_v26, %v67_v10 }
 0x106   :  { %v199_v28 = vpop.eup %198  ;;  %v83_v29 = vadd.f32 1e-05, %v81_v27 }
 0x107   :  { %v85_v30 = vmul.f32 %v199_v28, %v82_v25  ;;  %vm91_vm2 = vweird.f32 %v199_v28 }
 0x108   :  { %200 = vrsqrt.f32 %v83_v29  ;;  %vm92_vm4 = vmor %vm90_vm3, %vm91_vm2  ;;  %vm100_vm6 = vweird.f32 %v83_v29 }
 0x109   :  { %v86_v31 = vmul.f32 %v199_v28, %v85_v30 }
 0x10b   :  { %v87_v32 = vmul.f32 0.5, %v86_v31 }
 0x10d   :  { %v88_v33 = vsub.f32 1.5, %v87_v32 }
 0x10e   :  { %v201_v34 = vpop.eup %200 }
 0x10f   :  { %v89_v35 = vmul.f32 %v199_v28, %v88_v33  ;;  %v95_v36 = vmul.f32 %v201_v34, %v83_v29  ;;  %vm101_vm5 = vweird.f32 %v201_v34 }
 0x110   :  { %vm102_vm7 = vmor %vm100_vm6, %vm101_vm5 }
 0x111   :  { %v96_v37 = vmul.f32 %v201_v34, %v95_v36  ;;  %v93_v38 = vsel %vm92_vm4, %v199_v28, %v89_v35 }
 0x112   :  { %v104_v41 = vmul.f32 %v93_v38, %v70_v13 }
 0x113   :  { %v97_v39 = vmul.f32 0.5, %v96_v37 }
 0x114   :  { %v109_v46 = vmul.f32 %v193_v42, %v104_v41 }
 0x115   :  { %v98_v40 = vsub.f32 1.5, %v97_v39 }
 0x116   :  { %v114_v49 = vadd.f32 %v194_v47, %v109_v46 }
 0x117   :  { %v99_v43 = vmul.f32 %v201_v34, %v98_v40 }
 0x119   :  { %v103_v44 = vsel %vm102_vm7, %v201_v34, %v99_v43 }
 0x11a   :  { %v105_v45 = vmul.f32 %v103_v44, %v71_v18 }
 0x11c   :  { %v110_v48 = vmul.f32 %v193_v42, %v105_v45 }
 0x11e   :  { %v115_v50 = vadd.f32 %v194_v47, %v110_v48 }
 0x120   :  { %v120_v51 = vpack.c.bf16 %v115_v50, %v114_v49 }
 0x122   :  { %184 = vmatmul.msk.bf16.vlgmr.msra.gmra.mxu0 %vm54_vm0, %v120_v51 }
 0x19f   :  { %v149_v53 = vpop.f32.mrf.mxu0 }
 0x1a0   :  { %v150_v54 = vadd.f32 %v195_v52, %v149_v53 }
 0x1a2   :  { %154 = vst.msk [vmem:[#allocation7] sm:$0xff] %vm54_vm0, %v150_v54 }
 0x1a7   :  { %v151_v55 = vpop.f32.mrf.mxu0 }
 0x1a8   :  { %v152_v56 = vadd.f32 %v195_v52, %v151_v55 }
 0x1aa   :  { %155 = vst.msk [vmem:[#allocation7 + $0x8] sm:$0xff] %vm54_vm0, %v152_v56 }
 0x1ab   :  { %168 = dma.vmem_to_hbm [thread:$0]  %s161_s1, 256, %s163_s12, [#allocation4], %s284_s13, %s284_s13, %s285_s14  }
 0x1ac   :  { %278 = dma.done.wait [#allocation4], 256  }
 0x1ad   :  { %279 = vsyncadd [#allocation4], 4294967040 }
 0x1ae   :  { %173 = vsyncpa [#allocation3], 1 }
 0x1af   :  { %174 = vsyncpa [#allocation6], 1 }
 0x1b0   :  { %175 = vsyncpa [#allocation4], 1 }

// kernel: couplets_transformer_forward.9
= control target key start
LH: loop header
LB: loop body
LE: loop exit
PB: predicated region body
PF: predicated region fallthrough
CT: control target
= control target key end

     0   :  { %s2652_s0 = inlined_call_operand.vmem [shape: f32[2,8,32], index: 0, kind: input, shape index: {}]   ;;  %s2653_s1 = inlined_call_operand.vmem [shape: f32[2,8,32], index: 1, kind: input, shape index: {}]   ;;  %s2654_s2 = inlined_call_operand.vmem [shape: f32[2,8,8], index: 2, kind: input, shape index: {}]   ;;  %s2655_s3 = inlined_call_operand.vmem [shape: f32[2,8,8], index: 3, kind: input, shape index: {}]   ;;  %s2656_s4 = inlined_call_operand.vmem [shape: bf16[32,96], index: 4, kind: input, shape index: {}]   ;;  %s2657_s5 = inlined_call_operand.vmem [shape: f32[1,96], index: 5, kind: input, shape index: {}]   ;;  %s2658_s6 = inlined_call_operand.vmem [shape: bf16[32,32], index: 6, kind: input, shape index: {}]   ;;  %s2659_s7 = inlined_call_operand.vmem [shape: f32[1,32], index: 7, kind: input, shape index: {}]   ;;  %s2660_s8 = inlined_call_operand.vmem [shape: f32[1,32], index: 8, kind: input, shape index: {}]   ;;  %s2661_s9 = inlined_call_operand.vmem [shape: f32[1,32], index: 9, kind: input, shape index: {}]   ;;  %s2662_s10 = inlined_call_operand.vmem [shape: bf16[32,32], index: 10, kind: input, shape index: {}]   ;;  %s2663_s11 = inlined_call_operand.vmem [shape: f32[1,32], index: 11, kind: input, shape index: {}]   ;;  %s2664_s12 = inlined_call_operand.vmem [shape: bf16[32,64], index: 12, kind: input, shape index: {}]   ;;  %s2665_s13 = inlined_call_operand.vmem [shape: f32[1,64], index: 13, kind: input, shape index: {}]   ;;  %s2666_s14 = inlined_call_operand.vmem [shape: bf16[32,32], index: 14, kind: input, shape index: {}]   ;;  %s2667_s15 = inlined_call_operand.hbm [shape: f32[1,32], index: 15, kind: input, shape index: {}]   ;;  %s2668_s16 = inlined_call_operand.hbm [shape: f32[1,32], index: 16, kind: input, shape index: {}]   ;;  %s2669_s17 = inlined_call_operand.hbm [shape: f32[1,32], index: 17, kind: input, shape index: {}]   ;;  %s2670_s18 = inlined_call_operand.vmem [shape: bf16[32,64], index: 18, kind: input, shape index: {}]   ;;  %s2671_s19 = inlined_call_operand.hbm [shape: f32[1,64], index: 19, kind: input, shape index: {}]   ;;  %s2672_s20 = inlined_call_operand.vmem [shape: bf16[64,32], index: 20, kind: input, shape index: {}]   ;;  %s2673_s21 = inlined_call_operand.hbm [shape: f32[1,32], index: 21, kind: input, shape index: {}]   ;;  %s2674_s22 = inlined_call_operand.hbm [shape: f32[1,32], index: 22, kind: input, shape index: {}]   ;;  %s2675_s23 = inlined_call_operand.hbm [shape: f32[1,32], index: 23, kind: input, shape index: {}]   ;;  %s2676_s24 = inlined_call_operand.vmem [shape: f32[2,8,32], index: 24, kind: output, shape index: {}]  }
   0x1   :  { %2683 = sst [smem:[#allocation17_spill]] %s2652_s0 }
   0x2   :  { %2684 = sst [smem:[#allocation18_spill]] %s2653_s1 }
   0x3   :  { %2685 = sst [smem:[#allocation19_spill]] %s2654_s2 }
   0x4   :  { %2686 = sst [smem:[#allocation20_spill]] %s2655_s3 }
   0x5   :  { %2687 = sst [smem:[#allocation21_spill]] %s2656_s4 }
   0x6   :  { %2688 = sst [smem:[#allocation22_spill]] %s2657_s5 }
   0x7   :  { %2689 = sst [smem:[#allocation23_spill]] %s2658_s6 }
   0x8   :  { %2690 = sst [smem:[#allocation24_spill]] %s2659_s7 }
   0x9   :  { %2691 = sst [smem:[#allocation25_spill]] %s2660_s8 }
   0xa   :  { %29 = vsyncpa [#allocation3], 0 }
   0xb   :  { %30 = vsyncpa [#allocation5], 0 }
   0xc   :  { %31 = vsyncpa [#allocation8], 0  ;;  %s79_s27 = sshll.u32 %s2668_s16, 4  ;;  %s80_s27 = int_to_ptr.hbm [resolvable:$true] %s79_s27 }
   0xd   :  { %32 = vsyncpa [#allocation11], 0  ;;  %s2091_s28 = smov [#allocation4]   ;;  %s103_s0 = sshll.u32 %s2671_s19, 4  ;;  %s104_s0 = int_to_ptr.hbm [resolvable:$true] %s103_s0 }
   0xe   :  { %s81_s6 = sshll.u32 %s2091_s28, 4  ;;  %s2092_s7 = smov [#allocation7]   ;;  %s82_s6 = int_to_ptr.vmem [resolvable:$true] %s81_s6 }
   0xf   :  { %84 = dma.hbm_to_vmem [thread:$0]  %s80_s27, 16, %s82_s6, [#allocation5]  }
  0x10   :  { %s105_s30 = sshll.u32 %s2092_s7, 4  ;;  %s127_s8 = sshll.u32 %s2674_s22, 4  ;;  %s106_s30 = int_to_ptr.vmem [resolvable:$true] %s105_s30  ;;  %s128_s8 = int_to_ptr.hbm [resolvable:$true] %s127_s8 }
  0x11   :  { %108 = dma.hbm_to_vmem [thread:$0]  %s104_s0, 16, %s106_s30, [#allocation8]  }
  0x12   :  { %s68_s1 = sshll.u32 %s2667_s15, 4  ;;  %s2093_s5 = smov [#allocation10]   ;;  %s69_s1 = int_to_ptr.hbm [resolvable:$true] %s68_s1 }
  0x13   :  { %s129_s26 = sshll.u32 %s2093_s5, 4  ;;  %s2094_s19 = smov [#allocation2]   ;;  %s130_s26 = int_to_ptr.vmem [resolvable:$true] %s129_s26 }
  0x14   :  { %132 = dma.hbm_to_vmem [thread:$0]  %s128_s8, 16, %s130_s26, [#allocation11]  }
  0x15   :  { %s70_s27 = sshll.u32 %s2094_s19, 4  ;;  %s90_s2 = sshll.u32 %s2669_s17, 4  ;;  %s71_s27 = int_to_ptr.vmem [resolvable:$true] %s70_s27  ;;  %s91_s2 = int_to_ptr.hbm [resolvable:$true] %s90_s2 }
  0x16   :  { %73 = dma.hbm_to_vmem [thread:$0]  %s69_s1, 16, %s71_s27, [#allocation3]  }
  0x17   :  { %s116_s0 = sshll.u32 %s2673_s21, 4  ;;  %s2095_s7 = smov [#allocation6]   ;;  %s117_s0 = int_to_ptr.hbm [resolvable:$true] %s116_s0 }
  0x18   :  { %s92_s15 = sshll.u32 %s2095_s7, 4  ;;  %s2096_s30 = smov [#allocation9]   ;;  %s93_s15 = int_to_ptr.vmem [resolvable:$true] %s92_s15 }
  0x19   :  { %95 = dma.hbm_to_vmem [thread:$0]  %s91_s2, 16, %s93_s15, [#allocation5]  }
  0x1a   :  { %s118_s3 = sshll.u32 %s2096_s30, 4  ;;  %s138_s16 = sshll.u32 %s2675_s23, 4  ;;  %s119_s3 = int_to_ptr.vmem [resolvable:$true] %s118_s3  ;;  %s139_s16 = int_to_ptr.hbm [resolvable:$true] %s138_s16 }
  0x1b   :  { %121 = dma.hbm_to_vmem [thread:$0]  %s117_s0, 16, %s119_s3, [#allocation8]  }
  0x1c   :  { %s2097_s17 = smov [#allocation12]  }
  0x1d   :  { %s140_s4 = sshll.u32 %s2097_s17, 4  ;;  %s141_s4 = int_to_ptr.vmem [resolvable:$true] %s140_s4 }
  0x1e   :  { %143 = dma.hbm_to_vmem [thread:$0]  %s139_s16, 16, %s141_s4, [#allocation11]  }
  0x1f   :  { %2083 = dma.done.wait [#allocation3], 16  }
  0x20   :  { %2084 = vsyncadd [#allocation3], 4294967280 }
  0x21   :  { %2085 = dma.done.wait [#allocation5], 32  }
  0x22   :  { %2086 = vsyncadd [#allocation5], 4294967264 }
  0x23   :  { %2087 = dma.done.wait [#allocation8], 32  }
  0x24   :  { %2088 = vsyncadd [#allocation8], 4294967264 }
  0x25   :  { %2089 = dma.done.wait [#allocation11], 32  }
  0x26   :  { %2090 = vsyncadd [#allocation11], 4294967264  ;;  %s2692_s5 = sld [smem:[#allocation21_spill]]  ;;  %vm198_vm0 = vcmask 261120   ;;  %s2098_s7 = smov 96   ;;  %vm234_vm1 = vcmask 64512  }
  0x27   :  { %s2693_s28 = sld [smem:[#allocation17_spill]]  ;;  %s2099_s15 = smov 88   ;;  %vm307_vm2 = vcmask 1043456  }
  0x28   :  { %s2694_s0 = sld [smem:[#allocation22_spill]]  ;;  %s2100_s30 = smov 120  }
  0x29   :  { %s2101_s3 = smov 56   ;;  %s2695_s16 = sld [smem:[#allocation19_spill]] }
  0x2a   :  { %s2102_s21 = smov 80   ;;  %s2103_s1 = smov 64  }
  0x2b   :  { %s2105_s23 = smov 48   ;;  %s2106_s26 = smov 72  }
  0x2c   :  { %v1794_v0 = vld [vmem:[%s2692_s5 + $0x8] sm:$0xff]  ;;  %v1793_v1 = vld [vmem:[%s2692_s5] sm:$0xff]  ;;  %s2104_s5 = smov 112   ;;  %s2107_s22 = smov 104  }
  0x2d   :  { %v2265_v2 = vld [vmem:[%s2693_s28] sm:$0xff]  ;;  %v2270_v3 = vld [vmem:[%s2693_s28 + $0x8] sm:$0xff]  ;;  %208 = vmatpush.bf16.msra.mxu0 %v1794_v0  ;;  %s2696_s28 = sld [smem:[#allocation23_spill]]  ;;  %s2108_s29 = smov 40  }
  0x2e   :  { %v181_v4 = vpack.c.bf16 %v2270_v3, %v2265_v2  ;;  %v1824_v5 = vld [vmem:[%s2694_s0] ss:$0 sm:$0xff]  ;;  %s2697_s4 = sld [smem:[#allocation24_spill]] }
  0x2f   :  { %v2312_v36 = vld [vmem:[%s2695_s16] sm:$0xff]  ;;  %v2321_v45 = vld [vmem:[%s2695_s16 + $0x8] sm:$0xff]  ;;  %s2698_s0 = sld [smem:[#allocation18_spill]] }
  0x30   :  { %s2699_s17 = sld [smem:[#allocation25_spill]] }
  0x31   :  { %209 = vmatpush.bf16.msra.mxu0 %v1793_v1 }
  0x34   :  { %1708 = vmatmul.msk.bf16.vlgmr.msra.gmra.mxu0 %vm198_vm0, %v181_v4 }
  0xb1   :  { %v211_v6 = vpop.f32.mrf.mxu0 }
  0xb2   :  { %v212_v7 = vadd.f32 %v1824_v5, %v211_v6 }
  0xb4   :  { %v227_v8 = vpack.c.bf16 %v212_v7, %v212_v7  ;;  %v223_v9 = vmul.f32 0.35355338, %v212_v7 }
  0xb6   :  { %v230_v10 = vunpack.c.l.b16 %v227_v8  ;;  %v225_v12 = vpack.c.bf16 %v223_v9, %v223_v9 }
  0xb8   :  { %v2278_v11 = vpack.c.b16 %v230_v10, %v230_v10  ;;  %v347_v17 = vunpack.c.l.b16 %v225_v12 }
  0xb9   :  { %v213_v13 = vpop.f32.mrf.mxu0 }
  0xba   :  { %v214_v14 = vadd.f32 %v1824_v5, %v213_v13  ;;  %232 = vrot.lane.b32.xlu1 %v2278_v11, %s2098_s7  ;;  %351 = vrot.lane.b32.xlu0 %v2278_v11, %s2099_s15  ;;  %v2286_v21 = vpack.c.b16 %v347_v17, %v347_v17 }
  0xbc   :  { %v224_v15 = vmul.f32 0.35355338, %v214_v14  ;;  %v228_v16 = vpack.c.bf16 %v214_v14, %v214_v14 }
  0xbe   :  { %v255_v18 = vunpack.c.l.b16 %v228_v16  ;;  %v226_v19 = vpack.c.bf16 %v224_v15, %v224_v15 }
  0xc0   :  { %v2284_v20 = vpack.c.b16 %v255_v18, %v255_v18  ;;  %v373_v22 = vunpack.c.l.b16 %v226_v19 }
  0xc2   :  { %377 = vrot.lane.b32.xlu2 %v2284_v20, %s2099_s15  ;;  %257 = vrot.lane.b32.xlu1 %v2284_v20, %s2098_s7  ;;  %v2294_v23 = vpack.c.b16 %v373_v22, %v373_v22 }
  0xc3   :  { %349 = vrot.lane.b32.xlu0 %v2286_v21, %s2100_s30 }
  0xca   :  { %375 = vrot.lane.b32.xlu2 %v2294_v23, %s2100_s30 }
  0xd2   :  { %422 = vrot.lane.b32.xlu2 %v2278_v11, %s2101_s3 }
 0x11c   :  { %v378_v24 = vpop.permute.xlu2 %377 }
 0x11d   :  { %v383_v30 = vsel %vm234_vm1, %v378_v24, 0 }
 0x124   :  { %v376_v25 = vpop.permute.xlu2 %375 }
 0x12c   :  { %v233_v26 = vpop.permute.xlu1 %232  ;;  %v352_v27 = vpop.permute.xlu0 %351 }
 0x12d   :  { %v239_v28 = vsel %vm234_vm1, %v233_v26, 0  ;;  %v357_v29 = vsel %vm234_vm1, %v352_v27, 0  ;;  %v423_v31 = vpop.permute.xlu2 %422 }
 0x12e   :  { %248 = vmatpush.bf16.xpose.msra.mxu1 %v239_v28  ;;  %366 = vmatpush.bf16.xpose.msrb.mxu0 %v357_v29  ;;  %v428_v35 = vsel %vm307_vm2, %v423_v31, 0 }
 0x134   :  { %v258_v32 = vpop.permute.xlu1 %257 }
 0x135   :  { %v350_v33 = vpop.permute.xlu0 %349  ;;  %1709 = vmatmul.msk.bf16.vlgmr.msra.gmra.mxu1 %vm234_vm1, %v225_v12  ;;  %v263_v34 = vsel %vm234_vm1, %v258_v32, 0 }
 0x136   :  { %392 = vmatpush.bf16.xpose.msrb.mxu1 %v383_v30  ;;  %1713 = vmatmul.msk.bf16.vlgmr.msrb.gmra.mxu0 %vm234_vm1, %v350_v33 }
 0x137   :  { %272 = vmatpush.bf16.xpose.msra.mxu2 %v263_v34 }
 0x13e   :  { %1710 = vmatmul.msk.bf16.vlgmr.msra.gmra.mxu2 %vm234_vm1, %v226_v19  ;;  %v219_v19 = vld [vmem:[%s2696_s28 + $0x4] sm:$0xf] }
 0x13f   :  { %437 = vmatpush.bf16.msrb.mxu2 %v428_v35  ;;  %v469_v22 = vsel %vm307_vm2, %v219_v19, 0 }
 0x140   :  { %478 = vmatpush.bf16.msra.mxu0 %v469_v22 }
 0x145   :  { %1714 = vmatmul.msk.bf16.vlgmr.msrb.gmra.mxu1 %vm234_vm1, %v376_v25 }
 0x1b2   :  { %v250_v37 = vpop.f32.mrf.mxu1 }
 0x1b3   :  { %v251_v38 = vadd.f32 %v250_v37, %v2312_v36  ;;  %v368_v39 = vpop.f32.mrf.mxu0 }
 0x1b4   :  { %v369_v40 = vadd.f32 %v368_v39, %v2312_v36 }
 0x1b5   :  { %v278_v41 = vsel %vm234_vm1, %v251_v38, -inf }
 0x1b6   :  { %v398_v42 = vsel %vm234_vm1, %v369_v40, -inf  ;;  %279 = vmax.xlane.f32.xlu2 %v278_v41 }
 0x1b7   :  { %399 = vmax.xlane.f32.xlu0 %v398_v42 }
 0x1ba   :  { %v252_v43 = vpop.f32.mrf.mxu1 }
 0x1bb   :  { %v370_v44 = vpop.f32.mrf.mxu0 }
 0x1c1   :  { %v274_v46 = vpop.f32.mrf.mxu2 }
 0x1c2   :  { %v275_v47 = vadd.f32 %v274_v46, %v2321_v45  ;;  %v394_v48 = vpop.f32.mrf.mxu1 }
 0x1c3   :  { %v395_v50 = vadd.f32 %v394_v48, %v2321_v45 }
 0x1c4   :  { %v281_v49 = vsel %vm234_vm1, %v275_v47, -inf }
 0x1c5   :  { %282 = vmax.xlane.f32.xlu2 %v281_v49  ;;  %v401_v53 = vsel %vm234_vm1, %v395_v50, -inf }
 0x1c9   :  { %v276_v51 = vpop.f32.mrf.mxu2 }
 0x1ca   :  { %v396_v52 = vpop.f32.mrf.mxu1 }
 0x1cb   :  { %507 = vrot.lane.b32.xlu0 %v2278_v11, %s2102_s21 }
 0x1cd   :  { %402 = vmax.xlane.f32.xlu2 %v401_v53 }
 0x1e5   :  { %302 = vrot.lane.b32.xlu2 %v2278_v11, %s2103_s1 }
 0x1ed   :  { %324 = vrot.lane.b32.xlu2 %v2284_v20, %s2103_s1 }
 0x229   :  { %v280_v54 = vpop.xlane.xlu2 %279 }
 0x22a   :  { %v400_v55 = vpop.xlane.xlu0 %399  ;;  %v284_v56 = vsub.f32 %v251_v38, %v280_v54 }
 0x22b   :  { %v404_v57 = vsub.f32 %v369_v40, %v400_v55 }
 0x22c   :  { %v286_v58 = vmul.f32 1.442695, %v284_v56 }
 0x22d   :  { %v406_v59 = vmul.f32 1.442695, %v404_v57 }
 0x22e   :  { %1837 = vpow2.f32 %v286_v58 }
 0x22f   :  { %1839 = vpow2.f32 %v406_v59 }
 0x234   :  { %v1838_v60 = vpop.eup %1837 }
 0x235   :  { %v1840_v61 = vpop.eup %1839  ;;  %v290_v62 = vsel %vm234_vm1, %v1838_v60, 0.0 }
 0x236   :  { %v410_v63 = vsel %vm234_vm1, %v1840_v61, 0.0  ;;  %291 = vadd.xlane.f32.xlu0 %v290_v62 }
 0x237   :  { %411 = vadd.xlane.f32.xlu1 %v410_v63 }
 0x238   :  { %v283_v0 = vpop.xlane.xlu2 %282 }
 0x239   :  { %v285_v15 = vsub.f32 %v275_v47, %v283_v0 }
 0x23b   :  { %v288_v16 = vmul.f32 1.442695, %v285_v15 }
 0x23d   :  { %v508_v1 = vpop.permute.xlu0 %507 }
 0x23e   :  { %v513_v4 = vsel %vm234_vm1, %v508_v1, 0 }
 0x23f   :  { %522 = vmatpush.bf16.xpose.msra.mxu2 %v513_v4 }
 0x240   :  { %v403_v5 = vpop.xlane.xlu2 %402 }
 0x241   :  { %v405_v6 = vsub.f32 %v395_v50, %v403_v5 }
 0x243   :  { %v408_v7 = vmul.f32 1.442695, %v405_v6 }
 0x245   :  { %1841 = vpow2.f32 %v408_v7 }
 0x246   :  { %1843 = vpow2.f32 %v288_v16 }
 0x248   :  { %v303_v8 = vpop.permute.xlu2 %302 }
 0x249   :  { %v309_v9 = vsel %vm307_vm2, %v303_v8, 0 }
 0x24a   :  { %318 = vmatpush.bf16.msra.mxu3 %v309_v9  ;;  %443 = vrot.lane.b32.xlu0 %v2284_v20, %s2101_s3 }
 0x24b   :  { %v1842_v10 = vpop.eup %1841 }
 0x24c   :  { %v413_v12 = vsel %vm234_vm1, %v1842_v10, 0.0  ;;  %v1844_v17 = vpop.eup %1843 }
 0x24d   :  { %414 = vadd.xlane.f32.xlu2 %v413_v12  ;;  %v293_v18 = vsel %vm234_vm1, %v1844_v17, 0.0 }
 0x250   :  { %v325_v13 = vpop.permute.xlu2 %324  ;;  %505 = vrot.lane.b32.xlu1 %v2286_v21, %s2104_s5 }
 0x251   :  { %v330_v14 = vsel %vm307_vm2, %v325_v13, 0 }
 0x252   :  { %339 = vmatpush.bf16.msrb.mxu3 %v330_v14  ;;  %528 = vrot.lane.b32.xlu0 %v2294_v23, %s2104_s5 }
 0x265   :  { %575 = vrot.lane.b32.xlu2 %v2278_v11, %s2105_s23 }
 0x26d   :  { %642 = vrot.lane.b32.xlu2 %v2278_v11, %s2106_s26 }
 0x275   :  { %665 = vrot.lane.b32.xlu2 %v2284_v20, %s2106_s26 }
 0x27a   :  { %294 = vadd.xlane.f32.xlu1 %v293_v18 }
 0x293   :  { %530 = vrot.lane.b32.xlu1 %v2284_v20, %s2102_s21 }
 0x2a9   :  { %v292_v24 = vpop.xlane.xlu0 %291 }
 0x2aa   :  { %v412_v25 = vpop.xlane.xlu1 %411  ;;  %1845 = vrcp.f32 %v292_v24 }
 0x2ab   :  { %1847 = vrcp.f32 %v412_v25 }
 0x2b0   :  { %v1846_v26 = vpop.eup %1845 }
 0x2b1   :  { %v1848_v27 = vpop.eup %1847  ;;  %v298_v28 = vmul.f32 %v1846_v26, %v1838_v60  ;;  %v218_v60 = vld [vmem:[%s2696_s28] sm:$0xf] }
 0x2b2   :  { %v418_v29 = vmul.f32 %v1848_v27, %v1840_v61  ;;  %v489_v61 = vsel %vm307_vm2, %v218_v60, 0 }
 0x2b3   :  { %v300_v30 = vpack.c.bf16 %v298_v28, %v298_v28  ;;  %498 = vmatpush.bf16.msra.mxu1 %v489_v61 }
 0x2b4   :  { %v420_v31 = vpack.c.bf16 %v418_v29, %v418_v29 }
 0x2b5   :  { %1711 = vmatmul.msk.bf16.vlgmr.msra.gmra.mxu3 %vm234_vm1, %v300_v30 }
 0x2b6   :  { %1715 = vmatmul.msk.bf16.vlgmr.msrb.gmra.mxu2 %vm234_vm1, %v420_v31 }
 0x2bc   :  { %v444_v32 = vpop.permute.xlu0 %443 }
 0x2bd   :  { %v449_v33 = vsel %vm307_vm2, %v444_v32, 0 }
 0x2be   :  { %458 = vmatpush.bf16.msra.mxu3 %v449_v33 }
 0x2c0   :  { %v415_v34 = vpop.xlane.xlu2 %414 }
 0x2c2   :  { %v506_v35 = vpop.permute.xlu1 %505 }
 0x2c4   :  { %v529_v51 = vpop.permute.xlu0 %528 }
 0x2c6   :  { %1719 = vmatmul.msk.bf16.vlgmr.msra.gmra.mxu2 %vm234_vm1, %v506_v35 }
 0x2c8   :  { %v576_v37 = vpop.permute.xlu2 %575 }
 0x2c9   :  { %v581_v38 = vsel %vm307_vm2, %v576_v37, 0 }
 0x2ca   :  { %590 = vmatpush.bf16.msrb.mxu0 %v581_v38 }
 0x2d0   :  { %v643_v47 = vpop.permute.xlu2 %642 }
 0x2d1   :  { %v648_v50 = vsel %vm234_vm1, %v643_v47, 0 }
 0x2d8   :  { %v666_v1 = vpop.permute.xlu2 %665 }
 0x2d9   :  { %v671_v6 = vsel %vm234_vm1, %v666_v1, 0 }
 0x2ed   :  { %v295_v39 = vpop.xlane.xlu1 %294 }
 0x2ee   :  { %1849 = vrcp.f32 %v295_v39  ;;  %v220_v39 = vld [vmem:[%s2696_s28 + $0x8] sm:$0xf] }
 0x2ef   :  { %1851 = vrcp.f32 %v415_v34 }
 0x2f4   :  { %v1850_v40 = vpop.eup %1849 }
 0x2f5   :  { %v299_v41 = vmul.f32 %v1850_v40, %v1844_v17  ;;  %v1852_v43 = vpop.eup %1851  ;;  %v622_v40 = vsel %vm307_vm2, %v220_v39, 0  ;;  %v2109_v39 = vmov 32.0  }
 0x2f6   :  { %v419_v44 = vmul.f32 %v1852_v43, %v1842_v10  ;;  %631 = vmatpush.bf16.msrb.mxu2 %v622_v40 }
 0x2f7   :  { %v301_v42 = vpack.c.bf16 %v299_v41, %v299_v41 }
 0x2f8   :  { %v421_v49 = vpack.c.bf16 %v419_v44, %v419_v44 }
 0x2f9   :  { %1712 = vmatmul.msk.bf16.vlgmr.msrb.gmra.mxu3 %vm234_vm1, %v301_v42 }
 0x305   :  { %v531_v46 = vpop.permute.xlu1 %530 }
 0x306   :  { %v536_v48 = vsel %vm234_vm1, %v531_v46, 0 }
 0x307   :  { %545 = vmatpush.bf16.xpose.msrb.mxu3 %v536_v48 }
 0x309   :  { %1716 = vmatmul.msk.bf16.vlgmr.msra.gmra.mxu3 %vm234_vm1, %v421_v49 }
 0x30f   :  { %657 = vmatpush.bf16.xpose.msra.mxu3 %v648_v50 }
 0x319   :  { %1720 = vmatmul.msk.bf16.vlgmr.msrb.gmra.mxu3 %vm234_vm1, %v529_v51 }
 0x338   :  { %v320_v52 = vpop.f32.mrf.mxu3 }
 0x339   :  { %v439_v53 = vpop.f32.mrf.mxu2 }
 0x340   :  { %v322_v54 = vpop.f32.mrf.mxu3 }
 0x341   :  { %v441_v55 = vpop.f32.mrf.mxu2 }
 0x349   :  { %v524_v56 = vpop.f32.mrf.mxu2 }
 0x34a   :  { %v525_v57 = vadd.f32 %v524_v56, %v2312_v36 }
 0x34c   :  { %v551_v58 = vsel %vm234_vm1, %v525_v57, -inf }
 0x34d   :  { %552 = vmax.xlane.f32.xlu0 %v551_v58 }
 0x351   :  { %v526_v59 = vpop.f32.mrf.mxu2 }
 0x361   :  { %640 = vrot.lane.b32.xlu0 %v2286_v21, %s2107_s22 }
 0x37c   :  { %v341_v62 = vpop.f32.mrf.mxu3 }
 0x37d   :  { %v345_v63 = vpack.c.bf16 %v341_v62, %v320_v52 }
 0x37f   :  { %1718 = vmatmul.msk.bf16.vlgmr.msra.gmra.mxu1 %vm234_vm1, %v345_v63 }
 0x384   :  { %v343_v0 = vpop.f32.mrf.mxu3 }
 0x38c   :  { %v460_v4 = vpop.f32.mrf.mxu3 }
 0x38d   :  { %v464_v5 = vpack.c.bf16 %v460_v4, %v439_v53 }
 0x38f   :  { %1717 = vmatmul.msk.bf16.vlgmr.msra.gmra.mxu0 %vm234_vm1, %v464_v5 }
 0x390   :  { %680 = vmatpush.bf16.xpose.msra.mxu0 %v671_v6 }
 0x394   :  { %v462_v7 = vpop.f32.mrf.mxu3 }
 0x39c   :  { %v547_v8 = vpop.f32.mrf.mxu3 }
 0x39d   :  { %v548_v9 = vadd.f32 %v547_v8, %v2321_v45 }
 0x39f   :  { %v554_v10 = vsel %vm234_vm1, %v548_v9, -inf }
 0x3a0   :  { %555 = vmax.xlane.f32.xlu2 %v554_v10 }
 0x3a4   :  { %v549_v21 = vpop.f32.mrf.mxu3 }
 0x3c0   :  { %v553_v12 = vpop.xlane.xlu0 %552 }
 0x3c1   :  { %v557_v13 = vsub.f32 %v525_v57, %v553_v12 }
 0x3c3   :  { %v559_v14 = vmul.f32 1.442695, %v557_v13 }
 0x3c5   :  { %1853 = vpow2.f32 %v559_v14 }
 0x3cb   :  { %v1854_v15 = vpop.eup %1853 }
 0x3cc   :  { %v563_v16 = vsel %vm234_vm1, %v1854_v15, 0.0 }
 0x3cd   :  { %564 = vadd.xlane.f32.xlu1 %v563_v16 }
 0x3d3   :  { %v641_v17 = vpop.permute.xlu0 %640 }
 0x3d4   :  { %1724 = vmatmul.msk.bf16.vlgmr.msra.gmra.mxu3 %vm234_vm1, %v641_v17 }
 0x3e6   :  { %663 = vrot.lane.b32.xlu1 %v2294_v23, %s2107_s22 }
 0x3ee   :  { %596 = vrot.lane.b32.xlu1 %v2284_v20, %s2105_s23 }
 0x3fc   :  { %v500_v18 = vpop.f32.mrf.mxu1 }
 0x404   :  { %v502_v59 = vpop.f32.mrf.mxu1 }
 0x40c   :  { %v480_v19 = vpop.f32.mrf.mxu0 }
 0x40d   :  { %v2385_v22 = vadd.f32 %v500_v18, %v480_v19 }
 0x413   :  { %v556_v24 = vpop.xlane.xlu2 %555 }
 0x414   :  { %v558_v25 = vsub.f32 %v548_v9, %v556_v24  ;;  %v482_v47 = vpop.f32.mrf.mxu0 }
 0x416   :  { %v561_v26 = vmul.f32 1.442695, %v558_v25 }
 0x418   :  { %1855 = vpow2.f32 %v561_v26 }
 0x41e   :  { %v1856_v27 = vpop.eup %1855 }
 0x41f   :  { %v566_v28 = vsel %vm234_vm1, %v1856_v27, 0.0 }
 0x420   :  { %567 = vadd.xlane.f32.xlu0 %v566_v28 }
 0x434   :  { %731 = vrot.lane.b32.xlu0 %v2284_v20, %s2108_s29 }
 0x440   :  { %v565_v23 = vpop.xlane.xlu1 %564 }
 0x441   :  { %1857 = vrcp.f32 %v565_v23 }
 0x447   :  { %v1858_v29 = vpop.eup %1857 }
 0x448   :  { %v571_v30 = vmul.f32 %v1858_v29, %v1854_v15 }
 0x44a   :  { %v573_v31 = vpack.c.bf16 %v571_v30, %v571_v30  ;;  %v503_v30 = vadd.f32 %v502_v59, %v482_v47 }
 0x44c   :  { %1721 = vmatmul.msk.bf16.vlgmr.msrb.gmra.mxu0 %vm234_vm1, %v573_v31 }
 0x457   :  { %v659_v32 = vpop.f32.mrf.mxu3 }
 0x458   :  { %v660_v33 = vadd.f32 %v659_v32, %v2312_v36  ;;  %v664_v34 = vpop.permute.xlu1 %663 }
 0x45a   :  { %v686_v35 = vsel %vm234_vm1, %v660_v33, -inf }
 0x45b   :  { %687 = vmax.xlane.f32.xlu2 %v686_v35 }
 0x45c   :  { %1725 = vmatmul.msk.bf16.vlgmr.msra.gmra.mxu0 %vm234_vm1, %v664_v34 }
 0x45f   :  { %v661_v37 = vpop.f32.mrf.mxu3 }
 0x460   :  { %v597_v38 = vpop.permute.xlu1 %596 }
 0x461   :  { %v602_v20 = vsel %vm307_vm2, %v597_v38, 0 }
 0x462   :  { %611 = vmatpush.bf16.msrb.mxu1 %v602_v20 }
 0x493   :  { %v568_v41 = vpop.xlane.xlu0 %567 }
 0x494   :  { %1859 = vrcp.f32 %v568_v41 }
 0x49a   :  { %v1860_v36 = vpop.eup %1859 }
 0x49b   :  { %v572_v42 = vmul.f32 %v1860_v36, %v1856_v27  ;;  %v1825_v27 = vld [vmem:[%s2697_s4] ss:$0 sm:$0xff] }
 0x49d   :  { %v574_v43 = vpack.c.bf16 %v572_v42, %v572_v42 }
 0x49f   :  { %1722 = vmatmul.msk.bf16.vlgmr.msrb.gmra.mxu1 %vm234_vm1, %v574_v43 }
 0x4a6   :  { %v732_v44 = vpop.permute.xlu0 %731 }
 0x4a7   :  { %v737_v46 = vsel %vm307_vm2, %v732_v44, 0 }
 0x4a8   :  { %746 = vmatpush.bf16.msra.mxu2 %v737_v46 }
 0x4c9   :  { %v592_v48 = vpop.f32.mrf.mxu0 }
 0x4ce   :  { %v688_v49 = vpop.xlane.xlu2 %687 }
 0x4cf   :  { %v692_v50 = vsub.f32 %v660_v33, %v688_v49 }
 0x4d1   :  { %v694_v51 = vmul.f32 1.442695, %v692_v50  ;;  %v594_v52 = vpop.f32.mrf.mxu0 }
 0x4d3   :  { %1861 = vpow2.f32 %v694_v51 }
 0x4d9   :  { %v1862_v53 = vpop.eup %1861  ;;  %v682_v54 = vpop.f32.mrf.mxu0 }
 0x4da   :  { %v683_v55 = vadd.f32 %v682_v54, %v2321_v45  ;;  %v698_v56 = vsel %vm234_vm1, %v1862_v53, 0.0  ;;  %v1798_v54 = vld [vmem:[%s2664_s12 + $0x8] sm:$0xff] }
 0x4db   :  { %699 = vadd.xlane.f32.xlu2 %v698_v56  ;;  %v1796_v56 = vld [vmem:[%s2662_s10 + $0x8] sm:$0xff] }
 0x4dc   :  { %v689_v57 = vsel %vm234_vm1, %v683_v55, -inf  ;;  %875 = vmatpush.bf16.msrb.mxu0 %v1796_v56 }
 0x4dd   :  { %690 = vmax.xlane.f32.xlu1 %v689_v57  ;;  %v175_v57 = vld [vmem:[%s2698_s0] sm:$0xff] }
 0x4e1   :  { %v684_v58 = vpop.f32.mrf.mxu0 }
 0x4e2   :  { %v176_v58 = vld [vmem:[%s2698_s0 + $0x8] sm:$0xff] }
 0x51c   :  { %v613_v60 = vpop.f32.mrf.mxu1 }
 0x51d   :  { %v617_v61 = vpack.c.bf16 %v613_v60, %v592_v48  ;;  %v887_v60 = vpack.c.bf16 %v176_v58, %v175_v57 }
 0x51f   :  { %1723 = vmatmul.msk.bf16.vlgmr.msrb.gmra.mxu2 %vm234_vm1, %v617_v61 }
 0x524   :  { %v615_v62 = vpop.f32.mrf.mxu1 }
 0x54e   :  { %v700_v7 = vpop.xlane.xlu2 %699 }
 0x550   :  { %v691_v63 = vpop.xlane.xlu1 %690 }
 0x551   :  { %v693_v0 = vsub.f32 %v683_v55, %v691_v63  ;;  %v1797_v55 = vld [vmem:[%s2664_s12] sm:$0xff] }
 0x552   :  { %v1795_v63 = vld [vmem:[%s2662_s10] sm:$0xff] }
 0x553   :  { %v696_v1 = vmul.f32 1.442695, %v693_v0  ;;  %876 = vmatpush.bf16.msrb.mxu0 %v1795_v63 }
 0x555   :  { %1863 = vpow2.f32 %v696_v1 }
 0x556   :  { %1865 = vrcp.f32 %v700_v7 }
 0x55b   :  { %v1864_v4 = vpop.eup %1863 }
 0x55c   :  { %v701_v45 = vsel %vm234_vm1, %v1864_v4, 0.0  ;;  %v1866_v9 = vpop.eup %1865 }
 0x55d   :  { %702 = vadd.xlane.f32.xlu2 %v701_v45  ;;  %v706_v21 = vmul.f32 %v1866_v9, %v1862_v53 }
 0x55f   :  { %v708_v16 = vpack.c.bf16 %v706_v21, %v706_v21 }
 0x575   :  { %710 = vrot.lane.b32.xlu2 %v2278_v11, %s2108_s29  ;;  %v221_v11 = vld [vmem:[%s2696_s28 + $0xc] sm:$0xf]  ;;  %s2700_s28 = sld [smem:[#allocation20_spill]] }
 0x576   :  { %v757_v17 = vsel %vm307_vm2, %v221_v11, 0 }
 0x577   :  { %766 = vmatpush.bf16.msrb.mxu3 %v757_v17 }
 0x5a2   :  { %v633_v5 = vpop.f32.mrf.mxu2 }
 0x5a3   :  { %v638_v6 = vadd.f32 %v633_v5, %v2385_v22 }
 0x5aa   :  { %v635_v18 = vpop.f32.mrf.mxu2 }
 0x5ab   :  { %v639_v32 = vadd.f32 %v635_v18, %v503_v30 }
 0x5d0   :  { %v703_v8 = vpop.xlane.xlu2 %702 }
 0x5d1   :  { %1867 = vrcp.f32 %v703_v8 }
 0x5d2   :  { %1869 = vrcp.f32 %v2109_v39 }
 0x5d7   :  { %v1868_v10 = vpop.eup %1867 }
 0x5d8   :  { %v707_v12 = vmul.f32 %v1868_v10, %v1864_v4  ;;  %v711_v13 = vpop.permute.xlu2 %710  ;;  %v1870_v40 = vpop.eup %1869 }
 0x5d9   :  { %v716_v14 = vsel %vm307_vm2, %v711_v13, 0  ;;  %v791_v41 = vmul.f32 32.0, %v1870_v40  ;;  %vm795_vm3 = vweird.f32 %v1870_v40 }
 0x5da   :  { %v709_v15 = vpack.c.bf16 %v707_v12, %v707_v12  ;;  %725 = vmatpush.bf16.msra.mxu1 %v716_v14 }
 0x5db   :  { %v792_v36 = vsub.f32 1.0, %v791_v41  ;;  %v1829_v41 = vld [vmem:[%s2663_s11] ss:$0 sm:$0xff] }
 0x5dc   :  { %1727 = vmatmul.msk.bf16.vlgmr.msra.gmra.mxu2 %vm234_vm1, %v709_v15 }
 0x5dd   :  { %1726 = vmatmul.msk.bf16.vlgmr.msra.gmra.mxu1 %vm234_vm1, %v708_v16  ;;  %v793_v42 = vmul.f32 %v1870_v40, %v792_v36  ;;  %v1826_v16 = vld [vmem:[%s2699_s17] ss:$0 sm:$0xff] }
 0x5de   :  { %913 = vmatpush.bf16.msrb.mxu1 %v1798_v54 }
 0x5df   :  { %v794_v43 = vadd.f32 %v1870_v40, %v793_v42 }
 0x5e2   :  { %914 = vmatpush.bf16.msrb.mxu1 %v1797_v55 }
 0x5ed   :  { %1746 = vmatmul.msk.bf16.vlgmr.msrb.gmra.mxu1 %vm198_vm0, %v887_v60 }
 0x65a   :  { %v727_v19 = vpop.f32.mrf.mxu1 }
 0x65f   :  { %v748_v22 = vpop.f32.mrf.mxu2 }
 0x660   :  { %v752_v24 = vpack.c.bf16 %v748_v22, %v727_v19  ;;  %v1827_v19 = vld [vmem:[%s2661_s9] ss:$0 sm:$0xff] }
 0x662   :  { %v729_v25 = vpop.f32.mrf.mxu1  ;;  %1728 = vmatmul.msk.bf16.vlgmr.msrb.gmra.mxu3 %vm234_vm1, %v752_v24 }
 0x667   :  { %v750_v26 = vpop.f32.mrf.mxu2 }
 0x6e5   :  { %v768_v28 = vpop.f32.mrf.mxu3 }
 0x6e6   :  { %v773_v23 = vadd.f32 %v768_v28, %v638_v6 }
 0x6e8   :  { %v778_v29 = vadd.f32 %v1825_v27, %v773_v23  ;;  %v1828_v23 = vld [vmem:[%s2665_s13] ss:$0 sm:$0xff] }
 0x6ea   :  { %v780_v31 = vadd.f32 %v778_v29, %v2265_v2  ;;  %v2424_v2 = vsel %vm795_vm3, %v1870_v40, %v794_v43  ;;  %v916_v29 = vpop.f32.mrf.mxu1 }
 0x6eb   :  { %v917_v30 = vadd.f32 %v1828_v23, %v916_v29 }
 0x6ec   :  { %v784_v33 = vsel %vm198_vm0, %v780_v31, 0.0 }
 0x6ed   :  { %785 = vadd.xlane.f32.xlu1 %v784_v33  ;;  %v770_v34 = vpop.f32.mrf.mxu3 }
 0x6ee   :  { %v774_v35 = vadd.f32 %v770_v34, %v639_v32 }
 0x6f0   :  { %v779_v37 = vadd.f32 %v1825_v27, %v774_v35 }
 0x6f2   :  { %v781_v38 = vadd.f32 %v779_v37, %v2270_v3  ;;  %v918_v35 = vpop.f32.mrf.mxu1 }
 0x6f3   :  { %v919_v37 = vadd.f32 %v1828_v23, %v918_v35 }
 0x6f4   :  { %v787_v20 = vsel %vm198_vm0, %v781_v38, 0.0 }
 0x6f5   :  { %788 = vadd.xlane.f32.xlu0 %v787_v20 }
 0x760   :  { %v786_v44 = vpop.xlane.xlu1 %785 }
 0x761   :  { %v797_v46 = vmul.f32 %v2424_v2, %v786_v44 }
 0x763   :  { %v799_v47 = vsub.f32 %v780_v31, %v797_v46  ;;  %v932_v31 = vpack.c.bf16 %v917_v30, %v917_v30 }
 0x765   :  { %v801_v48 = vmul.f32 %v799_v47, %v799_v47  ;;  %v938_v32 = vsel %vm234_vm1, %v932_v31, 0  ;;  %v997_v33 = vunpack.c.l.b16 %v932_v31 }
 0x766   :  { %947 = vmatpush.bf16.xpose.msrb.mxu2 %v938_v32 }
 0x767   :  { %v803_v3 = vsel %vm198_vm0, %v801_v48, 0.0  ;;  %v2468_v34 = vpack.c.b16 %v997_v33, %v997_v33 }
 0x768   :  { %804 = vadd.xlane.f32.xlu1 %v803_v3  ;;  %v789_v49 = vpop.xlane.xlu0 %788 }
 0x769   :  { %v798_v50 = vmul.f32 %v2424_v2, %v789_v49  ;;  %1050 = vrot.lane.b32.xlu2 %v2468_v34, %s2100_s30 }
 0x76b   :  { %v800_v51 = vsub.f32 %v781_v38, %v798_v50  ;;  %v933_v38 = vpack.c.bf16 %v919_v37, %v919_v37 }
 0x76d   :  { %v802_v52 = vmul.f32 %v800_v51, %v800_v51  ;;  %v957_v20 = vsel %vm234_vm1, %v933_v38, 0  ;;  %v1021_v39 = vunpack.c.l.b16 %v933_v38 }
 0x76e   :  { %966 = vmatpush.bf16.xpose.msra.mxu3 %v957_v20 }
 0x76f   :  { %v806_v53 = vsel %vm198_vm0, %v802_v52, 0.0  ;;  %v2473_v40 = vpack.c.b16 %v1021_v39, %v1021_v39 }
 0x770   :  { %807 = vadd.xlane.f32.xlu1 %v806_v53 }
 0x771   :  { %1076 = vrot.lane.b32.xlu2 %v2473_v40, %s2100_s30 }
 0x7c3   :  { %v1051_v53 = vpop.permute.xlu2 %1050 }
 0x7c4   :  { %v1056_v54 = vsel %vm234_vm1, %v1051_v53, 0 }
 0x7c5   :  { %1065 = vmatpush.bf16.xpose.msra.mxu2 %v1056_v54 }
 0x7cb   :  { %v1077_v55 = vpop.permute.xlu2 %1076 }
 0x7cc   :  { %v1082_v56 = vsel %vm234_vm1, %v1077_v55, 0 }
 0x7cd   :  { %1091 = vmatpush.bf16.xpose.msrb.mxu3 %v1082_v56 }
 0x7db   :  { %v805_v59 = vpop.xlane.xlu1 %804 }
 0x7dc   :  { %v809_v61 = vmul.f32 %v805_v59, %v2424_v2  ;;  %v2497_v59 = vld [vmem:[%s2700_s28] sm:$0xff] }
 0x7de   :  { %v811_v62 = vadd.f32 1e-05, %v809_v61 }
 0x7e0   :  { %1871 = vrsqrt.f32 %v811_v62  ;;  %vm819_vm5 = vweird.f32 %v811_v62 }
 0x7e3   :  { %v808_v0 = vpop.xlane.xlu1 %807 }
 0x7e4   :  { %v810_v1 = vmul.f32 %v808_v0, %v2424_v2 }
 0x7e6   :  { %v1872_v4 = vpop.eup %1871  ;;  %v812_v45 = vadd.f32 1e-05, %v810_v1 }
 0x7e7   :  { %v814_v5 = vmul.f32 %v1872_v4, %v811_v62  ;;  %vm820_vm4 = vweird.f32 %v1872_v4 }
 0x7e8   :  { %1873 = vrsqrt.f32 %v812_v45  ;;  %vm821_vm6 = vmor %vm819_vm5, %vm820_vm4  ;;  %vm829_vm8 = vweird.f32 %v812_v45 }
 0x7e9   :  { %v815_v6 = vmul.f32 %v1872_v4, %v814_v5 }
 0x7eb   :  { %v816_v7 = vmul.f32 0.5, %v815_v6 }
 0x7ed   :  { %v817_v8 = vsub.f32 1.5, %v816_v7 }
 0x7ee   :  { %v1874_v9 = vpop.eup %1873 }
 0x7ef   :  { %v818_v10 = vmul.f32 %v1872_v4, %v817_v8  ;;  %v824_v21 = vmul.f32 %v1874_v9, %v812_v45  ;;  %vm830_vm7 = vweird.f32 %v1874_v9 }
 0x7f0   :  { %vm831_vm9 = vmor %vm829_vm8, %vm830_vm7 }
 0x7f1   :  { %v825_v12 = vmul.f32 %v1874_v9, %v824_v21  ;;  %v822_v13 = vsel %vm821_vm6, %v1872_v4, %v818_v10  ;;  %v2508_v4 = vld [vmem:[%s2700_s28 + $0x8] sm:$0xff] }
 0x7f2   :  { %v833_v11 = vmul.f32 %v822_v13, %v799_v47 }
 0x7f3   :  { %v826_v14 = vmul.f32 0.5, %v825_v12 }
 0x7f4   :  { %v838_v22 = vmul.f32 %v1826_v16, %v833_v11 }
 0x7f5   :  { %v827_v15 = vsub.f32 1.5, %v826_v14 }
 0x7f6   :  { %v2457_v26 = vadd.f32 %v1827_v19, %v838_v22 }
 0x7f7   :  { %v828_v17 = vmul.f32 %v1874_v9, %v827_v15 }
 0x7f9   :  { %v832_v18 = vsel %vm831_vm9, %v1874_v9, %v828_v17 }
 0x7fa   :  { %v834_v24 = vmul.f32 %v832_v18, %v800_v51 }
 0x7fc   :  { %v839_v25 = vmul.f32 %v1826_v16, %v834_v24 }
 0x7fe   :  { %v2459_v27 = vadd.f32 %v1827_v19, %v839_v25 }
 0x800   :  { %v849_v28 = vpack.c.bf16 %v2459_v27, %v2457_v26 }
 0x802   :  { %1737 = vmatmul.msk.bf16.vlgmr.msrb.gmra.mxu0 %vm198_vm0, %v849_v28 }
 0x87f   :  { %v878_v36 = vpop.f32.mrf.mxu0 }
 0x880   :  { %v879_v42 = vadd.f32 %v1829_v41, %v878_v36 }
 0x882   :  { %v928_v43 = vmul.f32 0.35355338, %v879_v42 }
 0x884   :  { %v930_v44 = vpack.c.bf16 %v928_v43, %v928_v43 }
 0x886   :  { %v1046_v46 = vunpack.c.l.b16 %v930_v44  ;;  %1747 = vmatmul.msk.bf16.vlgmr.msrb.gmra.mxu2 %vm234_vm1, %v930_v44 }
 0x887   :  { %v880_v47 = vpop.f32.mrf.mxu0 }
 0x888   :  { %v881_v48 = vadd.f32 %v1829_v41, %v880_v47  ;;  %v2481_v3 = vpack.c.b16 %v1046_v46, %v1046_v46 }
 0x88a   :  { %v929_v49 = vmul.f32 0.35355338, %v881_v48  ;;  %1048 = vrot.lane.b32.xlu1 %v2481_v3, %s2100_s30 }
 0x88c   :  { %v931_v50 = vpack.c.bf16 %v929_v49, %v929_v49 }
 0x88e   :  { %v1072_v51 = vunpack.c.l.b16 %v931_v50  ;;  %1748 = vmatmul.msk.bf16.vlgmr.msra.gmra.mxu3 %vm234_vm1, %v931_v50 }
 0x890   :  { %v2486_v52 = vpack.c.b16 %v1072_v51, %v1072_v51 }
 0x892   :  { %1074 = vrot.lane.b32.xlu2 %v2486_v52, %s2100_s30 }
 0x8ec   :  { %v1075_v57 = vpop.permute.xlu2 %1074 }
 0x8ed   :  { %1752 = vmatmul.msk.bf16.vlgmr.msrb.gmra.mxu3 %vm234_vm1, %v1075_v57 }
 0x8fc   :  { %v1049_v58 = vpop.permute.xlu1 %1048 }
 0x8fd   :  { %1751 = vmatmul.msk.bf16.vlgmr.msra.gmra.mxu2 %vm234_vm1, %v1049_v58 }
 0x909   :  { %v949_v60 = vpop.f32.mrf.mxu2 }
 0x90a   :  { %v950_v61 = vadd.f32 %v949_v60, %v2497_v59 }
 0x90c   :  { %v972_v62 = vsel %vm234_vm1, %v950_v61, -inf }
 0x90d   :  { %973 = vmax.xlane.f32.xlu2 %v972_v62 }
 0x911   :  { %v951_v63 = vpop.f32.mrf.mxu2  ;;  %v968_v0 = vpop.f32.mrf.mxu3 }
 0x912   :  { %v969_v45 = vadd.f32 %v968_v0, %v2508_v4 }
 0x914   :  { %v975_v5 = vsel %vm234_vm1, %v969_v45, -inf }
 0x919   :  { %v970_v1 = vpop.f32.mrf.mxu3 }
 0x925   :  { %1121 = vrot.lane.b32.xlu2 %v2468_v34, %s2099_s15 }
 0x92d   :  { %1204 = vrot.lane.b32.xlu2 %v2481_v3, %s2104_s5 }
 0x956   :  { %976 = vmax.xlane.f32.xlu2 %v975_v5  ;;  %v924_v5 = vld [vmem:[%s2666_s14 + $0x4] sm:$0xf] }
 0x96e   :  { %1142 = vrot.lane.b32.xlu2 %v2473_v40, %s2099_s15 }
 0x970   :  { %v1093_v6 = vpop.f32.mrf.mxu3 }
 0x971   :  { %v1094_v11 = vadd.f32 %v1093_v6, %v2508_v4  ;;  %v1168_v6 = vsel %vm307_vm2, %v924_v5, 0 }
 0x972   :  { %1177 = vmatpush.bf16.msrb.mxu2 %v1168_v6 }
 0x973   :  { %v1100_v17 = vsel %vm234_vm1, %v1094_v11, -inf }
 0x976   :  { %1227 = vrot.lane.b32.xlu2 %v2486_v52, %s2104_s5 }
 0x978   :  { %v1095_v7 = vpop.f32.mrf.mxu3 }
 0x980   :  { %v1067_v8 = vpop.f32.mrf.mxu2  ;;  %v974_v9 = vpop.xlane.xlu2 %973 }
 0x981   :  { %v1068_v10 = vadd.f32 %v1067_v8, %v2497_v59  ;;  %v978_v21 = vsub.f32 %v950_v61, %v974_v9 }
 0x983   :  { %v980_v12 = vmul.f32 1.442695, %v978_v21  ;;  %v1097_v13 = vsel %vm234_vm1, %v1068_v10, -inf }
 0x984   :  { %1098 = vmax.xlane.f32.xlu0 %v1097_v13 }
 0x985   :  { %1875 = vpow2.f32 %v980_v12 }
 0x988   :  { %v1069_v14 = vpop.f32.mrf.mxu2  ;;  %v1122_v18 = vpop.permute.xlu2 %1121 }
 0x989   :  { %v1127_v41 = vsel %vm307_vm2, %v1122_v18, 0 }
 0x98b   :  { %v1876_v15 = vpop.eup %1875 }
 0x98c   :  { %v984_v16 = vsel %vm234_vm1, %v1876_v15, 0.0 }
 0x98d   :  { %985 = vadd.xlane.f32.xlu1 %v984_v16 }
 0x990   :  { %v1205_v19 = vpop.permute.xlu2 %1204 }
 0x998   :  { %999 = vrot.lane.b32.xlu0 %v2468_v34, %s2098_s7 }
 0x9a6   :  { %1206 = vrot.lane.b32.xlu1 %v2468_v34, %s2104_s5 }
 0x9c9   :  { %v977_v22 = vpop.xlane.xlu2 %976 }
 0x9ca   :  { %v979_v28 = vsub.f32 %v969_v45, %v977_v22 }
 0x9cc   :  { %v982_v29 = vmul.f32 1.442695, %v979_v28 }
 0x9d0   :  { %1101 = vmax.xlane.f32.xlu1 %v1100_v17  ;;  %v923_v17 = vld [vmem:[%s2666_s14] sm:$0xf] }
 0x9d1   :  { %v1143_v58 = vpop.permute.xlu2 %1142  ;;  %v1188_v18 = vsel %vm307_vm2, %v923_v17, 0 }
 0x9d2   :  { %v1148_v63 = vsel %vm307_vm2, %v1143_v58, 0  ;;  %1197 = vmatpush.bf16.msra.mxu3 %v1188_v18 }
 0x9d9   :  { %v1228_v13 = vpop.permute.xlu2 %1227 }
 0x9e9   :  { %1229 = vrot.lane.b32.xlu1 %v2473_v40, %s2104_s5 }
 0x9f7   :  { %v1099_v24 = vpop.xlane.xlu0 %1098 }
 0x9f8   :  { %v1103_v25 = vsub.f32 %v1068_v10, %v1099_v24 }
 0x9fa   :  { %v1105_v23 = vmul.f32 1.442695, %v1103_v25 }
 0x9fc   :  { %1877 = vpow2.f32 %v1105_v23 }
 0xa00   :  { %v986_v30 = vpop.xlane.xlu1 %985 }
 0xa01   :  { %1879 = vrcp.f32 %v986_v30 }
 0xa02   :  { %v1878_v31 = vpop.eup %1877  ;;  %1881 = vpow2.f32 %v982_v29 }
 0xa03   :  { %v1109_v32 = vsel %vm234_vm1, %v1878_v31, 0.0 }
 0xa04   :  { %1110 = vadd.xlane.f32.xlu0 %v1109_v32 }
 0xa07   :  { %v1880_v33 = vpop.eup %1879 }
 0xa08   :  { %v1882_v35 = vpop.eup %1881  ;;  %v992_v37 = vmul.f32 %v1880_v33, %v1876_v15 }
 0xa09   :  { %v987_v39 = vsel %vm234_vm1, %v1882_v35, 0.0 }
 0xa0a   :  { %v1000_v38 = vpop.permute.xlu0 %999  ;;  %v994_v36 = vpack.c.bf16 %v992_v37, %v992_v37 }
 0xa0b   :  { %v1005_v20 = vsel %vm307_vm2, %v1000_v38, 0 }
 0xa0c   :  { %1014 = vmatpush.bf16.msra.mxu0 %v1005_v20  ;;  %988 = vadd.xlane.f32.xlu0 %v987_v39 }
 0xa0f   :  { %1749 = vmatmul.msk.bf16.vlgmr.msra.gmra.mxu0 %vm234_vm1, %v994_v36 }
 0xa10   :  { %1136 = vmatpush.bf16.msrb.mxu0 %v1127_v41 }
 0xa18   :  { %v1207_v42 = vpop.permute.xlu1 %1206 }
 0xa19   :  { %v1212_v43 = vsel %vm234_vm1, %v1207_v42, 0 }
 0xa1a   :  { %1221 = vmatpush.bf16.xpose.msra.mxu0 %v1212_v43 }
 0xa20   :  { %1023 = vrot.lane.b32.xlu0 %v2473_v40, %s2098_s7 }
 0xa43   :  { %v1102_v44 = vpop.xlane.xlu1 %1101 }
 0xa44   :  { %v1104_v46 = vsub.f32 %v1094_v11, %v1102_v44 }
 0xa46   :  { %v1107_v47 = vmul.f32 1.442695, %v1104_v46 }
 0xa48   :  { %1883 = vpow2.f32 %v1107_v47 }
 0xa4e   :  { %v1884_v48 = vpop.eup %1883 }
 0xa4f   :  { %v1112_v49 = vsel %vm234_vm1, %v1884_v48, 0.0 }
 0xa50   :  { %1113 = vadd.xlane.f32.xlu0 %v1112_v49 }
 0xa5b   :  { %v1230_v0 = vpop.permute.xlu1 %1229 }
 0xa5c   :  { %v1235_v45 = vsel %vm234_vm1, %v1230_v0, 0 }
 0xa64   :  { %1274 = vrot.lane.b32.xlu0 %v2468_v34, %s2102_s21 }
 0xa6c   :  { %1341 = vrot.lane.b32.xlu0 %v2468_v34, %s2107_s22 }
 0xa74   :  { %1364 = vrot.lane.b32.xlu0 %v2473_v40, %s2107_s22 }
 0xa77   :  { %v1111_v50 = vpop.xlane.xlu0 %1110 }
 0xa78   :  { %1885 = vrcp.f32 %v1111_v50 }
 0xa7c   :  { %1339 = vrot.lane.b32.xlu0 %v2481_v3, %s2107_s22 }
 0xa7e   :  { %v1886_v51 = vpop.eup %1885 }
 0xa7f   :  { %v1117_v53 = vmul.f32 %v1886_v51, %v1878_v31  ;;  %v989_v55 = vpop.xlane.xlu0 %988 }
 0xa80   :  { %1887 = vrcp.f32 %v989_v55 }
 0xa81   :  { %v1119_v54 = vpack.c.bf16 %v1117_v53, %v1117_v53  ;;  %v925_v53 = vld [vmem:[%s2666_s14 + $0x8] sm:$0xf] }
 0xa83   :  { %1753 = vmatmul.msk.bf16.vlgmr.msrb.gmra.mxu0 %vm234_vm1, %v1119_v54  ;;  %v1321_v54 = vsel %vm307_vm2, %v925_v53, 0  ;;  %v1830_v53 = vld [vmem:[#allocation2] ss:$0 sm:$0xff] }
 0xa84   :  { %1330 = vmatpush.bf16.msrb.mxu0 %v1321_v54 }
 0xa86   :  { %v1888_v57 = vpop.eup %1887 }
 0xa87   :  { %v993_v60 = vmul.f32 %v1888_v57, %v1882_v35 }
 0xa89   :  { %v995_v1 = vpack.c.bf16 %v993_v60, %v993_v60 }
 0xa8c   :  { %v1016_v56 = vpop.f32.mrf.mxu0 }
 0xa92   :  { %v1024_v61 = vpop.permute.xlu0 %1023 }
 0xa93   :  { %v1029_v62 = vsel %vm307_vm2, %v1024_v61, 0  ;;  %1757 = vmatmul.msk.bf16.vlgmr.msra.gmra.mxu0 %vm234_vm1, %v1205_v19 }
 0xa94   :  { %v1018_v3 = vpop.f32.mrf.mxu0  ;;  %1038 = vmatpush.bf16.msra.mxu1 %v1029_v62 }
 0xa97   :  { %1750 = vmatmul.msk.bf16.vlgmr.msra.gmra.mxu1 %vm234_vm1, %v995_v1 }
 0xa98   :  { %1157 = vmatpush.bf16.msrb.mxu1 %v1148_v63 }
 0xa9c   :  { %1244 = vmatpush.bf16.xpose.msra.mxu1 %v1235_v45 }
 0xac3   :  { %v1114_v7 = vpop.xlane.xlu0 %1113 }
 0xac4   :  { %1889 = vrcp.f32 %v1114_v7 }
 0xaca   :  { %v1890_v8 = vpop.eup %1889 }
 0xacb   :  { %v1118_v9 = vmul.f32 %v1890_v8, %v1884_v48 }
 0xacd   :  { %v1120_v10 = vpack.c.bf16 %v1118_v9, %v1118_v9 }
 0xacf   :  { %1754 = vmatmul.msk.bf16.vlgmr.msrb.gmra.mxu1 %vm234_vm1, %v1120_v10 }
 0xad6   :  { %v1275_v21 = vpop.permute.xlu0 %1274 }
 0xad7   :  { %v1280_v12 = vsel %vm307_vm2, %v1275_v21, 0 }
 0xad8   :  { %1289 = vmatpush.bf16.msra.mxu2 %v1280_v12 }
 0xade   :  { %v1342_v14 = vpop.permute.xlu0 %1341 }
 0xadf   :  { %v1347_v15 = vsel %vm234_vm1, %v1342_v14, 0  ;;  %1758 = vmatmul.msk.bf16.vlgmr.msra.gmra.mxu1 %vm234_vm1, %v1228_v13 }
 0xae0   :  { %1356 = vmatpush.bf16.xpose.msrb.mxu1 %v1347_v15 }
 0xae6   :  { %v1365_v16 = vpop.permute.xlu0 %1364 }
 0xae7   :  { %v1370_v35 = vsel %vm234_vm1, %v1365_v16, 0 }
 0xaee   :  { %v1340_v11 = vpop.permute.xlu0 %1339 }
 0xaef   :  { %1762 = vmatmul.msk.bf16.vlgmr.msrb.gmra.mxu1 %vm234_vm1, %v1340_v11 }
 0xb00   :  { %v1138_v19 = vpop.f32.mrf.mxu0 }
 0xb08   :  { %v1140_v22 = vpop.f32.mrf.mxu0 }
 0xb10   :  { %v1223_v24 = vpop.f32.mrf.mxu0 }
 0xb11   :  { %v1224_v25 = vadd.f32 %v1223_v24, %v2497_v59 }
 0xb13   :  { %v1250_v28 = vsel %vm234_vm1, %v1224_v25, -inf }
 0xb14   :  { %1251 = vmax.xlane.f32.xlu1 %v1250_v28  ;;  %v1040_v23 = vpop.f32.mrf.mxu1 }
 0xb15   :  { %v1044_v29 = vpack.c.bf16 %v1040_v23, %v1016_v56 }
 0xb17   :  { %1756 = vmatmul.msk.bf16.vlgmr.msra.gmra.mxu3 %vm234_vm1, %v1044_v29 }
 0xb18   :  { %v1225_v30 = vpop.f32.mrf.mxu0 }
 0xb1c   :  { %v1042_v31 = vpop.f32.mrf.mxu1 }
 0xb2d   :  { %1362 = vrot.lane.b32.xlu1 %v2486_v52, %s2107_s22 }
 0xb4c   :  { %v1159_v32 = vpop.f32.mrf.mxu1 }
 0xb4d   :  { %v1163_v33 = vpack.c.bf16 %v1159_v32, %v1138_v19 }
 0xb4f   :  { %1755 = vmatmul.msk.bf16.vlgmr.msrb.gmra.mxu2 %vm234_vm1, %v1163_v33 }
 0xb50   :  { %1379 = vmatpush.bf16.xpose.msrb.mxu2 %v1370_v35 }
 0xb54   :  { %v1161_v37 = vpop.f32.mrf.mxu1 }
 0xb5c   :  { %v1246_v38 = vpop.f32.mrf.mxu1 }
 0xb5d   :  { %v1247_v48 = vadd.f32 %v1246_v38, %v2508_v4 }
 0xb5f   :  { %v1253_v49 = vsel %vm234_vm1, %v1247_v48, -inf }
 0xb64   :  { %v1248_v20 = vpop.f32.mrf.mxu1 }
 0xb6c   :  { %v1358_v39 = vpop.f32.mrf.mxu1 }
 0xb6d   :  { %v1359_v41 = vadd.f32 %v1358_v39, %v2497_v59 }
 0xb6f   :  { %v1385_v36 = vsel %vm234_vm1, %v1359_v41, -inf }
 0xb70   :  { %1386 = vmax.xlane.f32.xlu1 %v1385_v36 }
 0xb74   :  { %v1360_v42 = vpop.f32.mrf.mxu1 }
 0xb87   :  { %v1252_v43 = vpop.xlane.xlu1 %1251 }
 0xb88   :  { %v1256_v44 = vsub.f32 %v1224_v25, %v1252_v43 }
 0xb89   :  { %1430 = vrot.lane.b32.xlu1 %v2473_v40, %s2106_s26 }
 0xb8a   :  { %v1258_v52 = vmul.f32 1.442695, %v1256_v44 }
 0xb8c   :  { %1891 = vpow2.f32 %v1258_v52 }
 0xb92   :  { %v1892_v46 = vpop.eup %1891 }
 0xb93   :  { %v1262_v47 = vsel %vm234_vm1, %v1892_v46, 0.0 }
 0xb94   :  { %1263 = vadd.xlane.f32.xlu2 %v1262_v47 }
 0xb9a   :  { %v1199_v59 = vpop.f32.mrf.mxu3 }
 0xb9c   :  { %1254 = vmax.xlane.f32.xlu2 %v1253_v49 }
 0xb9f   :  { %v1363_v55 = vpop.permute.xlu1 %1362 }
 0xba2   :  { %v1201_v24 = vpop.f32.mrf.mxu3 }
 0xbb4   :  { %1295 = vrot.lane.b32.xlu2 %v2473_v40, %s2102_s21 }
 0xbd2   :  { %v1179_v50 = vpop.f32.mrf.mxu2 }
 0xbd3   :  { %v2579_v51 = vadd.f32 %v1199_v59, %v1179_v50 }
 0xbda   :  { %v1181_v21 = vpop.f32.mrf.mxu2 }
 0xbe3   :  { %v1387_v56 = vpop.xlane.xlu1 %1386 }
 0xbe4   :  { %v1391_v3 = vsub.f32 %v1359_v41, %v1387_v56 }
 0xbe6   :  { %v1393_v45 = vmul.f32 1.442695, %v1391_v3 }
 0xbfb   :  { %v1431_v57 = vpop.permute.xlu1 %1430 }
 0xbfc   :  { %v1436_v58 = vsel %vm307_vm2, %v1431_v57, 0  ;;  %v1202_v57 = vadd.f32 %v1201_v24, %v1181_v21 }
 0xbfd   :  { %1445 = vmatpush.bf16.msra.mxu0 %v1436_v58 }
 0xc07   :  { %v1264_v60 = vpop.xlane.xlu2 %1263 }
 0xc08   :  { %1893 = vrcp.f32 %v1264_v60 }
 0xc0e   :  { %v1894_v40 = vpop.eup %1893 }
 0xc0f   :  { %v1270_v61 = vmul.f32 %v1894_v40, %v1892_v46  ;;  %v1255_v62 = vpop.xlane.xlu2 %1254 }
 0xc10   :  { %v1257_v63 = vsub.f32 %v1247_v48, %v1255_v62 }
 0xc11   :  { %v1272_v0 = vpack.c.bf16 %v1270_v61, %v1270_v61 }
 0xc12   :  { %v1260_v1 = vmul.f32 1.442695, %v1257_v63 }
 0xc13   :  { %1759 = vmatmul.msk.bf16.vlgmr.msra.gmra.mxu2 %vm234_vm1, %v1272_v0 }
 0xc14   :  { %1895 = vpow2.f32 %v1260_v1 }
 0xc15   :  { %1897 = vpow2.f32 %v1393_v45 }
 0xc17   :  { %v1296_v5 = vpop.permute.xlu2 %1295 }
 0xc18   :  { %v1301_v6 = vsel %vm307_vm2, %v1296_v5, 0 }
 0xc19   :  { %1310 = vmatpush.bf16.msrb.mxu3 %v1301_v6 }
 0xc1a   :  { %v1896_v7 = vpop.eup %1895 }
 0xc1b   :  { %v1265_v8 = vsel %vm234_vm1, %v1896_v7, 0.0  ;;  %v1898_v9 = vpop.eup %1897 }
 0xc1c   :  { %1266 = vadd.xlane.f32.xlu0 %v1265_v8  ;;  %v1397_v10 = vsel %vm234_vm1, %v1898_v9, 0.0 }
 0xc23   :  { %1763 = vmatmul.msk.bf16.vlgmr.msrb.gmra.mxu2 %vm234_vm1, %v1363_v55 }
 0xc24   :  { %1398 = vadd.xlane.f32.xlu0 %v1397_v10 }
 0xc8f   :  { %v1267_v12 = vpop.xlane.xlu0 %1266 }
 0xc90   :  { %1899 = vrcp.f32 %v1267_v12 }
 0xc96   :  { %v1900_v13 = vpop.eup %1899  ;;  %v1291_v14 = vpop.f32.mrf.mxu2 }
 0xc97   :  { %v1271_v15 = vmul.f32 %v1900_v13, %v1896_v7 }
 0xc99   :  { %v1273_v16 = vpack.c.bf16 %v1271_v15, %v1271_v15  ;;  %v1799_v15 = vld [vmem:[%s2670_s18] sm:$0xff] }
 0xc9b   :  { %1760 = vmatmul.msk.bf16.vlgmr.msrb.gmra.mxu3 %vm234_vm1, %v1273_v16 }
 0xc9e   :  { %v1293_v11 = vpop.f32.mrf.mxu2 }
 0xca6   :  { %v1381_v17 = vpop.f32.mrf.mxu2 }
 0xca7   :  { %v1382_v18 = vadd.f32 %v1381_v17, %v2508_v4  ;;  %v1399_v4 = vpop.xlane.xlu0 %1398 }
 0xca9   :  { %v1388_v19 = vsel %vm234_vm1, %v1382_v18, -inf }
 0xcaa   :  { %1389 = vmax.xlane.f32.xlu2 %v1388_v19 }
 0xcae   :  { %v1383_v22 = vpop.f32.mrf.mxu2 }
 0xd1d   :  { %v1390_v25 = vpop.xlane.xlu2 %1389 }
 0xd1e   :  { %v1392_v28 = vsub.f32 %v1382_v18, %v1390_v25  ;;  %v1312_v23 = vpop.f32.mrf.mxu3 }
 0xd1f   :  { %v1316_v29 = vpack.c.bf16 %v1312_v23, %v1291_v14 }
 0xd20   :  { %v1395_v30 = vmul.f32 1.442695, %v1392_v28 }
 0xd21   :  { %1761 = vmatmul.msk.bf16.vlgmr.msrb.gmra.mxu0 %vm234_vm1, %v1316_v29 }
 0xd22   :  { %1901 = vpow2.f32 %v1395_v30 }
 0xd26   :  { %v1314_v31 = vpop.f32.mrf.mxu3 }
 0xd28   :  { %v1902_v32 = vpop.eup %1901 }
 0xd29   :  { %v1400_v33 = vsel %vm234_vm1, %v1902_v32, 0.0 }
 0xd2a   :  { %1401 = vadd.xlane.f32.xlu0 %v1400_v33 }
 0xd3e   :  { %1409 = vrot.lane.b32.xlu0 %v2468_v34, %s2106_s26  ;;  %v926_v34 = vld [vmem:[%s2666_s14 + $0xc] sm:$0xf] }
 0xd3f   :  { %v1456_v46 = vsel %vm307_vm2, %v926_v34, 0  ;;  %v1803_v34 = vld [vmem:[%s2672_s20 + $0x10] sm:$0xff] }
 0xd40   :  { %1465 = vmatpush.bf16.msra.mxu1 %v1456_v46  ;;  %v1802_v46 = vld [vmem:[%s2672_s20 + $0x8] sm:$0xff] }
 0xd9d   :  { %v1402_v35 = vpop.xlane.xlu0 %1401 }
 0xd9e   :  { %1903 = vrcp.f32 %v1402_v35  ;;  %v1332_v37 = vpop.f32.mrf.mxu0 }
 0xd9f   :  { %v1337_v38 = vadd.f32 %v1332_v37, %v2579_v51  ;;  %1905 = vrcp.f32 %v1399_v4  ;;  %v1831_v4 = vld [vmem:[#allocation4] ss:$0 sm:$0xff] }
 0xda4   :  { %v1904_v20 = vpop.eup %1903 }
 0xda5   :  { %v1406_v39 = vmul.f32 %v1904_v20, %v1902_v32  ;;  %v1906_v36 = vpop.eup %1905  ;;  %v1832_v20 = vld [vmem:[#allocation6] ss:$0 sm:$0xff] }
 0xda6   :  { %v1405_v42 = vmul.f32 %v1906_v36, %v1898_v9  ;;  %v1334_v47 = vpop.f32.mrf.mxu0 }
 0xda7   :  { %v1408_v41 = vpack.c.bf16 %v1406_v39, %v1406_v39  ;;  %v1338_v60 = vadd.f32 %v1334_v47, %v1202_v57  ;;  %v1801_v47 = vld [vmem:[%s2672_s20] sm:$0xff] }
 0xda8   :  { %v1407_v52 = vpack.c.bf16 %v1405_v42, %v1405_v42 }
 0xda9   :  { %1765 = vmatmul.msk.bf16.vlgmr.msra.gmra.mxu0 %vm234_vm1, %v1408_v41 }
 0xdb0   :  { %v1410_v43 = vpop.permute.xlu0 %1409 }
 0xdb1   :  { %v1415_v44 = vsel %vm307_vm2, %v1410_v43, 0 }
 0xdb2   :  { %1424 = vmatpush.bf16.msra.mxu3 %v1415_v44 }
 0xdb5   :  { %1764 = vmatmul.msk.bf16.vlgmr.msra.gmra.mxu3 %vm234_vm1, %v1407_v52  ;;  %v1804_v52 = vld [vmem:[%s2672_s20 + $0x18] sm:$0xff] }
 0xdb6   :  { %1622 = vmatpush.bf16.msrb.mxu3 %v1804_v52 }
 0xdba   :  { %1623 = vmatpush.bf16.msrb.mxu3 %v1803_v34 }
 0xdbe   :  { %1624 = vmatpush.bf16.msrb.mxu3 %v1802_v46 }
 0xdc2   :  { %1625 = vmatpush.bf16.msrb.mxu3 %v1801_v47 }
 0xe26   :  { %v1447_v48 = vpop.f32.mrf.mxu0 }
 0xe2e   :  { %v1449_v49 = vpop.f32.mrf.mxu0 }
 0xe2f   :  { %v1833_v49 = vld [vmem:[#allocation7] ss:$0 sm:$0xff] }
 0xe38   :  { %v1426_v59 = vpop.f32.mrf.mxu3 }
 0xe39   :  { %v1451_v50 = vpack.c.bf16 %v1447_v48, %v1426_v59 }
 0xe3b   :  { %1766 = vmatmul.msk.bf16.vlgmr.msra.gmra.mxu1 %vm234_vm1, %v1451_v50  ;;  %vm1614_vm1 = vcmask 523264  }
 0xe40   :  { %v1428_v51 = vpop.f32.mrf.mxu3 }
 0xeb8   :  { %v1467_v54 = vpop.f32.mrf.mxu1 }
 0xeb9   :  { %v1472_v55 = vadd.f32 %v1467_v54, %v1337_v38 }
 0xebb   :  { %v1477_v56 = vadd.f32 %v1830_v53, %v1472_v55 }
 0xebd   :  { %v1479_v58 = vadd.f32 %v1477_v56, %v2457_v26  ;;  %v1834_v56 = vld [vmem:[#allocation9] ss:$0 sm:$0xff] }
 0xebf   :  { %v1483_v40 = vsel %vm198_vm0, %v1479_v58, 0.0 }
 0xec0   :  { %1484 = vadd.xlane.f32.xlu2 %v1483_v40  ;;  %v1469_v61 = vpop.f32.mrf.mxu1 }
 0xec1   :  { %v1473_v62 = vadd.f32 %v1469_v61, %v1338_v60 }
 0xec3   :  { %v1478_v63 = vadd.f32 %v1830_v53, %v1473_v62 }
 0xec5   :  { %v1480_v0 = vadd.f32 %v1478_v63, %v2459_v27  ;;  %v1800_v27 = vld [vmem:[%s2670_s18 + $0x8] sm:$0xff] }
 0xec6   :  { %1567 = vmatpush.bf16.msra.mxu2 %v1800_v27 }
 0xec7   :  { %v1486_v3 = vsel %vm198_vm0, %v1480_v0, 0.0 }
 0xec8   :  { %1487 = vadd.xlane.f32.xlu2 %v1486_v3 }
 0xeca   :  { %1568 = vmatpush.bf16.msra.mxu2 %v1799_v15 }
 0xf33   :  { %v1485_v1 = vpop.xlane.xlu2 %1484 }
 0xf34   :  { %v1489_v45 = vmul.f32 %v1485_v1, %v2424_v2 }
 0xf36   :  { %v1491_v5 = vsub.f32 %v1479_v58, %v1489_v45 }
 0xf38   :  { %v1493_v6 = vmul.f32 %v1491_v5, %v1491_v5 }
 0xf3a   :  { %v1495_v7 = vsel %vm198_vm0, %v1493_v6, 0.0 }
 0xf3b   :  { %1496 = vadd.xlane.f32.xlu0 %v1495_v7  ;;  %v1488_v26 = vpop.xlane.xlu2 %1487 }
 0xf3c   :  { %v1490_v8 = vmul.f32 %v1488_v26, %v2424_v2 }
 0xf3e   :  { %v1492_v9 = vsub.f32 %v1480_v0, %v1490_v8 }
 0xf40   :  { %v1494_v10 = vmul.f32 %v1492_v9, %v1492_v9 }
 0xf42   :  { %v1498_v21 = vsel %vm198_vm0, %v1494_v10, 0.0 }
 0xf43   :  { %1499 = vadd.xlane.f32.xlu2 %v1498_v21 }
 0xfae   :  { %v1497_v12 = vpop.xlane.xlu0 %1496 }
 0xfaf   :  { %v1501_v13 = vmul.f32 %v1497_v12, %v2424_v2 }
 0xfb1   :  { %v1503_v14 = vadd.f32 1e-05, %v1501_v13 }
 0xfb3   :  { %1907 = vrsqrt.f32 %v1503_v14  ;;  %vm1511_vm11 = vweird.f32 %v1503_v14 }
 0xfb6   :  { %v1500_v16 = vpop.xlane.xlu2 %1499 }
 0xfb7   :  { %v1502_v11 = vmul.f32 %v1500_v16, %v2424_v2 }
 0xfb9   :  { %v1908_v17 = vpop.eup %1907  ;;  %v1504_v18 = vadd.f32 1e-05, %v1502_v11 }
 0xfba   :  { %v1506_v19 = vmul.f32 %v1908_v17, %v1503_v14  ;;  %vm1512_vm10 = vweird.f32 %v1908_v17 }
 0xfbb   :  { %1909 = vrsqrt.f32 %v1504_v18  ;;  %vm1513_vm12 = vmor %vm1511_vm11, %vm1512_vm10  ;;  %vm1521_vm14 = vweird.f32 %v1504_v18 }
 0xfbc   :  { %v1507_v22 = vmul.f32 %v1908_v17, %v1506_v19 }
 0xfbe   :  { %v1508_v24 = vmul.f32 0.5, %v1507_v22 }
 0xfc0   :  { %v1509_v25 = vsub.f32 1.5, %v1508_v24 }
 0xfc1   :  { %v1910_v28 = vpop.eup %1909 }
 0xfc2   :  { %v1510_v23 = vmul.f32 %v1908_v17, %v1509_v25  ;;  %v1516_v29 = vmul.f32 %v1910_v28, %v1504_v18  ;;  %vm1522_vm13 = vweird.f32 %v1910_v28 }
 0xfc3   :  { %vm1523_vm15 = vmor %vm1521_vm14, %vm1522_vm13 }
 0xfc4   :  { %v1517_v30 = vmul.f32 %v1910_v28, %v1516_v29  ;;  %v1514_v31 = vsel %vm1513_vm12, %v1908_v17, %v1510_v23 }
 0xfc5   :  { %v1525_v35 = vmul.f32 %v1514_v31, %v1491_v5 }
 0xfc6   :  { %v1518_v32 = vmul.f32 0.5, %v1517_v30  ;;  %v1836_v30 = vld [vmem:[#allocation12] ss:$0 sm:$0xff] }
 0xfc7   :  { %v1530_v39 = vmul.f32 %v1831_v4, %v1525_v35 }
 0xfc8   :  { %v1519_v33 = vsub.f32 1.5, %v1518_v32 }
 0xfc9   :  { %v1535_v42 = vadd.f32 %v1832_v20, %v1530_v39 }
 0xfca   :  { %v1520_v37 = vmul.f32 %v1910_v28, %v1519_v33 }
 0xfcc   :  { %v1524_v38 = vsel %vm1523_vm15, %v1910_v28, %v1520_v37  ;;  %v1835_v28 = vld [vmem:[#allocation10] ss:$0 sm:$0xff] }
 0xfcd   :  { %v1526_v41 = vmul.f32 %v1524_v38, %v1492_v9 }
 0xfcf   :  { %v1531_v36 = vmul.f32 %v1831_v4, %v1526_v41 }
 0xfd1   :  { %v1536_v43 = vadd.f32 %v1832_v20, %v1531_v36 }
 0xfd3   :  { %v1541_v44 = vpack.c.bf16 %v1536_v43, %v1535_v42 }
 0xfd5   :  { %1775 = vmatmul.msk.bf16.vlgmr.msra.gmra.mxu2 %vm198_vm0, %v1541_v44 }
0x1058   :  { %v1570_v48 = vpop.f32.mrf.mxu2 }
0x1059   :  { %v1571_v59 = vadd.f32 %v1833_v49, %v1570_v48 }
0x105b   :  { %v1575_v53 = vmax.f32 %v1571_v59, 0.0 }
0x1060   :  { %v1572_v50 = vpop.f32.mrf.mxu2 }
0x1061   :  { %v1573_v51 = vadd.f32 %v1833_v49, %v1572_v50 }
0x1063   :  { %v1576_v54 = vmax.f32 %v1573_v51, 0.0 }
0x1065   :  { %v1585_v55 = vpack.c.bf16 %v1576_v54, %v1575_v53 }
0x1067   :  { %1792 = vmatmul.msk.bf16.vlgmr.msrb.gmra.mxu3 %vm1614_vm1, %v1585_v55 }
0x10ea   :  { %v1627_v57 = vpop.f32.mrf.mxu3 }
0x10eb   :  { %v1628_v58 = vadd.f32 %v1834_v56, %v1627_v57 }
0x10ed   :  { %v1632_v60 = vadd.f32 %v1628_v58, %v1535_v42 }
0x10ef   :  { %v1636_v40 = vsel %vm198_vm0, %v1632_v60, 0.0 }
0x10f0   :  { %1637 = vadd.xlane.f32.xlu1 %v1636_v40 }
0x10f2   :  { %v1629_v61 = vpop.f32.mrf.mxu3 }
0x10f3   :  { %v1630_v62 = vadd.f32 %v1834_v56, %v1629_v61 }
0x10f5   :  { %v1633_v63 = vadd.f32 %v1630_v62, %v1536_v43 }
0x10f7   :  { %v1639_v0 = vsel %vm198_vm0, %v1633_v63, 0.0 }
0x10f8   :  { %1640 = vadd.xlane.f32.xlu2 %v1639_v0 }
0x1163   :  { %v1638_v3 = vpop.xlane.xlu1 %1637 }
0x1164   :  { %v1642_v1 = vmul.f32 %v1638_v3, %v2424_v2 }
0x1166   :  { %v1644_v45 = vsub.f32 %v1632_v60, %v1642_v1 }
0x1168   :  { %v1646_v5 = vmul.f32 %v1644_v45, %v1644_v45 }
0x116a   :  { %v1648_v6 = vsel %vm198_vm0, %v1646_v5, 0.0 }
0x116b   :  { %v1641_v7 = vpop.xlane.xlu2 %1640  ;;  %1649 = vadd.xlane.f32.xlu2 %v1648_v6 }
0x116c   :  { %v1643_v26 = vmul.f32 %v1641_v7, %v2424_v2 }
0x116e   :  { %v1645_v8 = vsub.f32 %v1633_v63, %v1643_v26 }
0x1170   :  { %v1647_v9 = vmul.f32 %v1645_v8, %v1645_v8 }
0x1172   :  { %v1651_v10 = vsel %vm198_vm0, %v1647_v9, 0.0 }
0x1173   :  { %1652 = vadd.xlane.f32.xlu2 %v1651_v10 }
0x11de   :  { %v1650_v21 = vpop.xlane.xlu2 %1649 }
0x11df   :  { %v1654_v27 = vmul.f32 %v1650_v21, %v2424_v2 }
0x11e1   :  { %v1656_v12 = vadd.f32 1e-05, %v1654_v27 }
0x11e3   :  { %1911 = vrsqrt.f32 %v1656_v12  ;;  %vm1664_vm3 = vweird.f32 %v1656_v12 }
0x11e6   :  { %v1653_v13 = vpop.xlane.xlu2 %1652 }
0x11e7   :  { %v1655_v14 = vmul.f32 %v1653_v13, %v2424_v2 }
0x11e9   :  { %v1912_v15 = vpop.eup %1911  ;;  %v1657_v16 = vadd.f32 1e-05, %v1655_v14 }
0x11ea   :  { %v1659_v11 = vmul.f32 %v1912_v15, %v1656_v12  ;;  %vm1665_vm2 = vweird.f32 %v1912_v15 }
0x11eb   :  { %1913 = vrsqrt.f32 %v1657_v16  ;;  %vm1666_vm4 = vmor %vm1664_vm3, %vm1665_vm2  ;;  %vm1674_vm6 = vweird.f32 %v1657_v16 }
0x11ec   :  { %v1660_v17 = vmul.f32 %v1912_v15, %v1659_v11 }
0x11ee   :  { %v1661_v18 = vmul.f32 0.5, %v1660_v17 }
0x11f0   :  { %v1662_v19 = vsub.f32 1.5, %v1661_v18 }
0x11f1   :  { %v1914_v22 = vpop.eup %1913 }
0x11f2   :  { %v1663_v24 = vmul.f32 %v1912_v15, %v1662_v19  ;;  %v1669_v25 = vmul.f32 %v1914_v22, %v1657_v16  ;;  %vm1675_vm5 = vweird.f32 %v1914_v22 }
0x11f3   :  { %vm1676_vm7 = vmor %vm1674_vm6, %vm1675_vm5 }
0x11f4   :  { %v1667_v23 = vsel %vm1666_vm4, %v1912_v15, %v1663_v24  ;;  %v1670_v29 = vmul.f32 %v1914_v22, %v1669_v25 }
0x11f5   :  { %v1678_v31 = vmul.f32 %v1667_v23, %v1644_v45 }
0x11f6   :  { %v1671_v32 = vmul.f32 0.5, %v1670_v29 }
0x11f7   :  { %v1683_v2 = vmul.f32 %v1835_v28, %v1678_v31 }
0x11f8   :  { %v1672_v33 = vsub.f32 1.5, %v1671_v32 }
0x11f9   :  { %v1688_v4 = vadd.f32 %v1836_v30, %v1683_v2 }
0x11fa   :  { %v1673_v35 = vmul.f32 %v1914_v22, %v1672_v33 }
0x11fb   :  { %1690 = vst.msk [vmem:[%s2676_s24] sm:$0xff] %vm198_vm0, %v1688_v4 }
0x11fc   :  { %v1677_v37 = vsel %vm1676_vm7, %v1914_v22, %v1673_v35 }
0x11fd   :  { %v1679_v38 = vmul.f32 %v1677_v37, %v1645_v8 }
0x11ff   :  { %v1684_v20 = vmul.f32 %v1835_v28, %v1679_v38 }
0x1201   :  { %v1689_v39 = vadd.f32 %v1836_v30, %v1684_v20 }
0x1203   :  { %1691 = vst.msk [vmem:[%s2676_s24 + $0x8] sm:$0xff] %vm198_vm0, %v1689_v39 }
0x1204   :  { %1696 = vsyncpa [#allocation3], 1 }
0x1205   :  { %1697 = vsyncpa [#allocation5], 1 }
0x1206   :  { %1698 = vsyncpa [#allocation8], 1 }
0x1207   :  { %1699 = vsyncpa [#allocation11], 1 }

// kernel: couplets_transformer_forward.10
= control target key start
LH: loop header
LB: loop body
LE: loop exit
PB: predicated region body
PF: predicated region fallthrough
CT: control target
= control target key end

     0   :  { %s2898_s0 = inlined_call_operand.vmem [shape: f32[2,8,32], index: 0, kind: input, shape index: {}]   ;;  %s2899_s1 = inlined_call_operand.vmem [shape: f32[2,8,32], index: 1, kind: input, shape index: {}]   ;;  %s2900_s2 = inlined_call_operand.vmem [shape: f32[2,8,8], index: 2, kind: input, shape index: {}]   ;;  %s2901_s3 = inlined_call_operand.vmem [shape: f32[2,8,8], index: 3, kind: input, shape index: {}]   ;;  %s2902_s4 = inlined_call_operand.vmem [shape: bf16[32,96], index: 4, kind: input, shape index: {}]   ;;  %s2903_s5 = inlined_call_operand.hbm [shape: f32[1,96], index: 5, kind: input, shape index: {}]   ;;  %s2904_s6 = inlined_call_operand.vmem [shape: bf16[32,32], index: 6, kind: input, shape index: {}]   ;;  %s2905_s7 = inlined_call_operand.hbm [shape: f32[1,32], index: 7, kind: input, shape index: {}]   ;;  %s2906_s8 = inlined_call_operand.hbm [shape: f32[1,32], index: 8, kind: input, shape index: {}]   ;;  %s2907_s9 = inlined_call_operand.hbm [shape: f32[1,32], index: 9, kind: input, shape index: {}]   ;;  %s2908_s10 = inlined_call_operand.vmem [shape: bf16[32,32], index: 10, kind: input, shape index: {}]   ;;  %s2909_s11 = inlined_call_operand.hbm [shape: f32[1,32], index: 11, kind: input, shape index: {}]   ;;  %s2910_s12 = inlined_call_operand.vmem [shape: bf16[32,64], index: 12, kind: input, shape index: {}]   ;;  %s2911_s13 = inlined_call_operand.hbm [shape: f32[1,64], index: 13, kind: input, shape index: {}]   ;;  %s2912_s14 = inlined_call_operand.vmem [shape: bf16[32,32], index: 14, kind: input, shape index: {}]   ;;  %s2913_s15 = inlined_call_operand.hbm [shape: f32[1,32], index: 15, kind: input, shape index: {}]   ;;  %s2914_s16 = inlined_call_operand.hbm [shape: f32[1,32], index: 16, kind: input, shape index: {}]   ;;  %s2915_s17 = inlined_call_operand.hbm [shape: f32[1,32], index: 17, kind: input, shape index: {}]   ;;  %s2916_s18 = inlined_call_operand.vmem [shape: bf16[32,64], index: 18, kind: input, shape index: {}]   ;;  %s2917_s19 = inlined_call_operand.hbm [shape: f32[1,64], index: 19, kind: input, shape index: {}]   ;;  %s2918_s20 = inlined_call_operand.vmem [shape: bf16[64,32], index: 20, kind: input, shape index: {}]   ;;  %s2919_s21 = inlined_call_operand.hbm [shape: f32[1,32], index: 21, kind: input, shape index: {}]   ;;  %s2920_s22 = inlined_call_operand.hbm [shape: f32[1,32], index: 22, kind: input, shape index: {}]   ;;  %s2921_s23 = inlined_call_operand.hbm [shape: f32[1,32], index: 23, kind: input, shape index: {}]   ;;  %s2922_s24 = inlined_call_operand.vmem [shape: f32[2,8,32], index: 24, kind: output, shape index: {}]  }
   0x1   :  { %2929 = sst [smem:[#allocation29_spill]] %s2898_s0 }
   0x2   :  { %2930 = sst [smem:[#allocation30_spill]] %s2899_s1 }
   0x3   :  { %2931 = sst [smem:[#allocation31_spill]] %s2900_s2 }
   0x4   :  { %2932 = sst [smem:[#allocation32_spill]] %s2901_s3 }
   0x5   :  { %2933 = sst [smem:[#allocation33_spill]] %s2902_s4 }
   0x6   :  { %2934 = sst [smem:[#allocation34_spill]] %s2903_s5 }
   0x7   :  { %2935 = sst [smem:[#allocation35_spill]] %s2904_s6 }
   0x8   :  { %2936 = sst [smem:[#allocation36_spill]] %s2905_s7 }
   0x9   :  { %2937 = sst [smem:[#allocation37_spill]] %s2906_s8 }
   0xa   :  { %29 = vsyncpa [#allocation3], 0 }
   0xb   :  { %30 = vsyncpa [#allocation5], 0 }
   0xc   :  { %31 = vsyncpa [#allocation8], 0 }
   0xd   :  { %32 = vsyncpa [#allocation11], 0 }
   0xe   :  { %33 = vsyncpa [#allocation14], 0 }
   0xf   :  { %34 = vsyncpa [#allocation17], 0  ;;  %s2938_s27 = sld [smem:[#allocation36_spill]] }
  0x15   :  { %s64_s28 = sshll.u32 %s2938_s27, 4  ;;  %s65_s28 = int_to_ptr.hbm [resolvable:$true] %s64_s28 }
  0x16   :  { %35 = vsyncpa [#allocation20], 0  ;;  %s2331_s6 = smov [#allocation4]   ;;  %s86_s7 = sshll.u32 %s2907_s9, 4  ;;  %s87_s7 = int_to_ptr.hbm [resolvable:$true] %s86_s7 }
  0x17   :  { %s66_s2 = sshll.u32 %s2331_s6, 4  ;;  %s2332_s30 = smov [#allocation7]   ;;  %s67_s2 = int_to_ptr.vmem [resolvable:$true] %s66_s2 }
  0x18   :  { %69 = dma.hbm_to_vmem [thread:$0]  %s65_s28, 16, %s67_s2, [#allocation5]  }
  0x19   :  { %s88_s3 = sshll.u32 %s2332_s30, 4  ;;  %s112_s4 = sshll.u32 %s2911_s13, 4  ;;  %s89_s3 = int_to_ptr.vmem [resolvable:$true] %s88_s3  ;;  %s113_s4 = int_to_ptr.hbm [resolvable:$true] %s112_s4 }
  0x1a   :  { %91 = dma.hbm_to_vmem [thread:$0]  %s87_s7, 16, %s89_s3, [#allocation8]  }
  0x1b   :  { %s136_s26 = sshll.u32 %s2914_s16, 4  ;;  %s2333_s27 = smov [#allocation10]   ;;  %s137_s26 = int_to_ptr.hbm [resolvable:$true] %s136_s26 }
  0x1c   :  { %s114_s6 = sshll.u32 %s2333_s27, 4  ;;  %s2334_s9 = smov [#allocation13]   ;;  %s115_s6 = int_to_ptr.vmem [resolvable:$true] %s114_s6 }
  0x1d   :  { %117 = dma.hbm_to_vmem [thread:$0]  %s113_s4, 16, %s115_s6, [#allocation11]  }
  0x1e   :  { %s138_s28 = sshll.u32 %s2334_s9, 4  ;;  %s160_s0 = sshll.u32 %s2917_s19, 4  ;;  %s139_s28 = int_to_ptr.vmem [resolvable:$true] %s138_s28  ;;  %s161_s0 = int_to_ptr.hbm [resolvable:$true] %s160_s0 }
  0x1f   :  { %141 = dma.hbm_to_vmem [thread:$0]  %s137_s26, 16, %s139_s28, [#allocation14]  }
  0x20   :  { %s184_s30 = sshll.u32 %s2920_s22, 4  ;;  %s2335_s3 = smov [#allocation16]   ;;  %s185_s30 = int_to_ptr.hbm [resolvable:$true] %s184_s30 }
  0x21   :  { %s162_s16 = sshll.u32 %s2335_s3, 4  ;;  %s2336_s25 = smov [#allocation19]   ;;  %s163_s16 = int_to_ptr.vmem [resolvable:$true] %s162_s16 }
  0x22   :  { %165 = dma.hbm_to_vmem [thread:$0]  %s161_s0, 16, %s163_s16, [#allocation17]  }
  0x23   :  { %s186_s8 = sshll.u32 %s2336_s25, 4  ;;  %s2939_s5 = sld [smem:[#allocation34_spill]]  ;;  %s187_s8 = int_to_ptr.vmem [resolvable:$true] %s186_s8 }
  0x24   :  { %189 = dma.hbm_to_vmem [thread:$0]  %s185_s30, 16, %s187_s8, [#allocation20]  }
  0x25   :  { %s2940_s6 = sld [smem:[#allocation37_spill]]  ;;  %s2337_s28 = smov [#allocation2]  }
  0x26   :  { %s53_s22 = sshll.u32 %s2337_s28, 4  ;;  %s2338_s2 = smov [#allocation6]   ;;  %s54_s22 = int_to_ptr.vmem [resolvable:$true] %s53_s22 }
  0x27   :  { %s77_s29 = sshll.u32 %s2338_s2, 4  ;;  %s99_s7 = sshll.u32 %s2909_s11, 4  ;;  %s78_s29 = int_to_ptr.vmem [resolvable:$true] %s77_s29  ;;  %s100_s7 = int_to_ptr.hbm [resolvable:$true] %s99_s7 }
  0x28   :  { %s125_s16 = sshll.u32 %s2913_s15, 4  ;;  %s2339_s25 = smov [#allocation9]   ;;  %s126_s16 = int_to_ptr.hbm [resolvable:$true] %s125_s16 }
  0x29   :  { %s51_s27 = sshll.u32 %s2939_s5, 4  ;;  %s101_s8 = sshll.u32 %s2339_s25, 4  ;;  %s52_s27 = int_to_ptr.hbm [resolvable:$true] %s51_s27  ;;  %s102_s8 = int_to_ptr.vmem [resolvable:$true] %s101_s8 }
  0x2a   :  { %56 = dma.hbm_to_vmem [thread:$0]  %s52_s27, 16, %s54_s22, [#allocation3]  }
  0x2b   :  { %s75_s9 = sshll.u32 %s2940_s6, 4  ;;  %s2340_s4 = smov [#allocation12]   ;;  %s76_s9 = int_to_ptr.hbm [resolvable:$true] %s75_s9 }
  0x2c   :  { %80 = dma.hbm_to_vmem [thread:$0]  %s76_s9, 16, %s78_s29, [#allocation5]  }
  0x2d   :  { %104 = dma.hbm_to_vmem [thread:$0]  %s100_s7, 16, %s102_s8, [#allocation8]  }
  0x2e   :  { %s127_s1 = sshll.u32 %s2340_s4, 4  ;;  %s147_s19 = sshll.u32 %s2915_s17, 4  ;;  %s128_s1 = int_to_ptr.vmem [resolvable:$true] %s127_s1  ;;  %s148_s19 = int_to_ptr.hbm [resolvable:$true] %s147_s19 }
  0x2f   :  { %130 = dma.hbm_to_vmem [thread:$0]  %s126_s16, 16, %s128_s1, [#allocation11]  }
  0x30   :  { %s173_s6 = sshll.u32 %s2919_s21, 4  ;;  %s2341_s9 = smov [#allocation15]   ;;  %s174_s6 = int_to_ptr.hbm [resolvable:$true] %s173_s6 }
  0x31   :  { %s149_s15 = sshll.u32 %s2341_s9, 4  ;;  %s2342_s28 = smov [#allocation18]   ;;  %s150_s15 = int_to_ptr.vmem [resolvable:$true] %s149_s15 }
  0x32   :  { %152 = dma.hbm_to_vmem [thread:$0]  %s148_s19, 16, %s150_s15, [#allocation14]  }
  0x33   :  { %s175_s22 = sshll.u32 %s2342_s28, 4  ;;  %s195_s0 = sshll.u32 %s2921_s23, 4  ;;  %s176_s22 = int_to_ptr.vmem [resolvable:$true] %s175_s22  ;;  %s196_s0 = int_to_ptr.hbm [resolvable:$true] %s195_s0 }
  0x34   :  { %178 = dma.hbm_to_vmem [thread:$0]  %s174_s6, 16, %s176_s22, [#allocation17]  }
  0x35   :  { %s2343_s17 = smov [#allocation21]  }
  0x36   :  { %s197_s13 = sshll.u32 %s2343_s17, 4  ;;  %s198_s13 = int_to_ptr.vmem [resolvable:$true] %s197_s13 }
  0x37   :  { %200 = dma.hbm_to_vmem [thread:$0]  %s196_s0, 16, %s198_s13, [#allocation20]  }
  0x38   :  { %2317 = dma.done.wait [#allocation3], 16  }
  0x39   :  { %2318 = vsyncadd [#allocation3], 4294967280 }
  0x3a   :  { %2319 = dma.done.wait [#allocation5], 32  }
  0x3b   :  { %2320 = vsyncadd [#allocation5], 4294967264 }
  0x3c   :  { %2321 = dma.done.wait [#allocation8], 32  }
  0x3d   :  { %2322 = vsyncadd [#allocation8], 4294967264 }
  0x3e   :  { %2323 = dma.done.wait [#allocation11], 32  }
  0x3f   :  { %2324 = vsyncadd [#allocation11], 4294967264 }
  0x40   :  { %2325 = dma.done.wait [#allocation14], 32  }
  0x41   :  { %2326 = vsyncadd [#allocation14], 4294967264 }
  0x42   :  { %2327 = dma.done.wait [#allocation17], 32  }
  0x43   :  { %2328 = vsyncadd [#allocation17], 4294967264 }
  0x44   :  { %2329 = dma.done.wait [#allocation20], 32  }
  0x45   :  { %2330 = vsyncadd [#allocation20], 4294967264  ;;  %s2941_s7 = sld [smem:[#allocation33_spill]]  ;;  %vm279_vm0 = vcmask 261120   ;;  %v1914_v5 = vld [vmem:[#allocation2] ss:$0 sm:$0xff] }
  0x46   :  { %s2942_s8 = sld [smem:[#allocation29_spill]]  ;;  %s2344_s5 = smov 96   ;;  %vm315_vm1 = vcmask 64512   ;;  %vm388_vm2 = vcmask 1043456  }
  0x47   :  { %s2345_s27 = smov 88   ;;  %s2346_s19 = smov 120  }
  0x48   :  { %s2347_s11 = smov 56   ;;  %s2943_s9 = sld [smem:[#allocation31_spill]] }
  0x49   :  { %s2348_s22 = smov 80   ;;  %s2349_s2 = smov 64  }
  0x4a   :  { %s2350_s29 = smov 112   ;;  %s2351_s0 = smov 48  }
  0x4b   :  { %v1878_v0 = vld [vmem:[%s2941_s7 + $0x8] sm:$0xff]  ;;  %v1877_v1 = vld [vmem:[%s2941_s7] sm:$0xff]  ;;  %s2352_s17 = smov 72   ;;  %s2944_s23 = sld [smem:[#allocation35_spill]] }
  0x4c   :  { %v2529_v2 = vld [vmem:[%s2942_s8] sm:$0xff]  ;;  %v2534_v3 = vld [vmem:[%s2942_s8 + $0x8] sm:$0xff]  ;;  %289 = vmatpush.bf16.msra.mxu0 %v1878_v0  ;;  %s2353_s30 = smov 104   ;;  %s2354_s16 = smov 40  }
  0x4d   :  { %v262_v4 = vpack.c.bf16 %v2534_v3, %v2529_v2  ;;  %s2945_s13 = sld [smem:[#allocation30_spill]] }
  0x4e   :  { %v2573_v36 = vld [vmem:[%s2943_s9] sm:$0xff]  ;;  %v2582_v45 = vld [vmem:[%s2943_s9 + $0x8] sm:$0xff] }
  0x50   :  { %290 = vmatpush.bf16.msra.mxu0 %v1877_v1 }
  0x53   :  { %1792 = vmatmul.msk.bf16.vlgmr.msra.gmra.mxu0 %vm279_vm0, %v262_v4 }
  0xd0   :  { %v292_v6 = vpop.f32.mrf.mxu0 }
  0xd1   :  { %v293_v7 = vadd.f32 %v1914_v5, %v292_v6 }
  0xd3   :  { %v308_v8 = vpack.c.bf16 %v293_v7, %v293_v7  ;;  %v304_v9 = vmul.f32 0.35355338, %v293_v7 }
  0xd5   :  { %v311_v10 = vunpack.c.l.b16 %v308_v8  ;;  %v306_v12 = vpack.c.bf16 %v304_v9, %v304_v9 }
  0xd7   :  { %v2539_v11 = vpack.c.b16 %v311_v10, %v311_v10  ;;  %v428_v17 = vunpack.c.l.b16 %v306_v12 }
  0xd8   :  { %v294_v13 = vpop.f32.mrf.mxu0 }
  0xd9   :  { %v295_v14 = vadd.f32 %v1914_v5, %v294_v13  ;;  %313 = vrot.lane.b32.xlu1 %v2539_v11, %s2344_s5  ;;  %432 = vrot.lane.b32.xlu0 %v2539_v11, %s2345_s27  ;;  %v2547_v21 = vpack.c.b16 %v428_v17, %v428_v17 }
  0xdb   :  { %v305_v15 = vmul.f32 0.35355338, %v295_v14  ;;  %v309_v16 = vpack.c.bf16 %v295_v14, %v295_v14 }
  0xdd   :  { %v336_v18 = vunpack.c.l.b16 %v309_v16  ;;  %v307_v19 = vpack.c.bf16 %v305_v15, %v305_v15 }
  0xdf   :  { %v2545_v20 = vpack.c.b16 %v336_v18, %v336_v18  ;;  %v454_v22 = vunpack.c.l.b16 %v307_v19 }
  0xe1   :  { %458 = vrot.lane.b32.xlu2 %v2545_v20, %s2345_s27  ;;  %338 = vrot.lane.b32.xlu1 %v2545_v20, %s2344_s5  ;;  %v2555_v23 = vpack.c.b16 %v454_v22, %v454_v22 }
  0xe2   :  { %430 = vrot.lane.b32.xlu0 %v2547_v21, %s2346_s19 }
  0xe9   :  { %456 = vrot.lane.b32.xlu2 %v2555_v23, %s2346_s19 }
  0xf1   :  { %503 = vrot.lane.b32.xlu2 %v2539_v11, %s2347_s11 }
 0x13b   :  { %v459_v24 = vpop.permute.xlu2 %458 }
 0x13c   :  { %v464_v30 = vsel %vm315_vm1, %v459_v24, 0 }
 0x143   :  { %v457_v25 = vpop.permute.xlu2 %456 }
 0x14b   :  { %v314_v26 = vpop.permute.xlu1 %313  ;;  %v433_v27 = vpop.permute.xlu0 %432 }
 0x14c   :  { %v320_v28 = vsel %vm315_vm1, %v314_v26, 0  ;;  %v438_v29 = vsel %vm315_vm1, %v433_v27, 0  ;;  %v504_v31 = vpop.permute.xlu2 %503 }
 0x14d   :  { %329 = vmatpush.bf16.xpose.msra.mxu1 %v320_v28  ;;  %447 = vmatpush.bf16.xpose.msrb.mxu0 %v438_v29  ;;  %v509_v35 = vsel %vm388_vm2, %v504_v31, 0 }
 0x153   :  { %v339_v32 = vpop.permute.xlu1 %338 }
 0x154   :  { %v431_v33 = vpop.permute.xlu0 %430  ;;  %1793 = vmatmul.msk.bf16.vlgmr.msra.gmra.mxu1 %vm315_vm1, %v306_v12  ;;  %v344_v34 = vsel %vm315_vm1, %v339_v32, 0 }
 0x155   :  { %473 = vmatpush.bf16.xpose.msrb.mxu1 %v464_v30  ;;  %1797 = vmatmul.msk.bf16.vlgmr.msrb.gmra.mxu0 %vm315_vm1, %v431_v33 }
 0x156   :  { %353 = vmatpush.bf16.xpose.msra.mxu2 %v344_v34 }
 0x15d   :  { %1794 = vmatmul.msk.bf16.vlgmr.msra.gmra.mxu2 %vm315_vm1, %v307_v19  ;;  %v300_v19 = vld [vmem:[%s2944_s23 + $0x4] sm:$0xf] }
 0x15e   :  { %518 = vmatpush.bf16.msrb.mxu2 %v509_v35  ;;  %v550_v22 = vsel %vm388_vm2, %v300_v19, 0 }
 0x15f   :  { %559 = vmatpush.bf16.msra.mxu0 %v550_v22 }
 0x164   :  { %1798 = vmatmul.msk.bf16.vlgmr.msrb.gmra.mxu1 %vm315_vm1, %v457_v25 }
 0x1d1   :  { %v331_v37 = vpop.f32.mrf.mxu1 }
 0x1d2   :  { %v332_v38 = vadd.f32 %v331_v37, %v2573_v36  ;;  %v449_v39 = vpop.f32.mrf.mxu0 }
 0x1d3   :  { %v450_v40 = vadd.f32 %v449_v39, %v2573_v36 }
 0x1d4   :  { %v359_v41 = vsel %vm315_vm1, %v332_v38, -inf }
 0x1d5   :  { %v479_v42 = vsel %vm315_vm1, %v450_v40, -inf  ;;  %360 = vmax.xlane.f32.xlu2 %v359_v41 }
 0x1d6   :  { %480 = vmax.xlane.f32.xlu0 %v479_v42 }
 0x1d9   :  { %v333_v43 = vpop.f32.mrf.mxu1 }
 0x1da   :  { %v451_v44 = vpop.f32.mrf.mxu0 }
 0x1e0   :  { %v355_v46 = vpop.f32.mrf.mxu2 }
 0x1e1   :  { %v356_v47 = vadd.f32 %v355_v46, %v2582_v45  ;;  %v475_v48 = vpop.f32.mrf.mxu1 }
 0x1e2   :  { %v476_v50 = vadd.f32 %v475_v48, %v2582_v45 }
 0x1e3   :  { %v362_v49 = vsel %vm315_vm1, %v356_v47, -inf }
 0x1e4   :  { %363 = vmax.xlane.f32.xlu2 %v362_v49  ;;  %v482_v53 = vsel %vm315_vm1, %v476_v50, -inf }
 0x1e8   :  { %v357_v51 = vpop.f32.mrf.mxu2 }
 0x1e9   :  { %v477_v52 = vpop.f32.mrf.mxu1 }
 0x1ea   :  { %588 = vrot.lane.b32.xlu0 %v2539_v11, %s2348_s22 }
 0x1ec   :  { %483 = vmax.xlane.f32.xlu2 %v482_v53 }
 0x204   :  { %383 = vrot.lane.b32.xlu2 %v2539_v11, %s2349_s2 }
 0x20c   :  { %405 = vrot.lane.b32.xlu2 %v2545_v20, %s2349_s2 }
 0x248   :  { %v361_v54 = vpop.xlane.xlu2 %360 }
 0x249   :  { %v481_v55 = vpop.xlane.xlu0 %480  ;;  %v365_v56 = vsub.f32 %v332_v38, %v361_v54 }
 0x24a   :  { %v485_v57 = vsub.f32 %v450_v40, %v481_v55 }
 0x24b   :  { %v367_v58 = vmul.f32 1.442695, %v365_v56 }
 0x24c   :  { %v487_v59 = vmul.f32 1.442695, %v485_v57 }
 0x24d   :  { %1927 = vpow2.f32 %v367_v58 }
 0x24e   :  { %1929 = vpow2.f32 %v487_v59 }
 0x253   :  { %v1928_v60 = vpop.eup %1927 }
 0x254   :  { %v1930_v61 = vpop.eup %1929  ;;  %v371_v62 = vsel %vm315_vm1, %v1928_v60, 0.0 }
 0x255   :  { %v491_v63 = vsel %vm315_vm1, %v1930_v61, 0.0  ;;  %372 = vadd.xlane.f32.xlu0 %v371_v62 }
 0x256   :  { %492 = vadd.xlane.f32.xlu1 %v491_v63 }
 0x257   :  { %v364_v0 = vpop.xlane.xlu2 %363 }
 0x258   :  { %v366_v15 = vsub.f32 %v356_v47, %v364_v0 }
 0x25a   :  { %v369_v16 = vmul.f32 1.442695, %v366_v15 }
 0x25c   :  { %v589_v1 = vpop.permute.xlu0 %588 }
 0x25d   :  { %v594_v4 = vsel %vm315_vm1, %v589_v1, 0 }
 0x25e   :  { %603 = vmatpush.bf16.xpose.msra.mxu2 %v594_v4 }
 0x25f   :  { %v484_v5 = vpop.xlane.xlu2 %483 }
 0x260   :  { %v486_v6 = vsub.f32 %v476_v50, %v484_v5 }
 0x262   :  { %v489_v7 = vmul.f32 1.442695, %v486_v6 }
 0x264   :  { %1931 = vpow2.f32 %v489_v7 }
 0x265   :  { %1933 = vpow2.f32 %v369_v16 }
 0x267   :  { %v384_v8 = vpop.permute.xlu2 %383 }
 0x268   :  { %v390_v9 = vsel %vm388_vm2, %v384_v8, 0 }
 0x269   :  { %399 = vmatpush.bf16.msra.mxu3 %v390_v9  ;;  %524 = vrot.lane.b32.xlu0 %v2545_v20, %s2347_s11 }
 0x26a   :  { %v1932_v10 = vpop.eup %1931 }
 0x26b   :  { %v494_v12 = vsel %vm315_vm1, %v1932_v10, 0.0  ;;  %v1934_v17 = vpop.eup %1933 }
 0x26c   :  { %495 = vadd.xlane.f32.xlu2 %v494_v12  ;;  %v374_v18 = vsel %vm315_vm1, %v1934_v17, 0.0 }
 0x26f   :  { %v406_v13 = vpop.permute.xlu2 %405  ;;  %586 = vrot.lane.b32.xlu1 %v2547_v21, %s2350_s29 }
 0x270   :  { %v411_v14 = vsel %vm388_vm2, %v406_v13, 0 }
 0x271   :  { %420 = vmatpush.bf16.msrb.mxu3 %v411_v14  ;;  %609 = vrot.lane.b32.xlu0 %v2555_v23, %s2350_s29 }
 0x284   :  { %656 = vrot.lane.b32.xlu2 %v2539_v11, %s2351_s0 }
 0x28c   :  { %723 = vrot.lane.b32.xlu2 %v2539_v11, %s2352_s17 }
 0x294   :  { %746 = vrot.lane.b32.xlu2 %v2545_v20, %s2352_s17 }
 0x299   :  { %375 = vadd.xlane.f32.xlu1 %v374_v18 }
 0x2b2   :  { %611 = vrot.lane.b32.xlu1 %v2545_v20, %s2348_s22 }
 0x2c8   :  { %v373_v24 = vpop.xlane.xlu0 %372 }
 0x2c9   :  { %v493_v25 = vpop.xlane.xlu1 %492  ;;  %1935 = vrcp.f32 %v373_v24 }
 0x2ca   :  { %1937 = vrcp.f32 %v493_v25 }
 0x2cf   :  { %v1936_v26 = vpop.eup %1935 }
 0x2d0   :  { %v1938_v27 = vpop.eup %1937  ;;  %v379_v28 = vmul.f32 %v1936_v26, %v1928_v60  ;;  %v299_v60 = vld [vmem:[%s2944_s23] sm:$0xf] }
 0x2d1   :  { %v499_v29 = vmul.f32 %v1938_v27, %v1930_v61  ;;  %v570_v61 = vsel %vm388_vm2, %v299_v60, 0 }
 0x2d2   :  { %v381_v30 = vpack.c.bf16 %v379_v28, %v379_v28  ;;  %579 = vmatpush.bf16.msra.mxu1 %v570_v61 }
 0x2d3   :  { %v501_v31 = vpack.c.bf16 %v499_v29, %v499_v29 }
 0x2d4   :  { %1795 = vmatmul.msk.bf16.vlgmr.msra.gmra.mxu3 %vm315_vm1, %v381_v30 }
 0x2d5   :  { %1799 = vmatmul.msk.bf16.vlgmr.msrb.gmra.mxu2 %vm315_vm1, %v501_v31 }
 0x2db   :  { %v525_v32 = vpop.permute.xlu0 %524 }
 0x2dc   :  { %v530_v33 = vsel %vm388_vm2, %v525_v32, 0 }
 0x2dd   :  { %539 = vmatpush.bf16.msra.mxu3 %v530_v33 }
 0x2df   :  { %v496_v34 = vpop.xlane.xlu2 %495 }
 0x2e1   :  { %v587_v35 = vpop.permute.xlu1 %586 }
 0x2e3   :  { %v610_v51 = vpop.permute.xlu0 %609 }
 0x2e5   :  { %1803 = vmatmul.msk.bf16.vlgmr.msra.gmra.mxu2 %vm315_vm1, %v587_v35 }
 0x2e7   :  { %v657_v37 = vpop.permute.xlu2 %656 }
 0x2e8   :  { %v662_v38 = vsel %vm388_vm2, %v657_v37, 0 }
 0x2e9   :  { %671 = vmatpush.bf16.msrb.mxu0 %v662_v38 }
 0x2ef   :  { %v724_v47 = vpop.permute.xlu2 %723 }
 0x2f0   :  { %v729_v50 = vsel %vm315_vm1, %v724_v47, 0 }
 0x2f7   :  { %v747_v1 = vpop.permute.xlu2 %746 }
 0x2f8   :  { %v752_v6 = vsel %vm315_vm1, %v747_v1, 0 }
 0x30c   :  { %v376_v39 = vpop.xlane.xlu1 %375 }
 0x30d   :  { %1939 = vrcp.f32 %v376_v39  ;;  %v301_v39 = vld [vmem:[%s2944_s23 + $0x8] sm:$0xf] }
 0x30e   :  { %1941 = vrcp.f32 %v496_v34 }
 0x313   :  { %v1940_v40 = vpop.eup %1939 }
 0x314   :  { %v380_v41 = vmul.f32 %v1940_v40, %v1934_v17  ;;  %v1942_v43 = vpop.eup %1941  ;;  %v703_v40 = vsel %vm388_vm2, %v301_v39, 0  ;;  %v2355_v39 = vmov 32.0  }
 0x315   :  { %v500_v44 = vmul.f32 %v1942_v43, %v1932_v10  ;;  %712 = vmatpush.bf16.msrb.mxu2 %v703_v40 }
 0x316   :  { %v382_v42 = vpack.c.bf16 %v380_v41, %v380_v41 }
 0x317   :  { %v502_v49 = vpack.c.bf16 %v500_v44, %v500_v44 }
 0x318   :  { %1796 = vmatmul.msk.bf16.vlgmr.msrb.gmra.mxu3 %vm315_vm1, %v382_v42 }
 0x324   :  { %v612_v46 = vpop.permute.xlu1 %611 }
 0x325   :  { %v617_v48 = vsel %vm315_vm1, %v612_v46, 0 }
 0x326   :  { %626 = vmatpush.bf16.xpose.msrb.mxu3 %v617_v48 }
 0x328   :  { %1800 = vmatmul.msk.bf16.vlgmr.msra.gmra.mxu3 %vm315_vm1, %v502_v49 }
 0x32e   :  { %738 = vmatpush.bf16.xpose.msra.mxu3 %v729_v50 }
 0x338   :  { %1804 = vmatmul.msk.bf16.vlgmr.msrb.gmra.mxu3 %vm315_vm1, %v610_v51 }
 0x357   :  { %v401_v52 = vpop.f32.mrf.mxu3 }
 0x358   :  { %v520_v53 = vpop.f32.mrf.mxu2 }
 0x35f   :  { %v403_v54 = vpop.f32.mrf.mxu3 }
 0x360   :  { %v522_v55 = vpop.f32.mrf.mxu2 }
 0x368   :  { %v605_v56 = vpop.f32.mrf.mxu2 }
 0x369   :  { %v606_v57 = vadd.f32 %v605_v56, %v2573_v36 }
 0x36b   :  { %v632_v58 = vsel %vm315_vm1, %v606_v57, -inf }
 0x36c   :  { %633 = vmax.xlane.f32.xlu0 %v632_v58 }
 0x370   :  { %v607_v59 = vpop.f32.mrf.mxu2 }
 0x380   :  { %721 = vrot.lane.b32.xlu0 %v2547_v21, %s2353_s30 }
 0x39b   :  { %v422_v62 = vpop.f32.mrf.mxu3 }
 0x39c   :  { %v426_v63 = vpack.c.bf16 %v422_v62, %v401_v52 }
 0x39e   :  { %1802 = vmatmul.msk.bf16.vlgmr.msra.gmra.mxu1 %vm315_vm1, %v426_v63 }
 0x3a3   :  { %v424_v0 = vpop.f32.mrf.mxu3 }
 0x3ab   :  { %v541_v4 = vpop.f32.mrf.mxu3 }
 0x3ac   :  { %v545_v5 = vpack.c.bf16 %v541_v4, %v520_v53 }
 0x3ae   :  { %1801 = vmatmul.msk.bf16.vlgmr.msra.gmra.mxu0 %vm315_vm1, %v545_v5 }
 0x3af   :  { %761 = vmatpush.bf16.xpose.msra.mxu0 %v752_v6 }
 0x3b3   :  { %v543_v7 = vpop.f32.mrf.mxu3 }
 0x3bb   :  { %v628_v8 = vpop.f32.mrf.mxu3 }
 0x3bc   :  { %v629_v9 = vadd.f32 %v628_v8, %v2582_v45 }
 0x3be   :  { %v635_v10 = vsel %vm315_vm1, %v629_v9, -inf }
 0x3bf   :  { %636 = vmax.xlane.f32.xlu2 %v635_v10 }
 0x3c3   :  { %v630_v21 = vpop.f32.mrf.mxu3 }
 0x3df   :  { %v634_v12 = vpop.xlane.xlu0 %633 }
 0x3e0   :  { %v638_v13 = vsub.f32 %v606_v57, %v634_v12 }
 0x3e2   :  { %v640_v14 = vmul.f32 1.442695, %v638_v13 }
 0x3e4   :  { %1943 = vpow2.f32 %v640_v14 }
 0x3ea   :  { %v1944_v15 = vpop.eup %1943 }
 0x3eb   :  { %v644_v16 = vsel %vm315_vm1, %v1944_v15, 0.0 }
 0x3ec   :  { %645 = vadd.xlane.f32.xlu1 %v644_v16 }
 0x3f2   :  { %v722_v17 = vpop.permute.xlu0 %721 }
 0x3f3   :  { %1808 = vmatmul.msk.bf16.vlgmr.msra.gmra.mxu3 %vm315_vm1, %v722_v17 }
 0x405   :  { %744 = vrot.lane.b32.xlu1 %v2555_v23, %s2353_s30 }
 0x40d   :  { %677 = vrot.lane.b32.xlu1 %v2545_v20, %s2351_s0 }
 0x41b   :  { %v581_v18 = vpop.f32.mrf.mxu1 }
 0x423   :  { %v583_v59 = vpop.f32.mrf.mxu1 }
 0x42b   :  { %v561_v19 = vpop.f32.mrf.mxu0 }
 0x42c   :  { %v2646_v22 = vadd.f32 %v581_v18, %v561_v19 }
 0x432   :  { %v637_v24 = vpop.xlane.xlu2 %636 }
 0x433   :  { %v639_v25 = vsub.f32 %v629_v9, %v637_v24  ;;  %v563_v47 = vpop.f32.mrf.mxu0 }
 0x435   :  { %v642_v26 = vmul.f32 1.442695, %v639_v25 }
 0x437   :  { %1945 = vpow2.f32 %v642_v26 }
 0x43d   :  { %v1946_v27 = vpop.eup %1945 }
 0x43e   :  { %v647_v28 = vsel %vm315_vm1, %v1946_v27, 0.0 }
 0x43f   :  { %648 = vadd.xlane.f32.xlu0 %v647_v28 }
 0x453   :  { %812 = vrot.lane.b32.xlu0 %v2545_v20, %s2354_s16 }
 0x45f   :  { %v646_v23 = vpop.xlane.xlu1 %645 }
 0x460   :  { %1947 = vrcp.f32 %v646_v23 }
 0x466   :  { %v1948_v29 = vpop.eup %1947 }
 0x467   :  { %v652_v30 = vmul.f32 %v1948_v29, %v1944_v15 }
 0x469   :  { %v654_v31 = vpack.c.bf16 %v652_v30, %v652_v30  ;;  %v584_v30 = vadd.f32 %v583_v59, %v563_v47 }
 0x46b   :  { %1805 = vmatmul.msk.bf16.vlgmr.msrb.gmra.mxu0 %vm315_vm1, %v654_v31 }
 0x476   :  { %v740_v32 = vpop.f32.mrf.mxu3 }
 0x477   :  { %v741_v33 = vadd.f32 %v740_v32, %v2573_v36  ;;  %v745_v34 = vpop.permute.xlu1 %744 }
 0x479   :  { %v767_v35 = vsel %vm315_vm1, %v741_v33, -inf }
 0x47a   :  { %768 = vmax.xlane.f32.xlu2 %v767_v35 }
 0x47b   :  { %1809 = vmatmul.msk.bf16.vlgmr.msra.gmra.mxu0 %vm315_vm1, %v745_v34 }
 0x47e   :  { %v742_v37 = vpop.f32.mrf.mxu3 }
 0x47f   :  { %v678_v38 = vpop.permute.xlu1 %677 }
 0x480   :  { %v683_v20 = vsel %vm388_vm2, %v678_v38, 0 }
 0x481   :  { %692 = vmatpush.bf16.msrb.mxu1 %v683_v20 }
 0x4b2   :  { %v649_v41 = vpop.xlane.xlu0 %648 }
 0x4b3   :  { %1949 = vrcp.f32 %v649_v41 }
 0x4b9   :  { %v1950_v36 = vpop.eup %1949 }
 0x4ba   :  { %v653_v42 = vmul.f32 %v1950_v36, %v1946_v27  ;;  %v1915_v27 = vld [vmem:[#allocation4] ss:$0 sm:$0xff] }
 0x4bc   :  { %v655_v43 = vpack.c.bf16 %v653_v42, %v653_v42 }
 0x4be   :  { %1806 = vmatmul.msk.bf16.vlgmr.msrb.gmra.mxu1 %vm315_vm1, %v655_v43 }
 0x4c5   :  { %v813_v44 = vpop.permute.xlu0 %812 }
 0x4c6   :  { %v818_v46 = vsel %vm388_vm2, %v813_v44, 0 }
 0x4c7   :  { %827 = vmatpush.bf16.msra.mxu2 %v818_v46 }
 0x4e8   :  { %v673_v48 = vpop.f32.mrf.mxu0 }
 0x4ed   :  { %v769_v49 = vpop.xlane.xlu2 %768 }
 0x4ee   :  { %v773_v50 = vsub.f32 %v741_v33, %v769_v49 }
 0x4f0   :  { %v775_v51 = vmul.f32 1.442695, %v773_v50  ;;  %v675_v52 = vpop.f32.mrf.mxu0 }
 0x4f2   :  { %1951 = vpow2.f32 %v775_v51 }
 0x4f8   :  { %v1952_v53 = vpop.eup %1951  ;;  %v763_v54 = vpop.f32.mrf.mxu0 }
 0x4f9   :  { %v764_v55 = vadd.f32 %v763_v54, %v2582_v45  ;;  %v779_v56 = vsel %vm315_vm1, %v1952_v53, 0.0  ;;  %v1882_v54 = vld [vmem:[%s2910_s12 + $0x8] sm:$0xff] }
 0x4fa   :  { %780 = vadd.xlane.f32.xlu2 %v779_v56  ;;  %v1880_v56 = vld [vmem:[%s2908_s10 + $0x8] sm:$0xff] }
 0x4fb   :  { %v770_v57 = vsel %vm315_vm1, %v764_v55, -inf  ;;  %956 = vmatpush.bf16.msrb.mxu0 %v1880_v56 }
 0x4fc   :  { %771 = vmax.xlane.f32.xlu1 %v770_v57  ;;  %v256_v57 = vld [vmem:[%s2945_s13] sm:$0xff] }
 0x500   :  { %v765_v58 = vpop.f32.mrf.mxu0 }
 0x501   :  { %v257_v58 = vld [vmem:[%s2945_s13 + $0x8] sm:$0xff] }
 0x53b   :  { %v694_v60 = vpop.f32.mrf.mxu1 }
 0x53c   :  { %v698_v61 = vpack.c.bf16 %v694_v60, %v673_v48  ;;  %v968_v60 = vpack.c.bf16 %v257_v58, %v256_v57 }
 0x53e   :  { %1807 = vmatmul.msk.bf16.vlgmr.msrb.gmra.mxu2 %vm315_vm1, %v698_v61 }
 0x543   :  { %v696_v62 = vpop.f32.mrf.mxu1 }
 0x56d   :  { %v781_v7 = vpop.xlane.xlu2 %780 }
 0x56f   :  { %v772_v63 = vpop.xlane.xlu1 %771 }
 0x570   :  { %v774_v0 = vsub.f32 %v764_v55, %v772_v63  ;;  %v1881_v55 = vld [vmem:[%s2910_s12] sm:$0xff] }
 0x571   :  { %v1879_v63 = vld [vmem:[%s2908_s10] sm:$0xff] }
 0x572   :  { %v777_v1 = vmul.f32 1.442695, %v774_v0  ;;  %957 = vmatpush.bf16.msrb.mxu0 %v1879_v63 }
 0x574   :  { %1953 = vpow2.f32 %v777_v1 }
 0x575   :  { %1955 = vrcp.f32 %v781_v7 }
 0x57a   :  { %v1954_v4 = vpop.eup %1953 }
 0x57b   :  { %v782_v45 = vsel %vm315_vm1, %v1954_v4, 0.0  ;;  %v1956_v9 = vpop.eup %1955 }
 0x57c   :  { %783 = vadd.xlane.f32.xlu2 %v782_v45  ;;  %v787_v21 = vmul.f32 %v1956_v9, %v1952_v53 }
 0x57e   :  { %v789_v16 = vpack.c.bf16 %v787_v21, %v787_v21 }
 0x594   :  { %791 = vrot.lane.b32.xlu2 %v2539_v11, %s2354_s16  ;;  %v302_v11 = vld [vmem:[%s2944_s23 + $0xc] sm:$0xf]  ;;  %s2946_s16 = sld [smem:[#allocation32_spill]] }
 0x595   :  { %v838_v17 = vsel %vm388_vm2, %v302_v11, 0 }
 0x596   :  { %847 = vmatpush.bf16.msrb.mxu3 %v838_v17 }
 0x5c1   :  { %v714_v5 = vpop.f32.mrf.mxu2 }
 0x5c2   :  { %v719_v6 = vadd.f32 %v714_v5, %v2646_v22 }
 0x5c9   :  { %v716_v18 = vpop.f32.mrf.mxu2 }
 0x5ca   :  { %v720_v32 = vadd.f32 %v716_v18, %v584_v30 }
 0x5ef   :  { %v784_v8 = vpop.xlane.xlu2 %783 }
 0x5f0   :  { %1957 = vrcp.f32 %v784_v8 }
 0x5f1   :  { %1959 = vrcp.f32 %v2355_v39 }
 0x5f6   :  { %v1958_v10 = vpop.eup %1957 }
 0x5f7   :  { %v788_v12 = vmul.f32 %v1958_v10, %v1954_v4  ;;  %v792_v13 = vpop.permute.xlu2 %791  ;;  %v1960_v40 = vpop.eup %1959 }
 0x5f8   :  { %v797_v14 = vsel %vm388_vm2, %v792_v13, 0  ;;  %v872_v41 = vmul.f32 32.0, %v1960_v40  ;;  %vm876_vm3 = vweird.f32 %v1960_v40 }
 0x5f9   :  { %v790_v15 = vpack.c.bf16 %v788_v12, %v788_v12  ;;  %806 = vmatpush.bf16.msra.mxu1 %v797_v14 }
 0x5fa   :  { %v873_v36 = vsub.f32 1.0, %v872_v41  ;;  %v1919_v41 = vld [vmem:[#allocation9] ss:$0 sm:$0xff] }
 0x5fb   :  { %1811 = vmatmul.msk.bf16.vlgmr.msra.gmra.mxu2 %vm315_vm1, %v790_v15 }
 0x5fc   :  { %1810 = vmatmul.msk.bf16.vlgmr.msra.gmra.mxu1 %vm315_vm1, %v789_v16  ;;  %v874_v42 = vmul.f32 %v1960_v40, %v873_v36  ;;  %v1916_v16 = vld [vmem:[#allocation6] ss:$0 sm:$0xff] }
 0x5fd   :  { %994 = vmatpush.bf16.msrb.mxu1 %v1882_v54 }
 0x5fe   :  { %v875_v43 = vadd.f32 %v1960_v40, %v874_v42 }
 0x601   :  { %995 = vmatpush.bf16.msrb.mxu1 %v1881_v55 }
 0x60c   :  { %1830 = vmatmul.msk.bf16.vlgmr.msrb.gmra.mxu1 %vm279_vm0, %v968_v60 }
 0x679   :  { %v808_v19 = vpop.f32.mrf.mxu1 }
 0x67e   :  { %v829_v22 = vpop.f32.mrf.mxu2 }
 0x67f   :  { %v833_v24 = vpack.c.bf16 %v829_v22, %v808_v19  ;;  %v1917_v19 = vld [vmem:[#allocation7] ss:$0 sm:$0xff] }
 0x681   :  { %v810_v25 = vpop.f32.mrf.mxu1  ;;  %1812 = vmatmul.msk.bf16.vlgmr.msrb.gmra.mxu3 %vm315_vm1, %v833_v24 }
 0x686   :  { %v831_v26 = vpop.f32.mrf.mxu2 }
 0x704   :  { %v849_v28 = vpop.f32.mrf.mxu3 }
 0x705   :  { %v854_v23 = vadd.f32 %v849_v28, %v719_v6 }
 0x707   :  { %v859_v29 = vadd.f32 %v1915_v27, %v854_v23  ;;  %v1918_v23 = vld [vmem:[#allocation10] ss:$0 sm:$0xff] }
 0x709   :  { %v861_v31 = vadd.f32 %v859_v29, %v2529_v2  ;;  %v2682_v2 = vsel %vm876_vm3, %v1960_v40, %v875_v43  ;;  %v997_v29 = vpop.f32.mrf.mxu1 }
 0x70a   :  { %v998_v30 = vadd.f32 %v1918_v23, %v997_v29 }
 0x70b   :  { %v865_v33 = vsel %vm279_vm0, %v861_v31, 0.0 }
 0x70c   :  { %866 = vadd.xlane.f32.xlu1 %v865_v33  ;;  %v851_v34 = vpop.f32.mrf.mxu3 }
 0x70d   :  { %v855_v35 = vadd.f32 %v851_v34, %v720_v32 }
 0x70f   :  { %v860_v37 = vadd.f32 %v1915_v27, %v855_v35 }
 0x711   :  { %v862_v38 = vadd.f32 %v860_v37, %v2534_v3  ;;  %v999_v35 = vpop.f32.mrf.mxu1 }
 0x712   :  { %v1000_v37 = vadd.f32 %v1918_v23, %v999_v35 }
 0x713   :  { %v868_v20 = vsel %vm279_vm0, %v862_v38, 0.0 }
 0x714   :  { %869 = vadd.xlane.f32.xlu0 %v868_v20 }
 0x77f   :  { %v867_v44 = vpop.xlane.xlu1 %866 }
 0x780   :  { %v878_v46 = vmul.f32 %v2682_v2, %v867_v44 }
 0x782   :  { %v880_v47 = vsub.f32 %v861_v31, %v878_v46  ;;  %v1013_v31 = vpack.c.bf16 %v998_v30, %v998_v30 }
 0x784   :  { %v882_v48 = vmul.f32 %v880_v47, %v880_v47  ;;  %v1019_v32 = vsel %vm315_vm1, %v1013_v31, 0  ;;  %v1078_v33 = vunpack.c.l.b16 %v1013_v31 }
 0x785   :  { %1028 = vmatpush.bf16.xpose.msrb.mxu2 %v1019_v32 }
 0x786   :  { %v884_v3 = vsel %vm279_vm0, %v882_v48, 0.0  ;;  %v2717_v34 = vpack.c.b16 %v1078_v33, %v1078_v33 }
 0x787   :  { %885 = vadd.xlane.f32.xlu1 %v884_v3  ;;  %v870_v49 = vpop.xlane.xlu0 %869 }
 0x788   :  { %v879_v50 = vmul.f32 %v2682_v2, %v870_v49  ;;  %1131 = vrot.lane.b32.xlu2 %v2717_v34, %s2346_s19 }
 0x78a   :  { %v881_v51 = vsub.f32 %v862_v38, %v879_v50  ;;  %v1014_v38 = vpack.c.bf16 %v1000_v37, %v1000_v37 }
 0x78c   :  { %v883_v52 = vmul.f32 %v881_v51, %v881_v51  ;;  %v1038_v20 = vsel %vm315_vm1, %v1014_v38, 0  ;;  %v1102_v39 = vunpack.c.l.b16 %v1014_v38 }
 0x78d   :  { %1047 = vmatpush.bf16.xpose.msra.mxu3 %v1038_v20 }
 0x78e   :  { %v887_v53 = vsel %vm279_vm0, %v883_v52, 0.0  ;;  %v2722_v40 = vpack.c.b16 %v1102_v39, %v1102_v39 }
 0x78f   :  { %888 = vadd.xlane.f32.xlu1 %v887_v53 }
 0x790   :  { %1157 = vrot.lane.b32.xlu2 %v2722_v40, %s2346_s19 }
 0x7e2   :  { %v1132_v53 = vpop.permute.xlu2 %1131 }
 0x7e3   :  { %v1137_v54 = vsel %vm315_vm1, %v1132_v53, 0 }
 0x7e4   :  { %1146 = vmatpush.bf16.xpose.msra.mxu2 %v1137_v54 }
 0x7ea   :  { %v1158_v55 = vpop.permute.xlu2 %1157 }
 0x7eb   :  { %v1163_v56 = vsel %vm315_vm1, %v1158_v55, 0 }
 0x7ec   :  { %1172 = vmatpush.bf16.xpose.msrb.mxu3 %v1163_v56 }
 0x7fa   :  { %v886_v59 = vpop.xlane.xlu1 %885 }
 0x7fb   :  { %v890_v61 = vmul.f32 %v886_v59, %v2682_v2  ;;  %v2743_v59 = vld [vmem:[%s2946_s16] sm:$0xff] }
 0x7fd   :  { %v892_v62 = vadd.f32 1e-05, %v890_v61 }
 0x7ff   :  { %1961 = vrsqrt.f32 %v892_v62  ;;  %vm900_vm5 = vweird.f32 %v892_v62 }
 0x802   :  { %v889_v0 = vpop.xlane.xlu1 %888 }
 0x803   :  { %v891_v1 = vmul.f32 %v889_v0, %v2682_v2 }
 0x805   :  { %v1962_v4 = vpop.eup %1961  ;;  %v893_v45 = vadd.f32 1e-05, %v891_v1 }
 0x806   :  { %v895_v5 = vmul.f32 %v1962_v4, %v892_v62  ;;  %vm901_vm4 = vweird.f32 %v1962_v4 }
 0x807   :  { %1963 = vrsqrt.f32 %v893_v45  ;;  %vm902_vm6 = vmor %vm900_vm5, %vm901_vm4  ;;  %vm910_vm8 = vweird.f32 %v893_v45 }
 0x808   :  { %v896_v6 = vmul.f32 %v1962_v4, %v895_v5 }
 0x80a   :  { %v897_v7 = vmul.f32 0.5, %v896_v6 }
 0x80c   :  { %v898_v8 = vsub.f32 1.5, %v897_v7 }
 0x80d   :  { %v1964_v9 = vpop.eup %1963 }
 0x80e   :  { %v899_v10 = vmul.f32 %v1962_v4, %v898_v8  ;;  %v905_v21 = vmul.f32 %v1964_v9, %v893_v45  ;;  %vm911_vm7 = vweird.f32 %v1964_v9 }
 0x80f   :  { %vm912_vm9 = vmor %vm910_vm8, %vm911_vm7 }
 0x810   :  { %v906_v12 = vmul.f32 %v1964_v9, %v905_v21  ;;  %v903_v13 = vsel %vm902_vm6, %v1962_v4, %v899_v10  ;;  %v2754_v4 = vld [vmem:[%s2946_s16 + $0x8] sm:$0xff] }
 0x811   :  { %v914_v11 = vmul.f32 %v903_v13, %v880_v47 }
 0x812   :  { %v907_v14 = vmul.f32 0.5, %v906_v12 }
 0x813   :  { %v919_v22 = vmul.f32 %v1916_v16, %v914_v11 }
 0x814   :  { %v908_v15 = vsub.f32 1.5, %v907_v14 }
 0x815   :  { %v2709_v26 = vadd.f32 %v1917_v19, %v919_v22 }
 0x816   :  { %v909_v17 = vmul.f32 %v1964_v9, %v908_v15 }
 0x818   :  { %v913_v18 = vsel %vm912_vm9, %v1964_v9, %v909_v17 }
 0x819   :  { %v915_v24 = vmul.f32 %v913_v18, %v881_v51 }
 0x81b   :  { %v920_v25 = vmul.f32 %v1916_v16, %v915_v24 }
 0x81d   :  { %v2711_v27 = vadd.f32 %v1917_v19, %v920_v25 }
 0x81f   :  { %v930_v28 = vpack.c.bf16 %v2711_v27, %v2709_v26 }
 0x821   :  { %1821 = vmatmul.msk.bf16.vlgmr.msrb.gmra.mxu0 %vm279_vm0, %v930_v28 }
 0x89e   :  { %v959_v36 = vpop.f32.mrf.mxu0 }
 0x89f   :  { %v960_v42 = vadd.f32 %v1919_v41, %v959_v36 }
 0x8a1   :  { %v1009_v43 = vmul.f32 0.35355338, %v960_v42 }
 0x8a3   :  { %v1011_v44 = vpack.c.bf16 %v1009_v43, %v1009_v43 }
 0x8a5   :  { %v1127_v46 = vunpack.c.l.b16 %v1011_v44  ;;  %1831 = vmatmul.msk.bf16.vlgmr.msrb.gmra.mxu2 %vm315_vm1, %v1011_v44 }
 0x8a6   :  { %v961_v47 = vpop.f32.mrf.mxu0 }
 0x8a7   :  { %v962_v48 = vadd.f32 %v1919_v41, %v961_v47  ;;  %v2727_v3 = vpack.c.b16 %v1127_v46, %v1127_v46 }
 0x8a9   :  { %v1010_v49 = vmul.f32 0.35355338, %v962_v48  ;;  %1129 = vrot.lane.b32.xlu1 %v2727_v3, %s2346_s19 }
 0x8ab   :  { %v1012_v50 = vpack.c.bf16 %v1010_v49, %v1010_v49 }
 0x8ad   :  { %v1153_v51 = vunpack.c.l.b16 %v1012_v50  ;;  %1832 = vmatmul.msk.bf16.vlgmr.msra.gmra.mxu3 %vm315_vm1, %v1012_v50 }
 0x8af   :  { %v2732_v52 = vpack.c.b16 %v1153_v51, %v1153_v51 }
 0x8b1   :  { %1155 = vrot.lane.b32.xlu2 %v2732_v52, %s2346_s19 }
 0x90b   :  { %v1156_v57 = vpop.permute.xlu2 %1155 }
 0x90c   :  { %1836 = vmatmul.msk.bf16.vlgmr.msrb.gmra.mxu3 %vm315_vm1, %v1156_v57 }
 0x91b   :  { %v1130_v58 = vpop.permute.xlu1 %1129 }
 0x91c   :  { %1835 = vmatmul.msk.bf16.vlgmr.msra.gmra.mxu2 %vm315_vm1, %v1130_v58 }
 0x928   :  { %v1030_v60 = vpop.f32.mrf.mxu2 }
 0x929   :  { %v1031_v61 = vadd.f32 %v1030_v60, %v2743_v59 }
 0x92b   :  { %v1053_v62 = vsel %vm315_vm1, %v1031_v61, -inf }
 0x92c   :  { %1054 = vmax.xlane.f32.xlu2 %v1053_v62 }
 0x930   :  { %v1032_v63 = vpop.f32.mrf.mxu2  ;;  %v1049_v0 = vpop.f32.mrf.mxu3 }
 0x931   :  { %v1050_v45 = vadd.f32 %v1049_v0, %v2754_v4 }
 0x933   :  { %v1056_v5 = vsel %vm315_vm1, %v1050_v45, -inf }
 0x938   :  { %v1051_v1 = vpop.f32.mrf.mxu3 }
 0x944   :  { %1202 = vrot.lane.b32.xlu2 %v2717_v34, %s2345_s27 }
 0x94c   :  { %1285 = vrot.lane.b32.xlu2 %v2727_v3, %s2350_s29 }
 0x975   :  { %1057 = vmax.xlane.f32.xlu2 %v1056_v5  ;;  %v1005_v5 = vld [vmem:[%s2912_s14 + $0x4] sm:$0xf] }
 0x98d   :  { %1223 = vrot.lane.b32.xlu2 %v2722_v40, %s2345_s27 }
 0x98f   :  { %v1174_v6 = vpop.f32.mrf.mxu3 }
 0x990   :  { %v1175_v11 = vadd.f32 %v1174_v6, %v2754_v4  ;;  %v1249_v6 = vsel %vm388_vm2, %v1005_v5, 0 }
 0x991   :  { %1258 = vmatpush.bf16.msrb.mxu2 %v1249_v6 }
 0x992   :  { %v1181_v17 = vsel %vm315_vm1, %v1175_v11, -inf }
 0x995   :  { %1308 = vrot.lane.b32.xlu2 %v2732_v52, %s2350_s29 }
 0x997   :  { %v1176_v7 = vpop.f32.mrf.mxu3 }
 0x99f   :  { %v1148_v8 = vpop.f32.mrf.mxu2  ;;  %v1055_v9 = vpop.xlane.xlu2 %1054 }
 0x9a0   :  { %v1149_v10 = vadd.f32 %v1148_v8, %v2743_v59  ;;  %v1059_v21 = vsub.f32 %v1031_v61, %v1055_v9 }
 0x9a2   :  { %v1061_v12 = vmul.f32 1.442695, %v1059_v21  ;;  %v1178_v13 = vsel %vm315_vm1, %v1149_v10, -inf }
 0x9a3   :  { %1179 = vmax.xlane.f32.xlu0 %v1178_v13 }
 0x9a4   :  { %1965 = vpow2.f32 %v1061_v12 }
 0x9a7   :  { %v1150_v14 = vpop.f32.mrf.mxu2  ;;  %v1203_v18 = vpop.permute.xlu2 %1202 }
 0x9a8   :  { %v1208_v41 = vsel %vm388_vm2, %v1203_v18, 0 }
 0x9aa   :  { %v1966_v15 = vpop.eup %1965 }
 0x9ab   :  { %v1065_v16 = vsel %vm315_vm1, %v1966_v15, 0.0 }
 0x9ac   :  { %1066 = vadd.xlane.f32.xlu1 %v1065_v16 }
 0x9af   :  { %v1286_v19 = vpop.permute.xlu2 %1285 }
 0x9b7   :  { %1080 = vrot.lane.b32.xlu0 %v2717_v34, %s2344_s5 }
 0x9c5   :  { %1287 = vrot.lane.b32.xlu1 %v2717_v34, %s2350_s29 }
 0x9e8   :  { %v1058_v22 = vpop.xlane.xlu2 %1057 }
 0x9e9   :  { %v1060_v28 = vsub.f32 %v1050_v45, %v1058_v22 }
 0x9eb   :  { %v1063_v29 = vmul.f32 1.442695, %v1060_v28 }
 0x9ef   :  { %1182 = vmax.xlane.f32.xlu1 %v1181_v17  ;;  %v1004_v17 = vld [vmem:[%s2912_s14] sm:$0xf] }
 0x9f0   :  { %v1224_v58 = vpop.permute.xlu2 %1223  ;;  %v1269_v18 = vsel %vm388_vm2, %v1004_v17, 0 }
 0x9f1   :  { %v1229_v63 = vsel %vm388_vm2, %v1224_v58, 0  ;;  %1278 = vmatpush.bf16.msra.mxu3 %v1269_v18 }
 0x9f8   :  { %v1309_v13 = vpop.permute.xlu2 %1308 }
 0xa08   :  { %1310 = vrot.lane.b32.xlu1 %v2722_v40, %s2350_s29 }
 0xa16   :  { %v1180_v24 = vpop.xlane.xlu0 %1179 }
 0xa17   :  { %v1184_v25 = vsub.f32 %v1149_v10, %v1180_v24 }
 0xa19   :  { %v1186_v23 = vmul.f32 1.442695, %v1184_v25 }
 0xa1b   :  { %1967 = vpow2.f32 %v1186_v23 }
 0xa1f   :  { %v1067_v30 = vpop.xlane.xlu1 %1066 }
 0xa20   :  { %1969 = vrcp.f32 %v1067_v30 }
 0xa21   :  { %v1968_v31 = vpop.eup %1967  ;;  %1971 = vpow2.f32 %v1063_v29 }
 0xa22   :  { %v1190_v32 = vsel %vm315_vm1, %v1968_v31, 0.0 }
 0xa23   :  { %1191 = vadd.xlane.f32.xlu0 %v1190_v32 }
 0xa26   :  { %v1970_v33 = vpop.eup %1969 }
 0xa27   :  { %v1972_v35 = vpop.eup %1971  ;;  %v1073_v37 = vmul.f32 %v1970_v33, %v1966_v15 }
 0xa28   :  { %v1068_v39 = vsel %vm315_vm1, %v1972_v35, 0.0 }
 0xa29   :  { %v1081_v38 = vpop.permute.xlu0 %1080  ;;  %v1075_v36 = vpack.c.bf16 %v1073_v37, %v1073_v37 }
 0xa2a   :  { %v1086_v20 = vsel %vm388_vm2, %v1081_v38, 0 }
 0xa2b   :  { %1095 = vmatpush.bf16.msra.mxu0 %v1086_v20  ;;  %1069 = vadd.xlane.f32.xlu0 %v1068_v39 }
 0xa2e   :  { %1833 = vmatmul.msk.bf16.vlgmr.msra.gmra.mxu0 %vm315_vm1, %v1075_v36 }
 0xa2f   :  { %1217 = vmatpush.bf16.msrb.mxu0 %v1208_v41 }
 0xa37   :  { %v1288_v42 = vpop.permute.xlu1 %1287 }
 0xa38   :  { %v1293_v43 = vsel %vm315_vm1, %v1288_v42, 0 }
 0xa39   :  { %1302 = vmatpush.bf16.xpose.msra.mxu0 %v1293_v43 }
 0xa3f   :  { %1104 = vrot.lane.b32.xlu0 %v2722_v40, %s2344_s5 }
 0xa62   :  { %v1183_v44 = vpop.xlane.xlu1 %1182 }
 0xa63   :  { %v1185_v46 = vsub.f32 %v1175_v11, %v1183_v44 }
 0xa65   :  { %v1188_v47 = vmul.f32 1.442695, %v1185_v46 }
 0xa67   :  { %1973 = vpow2.f32 %v1188_v47 }
 0xa6d   :  { %v1974_v48 = vpop.eup %1973 }
 0xa6e   :  { %v1193_v49 = vsel %vm315_vm1, %v1974_v48, 0.0 }
 0xa6f   :  { %1194 = vadd.xlane.f32.xlu0 %v1193_v49 }
 0xa7a   :  { %v1311_v0 = vpop.permute.xlu1 %1310 }
 0xa7b   :  { %v1316_v45 = vsel %vm315_vm1, %v1311_v0, 0 }
 0xa83   :  { %1355 = vrot.lane.b32.xlu0 %v2717_v34, %s2348_s22 }
 0xa8b   :  { %1422 = vrot.lane.b32.xlu0 %v2717_v34, %s2353_s30 }
 0xa93   :  { %1445 = vrot.lane.b32.xlu0 %v2722_v40, %s2353_s30 }
 0xa96   :  { %v1192_v50 = vpop.xlane.xlu0 %1191 }
 0xa97   :  { %1975 = vrcp.f32 %v1192_v50 }
 0xa9b   :  { %1420 = vrot.lane.b32.xlu0 %v2727_v3, %s2353_s30 }
 0xa9d   :  { %v1976_v51 = vpop.eup %1975 }
 0xa9e   :  { %v1198_v53 = vmul.f32 %v1976_v51, %v1968_v31  ;;  %v1070_v55 = vpop.xlane.xlu0 %1069 }
 0xa9f   :  { %1977 = vrcp.f32 %v1070_v55 }
 0xaa0   :  { %v1200_v54 = vpack.c.bf16 %v1198_v53, %v1198_v53  ;;  %v1006_v53 = vld [vmem:[%s2912_s14 + $0x8] sm:$0xf] }
 0xaa2   :  { %1837 = vmatmul.msk.bf16.vlgmr.msrb.gmra.mxu0 %vm315_vm1, %v1200_v54  ;;  %v1402_v54 = vsel %vm388_vm2, %v1006_v53, 0  ;;  %v1920_v53 = vld [vmem:[#allocation12] ss:$0 sm:$0xff] }
 0xaa3   :  { %1411 = vmatpush.bf16.msrb.mxu0 %v1402_v54 }
 0xaa5   :  { %v1978_v57 = vpop.eup %1977 }
 0xaa6   :  { %v1074_v60 = vmul.f32 %v1978_v57, %v1972_v35 }
 0xaa8   :  { %v1076_v1 = vpack.c.bf16 %v1074_v60, %v1074_v60 }
 0xaab   :  { %v1097_v56 = vpop.f32.mrf.mxu0 }
 0xab1   :  { %v1105_v61 = vpop.permute.xlu0 %1104 }
 0xab2   :  { %v1110_v62 = vsel %vm388_vm2, %v1105_v61, 0  ;;  %1841 = vmatmul.msk.bf16.vlgmr.msra.gmra.mxu0 %vm315_vm1, %v1286_v19 }
 0xab3   :  { %v1099_v3 = vpop.f32.mrf.mxu0  ;;  %1119 = vmatpush.bf16.msra.mxu1 %v1110_v62 }
 0xab6   :  { %1834 = vmatmul.msk.bf16.vlgmr.msra.gmra.mxu1 %vm315_vm1, %v1076_v1 }
 0xab7   :  { %1238 = vmatpush.bf16.msrb.mxu1 %v1229_v63 }
 0xabb   :  { %1325 = vmatpush.bf16.xpose.msra.mxu1 %v1316_v45 }
 0xae2   :  { %v1195_v7 = vpop.xlane.xlu0 %1194 }
 0xae3   :  { %1979 = vrcp.f32 %v1195_v7 }
 0xae9   :  { %v1980_v8 = vpop.eup %1979 }
 0xaea   :  { %v1199_v9 = vmul.f32 %v1980_v8, %v1974_v48 }
 0xaec   :  { %v1201_v10 = vpack.c.bf16 %v1199_v9, %v1199_v9 }
 0xaee   :  { %1838 = vmatmul.msk.bf16.vlgmr.msrb.gmra.mxu1 %vm315_vm1, %v1201_v10 }
 0xaf5   :  { %v1356_v21 = vpop.permute.xlu0 %1355 }
 0xaf6   :  { %v1361_v12 = vsel %vm388_vm2, %v1356_v21, 0 }
 0xaf7   :  { %1370 = vmatpush.bf16.msra.mxu2 %v1361_v12 }
 0xafd   :  { %v1423_v14 = vpop.permute.xlu0 %1422 }
 0xafe   :  { %v1428_v15 = vsel %vm315_vm1, %v1423_v14, 0  ;;  %1842 = vmatmul.msk.bf16.vlgmr.msra.gmra.mxu1 %vm315_vm1, %v1309_v13 }
 0xaff   :  { %1437 = vmatpush.bf16.xpose.msrb.mxu1 %v1428_v15 }
 0xb05   :  { %v1446_v16 = vpop.permute.xlu0 %1445 }
 0xb06   :  { %v1451_v35 = vsel %vm315_vm1, %v1446_v16, 0 }
 0xb0d   :  { %v1421_v11 = vpop.permute.xlu0 %1420 }
 0xb0e   :  { %1846 = vmatmul.msk.bf16.vlgmr.msrb.gmra.mxu1 %vm315_vm1, %v1421_v11 }
 0xb1f   :  { %v1219_v19 = vpop.f32.mrf.mxu0 }
 0xb27   :  { %v1221_v22 = vpop.f32.mrf.mxu0 }
 0xb2f   :  { %v1304_v24 = vpop.f32.mrf.mxu0 }
 0xb30   :  { %v1305_v25 = vadd.f32 %v1304_v24, %v2743_v59 }
 0xb32   :  { %v1331_v28 = vsel %vm315_vm1, %v1305_v25, -inf }
 0xb33   :  { %1332 = vmax.xlane.f32.xlu1 %v1331_v28  ;;  %v1121_v23 = vpop.f32.mrf.mxu1 }
 0xb34   :  { %v1125_v29 = vpack.c.bf16 %v1121_v23, %v1097_v56 }
 0xb36   :  { %1840 = vmatmul.msk.bf16.vlgmr.msra.gmra.mxu3 %vm315_vm1, %v1125_v29 }
 0xb37   :  { %v1306_v30 = vpop.f32.mrf.mxu0 }
 0xb3b   :  { %v1123_v31 = vpop.f32.mrf.mxu1 }
 0xb4c   :  { %1443 = vrot.lane.b32.xlu1 %v2732_v52, %s2353_s30 }
 0xb6b   :  { %v1240_v32 = vpop.f32.mrf.mxu1 }
 0xb6c   :  { %v1244_v33 = vpack.c.bf16 %v1240_v32, %v1219_v19 }
 0xb6e   :  { %1839 = vmatmul.msk.bf16.vlgmr.msrb.gmra.mxu2 %vm315_vm1, %v1244_v33 }
 0xb6f   :  { %1460 = vmatpush.bf16.xpose.msrb.mxu2 %v1451_v35 }
 0xb73   :  { %v1242_v37 = vpop.f32.mrf.mxu1 }
 0xb7b   :  { %v1327_v38 = vpop.f32.mrf.mxu1 }
 0xb7c   :  { %v1328_v48 = vadd.f32 %v1327_v38, %v2754_v4 }
 0xb7e   :  { %v1334_v49 = vsel %vm315_vm1, %v1328_v48, -inf }
 0xb83   :  { %v1329_v20 = vpop.f32.mrf.mxu1 }
 0xb8b   :  { %v1439_v39 = vpop.f32.mrf.mxu1 }
 0xb8c   :  { %v1440_v41 = vadd.f32 %v1439_v39, %v2743_v59 }
 0xb8e   :  { %v1466_v36 = vsel %vm315_vm1, %v1440_v41, -inf }
 0xb8f   :  { %1467 = vmax.xlane.f32.xlu1 %v1466_v36 }
 0xb93   :  { %v1441_v42 = vpop.f32.mrf.mxu1 }
 0xba6   :  { %v1333_v43 = vpop.xlane.xlu1 %1332 }
 0xba7   :  { %v1337_v44 = vsub.f32 %v1305_v25, %v1333_v43 }
 0xba8   :  { %1511 = vrot.lane.b32.xlu1 %v2722_v40, %s2352_s17 }
 0xba9   :  { %v1339_v52 = vmul.f32 1.442695, %v1337_v44 }
 0xbab   :  { %1981 = vpow2.f32 %v1339_v52 }
 0xbb1   :  { %v1982_v46 = vpop.eup %1981 }
 0xbb2   :  { %v1343_v47 = vsel %vm315_vm1, %v1982_v46, 0.0 }
 0xbb3   :  { %1344 = vadd.xlane.f32.xlu2 %v1343_v47 }
 0xbb9   :  { %v1280_v59 = vpop.f32.mrf.mxu3 }
 0xbbb   :  { %1335 = vmax.xlane.f32.xlu2 %v1334_v49 }
 0xbbe   :  { %v1444_v55 = vpop.permute.xlu1 %1443 }
 0xbc1   :  { %v1282_v24 = vpop.f32.mrf.mxu3 }
 0xbd3   :  { %1376 = vrot.lane.b32.xlu2 %v2722_v40, %s2348_s22 }
 0xbf1   :  { %v1260_v50 = vpop.f32.mrf.mxu2 }
 0xbf2   :  { %v2825_v51 = vadd.f32 %v1280_v59, %v1260_v50 }
 0xbf9   :  { %v1262_v21 = vpop.f32.mrf.mxu2 }
 0xc02   :  { %v1468_v56 = vpop.xlane.xlu1 %1467 }
 0xc03   :  { %v1472_v3 = vsub.f32 %v1440_v41, %v1468_v56 }
 0xc05   :  { %v1474_v45 = vmul.f32 1.442695, %v1472_v3 }
 0xc1a   :  { %v1512_v57 = vpop.permute.xlu1 %1511 }
 0xc1b   :  { %v1517_v58 = vsel %vm388_vm2, %v1512_v57, 0  ;;  %v1283_v57 = vadd.f32 %v1282_v24, %v1262_v21 }
 0xc1c   :  { %1526 = vmatpush.bf16.msra.mxu0 %v1517_v58 }
 0xc26   :  { %v1345_v60 = vpop.xlane.xlu2 %1344 }
 0xc27   :  { %1983 = vrcp.f32 %v1345_v60 }
 0xc2d   :  { %v1984_v40 = vpop.eup %1983 }
 0xc2e   :  { %v1351_v61 = vmul.f32 %v1984_v40, %v1982_v46  ;;  %v1336_v62 = vpop.xlane.xlu2 %1335 }
 0xc2f   :  { %v1338_v63 = vsub.f32 %v1328_v48, %v1336_v62 }
 0xc30   :  { %v1353_v0 = vpack.c.bf16 %v1351_v61, %v1351_v61 }
 0xc31   :  { %v1341_v1 = vmul.f32 1.442695, %v1338_v63 }
 0xc32   :  { %1843 = vmatmul.msk.bf16.vlgmr.msra.gmra.mxu2 %vm315_vm1, %v1353_v0 }
 0xc33   :  { %1985 = vpow2.f32 %v1341_v1 }
 0xc34   :  { %1987 = vpow2.f32 %v1474_v45 }
 0xc36   :  { %v1377_v5 = vpop.permute.xlu2 %1376 }
 0xc37   :  { %v1382_v6 = vsel %vm388_vm2, %v1377_v5, 0 }
 0xc38   :  { %1391 = vmatpush.bf16.msrb.mxu3 %v1382_v6 }
 0xc39   :  { %v1986_v7 = vpop.eup %1985 }
 0xc3a   :  { %v1346_v8 = vsel %vm315_vm1, %v1986_v7, 0.0  ;;  %v1988_v9 = vpop.eup %1987 }
 0xc3b   :  { %1347 = vadd.xlane.f32.xlu0 %v1346_v8  ;;  %v1478_v10 = vsel %vm315_vm1, %v1988_v9, 0.0 }
 0xc42   :  { %1847 = vmatmul.msk.bf16.vlgmr.msrb.gmra.mxu2 %vm315_vm1, %v1444_v55 }
 0xc43   :  { %1479 = vadd.xlane.f32.xlu0 %v1478_v10 }
 0xcae   :  { %v1348_v12 = vpop.xlane.xlu0 %1347 }
 0xcaf   :  { %1989 = vrcp.f32 %v1348_v12 }
 0xcb5   :  { %v1990_v13 = vpop.eup %1989  ;;  %v1372_v14 = vpop.f32.mrf.mxu2 }
 0xcb6   :  { %v1352_v15 = vmul.f32 %v1990_v13, %v1986_v7 }
 0xcb8   :  { %v1354_v16 = vpack.c.bf16 %v1352_v15, %v1352_v15  ;;  %v1883_v15 = vld [vmem:[%s2916_s18] sm:$0xff] }
 0xcba   :  { %1844 = vmatmul.msk.bf16.vlgmr.msrb.gmra.mxu3 %vm315_vm1, %v1354_v16 }
 0xcbd   :  { %v1374_v11 = vpop.f32.mrf.mxu2 }
 0xcc5   :  { %v1462_v17 = vpop.f32.mrf.mxu2 }
 0xcc6   :  { %v1463_v18 = vadd.f32 %v1462_v17, %v2754_v4  ;;  %v1480_v4 = vpop.xlane.xlu0 %1479 }
 0xcc8   :  { %v1469_v19 = vsel %vm315_vm1, %v1463_v18, -inf }
 0xcc9   :  { %1470 = vmax.xlane.f32.xlu2 %v1469_v19 }
 0xccd   :  { %v1464_v22 = vpop.f32.mrf.mxu2 }
 0xd3c   :  { %v1471_v25 = vpop.xlane.xlu2 %1470 }
 0xd3d   :  { %v1473_v28 = vsub.f32 %v1463_v18, %v1471_v25  ;;  %v1393_v23 = vpop.f32.mrf.mxu3 }
 0xd3e   :  { %v1397_v29 = vpack.c.bf16 %v1393_v23, %v1372_v14 }
 0xd3f   :  { %v1476_v30 = vmul.f32 1.442695, %v1473_v28 }
 0xd40   :  { %1845 = vmatmul.msk.bf16.vlgmr.msrb.gmra.mxu0 %vm315_vm1, %v1397_v29 }
 0xd41   :  { %1991 = vpow2.f32 %v1476_v30 }
 0xd45   :  { %v1395_v31 = vpop.f32.mrf.mxu3 }
 0xd47   :  { %v1992_v32 = vpop.eup %1991 }
 0xd48   :  { %v1481_v33 = vsel %vm315_vm1, %v1992_v32, 0.0 }
 0xd49   :  { %1482 = vadd.xlane.f32.xlu0 %v1481_v33 }
 0xd5d   :  { %1490 = vrot.lane.b32.xlu0 %v2717_v34, %s2352_s17  ;;  %v1007_v34 = vld [vmem:[%s2912_s14 + $0xc] sm:$0xf] }
 0xd5e   :  { %v1537_v46 = vsel %vm388_vm2, %v1007_v34, 0  ;;  %v1887_v34 = vld [vmem:[%s2918_s20 + $0x10] sm:$0xff] }
 0xd5f   :  { %1546 = vmatpush.bf16.msra.mxu1 %v1537_v46  ;;  %v1886_v46 = vld [vmem:[%s2918_s20 + $0x8] sm:$0xff] }
 0xdbc   :  { %v1483_v35 = vpop.xlane.xlu0 %1482 }
 0xdbd   :  { %1993 = vrcp.f32 %v1483_v35  ;;  %v1413_v37 = vpop.f32.mrf.mxu0 }
 0xdbe   :  { %v1418_v38 = vadd.f32 %v1413_v37, %v2825_v51  ;;  %1995 = vrcp.f32 %v1480_v4  ;;  %v1921_v4 = vld [vmem:[#allocation13] ss:$0 sm:$0xff] }
 0xdc3   :  { %v1994_v20 = vpop.eup %1993 }
 0xdc4   :  { %v1487_v39 = vmul.f32 %v1994_v20, %v1992_v32  ;;  %v1996_v36 = vpop.eup %1995  ;;  %v1922_v20 = vld [vmem:[#allocation15] ss:$0 sm:$0xff] }
 0xdc5   :  { %v1486_v42 = vmul.f32 %v1996_v36, %v1988_v9  ;;  %v1415_v47 = vpop.f32.mrf.mxu0 }
 0xdc6   :  { %v1489_v41 = vpack.c.bf16 %v1487_v39, %v1487_v39  ;;  %v1419_v60 = vadd.f32 %v1415_v47, %v1283_v57  ;;  %v1885_v47 = vld [vmem:[%s2918_s20] sm:$0xff] }
 0xdc7   :  { %v1488_v52 = vpack.c.bf16 %v1486_v42, %v1486_v42 }
 0xdc8   :  { %1849 = vmatmul.msk.bf16.vlgmr.msra.gmra.mxu0 %vm315_vm1, %v1489_v41 }
 0xdcf   :  { %v1491_v43 = vpop.permute.xlu0 %1490 }
 0xdd0   :  { %v1496_v44 = vsel %vm388_vm2, %v1491_v43, 0 }
 0xdd1   :  { %1505 = vmatpush.bf16.msra.mxu3 %v1496_v44 }
 0xdd4   :  { %1848 = vmatmul.msk.bf16.vlgmr.msra.gmra.mxu3 %vm315_vm1, %v1488_v52  ;;  %v1888_v52 = vld [vmem:[%s2918_s20 + $0x18] sm:$0xff] }
 0xdd5   :  { %1703 = vmatpush.bf16.msrb.mxu3 %v1888_v52 }
 0xdd9   :  { %1704 = vmatpush.bf16.msrb.mxu3 %v1887_v34 }
 0xddd   :  { %1705 = vmatpush.bf16.msrb.mxu3 %v1886_v46 }
 0xde1   :  { %1706 = vmatpush.bf16.msrb.mxu3 %v1885_v47 }
 0xe45   :  { %v1528_v48 = vpop.f32.mrf.mxu0 }
 0xe4d   :  { %v1530_v49 = vpop.f32.mrf.mxu0 }
 0xe4e   :  { %v1923_v49 = vld [vmem:[#allocation16] ss:$0 sm:$0xff] }
 0xe57   :  { %v1507_v59 = vpop.f32.mrf.mxu3 }
 0xe58   :  { %v1532_v50 = vpack.c.bf16 %v1528_v48, %v1507_v59 }
 0xe5a   :  { %1850 = vmatmul.msk.bf16.vlgmr.msra.gmra.mxu1 %vm315_vm1, %v1532_v50  ;;  %vm1695_vm1 = vcmask 523264  }
 0xe5f   :  { %v1509_v51 = vpop.f32.mrf.mxu3 }
 0xed7   :  { %v1548_v54 = vpop.f32.mrf.mxu1 }
 0xed8   :  { %v1553_v55 = vadd.f32 %v1548_v54, %v1418_v38 }
 0xeda   :  { %v1558_v56 = vadd.f32 %v1920_v53, %v1553_v55 }
 0xedc   :  { %v1560_v58 = vadd.f32 %v1558_v56, %v2709_v26  ;;  %v1924_v56 = vld [vmem:[#allocation18] ss:$0 sm:$0xff] }
 0xede   :  { %v1564_v40 = vsel %vm279_vm0, %v1560_v58, 0.0 }
 0xedf   :  { %1565 = vadd.xlane.f32.xlu2 %v1564_v40  ;;  %v1550_v61 = vpop.f32.mrf.mxu1 }
 0xee0   :  { %v1554_v62 = vadd.f32 %v1550_v61, %v1419_v60 }
 0xee2   :  { %v1559_v63 = vadd.f32 %v1920_v53, %v1554_v62 }
 0xee4   :  { %v1561_v0 = vadd.f32 %v1559_v63, %v2711_v27  ;;  %v1884_v27 = vld [vmem:[%s2916_s18 + $0x8] sm:$0xff] }
 0xee5   :  { %1648 = vmatpush.bf16.msra.mxu2 %v1884_v27 }
 0xee6   :  { %v1567_v3 = vsel %vm279_vm0, %v1561_v0, 0.0 }
 0xee7   :  { %1568 = vadd.xlane.f32.xlu2 %v1567_v3 }
 0xee9   :  { %1649 = vmatpush.bf16.msra.mxu2 %v1883_v15 }
 0xf52   :  { %v1566_v1 = vpop.xlane.xlu2 %1565 }
 0xf53   :  { %v1570_v45 = vmul.f32 %v1566_v1, %v2682_v2 }
 0xf55   :  { %v1572_v5 = vsub.f32 %v1560_v58, %v1570_v45 }
 0xf57   :  { %v1574_v6 = vmul.f32 %v1572_v5, %v1572_v5 }
 0xf59   :  { %v1576_v7 = vsel %vm279_vm0, %v1574_v6, 0.0 }
 0xf5a   :  { %1577 = vadd.xlane.f32.xlu0 %v1576_v7  ;;  %v1569_v26 = vpop.xlane.xlu2 %1568 }
 0xf5b   :  { %v1571_v8 = vmul.f32 %v1569_v26, %v2682_v2 }
 0xf5d   :  { %v1573_v9 = vsub.f32 %v1561_v0, %v1571_v8 }
 0xf5f   :  { %v1575_v10 = vmul.f32 %v1573_v9, %v1573_v9 }
 0xf61   :  { %v1579_v21 = vsel %vm279_vm0, %v1575_v10, 0.0 }
 0xf62   :  { %1580 = vadd.xlane.f32.xlu2 %v1579_v21 }
 0xfcd   :  { %v1578_v12 = vpop.xlane.xlu0 %1577 }
 0xfce   :  { %v1582_v13 = vmul.f32 %v1578_v12, %v2682_v2 }
 0xfd0   :  { %v1584_v14 = vadd.f32 1e-05, %v1582_v13 }
 0xfd2   :  { %1997 = vrsqrt.f32 %v1584_v14  ;;  %vm1592_vm11 = vweird.f32 %v1584_v14 }
 0xfd5   :  { %v1581_v16 = vpop.xlane.xlu2 %1580 }
 0xfd6   :  { %v1583_v11 = vmul.f32 %v1581_v16, %v2682_v2 }
 0xfd8   :  { %v1998_v17 = vpop.eup %1997  ;;  %v1585_v18 = vadd.f32 1e-05, %v1583_v11 }
 0xfd9   :  { %v1587_v19 = vmul.f32 %v1998_v17, %v1584_v14  ;;  %vm1593_vm10 = vweird.f32 %v1998_v17 }
 0xfda   :  { %1999 = vrsqrt.f32 %v1585_v18  ;;  %vm1594_vm12 = vmor %vm1592_vm11, %vm1593_vm10  ;;  %vm1602_vm14 = vweird.f32 %v1585_v18 }
 0xfdb   :  { %v1588_v22 = vmul.f32 %v1998_v17, %v1587_v19 }
 0xfdd   :  { %v1589_v24 = vmul.f32 0.5, %v1588_v22 }
 0xfdf   :  { %v1590_v25 = vsub.f32 1.5, %v1589_v24 }
 0xfe0   :  { %v2000_v28 = vpop.eup %1999 }
 0xfe1   :  { %v1591_v23 = vmul.f32 %v1998_v17, %v1590_v25  ;;  %v1597_v29 = vmul.f32 %v2000_v28, %v1585_v18  ;;  %vm1603_vm13 = vweird.f32 %v2000_v28 }
 0xfe2   :  { %vm1604_vm15 = vmor %vm1602_vm14, %vm1603_vm13 }
 0xfe3   :  { %v1598_v30 = vmul.f32 %v2000_v28, %v1597_v29  ;;  %v1595_v31 = vsel %vm1594_vm12, %v1998_v17, %v1591_v23 }
 0xfe4   :  { %v1606_v35 = vmul.f32 %v1595_v31, %v1572_v5 }
 0xfe5   :  { %v1599_v32 = vmul.f32 0.5, %v1598_v30  ;;  %v1926_v30 = vld [vmem:[#allocation21] ss:$0 sm:$0xff] }
 0xfe6   :  { %v1611_v39 = vmul.f32 %v1921_v4, %v1606_v35 }
 0xfe7   :  { %v1600_v33 = vsub.f32 1.5, %v1599_v32 }
 0xfe8   :  { %v1616_v42 = vadd.f32 %v1922_v20, %v1611_v39 }
 0xfe9   :  { %v1601_v37 = vmul.f32 %v2000_v28, %v1600_v33 }
 0xfeb   :  { %v1605_v38 = vsel %vm1604_vm15, %v2000_v28, %v1601_v37  ;;  %v1925_v28 = vld [vmem:[#allocation19] ss:$0 sm:$0xff] }
 0xfec   :  { %v1607_v41 = vmul.f32 %v1605_v38, %v1573_v9 }
 0xfee   :  { %v1612_v36 = vmul.f32 %v1921_v4, %v1607_v41 }
 0xff0   :  { %v1617_v43 = vadd.f32 %v1922_v20, %v1612_v36 }
 0xff2   :  { %v1622_v44 = vpack.c.bf16 %v1617_v43, %v1616_v42 }
 0xff4   :  { %1859 = vmatmul.msk.bf16.vlgmr.msra.gmra.mxu2 %vm279_vm0, %v1622_v44 }
0x1077   :  { %v1651_v48 = vpop.f32.mrf.mxu2 }
0x1078   :  { %v1652_v59 = vadd.f32 %v1923_v49, %v1651_v48 }
0x107a   :  { %v1656_v53 = vmax.f32 %v1652_v59, 0.0 }
0x107f   :  { %v1653_v50 = vpop.f32.mrf.mxu2 }
0x1080   :  { %v1654_v51 = vadd.f32 %v1923_v49, %v1653_v50 }
0x1082   :  { %v1657_v54 = vmax.f32 %v1654_v51, 0.0 }
0x1084   :  { %v1666_v55 = vpack.c.bf16 %v1657_v54, %v1656_v53 }
0x1086   :  { %1876 = vmatmul.msk.bf16.vlgmr.msrb.gmra.mxu3 %vm1695_vm1, %v1666_v55 }
0x1109   :  { %v1708_v57 = vpop.f32.mrf.mxu3 }
0x110a   :  { %v1709_v58 = vadd.f32 %v1924_v56, %v1708_v57 }
0x110c   :  { %v1713_v60 = vadd.f32 %v1709_v58, %v1616_v42 }
0x110e   :  { %v1717_v40 = vsel %vm279_vm0, %v1713_v60, 0.0 }
0x110f   :  { %1718 = vadd.xlane.f32.xlu1 %v1717_v40 }
0x1111   :  { %v1710_v61 = vpop.f32.mrf.mxu3 }
0x1112   :  { %v1711_v62 = vadd.f32 %v1924_v56, %v1710_v61 }
0x1114   :  { %v1714_v63 = vadd.f32 %v1711_v62, %v1617_v43 }
0x1116   :  { %v1720_v0 = vsel %vm279_vm0, %v1714_v63, 0.0 }
0x1117   :  { %1721 = vadd.xlane.f32.xlu2 %v1720_v0 }
0x1182   :  { %v1719_v3 = vpop.xlane.xlu1 %1718 }
0x1183   :  { %v1723_v1 = vmul.f32 %v1719_v3, %v2682_v2 }
0x1185   :  { %v1725_v45 = vsub.f32 %v1713_v60, %v1723_v1 }
0x1187   :  { %v1727_v5 = vmul.f32 %v1725_v45, %v1725_v45 }
0x1189   :  { %v1729_v6 = vsel %vm279_vm0, %v1727_v5, 0.0 }
0x118a   :  { %v1722_v7 = vpop.xlane.xlu2 %1721  ;;  %1730 = vadd.xlane.f32.xlu2 %v1729_v6 }
0x118b   :  { %v1724_v26 = vmul.f32 %v1722_v7, %v2682_v2 }
0x118d   :  { %v1726_v8 = vsub.f32 %v1714_v63, %v1724_v26 }
0x118f   :  { %v1728_v9 = vmul.f32 %v1726_v8, %v1726_v8 }
0x1191   :  { %v1732_v10 = vsel %vm279_vm0, %v1728_v9, 0.0 }
0x1192   :  { %1733 = vadd.xlane.f32.xlu2 %v1732_v10 }
0x11fd   :  { %v1731_v21 = vpop.xlane.xlu2 %1730 }
0x11fe   :  { %v1735_v27 = vmul.f32 %v1731_v21, %v2682_v2 }
0x1200   :  { %v1737_v12 = vadd.f32 1e-05, %v1735_v27 }
0x1202   :  { %2001 = vrsqrt.f32 %v1737_v12  ;;  %vm1745_vm3 = vweird.f32 %v1737_v12 }
0x1205   :  { %v1734_v13 = vpop.xlane.xlu2 %1733 }
0x1206   :  { %v1736_v14 = vmul.f32 %v1734_v13, %v2682_v2 }
0x1208   :  { %v2002_v15 = vpop.eup %2001  ;;  %v1738_v16 = vadd.f32 1e-05, %v1736_v14 }
0x1209   :  { %v1740_v11 = vmul.f32 %v2002_v15, %v1737_v12  ;;  %vm1746_vm2 = vweird.f32 %v2002_v15 }
0x120a   :  { %2003 = vrsqrt.f32 %v1738_v16  ;;  %vm1747_vm4 = vmor %vm1745_vm3, %vm1746_vm2  ;;  %vm1755_vm6 = vweird.f32 %v1738_v16 }
0x120b   :  { %v1741_v17 = vmul.f32 %v2002_v15, %v1740_v11 }
0x120d   :  { %v1742_v18 = vmul.f32 0.5, %v1741_v17 }
0x120f   :  { %v1743_v19 = vsub.f32 1.5, %v1742_v18 }
0x1210   :  { %v2004_v22 = vpop.eup %2003 }
0x1211   :  { %v1744_v24 = vmul.f32 %v2002_v15, %v1743_v19  ;;  %v1750_v25 = vmul.f32 %v2004_v22, %v1738_v16  ;;  %vm1756_vm5 = vweird.f32 %v2004_v22 }
0x1212   :  { %vm1757_vm7 = vmor %vm1755_vm6, %vm1756_vm5 }
0x1213   :  { %v1748_v23 = vsel %vm1747_vm4, %v2002_v15, %v1744_v24  ;;  %v1751_v29 = vmul.f32 %v2004_v22, %v1750_v25 }
0x1214   :  { %v1759_v31 = vmul.f32 %v1748_v23, %v1725_v45 }
0x1215   :  { %v1752_v32 = vmul.f32 0.5, %v1751_v29 }
0x1216   :  { %v1764_v2 = vmul.f32 %v1925_v28, %v1759_v31 }
0x1217   :  { %v1753_v33 = vsub.f32 1.5, %v1752_v32 }
0x1218   :  { %v1769_v4 = vadd.f32 %v1926_v30, %v1764_v2 }
0x1219   :  { %v1754_v35 = vmul.f32 %v2004_v22, %v1753_v33 }
0x121a   :  { %1771 = vst.msk [vmem:[%s2922_s24] sm:$0xff] %vm279_vm0, %v1769_v4 }
0x121b   :  { %v1758_v37 = vsel %vm1757_vm7, %v2004_v22, %v1754_v35 }
0x121c   :  { %v1760_v38 = vmul.f32 %v1758_v37, %v1726_v8 }
0x121e   :  { %v1765_v20 = vmul.f32 %v1925_v28, %v1760_v38 }
0x1220   :  { %v1770_v39 = vadd.f32 %v1926_v30, %v1765_v20 }
0x1222   :  { %1772 = vst.msk [vmem:[%s2922_s24 + $0x8] sm:$0xff] %vm279_vm0, %v1770_v39 }
0x1223   :  { %1777 = vsyncpa [#allocation3], 1 }
0x1224   :  { %1778 = vsyncpa [#allocation5], 1 }
0x1225   :  { %1779 = vsyncpa [#allocation8], 1 }
0x1226   :  { %1780 = vsyncpa [#allocation11], 1 }
0x1227   :  { %1781 = vsyncpa [#allocation14], 1 }
0x1228   :  { %1782 = vsyncpa [#allocation17], 1 }
0x1229   :  { %1783 = vsyncpa [#allocation20], 1 }

</bundles_post_ra>
